<compile_context>
chip_gen: v6e
topology: v6e:2x2x1
jax: 0.10.0
libtpu: 0.0.40
codegen_flags: <defaults>
</compile_context>

<pallas_src>
import jax
import jax.numpy as jnp
import numpy as np
from jax.experimental import pallas as pl
from jax.experimental.pallas import tpu as pltpu

EPS = 1e-5  # nn.BatchNorm2d default


def _round_up(x, m):
    return ((x + m - 1) // m) * m


# ----------------------------------------------------------------------------
# Kernel 1: fused 1x1 Conv + (folded) BatchNorm + SiLU as a tiled matmul (cv1).
#   x2d : (M, Cin)    flattened pixels, bf16     -> tiled over M
#   w   : (Cin, Cout) folded conv weight, bf16      (VMEM resident)
#   b   : (1, Cout)   folded conv bias, f32         (VMEM resident)
# ----------------------------------------------------------------------------
def conv_bn_silu_kernel(x_ref, w_ref, b_ref, o_ref):
    y = jnp.dot(x_ref[...], w_ref[...], preferred_element_type=jnp.float32)
    y = y + b_ref[...]
    # SiLU = y * sigmoid(y); sigmoid via tanh -> a single EUP push per element.
    out = y * (0.5 * (jnp.tanh(0.5 * y) + 1.0))
    o_ref[...] = out.astype(o_ref.dtype)


def conv_bn_silu(x2d, w_eff, b_eff, out_dtype, *, tile_m=512):
    """M-tiled matmul; M is zero-padded to a multiple of the tile (cdiv-style grid)."""
    M, cin = x2d.shape
    cout = w_eff.shape[1]
    tm = min(tile_m, _round_up(M, 8))          # tile rows, multiple of 8 sublanes
    m_pad = _round_up(M, tm)
    if m_pad != M:
        x2d = jnp.pad(x2d, ((0, m_pad - M), (0, 0)))
    grid_m = m_pad // tm

    out = pl.pallas_call(
        conv_bn_silu_kernel,
        out_shape=jax.ShapeDtypeStruct((m_pad, cout), out_dtype),
        grid=(grid_m,),
        in_specs=[
            pl.BlockSpec((tm, cin), lambda i: (i, 0)),    # streamed activation tile
            pl.BlockSpec((cin, cout), lambda i: (0, 0)),  # resident folded weight
            pl.BlockSpec((1, cout), lambda i: (0, 0)),    # resident folded bias (f32)
        ],
        out_specs=pl.BlockSpec((tm, cout), lambda i: (i, 0)),
        compiler_params=pltpu.CompilerParams(
            dimension_semantics=("parallel",),
            vmem_limit_bytes=32 * 1024 * 1024),
    )(x2d, w_eff, b_eff)
    return out[:M] if m_pad != M else out


# ----------------------------------------------------------------------------
# Kernel 2: fused SPPF pooling chain + cv2 (1x1 conv + BN + SiLU).
# For each batch element:
#   y1 = maxpool5x5_s1_p2(x); y2 = mp(y1); y3 = mp(y2)   (all kept in VMEM)
#   out = SiLU(x@W2[0] + y1@W2[1] + y2@W2[2] + y3@W2[3] + b2)
# The 5x5 pool is separable (5 W-offset maxes then 5 H-offset maxes) over a
# -inf-bordered scratch buffer; only the four 2-wide border strips are filled.
# ----------------------------------------------------------------------------
def sppf_pool_cv2_kernel(x_ref, w2_ref, b2_ref, o_ref, pad_ref):
    # x_ref:  (1, H, W, C) bf16 cv1 output
    # w2_ref: (4, C, Cout) bf16 folded cv2 weight, split by concat source (resident)
    # b2_ref: (1, Cout)    f32 folded cv2 bias (resident)
    # o_ref:  (1, H, W, Cout) f32
    # pad_ref: (H+4, W+4, C) bf16 scratch (-inf border)
    _, H, W, C = x_ref.shape
    cout = o_ref.shape[-1]
    dt = pad_ref.dtype

    # Fill only the 2-wide border strips, every grid step (cheap, and stays correct
    # when the batch axis is sharded across TensorCores so program_id==0 may never
    # run on a given core).  Interior is overwritten by each pool below.
    pad_ref[0:2, :, :] = jnp.full((2, W + 4, C), -jnp.inf, dt)
    pad_ref[H + 2:H + 4, :, :] = jnp.full((2, W + 4, C), -jnp.inf, dt)
    pad_ref[:, 0:2, :] = jnp.full((H + 4, 2, C), -jnp.inf, dt)
    pad_ref[:, W + 2:W + 4, :] = jnp.full((H + 4, 2, C), -jnp.inf, dt)

    def maxpool5(arr):
        pad_ref[2:2 + H, 2:2 + W, :] = arr
        buf = pad_ref[...]
        # Separable 5x5 max: first along W (sublane shifts) ...
        row = buf[:, 0:W, :]
        for dj in range(1, 5):
            row = jnp.maximum(row, buf[:, dj:dj + W, :])
        # ... then along H (cheap leading-dim shifts).
        out = row[0:H, :, :]
        for di in range(1, 5):
            out = jnp.maximum(out, row[di:di + H, :, :])
        return out

    x = x_ref[0]
    y1 = maxpool5(x)
    y2 = maxpool5(y1)
    y3 = maxpool5(y2)

    # cv2 as four accumulated (H*W, C) x (C, Cout) matmuls -> no 4C concat to HBM.
    def mm(a, k):
        return jnp.dot(a.reshape(H * W, C), w2_ref[k],
                       preferred_element_type=jnp.float32)

    y = mm(x, 0) + mm(y1, 1) + mm(y2, 2) + mm(y3, 3)
    y = y + b2_ref[...]
    out = y * (0.5 * (jnp.tanh(0.5 * y) + 1.0))           # SiLU
    o_ref[0] = out.reshape(H, W, cout).astype(o_ref.dtype)


def sppf_pool_cv2(x_nhwc, w2_split, b2):
    N, H, W, C = x_nhwc.shape
    cout = w2_split.shape[-1]
    return pl.pallas_call(
        sppf_pool_cv2_kernel,
        out_shape=jax.ShapeDtypeStruct((N, H, W, cout), jnp.float32),
        grid=(N,),
        in_specs=[
            pl.BlockSpec((1, H, W, C), lambda n: (n, 0, 0, 0)),
            pl.BlockSpec((4, C, cout), lambda n: (0, 0, 0)),   # resident weight
            pl.BlockSpec((1, cout), lambda n: (0, 0)),         # resident bias
        ],
        out_specs=pl.BlockSpec((1, H, W, cout), lambda n: (n, 0, 0, 0)),
        scratch_shapes=[pltpu.VMEM((H + 4, W + 4, C), x_nhwc.dtype)],
        compiler_params=pltpu.CompilerParams(
            dimension_semantics=("parallel",),
            vmem_limit_bytes=32 * 1024 * 1024),
    )(x_nhwc, w2_split, b2)


# ----------------------------------------------------------------------------
# Parameter setup / folding (glue, plain JAX)
# ----------------------------------------------------------------------------
def fold_conv_bn(w, b, gamma, beta, mean, var):
    """Fold 1x1-conv weight (Cout, Cin), bias (Cout,), and BN stats into an
    equivalent (Cin, Cout) weight and (1, Cout) bias (both f32)."""
    scale = gamma / jnp.sqrt(var + EPS)
    w_eff = (w * scale[:, None]).T                # (Cin, Cout)
    b_eff = ((b - mean) * scale + beta).reshape(1, -1)
    return w_eff, b_eff


def init_sppf_params(key, ch_in, ch_out):
    c_ = ch_in // 2
    ks = jax.random.split(key, 12)

    def conv_w(k, co, ci):
        return 0.5 * jax.random.normal(k, (co, ci), jnp.float32)

    def bn(kg, kb, km, kv, c):
        gamma = 0.9 + 0.2 * jax.random.uniform(kg, (c,), jnp.float32)
        beta = 0.05 * jax.random.normal(kb, (c,), jnp.float32)
        mean = 0.1 * jax.random.normal(km, (c,), jnp.float32)
        var = 0.5 + jax.random.uniform(kv, (c,), jnp.float32)
        return gamma, beta, mean, var

    w1 = conv_w(ks[0], c_, ch_in)
    b1 = 0.1 * jax.random.normal(ks[1], (c_,), jnp.float32)
    g1, be1, m1, v1 = bn(ks[2], ks[3], ks[4], ks[5], c_)

    w2 = conv_w(ks[6], ch_out, 4 * c_)
    b2 = 0.1 * jax.random.normal(ks[7], (ch_out,), jnp.float32)
    g2, be2, m2, v2 = bn(ks[8], ks[9], ks[10], ks[11], ch_out)

    return dict(w1=w1, b1=b1, g1=g1, be1=be1, m1=m1, v1=v1,
                w2=w2, b2=b2, g2=g2, be2=be2, m2=m2, v2=v2)


# ----------------------------------------------------------------------------
# SPPF forward using the Pallas kernels
# ----------------------------------------------------------------------------
@jax.jit
def sppf_forward_pallas(x_nchw, params):
    N, Cin, H, W = x_nchw.shape
    c_ = Cin // 2

    w1e, b1e = fold_conv_bn(params["w1"], params["b1"], params["g1"],
                            params["be1"], params["m1"], params["v1"])
    w2e, b2e = fold_conv_bn(params["w2"], params["b2"], params["g2"],
                            params["be2"], params["m2"], params["v2"])

    # bf16 datapath for the matmuls / pool; biases stay f32 (added after f32 acc).
    w1b = w1e.astype(jnp.bfloat16)                        # (Cin, c_)
    w2b = w2e.reshape(4, c_, -1).astype(jnp.bfloat16)     # (4, c_, Cout), split by concat source

    # NCHW -> NHWC -> (N*H*W, Cin).
    # TODO(synk): in an NHWC end-to-end model these boundary transposes disappear;
    # they are kept here only to preserve the PyTorch NCHW interface.
    x_nhwc = jnp.transpose(x_nchw, (0, 2, 3, 1)).astype(jnp.bfloat16)
    x2d = x_nhwc.reshape(N * H * W, Cin)

    h1 = conv_bn_silu(x2d, w1b, b1e, out_dtype=jnp.bfloat16)   # (NHW, c_) bf16
    h1 = h1.reshape(N, H, W, c_)

    out_nhwc = sppf_pool_cv2(h1, w2b, b2e)                     # (N, H, W, Cout) f32
    return jnp.transpose(out_nhwc, (0, 3, 1, 2))               # back to NCHW


# ----------------------------------------------------------------------------
# Pure-JAX reference (matches the PyTorch module semantics, f32)
# ----------------------------------------------------------------------------
def sppf_forward_ref(x, p):
    def cbs(x, w, b, g, be, m, v):
        y = jnp.einsum("nchw,oc->nohw", x, w,
                       precision=jax.lax.Precision.HIGHEST) + b[None, :, None, None]
        y = (y - m[None, :, None, None]) * (g / jnp.sqrt(v + EPS))[None, :, None, None] \
            + be[None, :, None, None]
        return y * (1.0 / (1.0 + jnp.exp(-y)))

    def mp(x):
        return jax.lax.reduce_window(
            x, -jnp.inf, jax.lax.max,
            window_dimensions=(1, 1, 5, 5), window_strides=(1, 1, 1, 1),
            padding=((0, 0), (0, 0), (2, 2), (2, 2)))

    x = cbs(x, p["w1"], p["b1"], p["g1"], p["be1"], p["m1"], p["v1"])
    y1 = mp(x)
    y2 = mp(y1)
    y3 = mp(y2)
    cat = jnp.concatenate([x, y1, y2, y3], axis=1)
    return cbs(cat, p["w2"], p["b2"], p["g2"], p["be2"], p["m2"], p["v2"])


if __name__ == "__main__":
    N, CH_IN, H, W = 2, 4, 16, 16
    CH_OUT = 8

    key = jax.random.PRNGKey(0)
    kx, kp = jax.random.split(key)
    x = jax.random.normal(kx, (N, CH_IN, H, W), jnp.float32)   # NCHW like PyTorch
    params = init_sppf_params(kp, CH_IN, CH_OUT)

    out = sppf_forward_pallas(x, params)
    out = jax.block_until_ready(out)

    ref = jax.block_until_ready(sppf_forward_ref(x, params))
    assert out.shape == (N, CH_OUT, H, W), out.shape
    # Tolerance accounts for the bf16 activation/weight datapath (f32 accumulation).
    np.testing.assert_allclose(np.asarray(out), np.asarray(ref), rtol=2e-2, atol=2e-2)

    print("KERNEL_OK")
</pallas_src>

<mosaic_0001>
module attributes {stable_mosaic.version = 11 : i64} {
  func.func @sppf_pool_cv2_kernel(%arg0: i32, %arg1: memref<1x16x16x2xbf16, #tpu.memory_space<vmem>>, %arg2: memref<4x2x8xbf16, #tpu.memory_space<vmem>>, %arg3: memref<1x8xf32, #tpu.memory_space<vmem>>, %arg4: memref<1x16x16x8xf32, #tpu.memory_space<vmem>>, %arg5: memref<20x20x2xbf16, #tpu.memory_space<vmem>>) attributes {dimension_semantics = [#tpu.dimension_semantics<parallel>], iteration_bounds = array<i64: 2>, scalar_prefetch = 0 : i64, scratch_operands = 1 : i64, tpu.core_type = #tpu.core_type<tc>, window_params = [{transform_indices = @transform_0, window_bounds = array<i64: 1, 16, 16, 2>}, {pipeline_mode = #tpu.pipeline_mode<synchronous>, transform_indices = @transform_1, window_bounds = array<i64: 4, 2, 8>}, {pipeline_mode = #tpu.pipeline_mode<synchronous>, transform_indices = @transform_2, window_bounds = array<i64: 1, 8>}, {transform_indices = @transform_3, window_bounds = array<i64: 1, 16, 16, 8>}]} {
    %cst = arith.constant 0xFF80 : bf16
    %0 = vector.broadcast %cst : bf16 to vector<2x20x2xbf16>
    %c0 = arith.constant 0 : index
    %c0_0 = arith.constant 0 : index
    %c0_1 = arith.constant 0 : index
    %1 = vector.load %arg5[%c0, %c0_0, %c0_1] : memref<20x20x2xbf16, #tpu.memory_space<vmem>>, vector<2x20x2xbf16>
    tpu.vector_store %arg5[%c0, %c0_0, %c0_1], %0 {strides = array<i32>} : memref<20x20x2xbf16, #tpu.memory_space<vmem>>, vector<2x20x2xbf16>,
    %cst_2 = arith.constant 0xFF80 : bf16
    %2 = vector.broadcast %cst_2 : bf16 to vector<2x20x2xbf16>
    %c18 = arith.constant 18 : index
    %c0_3 = arith.constant 0 : index
    %c0_4 = arith.constant 0 : index
    %3 = vector.load %arg5[%c18, %c0_3, %c0_4] : memref<20x20x2xbf16, #tpu.memory_space<vmem>>, vector<2x20x2xbf16>
    tpu.vector_store %arg5[%c18, %c0_3, %c0_4], %2 {strides = array<i32>} : memref<20x20x2xbf16, #tpu.memory_space<vmem>>, vector<2x20x2xbf16>,
    %cst_5 = arith.constant 0xFF80 : bf16
    %4 = vector.broadcast %cst_5 : bf16 to vector<20x2x2xbf16>
    %c0_6 = arith.constant 0 : index
    %c0_7 = arith.constant 0 : index
    %c0_8 = arith.constant 0 : index
    %5 = vector.load %arg5[%c0_6, %c0_7, %c0_8] : memref<20x20x2xbf16, #tpu.memory_space<vmem>>, vector<20x2x2xbf16>
    tpu.vector_store %arg5[%c0_6, %c0_7, %c0_8], %4 {strides = array<i32>} : memref<20x20x2xbf16, #tpu.memory_space<vmem>>, vector<20x2x2xbf16>,
    %cst_9 = arith.constant 0xFF80 : bf16
    %6 = vector.broadcast %cst_9 : bf16 to vector<20x2x2xbf16>
    %c0_10 = arith.constant 0 : index
    %c18_11 = arith.constant 18 : index
    %c0_12 = arith.constant 0 : index
    %7 = vector.load %arg5[%c0_10, %c18_11, %c0_12] : memref<20x20x2xbf16, #tpu.memory_space<vmem>>, vector<20x2x2xbf16>
    tpu.vector_store %arg5[%c0_10, %c18_11, %c0_12], %6 {strides = array<i32>} : memref<20x20x2xbf16, #tpu.memory_space<vmem>>, vector<20x2x2xbf16>,
    %c0_13 = arith.constant 0 : index
    %c0_14 = arith.constant 0 : index
    %c0_15 = arith.constant 0 : index
    %c0_16 = arith.constant 0 : index
    %8 = vector.load %arg1[%c0_13, %c0_14, %c0_15, %c0_16] : memref<1x16x16x2xbf16, #tpu.memory_space<vmem>>, vector<1x16x16x2xbf16>
    %9 = vector.shape_cast %8 : vector<1x16x16x2xbf16> to vector<16x16x2xbf16>
    %c2 = arith.constant 2 : index
    %c2_17 = arith.constant 2 : index
    %c0_18 = arith.constant 0 : index
    %10 = vector.load %arg5[%c2, %c2_17, %c0_18] : memref<20x20x2xbf16, #tpu.memory_space<vmem>>, vector<16x16x2xbf16>
    tpu.vector_store %arg5[%c2, %c2_17, %c0_18], %9 {strides = array<i32>} : memref<20x20x2xbf16, #tpu.memory_space<vmem>>, vector<16x16x2xbf16>,
    %c0_19 = arith.constant 0 : index
    %c0_20 = arith.constant 0 : index
    %c0_21 = arith.constant 0 : index
    %11 = vector.load %arg5[%c0_19, %c0_20, %c0_21] : memref<20x20x2xbf16, #tpu.memory_space<vmem>>, vector<20x20x2xbf16>
    %12 = vector.extract_strided_slice %11 {offsets = [0, 0, 0], sizes = [20, 16, 2], strides = [1, 1, 1]} : vector<20x20x2xbf16> to vector<20x16x2xbf16>
    %13 = vector.extract_strided_slice %11 {offsets = [0, 1, 0], sizes = [20, 16, 2], strides = [1, 1, 1]} : vector<20x20x2xbf16> to vector<20x16x2xbf16>
    %14 = arith.maximumf %12, %13 : vector<20x16x2xbf16>
    %15 = vector.extract_strided_slice %11 {offsets = [0, 2, 0], sizes = [20, 16, 2], strides = [1, 1, 1]} : vector<20x20x2xbf16> to vector<20x16x2xbf16>
    %16 = arith.maximumf %14, %15 : vector<20x16x2xbf16>
    %17 = vector.extract_strided_slice %11 {offsets = [0, 3, 0], sizes = [20, 16, 2], strides = [1, 1, 1]} : vector<20x20x2xbf16> to vector<20x16x2xbf16>
    %18 = arith.maximumf %16, %17 : vector<20x16x2xbf16>
    %19 = vector.extract_strided_slice %11 {offsets = [0, 4, 0], sizes = [20, 16, 2], strides = [1, 1, 1]} : vector<20x20x2xbf16> to vector<20x16x2xbf16>
    %20 = arith.maximumf %18, %19 : vector<20x16x2xbf16>
    %21 = vector.extract_strided_slice %20 {offsets = [0, 0, 0], sizes = [16, 16, 2], strides = [1, 1, 1]} : vector<20x16x2xbf16> to vector<16x16x2xbf16>
    %22 = vector.extract_strided_slice %20 {offsets = [1, 0, 0], sizes = [16, 16, 2], strides = [1, 1, 1]} : vector<20x16x2xbf16> to vector<16x16x2xbf16>
    %23 = arith.maximumf %21, %22 : vector<16x16x2xbf16>
    %24 = vector.extract_strided_slice %20 {offsets = [2, 0, 0], sizes = [16, 16, 2], strides = [1, 1, 1]} : vector<20x16x2xbf16> to vector<16x16x2xbf16>
    %25 = arith.maximumf %23, %24 : vector<16x16x2xbf16>
    %26 = vector.extract_strided_slice %20 {offsets = [3, 0, 0], sizes = [16, 16, 2], strides = [1, 1, 1]} : vector<20x16x2xbf16> to vector<16x16x2xbf16>
    %27 = arith.maximumf %25, %26 : vector<16x16x2xbf16>
    %28 = vector.extract_strided_slice %20 {offsets = [4, 0, 0], sizes = [16, 16, 2], strides = [1, 1, 1]} : vector<20x16x2xbf16> to vector<16x16x2xbf16>
    %29 = arith.maximumf %27, %28 : vector<16x16x2xbf16>
    %c2_22 = arith.constant 2 : index
    %c2_23 = arith.constant 2 : index
    %c0_24 = arith.constant 0 : index
    %30 = vector.load %arg5[%c2_22, %c2_23, %c0_24] : memref<20x20x2xbf16, #tpu.memory_space<vmem>>, vector<16x16x2xbf16>
    tpu.vector_store %arg5[%c2_22, %c2_23, %c0_24], %29 {strides = array<i32>} : memref<20x20x2xbf16, #tpu.memory_space<vmem>>, vector<16x16x2xbf16>,
    %c0_25 = arith.constant 0 : index
    %c0_26 = arith.constant 0 : index
    %c0_27 = arith.constant 0 : index
    %31 = vector.load %arg5[%c0_25, %c0_26, %c0_27] : memref<20x20x2xbf16, #tpu.memory_space<vmem>>, vector<20x20x2xbf16>
    %32 = vector.extract_strided_slice %31 {offsets = [0, 0, 0], sizes = [20, 16, 2], strides = [1, 1, 1]} : vector<20x20x2xbf16> to vector<20x16x2xbf16>
    %33 = vector.extract_strided_slice %31 {offsets = [0, 1, 0], sizes = [20, 16, 2], strides = [1, 1, 1]} : vector<20x20x2xbf16> to vector<20x16x2xbf16>
    %34 = arith.maximumf %32, %33 : vector<20x16x2xbf16>
    %35 = vector.extract_strided_slice %31 {offsets = [0, 2, 0], sizes = [20, 16, 2], strides = [1, 1, 1]} : vector<20x20x2xbf16> to vector<20x16x2xbf16>
    %36 = arith.maximumf %34, %35 : vector<20x16x2xbf16>
    %37 = vector.extract_strided_slice %31 {offsets = [0, 3, 0], sizes = [20, 16, 2], strides = [1, 1, 1]} : vector<20x20x2xbf16> to vector<20x16x2xbf16>
    %38 = arith.maximumf %36, %37 : vector<20x16x2xbf16>
    %39 = vector.extract_strided_slice %31 {offsets = [0, 4, 0], sizes = [20, 16, 2], strides = [1, 1, 1]} : vector<20x20x2xbf16> to vector<20x16x2xbf16>
    %40 = arith.maximumf %38, %39 : vector<20x16x2xbf16>
    %41 = vector.extract_strided_slice %40 {offsets = [0, 0, 0], sizes = [16, 16, 2], strides = [1, 1, 1]} : vector<20x16x2xbf16> to vector<16x16x2xbf16>
    %42 = vector.extract_strided_slice %40 {offsets = [1, 0, 0], sizes = [16, 16, 2], strides = [1, 1, 1]} : vector<20x16x2xbf16> to vector<16x16x2xbf16>
    %43 = arith.maximumf %41, %42 : vector<16x16x2xbf16>
    %44 = vector.extract_strided_slice %40 {offsets = [2, 0, 0], sizes = [16, 16, 2], strides = [1, 1, 1]} : vector<20x16x2xbf16> to vector<16x16x2xbf16>
    %45 = arith.maximumf %43, %44 : vector<16x16x2xbf16>
    %46 = vector.extract_strided_slice %40 {offsets = [3, 0, 0], sizes = [16, 16, 2], strides = [1, 1, 1]} : vector<20x16x2xbf16> to vector<16x16x2xbf16>
    %47 = arith.maximumf %45, %46 : vector<16x16x2xbf16>
    %48 = vector.extract_strided_slice %40 {offsets = [4, 0, 0], sizes = [16, 16, 2], strides = [1, 1, 1]} : vector<20x16x2xbf16> to vector<16x16x2xbf16>
    %49 = arith.maximumf %47, %48 : vector<16x16x2xbf16>
    %c2_28 = arith.constant 2 : index
    %c2_29 = arith.constant 2 : index
    %c0_30 = arith.constant 0 : index
    %50 = vector.load %arg5[%c2_28, %c2_29, %c0_30] : memref<20x20x2xbf16, #tpu.memory_space<vmem>>, vector<16x16x2xbf16>
    tpu.vector_store %arg5[%c2_28, %c2_29, %c0_30], %49 {strides = array<i32>} : memref<20x20x2xbf16, #tpu.memory_space<vmem>>, vector<16x16x2xbf16>,
    %c0_31 = arith.constant 0 : index
    %c0_32 = arith.constant 0 : index
    %c0_33 = arith.constant 0 : index
    %51 = vector.load %arg5[%c0_31, %c0_32, %c0_33] : memref<20x20x2xbf16, #tpu.memory_space<vmem>>, vector<20x20x2xbf16>
    %52 = vector.extract_strided_slice %51 {offsets = [0, 0, 0], sizes = [20, 16, 2], strides = [1, 1, 1]} : vector<20x20x2xbf16> to vector<20x16x2xbf16>
    %53 = vector.extract_strided_slice %51 {offsets = [0, 1, 0], sizes = [20, 16, 2], strides = [1, 1, 1]} : vector<20x20x2xbf16> to vector<20x16x2xbf16>
    %54 = arith.maximumf %52, %53 : vector<20x16x2xbf16>
    %55 = vector.extract_strided_slice %51 {offsets = [0, 2, 0], sizes = [20, 16, 2], strides = [1, 1, 1]} : vector<20x20x2xbf16> to vector<20x16x2xbf16>
    %56 = arith.maximumf %54, %55 : vector<20x16x2xbf16>
    %57 = vector.extract_strided_slice %51 {offsets = [0, 3, 0], sizes = [20, 16, 2], strides = [1, 1, 1]} : vector<20x20x2xbf16> to vector<20x16x2xbf16>
    %58 = arith.maximumf %56, %57 : vector<20x16x2xbf16>
    %59 = vector.extract_strided_slice %51 {offsets = [0, 4, 0], sizes = [20, 16, 2], strides = [1, 1, 1]} : vector<20x20x2xbf16> to vector<20x16x2xbf16>
    %60 = arith.maximumf %58, %59 : vector<20x16x2xbf16>
    %61 = vector.extract_strided_slice %60 {offsets = [0, 0, 0], sizes = [16, 16, 2], strides = [1, 1, 1]} : vector<20x16x2xbf16> to vector<16x16x2xbf16>
    %62 = vector.extract_strided_slice %60 {offsets = [1, 0, 0], sizes = [16, 16, 2], strides = [1, 1, 1]} : vector<20x16x2xbf16> to vector<16x16x2xbf16>
    %63 = arith.maximumf %61, %62 : vector<16x16x2xbf16>
    %64 = vector.extract_strided_slice %60 {offsets = [2, 0, 0], sizes = [16, 16, 2], strides = [1, 1, 1]} : vector<20x16x2xbf16> to vector<16x16x2xbf16>
    %65 = arith.maximumf %63, %64 : vector<16x16x2xbf16>
    %66 = vector.extract_strided_slice %60 {offsets = [3, 0, 0], sizes = [16, 16, 2], strides = [1, 1, 1]} : vector<20x16x2xbf16> to vector<16x16x2xbf16>
    %67 = arith.maximumf %65, %66 : vector<16x16x2xbf16>
    %68 = vector.extract_strided_slice %60 {offsets = [4, 0, 0], sizes = [16, 16, 2], strides = [1, 1, 1]} : vector<20x16x2xbf16> to vector<16x16x2xbf16>
    %69 = arith.maximumf %67, %68 : vector<16x16x2xbf16>
    %70 = vector.shape_cast %9 : vector<16x16x2xbf16> to vector<256x2xbf16>
    %c0_34 = arith.constant 0 : index
    %c0_35 = arith.constant 0 : index
    %c0_36 = arith.constant 0 : index
    %71 = vector.load %arg2[%c0_34, %c0_35, %c0_36] : memref<4x2x8xbf16, #tpu.memory_space<vmem>>, vector<1x2x8xbf16>
    %72 = vector.shape_cast %71 : vector<1x2x8xbf16> to vector<2x8xbf16>
    %cst_37 = arith.constant dense<0.000000e+00> : vector<256x8xf32>
    %73 = tpu.matmul %70, %72, %cst_37 {dimension_numbers = #tpu.dot_dimension_numbers<[1], [0], [0], [1], [0, 0, 1, 1], [], []>} : vector<256x2xbf16>, vector<2x8xbf16>, vector<256x8xf32> -> vector<256x8xf32>
    %74 = vector.shape_cast %29 : vector<16x16x2xbf16> to vector<256x2xbf16>
    %c1 = arith.constant 1 : index
    %c0_38 = arith.constant 0 : index
    %c0_39 = arith.constant 0 : index
    %75 = vector.load %arg2[%c1, %c0_38, %c0_39] : memref<4x2x8xbf16, #tpu.memory_space<vmem>>, vector<1x2x8xbf16>
    %76 = vector.shape_cast %75 : vector<1x2x8xbf16> to vector<2x8xbf16>
    %cst_40 = arith.constant dense<0.000000e+00> : vector<256x8xf32>
    %77 = tpu.matmul %74, %76, %cst_40 {dimension_numbers = #tpu.dot_dimension_numbers<[1], [0], [0], [1], [0, 0, 1, 1], [], []>} : vector<256x2xbf16>, vector<2x8xbf16>, vector<256x8xf32> -> vector<256x8xf32>
    %78 = arith.addf %73, %77 : vector<256x8xf32>
    %79 = vector.shape_cast %49 : vector<16x16x2xbf16> to vector<256x2xbf16>
    %c2_41 = arith.constant 2 : index
    %c0_42 = arith.constant 0 : index
    %c0_43 = arith.constant 0 : index
    %80 = vector.load %arg2[%c2_41, %c0_42, %c0_43] : memref<4x2x8xbf16, #tpu.memory_space<vmem>>, vector<1x2x8xbf16>
    %81 = vector.shape_cast %80 : vector<1x2x8xbf16> to vector<2x8xbf16>
    %cst_44 = arith.constant dense<0.000000e+00> : vector<256x8xf32>
    %82 = tpu.matmul %79, %81, %cst_44 {dimension_numbers = #tpu.dot_dimension_numbers<[1], [0], [0], [1], [0, 0, 1, 1], [], []>} : vector<256x2xbf16>, vector<2x8xbf16>, vector<256x8xf32> -> vector<256x8xf32>
    %83 = arith.addf %78, %82 : vector<256x8xf32>
    %84 = vector.shape_cast %69 : vector<16x16x2xbf16> to vector<256x2xbf16>
    %c3 = arith.constant 3 : index
    %c0_45 = arith.constant 0 : index
    %c0_46 = arith.constant 0 : index
    %85 = vector.load %arg2[%c3, %c0_45, %c0_46] : memref<4x2x8xbf16, #tpu.memory_space<vmem>>, vector<1x2x8xbf16>
    %86 = vector.shape_cast %85 : vector<1x2x8xbf16> to vector<2x8xbf16>
    %cst_47 = arith.constant dense<0.000000e+00> : vector<256x8xf32>
    %87 = tpu.matmul %84, %86, %cst_47 {dimension_numbers = #tpu.dot_dimension_numbers<[1], [0], [0], [1], [0, 0, 1, 1], [], []>} : vector<256x2xbf16>, vector<2x8xbf16>, vector<256x8xf32> -> vector<256x8xf32>
    %88 = arith.addf %83, %87 : vector<256x8xf32>
    %c0_48 = arith.constant 0 : index
    %c0_49 = arith.constant 0 : index
    %89 = vector.load %arg3[%c0_48, %c0_49] : memref<1x8xf32, #tpu.memory_space<vmem>>, vector<1x8xf32>
    %90 = vector.broadcast %89 : vector<1x8xf32> to vector<256x8xf32>
    %91 = arith.addf %88, %90 : vector<256x8xf32>
    %cst_50 = arith.constant 5.000000e-01 : f32
    %92 = vector.broadcast %cst_50 : f32 to vector<256x8xf32>
    %93 = arith.mulf %92, %91 : vector<256x8xf32>
    %94 = math.tanh %93 : vector<256x8xf32>
    %cst_51 = arith.constant 1.000000e+00 : f32
    %95 = vector.broadcast %cst_51 : f32 to vector<256x8xf32>
    %96 = arith.addf %94, %95 : vector<256x8xf32>
    %cst_52 = arith.constant 5.000000e-01 : f32
    %97 = vector.broadcast %cst_52 : f32 to vector<256x8xf32>
    %98 = arith.mulf %97, %96 : vector<256x8xf32>
    %99 = arith.mulf %91, %98 : vector<256x8xf32>
    %100 = vector.shape_cast %99 : vector<256x8xf32> to vector<16x16x8xf32>
    %c0_53 = arith.constant 0 : index
    %c0_54 = arith.constant 0 : index
    %c0_55 = arith.constant 0 : index
    %c0_56 = arith.constant 0 : index
    %101 = vector.load %arg4[%c0_53, %c0_54, %c0_55, %c0_56] : memref<1x16x16x8xf32, #tpu.memory_space<vmem>>, vector<1x16x16x8xf32>
    %102 = vector.shape_cast %101 : vector<1x16x16x8xf32> to vector<16x16x8xf32>
    %103 = vector.shape_cast %100 : vector<16x16x8xf32> to vector<1x16x16x8xf32>
    tpu.vector_store %arg4[%c0_53, %c0_54, %c0_55, %c0_56], %103 {strides = array<i32>} : memref<1x16x16x8xf32, #tpu.memory_space<vmem>>, vector<1x16x16x8xf32>,
    return
  }
  func.func @transform_0(%arg0: i32) -> (i32, i32, i32, i32) {
    %c0_i32 = arith.constant 0 : i32
    %c0_i32_0 = arith.constant 0 : i32
    %c0_i32_1 = arith.constant 0 : i32
    %c0_i32_2 = arith.constant 0 : i32
    return %arg0, %c0_i32, %c0_i32_0, %c0_i32_1 : i32, i32, i32, i32
  }
  func.func @transform_1(%arg0: i32) -> (i32, i32, i32) {
    %c0_i32 = arith.constant 0 : i32
    %c0_i32_0 = arith.constant 0 : i32
    %c0_i32_1 = arith.constant 0 : i32
    %c0_i32_2 = arith.constant 0 : i32
    return %c0_i32, %c0_i32_0, %c0_i32_1 : i32, i32, i32
  }
  func.func @transform_2(%arg0: i32) -> (i32, i32) {
    %c0_i32 = arith.constant 0 : i32
    %c0_i32_0 = arith.constant 0 : i32
    %c0_i32_1 = arith.constant 0 : i32
    return %c0_i32, %c0_i32_0 : i32, i32
  }
  func.func @transform_3(%arg0: i32) -> (i32, i32, i32, i32) {
    %c0_i32 = arith.constant 0 : i32
    %c0_i32_0 = arith.constant 0 : i32
    %c0_i32_1 = arith.constant 0 : i32
    %c0_i32_2 = arith.constant 0 : i32
    return %arg0, %c0_i32, %c0_i32_0, %c0_i32_1 : i32, i32, i32, i32
  }
}

module attributes {stable_mosaic.version = 11 : i64} {
  func.func @conv_bn_silu_kernel(%arg0: i32, %arg1: memref<512x4xbf16, #tpu.memory_space<vmem>>, %arg2: memref<4x2xbf16, #tpu.memory_space<vmem>>, %arg3: memref<1x2xf32, #tpu.memory_space<vmem>>, %arg4: memref<512x2xbf16, #tpu.memory_space<vmem>>) attributes {dimension_semantics = [#tpu.dimension_semantics<parallel>], iteration_bounds = array<i64: 1>, scalar_prefetch = 0 : i64, scratch_operands = 0 : i64, tpu.core_type = #tpu.core_type<tc>, window_params = [{transform_indices = @transform_0, window_bounds = array<i64: 512, 4>}, {pipeline_mode = #tpu.pipeline_mode<synchronous>, transform_indices = @transform_1, window_bounds = array<i64: 4, 2>}, {pipeline_mode = #tpu.pipeline_mode<synchronous>, transform_indices = @transform_2, window_bounds = array<i64: 1, 2>}, {transform_indices = @transform_3, window_bounds = array<i64: 512, 2>}]} {
    %c0 = arith.constant 0 : index
    %c0_0 = arith.constant 0 : index
    %0 = vector.load %arg1[%c0, %c0_0] : memref<512x4xbf16, #tpu.memory_space<vmem>>, vector<512x4xbf16>
    %c0_1 = arith.constant 0 : index
    %c0_2 = arith.constant 0 : index
    %1 = vector.load %arg2[%c0_1, %c0_2] : memref<4x2xbf16, #tpu.memory_space<vmem>>, vector<4x2xbf16>
    %cst = arith.constant dense<0.000000e+00> : vector<512x2xf32>
    %2 = tpu.matmul %0, %1, %cst {dimension_numbers = #tpu.dot_dimension_numbers<[1], [0], [0], [1], [0, 0, 1, 1], [], []>} : vector<512x4xbf16>, vector<4x2xbf16>, vector<512x2xf32> -> vector<512x2xf32>
    %c0_3 = arith.constant 0 : index
    %c0_4 = arith.constant 0 : index
    %3 = vector.load %arg3[%c0_3, %c0_4] : memref<1x2xf32, #tpu.memory_space<vmem>>, vector<1x2xf32>
    %4 = vector.broadcast %3 : vector<1x2xf32> to vector<512x2xf32>
    %5 = arith.addf %2, %4 : vector<512x2xf32>
    %cst_5 = arith.constant 5.000000e-01 : f32
    %6 = vector.broadcast %cst_5 : f32 to vector<512x2xf32>
    %7 = arith.mulf %6, %5 : vector<512x2xf32>
    %8 = math.tanh %7 : vector<512x2xf32>
    %cst_6 = arith.constant 1.000000e+00 : f32
    %9 = vector.broadcast %cst_6 : f32 to vector<512x2xf32>
    %10 = arith.addf %8, %9 : vector<512x2xf32>
    %cst_7 = arith.constant 5.000000e-01 : f32
    %11 = vector.broadcast %cst_7 : f32 to vector<512x2xf32>
    %12 = arith.mulf %11, %10 : vector<512x2xf32>
    %13 = arith.mulf %5, %12 : vector<512x2xf32>
    %14 = arith.truncf %13 : vector<512x2xf32> to vector<512x2xbf16>
    %c0_8 = arith.constant 0 : index
    %c0_9 = arith.constant 0 : index
    %15 = vector.load %arg4[%c0_8, %c0_9] : memref<512x2xbf16, #tpu.memory_space<vmem>>, vector<512x2xbf16>
    tpu.vector_store %arg4[%c0_8, %c0_9], %14 {strides = array<i32>} : memref<512x2xbf16, #tpu.memory_space<vmem>>, vector<512x2xbf16>,
    return
  }
  func.func @transform_0(%arg0: i32) -> (i32, i32) {
    %c0_i32 = arith.constant 0 : i32
    %c0_i32_0 = arith.constant 0 : i32
    return %arg0, %c0_i32 : i32, i32
  }
  func.func @transform_1(%arg0: i32) -> (i32, i32) {
    %c0_i32 = arith.constant 0 : i32
    %c0_i32_0 = arith.constant 0 : i32
    %c0_i32_1 = arith.constant 0 : i32
    return %c0_i32, %c0_i32_0 : i32, i32
  }
  func.func @transform_2(%arg0: i32) -> (i32, i32) {
    %c0_i32 = arith.constant 0 : i32
    %c0_i32_0 = arith.constant 0 : i32
    %c0_i32_1 = arith.constant 0 : i32
    return %c0_i32, %c0_i32_0 : i32, i32
  }
  func.func @transform_3(%arg0: i32) -> (i32, i32) {
    %c0_i32 = arith.constant 0 : i32
    %c0_i32_0 = arith.constant 0 : i32
    return %arg0, %c0_i32 : i32, i32
  }
}

</mosaic_0001>

<bundles_post_ra>
// kernel: sppf_forward_pallas.2
= control target key start
LH: loop header
LB: loop body
LE: loop exit
PB: predicated region body
PF: predicated region fallthrough
CT: control target
= control target key end

     0   :  { %vm344_vm0 = vcmask 1041408   ;;  %vm247_vm1 = vcmask 31744   ;;  %vm1213_vm2 = vcmask 11264   ;;  %s2587_s1 = inlined_call_operand.vmem [shape: bf16[4,2], index: 1, kind: input, shape index: {}]   ;;  %s2588_s0 = inlined_call_operand.vmem [shape: bf16[512,4], index: 0, kind: input, shape index: {}]   ;;  %s2589_s2 = inlined_call_operand.vmem [shape: f32[1,2], index: 2, kind: input, shape index: {}]   ;;  %s2590_s3 = inlined_call_operand.vmem [shape: bf16[512,2], index: 3, kind: output, shape index: {}]  }
   0x1   :  { %v79_v0 = vld [vmem:[%s2587_s1] sm:$0x3]  ;;  %v1580_v4 = vld [vmem:[%s2588_s0 + $0x8] sm:$0xff]   ;;  %v1582_v6 = vld [vmem:[%s2588_s0 + $0x10] sm:$0xff]  }
   0x2   :  { %1576 = vmatprep.subr.msk.bf16.mxu0 %vm344_vm0, %v79_v0  ;;  %1577 = vmatprep.subr.msk.bf16.mxu1 %vm344_vm0, %v79_v0  ;;  %v346_v1 = vsel %vm344_vm0, %v79_v0, 0  ;;  %v1578_v2 = vld [vmem:[%s2588_s0] sm:$0xff]   ;;  %v1581_v5 = vld [vmem:[%s2588_s0 + $0x88] sm:$0xff]   ;;  %v1583_v7 = vld [vmem:[%s2588_s0 + $0x90] sm:$0xff]  }
   0x3   :  { %1509 = vmatpush3.bf16.msra.mxu0 %v346_v1  ;;  %1575 = vmatpush3.bf16.msra.mxu1 %v346_v1  ;;  %v1579_v3 = vld [vmem:[%s2588_s0 + $0x80] sm:$0xff]   ;;  %v1584_v8 = vld [vmem:[%s2588_s0 + $0x18] sm:$0xff]   ;;  %v1588_v12 = vld [vmem:[%s2588_s0 + $0x28] sm:$0xff]  }
   0x4   :  { %1510 = vmatprep.mubr.msk.bf16.mxu0 %vm247_vm1, %v1578_v2  ;;  %1542 = vmatprep.mubr.msk.bf16.mxu1 %vm247_vm1, %v1579_v3  ;;  %v1585_v9 = vld [vmem:[%s2588_s0 + $0x98] sm:$0xff]   ;;  %v1586_v10 = vld [vmem:[%s2588_s0 + $0x20] sm:$0xff]   ;;  %v1589_v13 = vld [vmem:[%s2588_s0 + $0xa8] sm:$0xff]  }
   0x5   :  { %v1587_v11 = vld [vmem:[%s2588_s0 + $0xa0] sm:$0xff]   ;;  %v1590_v14 = vld [vmem:[%s2588_s0 + $0x30] sm:$0xff]   ;;  %v1592_v16 = vld [vmem:[%s2588_s0 + $0x38] sm:$0xff]  }
   0x6   :  { %1511 = vmatmul.mubr.msk.bf16.vlgmr.msra.gmra.mxu0 %vm247_vm1, %v1580_v4  ;;  %1543 = vmatmul.mubr.msk.bf16.vlgmr.msra.gmra.mxu1 %vm247_vm1, %v1581_v5  ;;  %v1591_v15 = vld [vmem:[%s2588_s0 + $0xb0] sm:$0xff]   ;;  %v1593_v17 = vld [vmem:[%s2588_s0 + $0xb8] sm:$0xff]   ;;  %v1594_v18 = vld [vmem:[%s2588_s0 + $0x40] sm:$0xff]  }
   0x7   :  { %1514 = vmatprep.mubr.msk.bf16.mxu0 %vm247_vm1, %v1582_v6  ;;  %1546 = vmatprep.mubr.msk.bf16.mxu1 %vm247_vm1, %v1583_v7  ;;  %v1595_v19 = vld [vmem:[%s2588_s0 + $0xc0] sm:$0xff]   ;;  %v1596_v20 = vld [vmem:[%s2588_s0 + $0x48] sm:$0xff]   ;;  %v1598_v22 = vld [vmem:[%s2588_s0 + $0x50] sm:$0xff]  }
   0x8   :  { %v1597_v21 = vld [vmem:[%s2588_s0 + $0xc8] sm:$0xff]   ;;  %v1599_v23 = vld [vmem:[%s2588_s0 + $0xd0] sm:$0xff]   ;;  %v1600_v24 = vld [vmem:[%s2588_s0 + $0x58] sm:$0xff]  }
   0x9   :  { %v1601_v25 = vld [vmem:[%s2588_s0 + $0xd8] sm:$0xff]   ;;  %v1602_v26 = vld [vmem:[%s2588_s0 + $0x60] sm:$0xff]   ;;  %v1604_v28 = vld [vmem:[%s2588_s0 + $0x68] sm:$0xff]  }
   0xa   :  { %v1603_v27 = vld [vmem:[%s2588_s0 + $0xe0] sm:$0xff]   ;;  %v1605_v29 = vld [vmem:[%s2588_s0 + $0xe8] sm:$0xff]   ;;  %v1606_v30 = vld [vmem:[%s2588_s0 + $0x70] sm:$0xff]  }
   0xb   :  { %v1607_v31 = vld [vmem:[%s2588_s0 + $0xf0] sm:$0xff]   ;;  %v1608_v32 = vld [vmem:[%s2588_s0 + $0x78] sm:$0xff]   ;;  %v1892_v34 = vld [vmem:[%s2589_s2] ss:$0 sm:$0xff] }
   0xc   :  { %v1609_v33 = vld [vmem:[%s2588_s0 + $0xf8] sm:$0xff]  }
   0xe   :  { %1515 = vmatmul.mubr.msk.bf16.gmra.mxu0 %vm247_vm1, %v1584_v8  ;;  %1547 = vmatmul.mubr.msk.bf16.gmra.mxu1 %vm247_vm1, %v1585_v9 }
   0xf   :  { %1518 = vmatprep.mubr.msk.bf16.mxu0 %vm247_vm1, %v1586_v10  ;;  %1550 = vmatprep.mubr.msk.bf16.mxu1 %vm247_vm1, %v1587_v11 }
  0x16   :  { %1519 = vmatmul.mubr.msk.bf16.gmra.mxu0 %vm247_vm1, %v1588_v12  ;;  %1551 = vmatmul.mubr.msk.bf16.gmra.mxu1 %vm247_vm1, %v1589_v13 }
  0x17   :  { %1522 = vmatprep.mubr.msk.bf16.mxu0 %vm247_vm1, %v1590_v14  ;;  %1554 = vmatprep.mubr.msk.bf16.mxu1 %vm247_vm1, %v1591_v15 }
  0x1e   :  { %1523 = vmatmul.mubr.msk.bf16.gmra.mxu0 %vm247_vm1, %v1592_v16  ;;  %1555 = vmatmul.mubr.msk.bf16.gmra.mxu1 %vm247_vm1, %v1593_v17 }
  0x1f   :  { %1526 = vmatprep.mubr.msk.bf16.mxu0 %vm247_vm1, %v1594_v18  ;;  %1558 = vmatprep.mubr.msk.bf16.mxu1 %vm247_vm1, %v1595_v19 }
  0x26   :  { %1527 = vmatmul.mubr.msk.bf16.gmra.mxu0 %vm247_vm1, %v1596_v20  ;;  %1559 = vmatmul.mubr.msk.bf16.gmra.mxu1 %vm247_vm1, %v1597_v21 }
  0x27   :  { %1530 = vmatprep.mubr.msk.bf16.mxu0 %vm247_vm1, %v1598_v22  ;;  %1562 = vmatprep.mubr.msk.bf16.mxu1 %vm247_vm1, %v1599_v23 }
  0x2e   :  { %1531 = vmatmul.mubr.msk.bf16.gmra.mxu0 %vm247_vm1, %v1600_v24  ;;  %1563 = vmatmul.mubr.msk.bf16.gmra.mxu1 %vm247_vm1, %v1601_v25 }
  0x2f   :  { %1534 = vmatprep.mubr.msk.bf16.mxu0 %vm247_vm1, %v1602_v26  ;;  %1566 = vmatprep.mubr.msk.bf16.mxu1 %vm247_vm1, %v1603_v27 }
  0x36   :  { %1535 = vmatmul.mubr.msk.bf16.gmra.mxu0 %vm247_vm1, %v1604_v28  ;;  %1567 = vmatmul.mubr.msk.bf16.gmra.mxu1 %vm247_vm1, %v1605_v29 }
  0x37   :  { %1538 = vmatprep.mubr.msk.bf16.mxu0 %vm247_vm1, %v1606_v30  ;;  %1570 = vmatprep.mubr.msk.bf16.mxu1 %vm247_vm1, %v1607_v31 }
  0x3e   :  { %1539 = vmatmul.mubr.msk.bf16.gmra.mxu0 %vm247_vm1, %v1608_v32  ;;  %1571 = vmatmul.mubr.msk.bf16.gmra.mxu1 %vm247_vm1, %v1609_v33 }
  0xc6   :  { %v1512_v35 = vpop.f32.mrf.mxu0  ;;  %v1544_v37 = vpop.f32.mrf.mxu1 }
  0xc7   :  { %v1895_v36 = vadd.f32 %v1512_v35, %v1892_v34  ;;  %v1898_v38 = vadd.f32 %v1544_v37, %v1892_v34 }
  0xc8   :  { %v382_v39 = vpop.f32.mrf.mxu0  ;;  %v510_v42 = vpop.f32.mrf.mxu1 }
  0xc9   :  { %v639_v40 = vmul.f32 0.5, %v1895_v36  ;;  %v1902_v41 = vadd.f32 %v1892_v34, %v382_v39  ;;  %v671_v43 = vmul.f32 0.5, %v1898_v38  ;;  %v1906_v44 = vadd.f32 %v1892_v34, %v510_v42 }
  0xca   :  { %v1513_v45 = vpop.f32.mrf.mxu0  ;;  %v1545_v48 = vpop.f32.mrf.mxu1 }
  0xcb   :  { %1610 = vtanh.f32 %v639_v40  ;;  %v637_v46 = vmul.f32 0.5, %v1902_v41  ;;  %v1910_v47 = vadd.f32 %v1513_v45, %v1892_v34  ;;  %v669_v49 = vmul.f32 0.5, %v1906_v44 }
  0xcc   :  { %1612 = vtanh.f32 %v671_v43  ;;  %v1914_v50 = vadd.f32 %v1545_v48, %v1892_v34  ;;  %v385_v51 = vpop.f32.mrf.mxu0  ;;  %v513_v54 = vpop.f32.mrf.mxu1 }
  0xcd   :  { %1614 = vtanh.f32 %v637_v46  ;;  %v640_v52 = vmul.f32 0.5, %v1910_v47  ;;  %v1918_v53 = vadd.f32 %v1892_v34, %v385_v51  ;;  %v1922_v56 = vadd.f32 %v1892_v34, %v513_v54 }
  0xce   :  { %1616 = vtanh.f32 %v669_v49  ;;  %v672_v55 = vmul.f32 0.5, %v1914_v50  ;;  %v1516_v57 = vpop.f32.mrf.mxu0  ;;  %v1548_v60 = vpop.f32.mrf.mxu1 }
  0xcf   :  { %1618 = vtanh.f32 %v640_v52  ;;  %v638_v58 = vmul.f32 0.5, %v1918_v53  ;;  %v1926_v59 = vadd.f32 %v1516_v57, %v1892_v34  ;;  %v670_v61 = vmul.f32 0.5, %v1922_v56 }
  0xd0   :  { %1620 = vtanh.f32 %v672_v55  ;;  %v1930_v62 = vadd.f32 %v1548_v60, %v1892_v34  ;;  %v398_v63 = vpop.f32.mrf.mxu0  ;;  %v526_v2 = vpop.f32.mrf.mxu1 }
  0xd1   :  { %1622 = vtanh.f32 %v638_v58  ;;  %v643_v0 = vmul.f32 0.5, %v1926_v59  ;;  %v1934_v1 = vadd.f32 %v1892_v34, %v398_v63  ;;  %v1938_v4 = vadd.f32 %v1892_v34, %v526_v2 }
  0xd2   :  { %1624 = vtanh.f32 %v670_v61  ;;  %v675_v3 = vmul.f32 0.5, %v1930_v62  ;;  %v1517_v5 = vpop.f32.mrf.mxu0  ;;  %v1549_v8 = vpop.f32.mrf.mxu1 }
  0xd3   :  { %1626 = vtanh.f32 %v643_v0  ;;  %v641_v6 = vmul.f32 0.5, %v1934_v1  ;;  %v1942_v7 = vadd.f32 %v1517_v5, %v1892_v34  ;;  %v673_v9 = vmul.f32 0.5, %v1938_v4 }
  0xd4   :  { %1628 = vtanh.f32 %v675_v3  ;;  %v1946_v10 = vadd.f32 %v1549_v8, %v1892_v34  ;;  %v401_v11 = vpop.f32.mrf.mxu0  ;;  %v529_v14 = vpop.f32.mrf.mxu1 }
  0xd5   :  { %1630 = vtanh.f32 %v641_v6  ;;  %v644_v12 = vmul.f32 0.5, %v1942_v7  ;;  %v1950_v13 = vadd.f32 %v1892_v34, %v401_v11  ;;  %v1954_v16 = vadd.f32 %v1892_v34, %v529_v14 }
  0xd6   :  { %1632 = vtanh.f32 %v673_v9  ;;  %v676_v15 = vmul.f32 0.5, %v1946_v10  ;;  %v1520_v17 = vpop.f32.mrf.mxu0  ;;  %v1552_v20 = vpop.f32.mrf.mxu1 }
  0xd7   :  { %1634 = vtanh.f32 %v644_v12  ;;  %v642_v18 = vmul.f32 0.5, %v1950_v13  ;;  %v1958_v19 = vadd.f32 %v1520_v17, %v1892_v34  ;;  %v674_v22 = vmul.f32 0.5, %v1954_v16 }
  0xd8   :  { %v1611_v21 = vpop.eup %1610  ;;  %1636 = vtanh.f32 %v676_v15  ;;  %v1962_v23 = vadd.f32 %v1552_v20, %v1892_v34  ;;  %v414_v24 = vpop.f32.mrf.mxu0 }
  0xd9   :  { %v1613_v25 = vpop.eup %1612  ;;  %v767_v26 = vadd.f32 1.0, %v1611_v21  ;;  %1638 = vtanh.f32 %v642_v18  ;;  %v647_v27 = vmul.f32 0.5, %v1958_v19  ;;  %v1966_v28 = vadd.f32 %v1892_v34, %v414_v24  ;;  %v542_v29 = vpop.f32.mrf.mxu1 }
  0xda   :  { %v1615_v30 = vpop.eup %1614  ;;  %v799_v31 = vadd.f32 1.0, %v1613_v25  ;;  %1640 = vtanh.f32 %v674_v22  ;;  %v679_v32 = vmul.f32 0.5, %v1962_v23  ;;  %v1970_v33 = vadd.f32 %v1892_v34, %v542_v29  ;;  %v1972_v35 = vpop.f32.mrf.mxu0 }
  0xdb   :  { %v1617_v37 = vpop.eup %1616  ;;  %v831_v39 = vmul.f32 0.5, %v767_v26  ;;  %v765_v40 = vadd.f32 1.0, %v1615_v30  ;;  %1642 = vtanh.f32 %v647_v27  ;;  %v645_v42 = vmul.f32 0.5, %v1966_v28  ;;  %v1975_v43 = vpop.f32.mrf.mxu1 }
  0xdc   :  { %v1619_v45 = vpop.eup %1618  ;;  %v863_v46 = vmul.f32 0.5, %v799_v31  ;;  %v797_v48 = vadd.f32 1.0, %v1617_v37  ;;  %1644 = vtanh.f32 %v679_v32  ;;  %v677_v49 = vmul.f32 0.5, %v1970_v33  ;;  %v1978_v51 = vpop.f32.mrf.mxu0 }
  0xdd   :  { %v1621_v52 = vpop.eup %1620  ;;  %v895_v54 = vmul.f32 %v831_v39, %v1895_v36  ;;  %v829_v55 = vmul.f32 0.5, %v765_v40  ;;  %v768_v57 = vadd.f32 1.0, %v1619_v45  ;;  %1646 = vtanh.f32 %v645_v42  ;;  %v1981_v58 = vpop.f32.mrf.mxu1 }
  0xde   :  { %v1623_v60 = vpop.eup %1622  ;;  %v927_v61 = vmul.f32 %v863_v46, %v1898_v38  ;;  %v861_v63 = vmul.f32 0.5, %v797_v48  ;;  %v800_v0 = vadd.f32 1.0, %v1621_v52  ;;  %1648 = vtanh.f32 %v677_v49  ;;  %v1984_v2 = vpop.f32.mrf.mxu0 }
  0xdf   :  { %v1625_v3 = vpop.eup %1624  ;;  %v1413_v5 = vpack.c.bf16 %v895_v54, %v895_v54  ;;  %v893_v6 = vmul.f32 %v829_v55, %v1902_v41  ;;  %v832_v8 = vmul.f32 0.5, %v768_v57  ;;  %v766_v9 = vadd.f32 1.0, %v1623_v60  ;;  %v1987_v36 = vpop.f32.mrf.mxu1 }
  0xe0   :  { %v1627_v11 = vpop.eup %1626  ;;  %v1445_v12 = vpack.c.bf16 %v927_v61, %v927_v61  ;;  %v925_v14 = vmul.f32 %v861_v63, %v1906_v44  ;;  %v864_v15 = vmul.f32 0.5, %v800_v0  ;;  %v798_v17 = vadd.f32 1.0, %v1625_v3  ;;  %v1990_v38 = vpop.f32.mrf.mxu0 }
  0xe1   :  { %v1629_v18 = vpop.eup %1628  ;;  %1216 = vst.msk [vmem:[%s2590_s3 + $0x8] sm:$0xf] %vm1213_vm2, %v1413_v5  ;;  %v1411_v20 = vpack.c.bf16 %v893_v6, %v893_v6  ;;  %v896_v41 = vmul.f32 %v832_v8, %v1910_v47  ;;  %v830_v21 = vmul.f32 0.5, %v766_v9  ;;  %v771_v22 = vadd.f32 1.0, %v1627_v11  ;;  %v1997_v24 = vpop.f32.mrf.mxu1 }
  0xe2   :  { %v1631_v25 = vpop.eup %1630  ;;  %1248 = vst.msk [vmem:[%s2590_s3 + $0x88] sm:$0xf] %vm1213_vm2, %v1445_v12  ;;  %v1443_v44 = vpack.c.bf16 %v925_v14, %v925_v14  ;;  %v928_v26 = vmul.f32 %v864_v15, %v1914_v50  ;;  %v862_v27 = vmul.f32 0.5, %v798_v17  ;;  %v803_v29 = vadd.f32 1.0, %v1629_v18  ;;  %v2004_v30 = vpop.f32.mrf.mxu0 }
  0xe3   :  { %v1633_v31 = vpop.eup %1632  ;;  %1214 = vst.msk [vmem:[%s2590_s3] sm:$0xf] %vm1213_vm2, %v1411_v20  ;;  %v1414_v47 = vpack.c.bf16 %v896_v41, %v896_v41  ;;  %v894_v32 = vmul.f32 %v830_v21, %v1918_v53  ;;  %v835_v37 = vmul.f32 0.5, %v771_v22  ;;  %v769_v39 = vadd.f32 1.0, %v1631_v25  ;;  %v2011_v40 = vpop.f32.mrf.mxu1 }
  0xe4   :  { %v1635_v42 = vpop.eup %1634  ;;  %1246 = vst.msk [vmem:[%s2590_s3 + $0x80] sm:$0xf] %vm1213_vm2, %v1443_v44  ;;  %v1446_v50 = vpack.c.bf16 %v928_v26, %v928_v26  ;;  %v926_v45 = vmul.f32 %v862_v27, %v1922_v56  ;;  %v867_v46 = vmul.f32 0.5, %v803_v29  ;;  %v801_v48 = vadd.f32 1.0, %v1633_v31  ;;  %v2018_v49 = vpop.f32.mrf.mxu0 }
  0xe5   :  { %v1637_v52 = vpop.eup %1636  ;;  %1217 = vst.msk [vmem:[%s2590_s3 + $0xc] sm:$0xf] %vm1213_vm2, %v1414_v47  ;;  %v1412_v53 = vpack.c.bf16 %v894_v32, %v894_v32  ;;  %v899_v54 = vmul.f32 %v835_v37, %v1926_v59  ;;  %v833_v55 = vmul.f32 0.5, %v769_v39  ;;  %v772_v57 = vadd.f32 1.0, %v1635_v42  ;;  %v2025_v60 = vpop.f32.mrf.mxu1 }
  0xe6   :  { %v1639_v61 = vpop.eup %1638  ;;  %1249 = vst.msk [vmem:[%s2590_s3 + $0x8c] sm:$0xf] %vm1213_vm2, %v1446_v50  ;;  %v1444_v56 = vpack.c.bf16 %v926_v45, %v926_v45  ;;  %v931_v63 = vmul.f32 %v867_v46, %v1930_v62  ;;  %v865_v0 = vmul.f32 0.5, %v801_v48  ;;  %v804_v3 = vadd.f32 1.0, %v1637_v52  ;;  %v2032_v5 = vpop.f32.mrf.mxu0 }
  0xe7   :  { %v1641_v6 = vpop.eup %1640  ;;  %1215 = vst.msk [vmem:[%s2590_s3 + $0x4] sm:$0xf] %vm1213_vm2, %v1412_v53  ;;  %v1417_v59 = vpack.c.bf16 %v899_v54, %v899_v54  ;;  %v897_v8 = vmul.f32 %v833_v55, %v1934_v1  ;;  %v836_v9 = vmul.f32 0.5, %v772_v57  ;;  %v770_v11 = vadd.f32 1.0, %v1639_v61  ;;  %v2039_v12 = vpop.f32.mrf.mxu1 }
  0xe8   :  { %v1643_v14 = vpop.eup %1642  ;;  %1247 = vst.msk [vmem:[%s2590_s3 + $0x84] sm:$0xf] %vm1213_vm2, %v1444_v56  ;;  %v1449_v62 = vpack.c.bf16 %v931_v63, %v931_v63  ;;  %v929_v15 = vmul.f32 %v865_v0, %v1938_v4  ;;  %v868_v17 = vmul.f32 0.5, %v804_v3  ;;  %v802_v18 = vadd.f32 1.0, %v1641_v6  ;;  %v2046_v20 = vpop.f32.mrf.mxu0 }
  0xe9   :  { %v1645_v41 = vpop.eup %1644  ;;  %1220 = vst.msk [vmem:[%s2590_s3 + $0x18] sm:$0xf] %vm1213_vm2, %v1417_v59  ;;  %v1415_v1 = vpack.c.bf16 %v897_v8, %v897_v8  ;;  %v900_v21 = vmul.f32 %v836_v9, %v1942_v7  ;;  %v834_v22 = vmul.f32 0.5, %v770_v11  ;;  %v775_v25 = vadd.f32 1.0, %v1643_v14  ;;  %v2053_v44 = vpop.f32.mrf.mxu1 }
  0xea   :  { %v1647_v26 = vpop.eup %1646  ;;  %1252 = vst.msk [vmem:[%s2590_s3 + $0x98] sm:$0xf] %vm1213_vm2, %v1449_v62  ;;  %v1447_v4 = vpack.c.bf16 %v929_v15, %v929_v15  ;;  %v932_v27 = vmul.f32 %v868_v17, %v1946_v10  ;;  %v866_v29 = vmul.f32 0.5, %v802_v18  ;;  %v807_v31 = vadd.f32 1.0, %v1645_v41  ;;  %v2060_v47 = vpop.f32.mrf.mxu0 }
  0xeb   :  { %v1649_v32 = vpop.eup %1648  ;;  %1218 = vst.msk [vmem:[%s2590_s3 + $0x10] sm:$0xf] %vm1213_vm2, %v1415_v1  ;;  %v1418_v7 = vpack.c.bf16 %v900_v21, %v900_v21  ;;  %v898_v37 = vmul.f32 %v834_v22, %v1950_v13  ;;  %v839_v39 = vmul.f32 0.5, %v775_v25  ;;  %v773_v42 = vadd.f32 1.0, %v1647_v26  ;;  %v2067_v50 = vpop.f32.mrf.mxu1 }
  0xec   :  { %1250 = vst.msk [vmem:[%s2590_s3 + $0x90] sm:$0xf] %vm1213_vm2, %v1447_v4  ;;  %v1450_v10 = vpack.c.bf16 %v932_v27, %v932_v27  ;;  %v930_v45 = vmul.f32 %v866_v29, %v1954_v16  ;;  %v871_v46 = vmul.f32 0.5, %v807_v31  ;;  %v805_v48 = vadd.f32 1.0, %v1649_v32  ;;  %v2092_v56 = vpop.f32.mrf.mxu0 }
  0xed   :  { %1221 = vst.msk [vmem:[%s2590_s3 + $0x1c] sm:$0xf] %vm1213_vm2, %v1418_v7  ;;  %v1416_v13 = vpack.c.bf16 %v898_v37, %v898_v37  ;;  %v903_v52 = vmul.f32 %v839_v39, %v1958_v19  ;;  %v837_v53 = vmul.f32 0.5, %v773_v42  ;;  %v2081_v54 = vadd.f32 %v1972_v35, %v1892_v34  ;;  %v577_v0 = vpop.f32.mrf.mxu1 }
  0xee   :  { %1253 = vst.msk [vmem:[%s2590_s3 + $0x9c] sm:$0xf] %vm1213_vm2, %v1450_v10  ;;  %v1448_v16 = vpack.c.bf16 %v930_v45, %v930_v45  ;;  %v935_v55 = vmul.f32 %v871_v46, %v1962_v23  ;;  %v869_v57 = vmul.f32 0.5, %v805_v48  ;;  %v2090_v61 = vadd.f32 %v1975_v43, %v1892_v34  ;;  %v1532_v11 = vpop.f32.mrf.mxu0 }
  0xef   :  { %1219 = vst.msk [vmem:[%s2590_s3 + $0x14] sm:$0xf] %vm1213_vm2, %v1416_v13  ;;  %v1421_v19 = vpack.c.bf16 %v903_v52, %v903_v52  ;;  %v901_v35 = vmul.f32 %v837_v53, %v1966_v28  ;;  %v648_v63 = vmul.f32 0.5, %v2081_v54  ;;  %v2102_v23 = vadd.f32 %v1892_v34, %v1978_v51  ;;  %v1564_v15 = vpop.f32.mrf.mxu1 }
  0xf0   :  { %1251 = vst.msk [vmem:[%s2590_s3 + $0x94] sm:$0xf] %vm1213_vm2, %v1448_v16  ;;  %v1453_v43 = vpack.c.bf16 %v935_v55, %v935_v55  ;;  %v933_v3 = vmul.f32 %v869_v57, %v1970_v33  ;;  %v680_v6 = vmul.f32 0.5, %v2090_v61  ;;  %v2112_v28 = vadd.f32 %v1892_v34, %v1981_v58 }
  0xf1   :  { %1224 = vst.msk [vmem:[%s2590_s3 + $0x28] sm:$0xf] %vm1213_vm2, %v1421_v19  ;;  %v1419_v51 = vpack.c.bf16 %v901_v35, %v901_v35  ;;  %1650 = vtanh.f32 %v648_v63  ;;  %v646_v59 = vmul.f32 0.5, %v2102_v23  ;;  %v2121_v8 = vadd.f32 %v1984_v2, %v1892_v34  ;;  %v590_v26 = vpop.f32.mrf.mxu1 }
  0xf2   :  { %1256 = vst.msk [vmem:[%s2590_s3 + $0xa8] sm:$0xf] %vm1213_vm2, %v1453_v43  ;;  %v1451_v33 = vpack.c.bf16 %v933_v3, %v933_v3  ;;  %1652 = vtanh.f32 %v680_v6  ;;  %v678_v58 = vmul.f32 0.5, %v2112_v28  ;;  %v2130_v9 = vadd.f32 %v1987_v36, %v1892_v34 }
  0xf3   :  { %1222 = vst.msk [vmem:[%s2590_s3 + $0x20] sm:$0xf] %vm1213_vm2, %v1419_v51  ;;  %1654 = vtanh.f32 %v646_v59  ;;  %v651_v2 = vmul.f32 0.5, %v2121_v8  ;;  %v2139_v14 = vadd.f32 %v1892_v34, %v1990_v38  ;;  %v2143_v62 = vadd.f32 %v1892_v34, %v1997_v24  ;;  %v1565_v39 = vpop.f32.mrf.mxu1 }
  0xf4   :  { %1254 = vst.msk [vmem:[%s2590_s3 + $0xa0] sm:$0xf] %vm1213_vm2, %v1451_v33  ;;  %1656 = vtanh.f32 %v678_v58  ;;  %v683_v36 = vmul.f32 0.5, %v2130_v9  ;;  %v2152_v17 = vadd.f32 %v2004_v30, %v1892_v34  ;;  %v2156_v38 = vadd.f32 %v2011_v40, %v1892_v34  ;;  %v462_v40 = vpop.f32.mrf.mxu0 }
  0xf5   :  { %1658 = vtanh.f32 %v651_v2  ;;  %v649_v24 = vmul.f32 0.5, %v2139_v14  ;;  %v681_v18 = vmul.f32 0.5, %v2143_v62  ;;  %v2162_v41 = vadd.f32 %v1892_v34, %v2018_v49  ;;  %v2237_v63 = vpop.f32.mrf.mxu1 }
  0xf6   :  { %1660 = vtanh.f32 %v683_v36  ;;  %v652_v1 = vmul.f32 0.5, %v2152_v17  ;;  %v684_v21 = vmul.f32 0.5, %v2156_v38  ;;  %v2168_v30 = vadd.f32 %v1892_v34, %v2025_v60 }
  0xf7   :  { %1662 = vtanh.f32 %v649_v24  ;;  %v650_v22 = vmul.f32 0.5, %v2162_v41  ;;  %v2173_v25 = vadd.f32 %v2032_v5, %v1892_v34  ;;  %v2177_v49 = vadd.f32 %v2039_v12, %v1892_v34 }
  0xf8   :  { %1664 = vtanh.f32 %v681_v18  ;;  %v682_v4 = vmul.f32 0.5, %v2168_v30  ;;  %v2182_v60 = vadd.f32 %v1892_v34, %v2046_v20  ;;  %v2186_v27 = vadd.f32 %v1892_v34, %v2053_v44  ;;  %v1533_v44 = vpop.f32.mrf.mxu0 }
  0xf9   :  { %1666 = vtanh.f32 %v652_v1  ;;  %v655_v5 = vmul.f32 0.5, %v2173_v25  ;;  %v687_v29 = vmul.f32 0.5, %v2177_v49  ;;  %v2192_v12 = vadd.f32 %v2060_v47, %v1892_v34 }
  0xfa   :  { %1668 = vtanh.f32 %v684_v21  ;;  %v653_v31 = vmul.f32 0.5, %v2182_v60  ;;  %v685_v32 = vmul.f32 0.5, %v2186_v27  ;;  %v2198_v20 = vadd.f32 %v2067_v50, %v1892_v34  ;;  %v2229_v55 = vpop.f32.mrf.mxu0 }
  0xfb   :  { %1670 = vtanh.f32 %v650_v22  ;;  %v656_v7 = vmul.f32 0.5, %v2192_v12  ;;  %v2203_v37 = vadd.f32 %v1892_v34, %v2092_v56  ;;  %v2206_v47 = vadd.f32 %v1892_v34, %v577_v0  ;;  %v2254_v22 = vpop.f32.mrf.mxu1 }
  0xfc   :  { %1672 = vtanh.f32 %v682_v4  ;;  %v688_v42 = vmul.f32 0.5, %v2198_v20  ;;  %v2210_v10 = vadd.f32 %v1532_v11, %v1892_v34  ;;  %v2213_v50 = vadd.f32 %v1564_v15, %v1892_v34  ;;  %v2251_v24 = vpop.f32.mrf.mxu0 }
  0xfd   :  { %1674 = vtanh.f32 %v655_v5  ;;  %v654_v45 = vmul.f32 0.5, %v2203_v37  ;;  %v686_v46 = vmul.f32 0.5, %v2206_v47  ;;  %v2218_v48 = vadd.f32 %v1892_v34, %v462_v40 }
  0xfe   :  { %v1651_v13 = vpop.eup %1650  ;;  %1676 = vtanh.f32 %v687_v29  ;;  %v2221_v52 = vmul.f32 0.5, %v2210_v10  ;;  %v2224_v53 = vmul.f32 0.5, %v2213_v50  ;;  %v2227_v16 = vadd.f32 %v1892_v34, %v590_v26 }
  0xff   :  { %v1653_v57 = vpop.eup %1652  ;;  %v776_v56 = vadd.f32 1.0, %v1651_v13  ;;  %1678 = vtanh.f32 %v653_v31  ;;  %v2232_v19 = vmul.f32 0.5, %v2218_v48  ;;  %v2235_v35 = vadd.f32 %v1533_v44, %v1892_v34 }
 0x100   :  { %v1655_v0 = vpop.eup %1654  ;;  %v808_v43 = vadd.f32 1.0, %v1653_v57  ;;  %1680 = vtanh.f32 %v685_v32  ;;  %v2240_v3 = vmul.f32 0.5, %v2227_v16  ;;  %v2243_v6 = vadd.f32 %v1565_v39, %v1892_v34 }
 0x101   :  { %v1657_v51 = vpop.eup %1656  ;;  %v840_v59 = vmul.f32 0.5, %v776_v56  ;;  %v774_v33 = vadd.f32 1.0, %v1655_v0  ;;  %1682 = vtanh.f32 %v656_v7  ;;  %v2246_v58 = vmul.f32 0.5, %v2235_v35  ;;  %v2259_v56 = vpop.f32.mrf.mxu0 }
 0x102   :  { %v1659_v11 = vpop.eup %1658  ;;  %v872_v2 = vmul.f32 0.5, %v808_v43  ;;  %v806_v15 = vadd.f32 1.0, %v1657_v51  ;;  %1684 = vtanh.f32 %v688_v42  ;;  %v2249_v36 = vmul.f32 0.5, %v2243_v6  ;;  %v2266_v51 = vpop.f32.mrf.mxu1 }
 0x103   :  { %v1661_v18 = vpop.eup %1660  ;;  %v904_v1 = vmul.f32 %v840_v59, %v2081_v54  ;;  %v838_v21 = vmul.f32 0.5, %v774_v33  ;;  %v779_v40 = vadd.f32 1.0, %v1659_v11  ;;  %1686 = vtanh.f32 %v654_v45 }
 0x104   :  { %v1663_v26 = vpop.eup %1662  ;;  %v936_v4 = vmul.f32 %v872_v2, %v2090_v61  ;;  %v870_v5 = vmul.f32 0.5, %v806_v15  ;;  %v811_v29 = vadd.f32 1.0, %v1661_v18  ;;  %1688 = vtanh.f32 %v686_v46 }
 0x105   :  { %v1665_v31 = vpop.eup %1664  ;;  %v1422_v32 = vpack.c.bf16 %v904_v1, %v904_v1  ;;  %v902_v44 = vmul.f32 %v838_v21, %v2102_v23  ;;  %v843_v7 = vmul.f32 0.5, %v779_v40  ;;  %v777_v39 = vadd.f32 1.0, %v1663_v26 }
 0x106   :  { %v1667_v42 = vpop.eup %1666  ;;  %v1454_v13 = vpack.c.bf16 %v936_v4, %v936_v4  ;;  %v934_v54 = vmul.f32 %v870_v5, %v2112_v28  ;;  %v875_v57 = vmul.f32 0.5, %v811_v29  ;;  %v809_v45 = vadd.f32 1.0, %v1665_v31  ;;  %v2283_v29 = vpop.f32.mrf.mxu0 }
 0x107   :  { %v1669_v0 = vpop.eup %1668  ;;  %1225 = vst.msk [vmem:[%s2590_s3 + $0x2c] sm:$0xf] %vm1213_vm2, %v1422_v32  ;;  %v1420_v61 = vpack.c.bf16 %v902_v44, %v902_v44  ;;  %v907_v46 = vmul.f32 %v843_v7, %v2121_v8  ;;  %v841_v23 = vmul.f32 0.5, %v777_v39  ;;  %v780_v43 = vadd.f32 1.0, %v1667_v42  ;;  %v2290_v39 = vpop.f32.mrf.mxu1 }
 0x108   :  { %v1671_v59 = vpop.eup %1670  ;;  %1257 = vst.msk [vmem:[%s2590_s3 + $0xac] sm:$0xf] %vm1213_vm2, %v1454_v13  ;;  %v1452_v28 = vpack.c.bf16 %v934_v54, %v934_v54  ;;  %v939_v33 = vmul.f32 %v875_v57, %v2130_v9  ;;  %v873_v11 = vmul.f32 0.5, %v809_v45  ;;  %v812_v2 = vadd.f32 1.0, %v1669_v0 }
 0x109   :  { %v1673_v15 = vpop.eup %1672  ;;  %1223 = vst.msk [vmem:[%s2590_s3 + $0x24] sm:$0xf] %vm1213_vm2, %v1420_v61  ;;  %v1425_v8 = vpack.c.bf16 %v907_v46, %v907_v46  ;;  %v905_v18 = vmul.f32 %v841_v23, %v2139_v14  ;;  %v844_v1 = vmul.f32 0.5, %v780_v43  ;;  %v778_v21 = vadd.f32 1.0, %v1671_v59 }
 0x10a   :  { %v1675_v40 = vpop.eup %1674  ;;  %1255 = vst.msk [vmem:[%s2590_s3 + $0xa4] sm:$0xf] %vm1213_vm2, %v1452_v28  ;;  %v1457_v9 = vpack.c.bf16 %v939_v33, %v939_v33  ;;  %v937_v26 = vmul.f32 %v873_v11, %v2143_v62  ;;  %v876_v4 = vmul.f32 0.5, %v812_v2  ;;  %v810_v5 = vadd.f32 1.0, %v1673_v15  ;;  %v2307_v33 = vpop.f32.mrf.mxu0 }
 0x10b   :  { %v1677_v31 = vpop.eup %1676  ;;  %1228 = vst.msk [vmem:[%s2590_s3 + $0x38] sm:$0xf] %vm1213_vm2, %v1425_v8  ;;  %v1423_v14 = vpack.c.bf16 %v905_v18, %v905_v18  ;;  %v908_v32 = vmul.f32 %v844_v1, %v2152_v17  ;;  %v842_v44 = vmul.f32 0.5, %v778_v21  ;;  %v783_v7 = vadd.f32 1.0, %v1675_v40  ;;  %v2314_v18 = vpop.f32.mrf.mxu1 }
 0x10c   :  { %v1679_v42 = vpop.eup %1678  ;;  %1260 = vst.msk [vmem:[%s2590_s3 + $0xb8] sm:$0xf] %vm1213_vm2, %v1457_v9  ;;  %v1455_v62 = vpack.c.bf16 %v937_v26, %v937_v26  ;;  %v940_v13 = vmul.f32 %v876_v4, %v2156_v38  ;;  %v874_v54 = vmul.f32 0.5, %v810_v5  ;;  %v815_v57 = vadd.f32 1.0, %v1677_v31 }
 0x10d   :  { %v1681_v45 = vpop.eup %1680  ;;  %1226 = vst.msk [vmem:[%s2590_s3 + $0x30] sm:$0xf] %vm1213_vm2, %v1423_v14  ;;  %v1426_v17 = vpack.c.bf16 %v908_v32, %v908_v32  ;;  %v906_v0 = vmul.f32 %v842_v44, %v2162_v41  ;;  %v847_v61 = vmul.f32 0.5, %v783_v7  ;;  %v781_v46 = vadd.f32 1.0, %v1679_v42  ;;  %v1540_v7 = vpop.f32.mrf.mxu0 }
 0x10e   :  { %v1683_v23 = vpop.eup %1682  ;;  %1258 = vst.msk [vmem:[%s2590_s3 + $0xb0] sm:$0xf] %vm1213_vm2, %v1455_v62  ;;  %v1458_v38 = vpack.c.bf16 %v940_v13, %v940_v13  ;;  %v938_v43 = vmul.f32 %v874_v54, %v2168_v30  ;;  %v879_v59 = vmul.f32 0.5, %v815_v57  ;;  %v813_v28 = vadd.f32 1.0, %v1681_v45  ;;  %v1572_v13 = vpop.f32.mrf.mxu1 }
 0x10f   :  { %v1685_v11 = vpop.eup %1684  ;;  %1229 = vst.msk [vmem:[%s2590_s3 + $0x3c] sm:$0xf] %vm1213_vm2, %v1426_v17  ;;  %v1424_v41 = vpack.c.bf16 %v906_v0, %v906_v0  ;;  %v911_v2 = vmul.f32 %v847_v61, %v2173_v25  ;;  %v845_v15 = vmul.f32 0.5, %v781_v46  ;;  %v784_v8 = vadd.f32 1.0, %v1683_v23 }
 0x110   :  { %v1687_v1 = vpop.eup %1686  ;;  %1261 = vst.msk [vmem:[%s2590_s3 + $0xbc] sm:$0xf] %vm1213_vm2, %v1458_v38  ;;  %v1456_v30 = vpack.c.bf16 %v938_v43, %v938_v43  ;;  %v943_v21 = vmul.f32 %v879_v59, %v2177_v49  ;;  %v877_v40 = vmul.f32 0.5, %v813_v28  ;;  %v816_v9 = vadd.f32 1.0, %v1685_v11 }
 0x111   :  { %v1689_v26 = vpop.eup %1688  ;;  %1227 = vst.msk [vmem:[%s2590_s3 + $0x34] sm:$0xf] %vm1213_vm2, %v1424_v41  ;;  %v1429_v25 = vpack.c.bf16 %v911_v2, %v911_v2  ;;  %v909_v4 = vmul.f32 %v845_v15, %v2182_v60  ;;  %v848_v5 = vmul.f32 0.5, %v784_v8  ;;  %v782_v31 = vadd.f32 1.0, %v1687_v1 }
 0x112   :  { %1259 = vst.msk [vmem:[%s2590_s3 + $0xb4] sm:$0xf] %vm1213_vm2, %v1456_v30  ;;  %v1461_v14 = vpack.c.bf16 %v943_v21, %v943_v21  ;;  %v941_v49 = vmul.f32 %v877_v40, %v2186_v27  ;;  %v880_v32 = vmul.f32 0.5, %v816_v9  ;;  %v814_v44 = vadd.f32 1.0, %v1689_v26 }
 0x113   :  { %1232 = vst.msk [vmem:[%s2590_s3 + $0x48] sm:$0xf] %vm1213_vm2, %v1429_v25  ;;  %v1427_v42 = vpack.c.bf16 %v909_v4, %v909_v4  ;;  %v912_v60 = vmul.f32 %v848_v5, %v2192_v12  ;;  %v846_v62 = vmul.f32 0.5, %v782_v31  ;;  %1690 = vtanh.f32 %v2221_v52 }
 0x114   :  { %1264 = vst.msk [vmem:[%s2590_s3 + $0xc8] sm:$0xf] %vm1213_vm2, %v1461_v14  ;;  %v1459_v27 = vpack.c.bf16 %v941_v49, %v941_v49  ;;  %v944_v54 = vmul.f32 %v880_v32, %v2198_v20  ;;  %v878_v57 = vmul.f32 0.5, %v814_v44  ;;  %1692 = vtanh.f32 %v2224_v53 }
 0x115   :  { %1230 = vst.msk [vmem:[%s2590_s3 + $0x40] sm:$0xf] %vm1213_vm2, %v1427_v42  ;;  %v1430_v12 = vpack.c.bf16 %v912_v60, %v912_v60  ;;  %v910_v52 = vmul.f32 %v846_v62, %v2203_v37  ;;  %1694 = vtanh.f32 %v2232_v19  ;;  %v2351_v45 = vadd.f32 %v1892_v34, %v2229_v55  ;;  %v494_v37 = vpop.f32.mrf.mxu0 }
 0x116   :  { %1262 = vst.msk [vmem:[%s2590_s3 + $0xc0] sm:$0xf] %vm1213_vm2, %v1459_v27  ;;  %v1462_v20 = vpack.c.bf16 %v944_v54, %v944_v54  ;;  %v942_v53 = vmul.f32 %v878_v57, %v2206_v47  ;;  %1696 = vtanh.f32 %v2240_v3  ;;  %v2361_v17 = vadd.f32 %v1892_v34, %v2237_v63  ;;  %v622_v3 = vpop.f32.mrf.mxu1 }
 0x117   :  { %1233 = vst.msk [vmem:[%s2590_s3 + $0x4c] sm:$0xf] %vm1213_vm2, %v1430_v12  ;;  %v1428_v55 = vpack.c.bf16 %v910_v52, %v910_v52  ;;  %1698 = vtanh.f32 %v2246_v58  ;;  %v658_v19 = vmul.f32 0.5, %v2351_v45  ;;  %v2371_v47 = vadd.f32 %v2251_v24, %v1892_v34  ;;  %v1541_v23 = vpop.f32.mrf.mxu0 }
 0x118   :  { %1265 = vst.msk [vmem:[%s2590_s3 + $0xcc] sm:$0xf] %vm1213_vm2, %v1462_v20  ;;  %v1460_v63 = vpack.c.bf16 %v942_v53, %v942_v53  ;;  %1700 = vtanh.f32 %v2249_v36  ;;  %v690_v0 = vmul.f32 0.5, %v2361_v17  ;;  %v2381_v58 = vadd.f32 %v2254_v22, %v1892_v34  ;;  %v1573_v59 = vpop.f32.mrf.mxu1 }
 0x119   :  { %1231 = vst.msk [vmem:[%s2590_s3 + $0x44] sm:$0xf] %vm1213_vm2, %v1428_v55  ;;  %1702 = vtanh.f32 %v658_v19  ;;  %v663_v24 = vmul.f32 0.5, %v2371_v47  ;;  %v2390_v61 = vadd.f32 %v1892_v34, %v2259_v56  ;;  %v2394_v36 = vadd.f32 %v1892_v34, %v2266_v51 }
 0x11a   :  { %1263 = vst.msk [vmem:[%s2590_s3 + $0xc4] sm:$0xf] %vm1213_vm2, %v1460_v63  ;;  %1704 = vtanh.f32 %v690_v0  ;;  %v695_v22 = vmul.f32 0.5, %v2381_v58  ;;  %v2403_v46 = vadd.f32 %v2283_v29, %v1892_v34  ;;  %v2407_v56 = vadd.f32 %v2290_v39, %v1892_v34  ;;  %v625_v40 = vpop.f32.mrf.mxu1 }
 0x11b   :  { %1706 = vtanh.f32 %v663_v24  ;;  %v661_v51 = vmul.f32 0.5, %v2390_v61  ;;  %v693_v38 = vmul.f32 0.5, %v2394_v36  ;;  %v2413_v43 = vadd.f32 %v1892_v34, %v2307_v33 }
 0x11c   :  { %1708 = vtanh.f32 %v695_v22  ;;  %v664_v28 = vmul.f32 0.5, %v2403_v46  ;;  %v696_v29 = vmul.f32 0.5, %v2407_v56  ;;  %v2419_v39 = vadd.f32 %v1892_v34, %v2314_v18  ;;  %v497_v18 = vpop.f32.mrf.mxu0 }
 0x11d   :  { %1710 = vtanh.f32 %v661_v51  ;;  %v662_v11 = vmul.f32 0.5, %v2413_v43  ;;  %v2423_v41 = vadd.f32 %v1540_v7, %v1892_v34  ;;  %v2426_v2 = vadd.f32 %v1572_v13, %v1892_v34 }
 0x11e   :  { %1712 = vtanh.f32 %v693_v38  ;;  %v694_v33 = vmul.f32 0.5, %v2419_v39  ;;  %v2430_v15 = vadd.f32 %v1892_v34, %v494_v37  ;;  %v2433_v8 = vadd.f32 %v1892_v34, %v622_v3 }
 0x11f   :  { %1714 = vtanh.f32 %v664_v28  ;;  %v667_v1 = vmul.f32 0.5, %v2423_v41  ;;  %v699_v30 = vmul.f32 0.5, %v2426_v2  ;;  %v2438_v21 = vadd.f32 %v1541_v23, %v1892_v34 }
 0x120   :  { %v1691_v9 = vpop.eup %1690  ;;  %1716 = vtanh.f32 %v696_v29  ;;  %v665_v26 = vmul.f32 0.5, %v2430_v15  ;;  %v697_v25 = vmul.f32 0.5, %v2433_v8  ;;  %v2443_v4 = vadd.f32 %v1573_v59, %v1892_v34 }
 0x121   :  { %v1693_v5 = vpop.eup %1692  ;;  %v787_v31 = vadd.f32 1.0, %v1691_v9  ;;  %1718 = vtanh.f32 %v662_v11  ;;  %v2446_v14 = vmul.f32 0.5, %v2438_v21  ;;  %v2449_v49 = vadd.f32 %v1892_v34, %v497_v18 }
 0x122   :  { %v1695_v32 = vpop.eup %1694  ;;  %v819_v44 = vadd.f32 1.0, %v1693_v5  ;;  %1720 = vtanh.f32 %v694_v33  ;;  %v2452_v7 = vmul.f32 0.5, %v2443_v4  ;;  %v2455_v42 = vadd.f32 %v1892_v34, %v625_v40 }
 0x123   :  { %v1697_v60 = vpop.eup %1696  ;;  %v851_v62 = vmul.f32 0.5, %v787_v31  ;;  %v785_v13 = vadd.f32 1.0, %v1695_v32  ;;  %1722 = vtanh.f32 %v667_v1  ;;  %v2458_v27 = vmul.f32 0.5, %v2449_v49 }
 0x124   :  { %v1699_v54 = vpop.eup %1698  ;;  %v883_v57 = vmul.f32 0.5, %v819_v44  ;;  %v817_v12 = vadd.f32 1.0, %v1697_v60  ;;  %1724 = vtanh.f32 %v699_v30  ;;  %v2461_v52 = vmul.f32 0.5, %v2455_v42 }
 0x125   :  { %v1701_v20 = vpop.eup %1700  ;;  %v915_v53 = vmul.f32 %v851_v62, %v2210_v10  ;;  %v849_v37 = vmul.f32 0.5, %v785_v13  ;;  %v788_v34 = vadd.f32 1.0, %v1699_v54  ;;  %1726 = vtanh.f32 %v665_v26 }
 0x126   :  { %v1703_v55 = vpop.eup %1702  ;;  %v947_v19 = vmul.f32 %v883_v57, %v2213_v50  ;;  %v881_v3 = vmul.f32 0.5, %v817_v12  ;;  %v820_v63 = vadd.f32 1.0, %v1701_v20  ;;  %1728 = vtanh.f32 %v697_v25 }
 0x127   :  { %v1705_v0 = vpop.eup %1704  ;;  %v1433_v24 = vpack.c.bf16 %v915_v53, %v915_v53  ;;  %v913_v22 = vmul.f32 %v849_v37, %v2218_v48  ;;  %v852_v23 = vmul.f32 0.5, %v788_v34  ;;  %v786_v51 = vadd.f32 1.0, %v1703_v55 }
 0x128   :  { %v1707_v38 = vpop.eup %1706  ;;  %v1465_v59 = vpack.c.bf16 %v947_v19, %v947_v19  ;;  %v945_v28 = vmul.f32 %v881_v3, %v2227_v16  ;;  %v884_v10 = vmul.f32 0.5, %v820_v63  ;;  %v818_v29 = vadd.f32 1.0, %v1705_v0 }
 0x129   :  { %v1709_v11 = vpop.eup %1708  ;;  %1236 = vst.msk [vmem:[%s2590_s3 + $0x58] sm:$0xf] %vm1213_vm2, %v1433_v24  ;;  %v1431_v50 = vpack.c.bf16 %v913_v22, %v913_v22  ;;  %v916_v33 = vmul.f32 %v852_v23, %v2235_v35  ;;  %v850_v18 = vmul.f32 0.5, %v786_v51  ;;  %v791_v1 = vadd.f32 1.0, %v1707_v38 }
 0x12a   :  { %v1711_v48 = vpop.eup %1710  ;;  %1268 = vst.msk [vmem:[%s2590_s3 + $0xd8] sm:$0xf] %vm1213_vm2, %v1465_v59  ;;  %v1463_v16 = vpack.c.bf16 %v945_v28, %v945_v28  ;;  %v948_v30 = vmul.f32 %v884_v10, %v2243_v6  ;;  %v882_v40 = vmul.f32 0.5, %v818_v29  ;;  %v823_v9 = vadd.f32 1.0, %v1709_v11 }
 0x12b   :  { %v1713_v26 = vpop.eup %1712  ;;  %1234 = vst.msk [vmem:[%s2590_s3 + $0x50] sm:$0xf] %vm1213_vm2, %v1431_v50  ;;  %v1434_v35 = vpack.c.bf16 %v916_v33, %v916_v33  ;;  %v914_v25 = vmul.f32 %v850_v18, %v2351_v45  ;;  %v855_v5 = vmul.f32 0.5, %v791_v1  ;;  %v789_v31 = vadd.f32 1.0, %v1711_v48 }
 0x12c   :  { %v1715_v32 = vpop.eup %1714  ;;  %1266 = vst.msk [vmem:[%s2590_s3 + $0xd0] sm:$0xf] %vm1213_vm2, %v1463_v16  ;;  %v1466_v6 = vpack.c.bf16 %v948_v30, %v948_v30  ;;  %v946_v44 = vmul.f32 %v882_v40, %v2361_v17  ;;  %v887_v60 = vmul.f32 0.5, %v823_v9  ;;  %v821_v62 = vadd.f32 1.0, %v1713_v26 }
 0x12d   :  { %v1717_v13 = vpop.eup %1716  ;;  %1237 = vst.msk [vmem:[%s2590_s3 + $0x5c] sm:$0xf] %vm1213_vm2, %v1434_v35  ;;  %v1432_v45 = vpack.c.bf16 %v914_v25, %v914_v25  ;;  %v919_v54 = vmul.f32 %v855_v5, %v2371_v47  ;;  %v853_v57 = vmul.f32 0.5, %v789_v31  ;;  %v792_v12 = vadd.f32 1.0, %v1715_v32 }
 0x12e   :  { %v1719_v20 = vpop.eup %1718  ;;  %1269 = vst.msk [vmem:[%s2590_s3 + $0xdc] sm:$0xf] %vm1213_vm2, %v1466_v6  ;;  %v1464_v17 = vpack.c.bf16 %v946_v44, %v946_v44  ;;  %v951_v53 = vmul.f32 %v887_v60, %v2381_v58  ;;  %v885_v37 = vmul.f32 0.5, %v821_v62  ;;  %v824_v34 = vadd.f32 1.0, %v1717_v13 }
 0x12f   :  { %v1721_v55 = vpop.eup %1720  ;;  %1235 = vst.msk [vmem:[%s2590_s3 + $0x54] sm:$0xf] %vm1213_vm2, %v1432_v45  ;;  %v1437_v47 = vpack.c.bf16 %v919_v54, %v919_v54  ;;  %v917_v19 = vmul.f32 %v853_v57, %v2390_v61  ;;  %v856_v3 = vmul.f32 0.5, %v792_v12  ;;  %v790_v63 = vadd.f32 1.0, %v1719_v20 }
 0x130   :  { %v1723_v0 = vpop.eup %1722  ;;  %1267 = vst.msk [vmem:[%s2590_s3 + $0xd4] sm:$0xf] %vm1213_vm2, %v1464_v17  ;;  %v1469_v58 = vpack.c.bf16 %v951_v53, %v951_v53  ;;  %v949_v24 = vmul.f32 %v885_v37, %v2394_v36  ;;  %v888_v22 = vmul.f32 0.5, %v824_v34  ;;  %v822_v23 = vadd.f32 1.0, %v1721_v55 }
 0x131   :  { %v1725_v51 = vpop.eup %1724  ;;  %1240 = vst.msk [vmem:[%s2590_s3 + $0x68] sm:$0xf] %vm1213_vm2, %v1437_v47  ;;  %v1435_v61 = vpack.c.bf16 %v917_v19, %v917_v19  ;;  %v920_v38 = vmul.f32 %v856_v3, %v2403_v46  ;;  %v854_v59 = vmul.f32 0.5, %v790_v63  ;;  %v795_v28 = vadd.f32 1.0, %v1723_v0 }
 0x132   :  { %v1727_v10 = vpop.eup %1726  ;;  %1272 = vst.msk [vmem:[%s2590_s3 + $0xe8] sm:$0xf] %vm1213_vm2, %v1469_v58  ;;  %v1467_v36 = vpack.c.bf16 %v949_v24, %v949_v24  ;;  %v952_v29 = vmul.f32 %v888_v22, %v2407_v56  ;;  %v886_v11 = vmul.f32 0.5, %v822_v23  ;;  %v827_v50 = vadd.f32 1.0, %v1725_v51 }
 0x133   :  { %v1729_v33 = vpop.eup %1728  ;;  %1238 = vst.msk [vmem:[%s2590_s3 + $0x60] sm:$0xf] %vm1213_vm2, %v1435_v61  ;;  %v1438_v46 = vpack.c.bf16 %v920_v38, %v920_v38  ;;  %v918_v18 = vmul.f32 %v854_v59, %v2413_v43  ;;  %v859_v1 = vmul.f32 0.5, %v795_v28  ;;  %v793_v48 = vadd.f32 1.0, %v1727_v10 }
 0x134   :  { %1270 = vst.msk [vmem:[%s2590_s3 + $0xe0] sm:$0xf] %vm1213_vm2, %v1467_v36  ;;  %v1470_v16 = vpack.c.bf16 %v952_v29, %v952_v29  ;;  %v950_v56 = vmul.f32 %v886_v11, %v2419_v39  ;;  %v891_v30 = vmul.f32 0.5, %v827_v50  ;;  %v825_v40 = vadd.f32 1.0, %v1729_v33 }
 0x135   :  { %1241 = vst.msk [vmem:[%s2590_s3 + $0x6c] sm:$0xf] %vm1213_vm2, %v1438_v46  ;;  %v1436_v9 = vpack.c.bf16 %v918_v18, %v918_v18  ;;  %v923_v43 = vmul.f32 %v859_v1, %v2423_v41  ;;  %v857_v26 = vmul.f32 0.5, %v793_v48  ;;  %1730 = vtanh.f32 %v2446_v14 }
 0x136   :  { %1273 = vst.msk [vmem:[%s2590_s3 + $0xec] sm:$0xf] %vm1213_vm2, %v1470_v16  ;;  %v1468_v35 = vpack.c.bf16 %v950_v56, %v950_v56  ;;  %v955_v39 = vmul.f32 %v891_v30, %v2426_v2  ;;  %v889_v25 = vmul.f32 0.5, %v825_v40  ;;  %1732 = vtanh.f32 %v2452_v7 }
 0x137   :  { %1239 = vst.msk [vmem:[%s2590_s3 + $0x64] sm:$0xf] %vm1213_vm2, %v1436_v9  ;;  %v1441_v41 = vpack.c.bf16 %v923_v43, %v923_v43  ;;  %v921_v5 = vmul.f32 %v857_v26, %v2430_v15  ;;  %1734 = vtanh.f32 %v2458_v27 }
 0x138   :  { %1271 = vst.msk [vmem:[%s2590_s3 + $0xe4] sm:$0xf] %vm1213_vm2, %v1468_v35  ;;  %v1473_v14 = vpack.c.bf16 %v955_v39, %v955_v39  ;;  %v953_v2 = vmul.f32 %v889_v25, %v2433_v8  ;;  %1736 = vtanh.f32 %v2461_v52 }
 0x139   :  { %1244 = vst.msk [vmem:[%s2590_s3 + $0x78] sm:$0xf] %vm1213_vm2, %v1441_v41  ;;  %v1439_v7 = vpack.c.bf16 %v921_v5, %v921_v5 }
 0x13a   :  { %1276 = vst.msk [vmem:[%s2590_s3 + $0xf8] sm:$0xf] %vm1213_vm2, %v1473_v14  ;;  %v1471_v15 = vpack.c.bf16 %v953_v2, %v953_v2 }
 0x13b   :  { %1242 = vst.msk [vmem:[%s2590_s3 + $0x70] sm:$0xf] %vm1213_vm2, %v1439_v7 }
 0x13c   :  { %1274 = vst.msk [vmem:[%s2590_s3 + $0xf0] sm:$0xf] %vm1213_vm2, %v1471_v15 }
 0x142   :  { %v1731_v8 = vpop.eup %1730 }
 0x143   :  { %v1733_v27 = vpop.eup %1732  ;;  %v796_v52 = vadd.f32 1.0, %v1731_v8 }
 0x144   :  { %v1735_v31 = vpop.eup %1734  ;;  %v828_v32 = vadd.f32 1.0, %v1733_v27 }
 0x145   :  { %v1737_v6 = vpop.eup %1736  ;;  %v860_v44 = vmul.f32 0.5, %v796_v52  ;;  %v794_v60 = vadd.f32 1.0, %v1735_v31 }
 0x146   :  { %v892_v62 = vmul.f32 0.5, %v828_v32  ;;  %v826_v13 = vadd.f32 1.0, %v1737_v6 }
 0x147   :  { %v924_v45 = vmul.f32 %v860_v44, %v2438_v21  ;;  %v858_v54 = vmul.f32 0.5, %v794_v60 }
 0x148   :  { %v956_v57 = vmul.f32 %v892_v62, %v2443_v4  ;;  %v890_v12 = vmul.f32 0.5, %v826_v13 }
 0x149   :  { %v1442_v20 = vpack.c.bf16 %v924_v45, %v924_v45  ;;  %v922_v17 = vmul.f32 %v858_v54, %v2449_v49 }
 0x14a   :  { %v1474_v53 = vpack.c.bf16 %v956_v57, %v956_v57  ;;  %v954_v37 = vmul.f32 %v890_v12, %v2455_v42 }
 0x14b   :  { %1245 = vst.msk [vmem:[%s2590_s3 + $0x7c] sm:$0xf] %vm1213_vm2, %v1442_v20  ;;  %v1440_v34 = vpack.c.bf16 %v922_v17, %v922_v17 }
 0x14c   :  { %1277 = vst.msk [vmem:[%s2590_s3 + $0xfc] sm:$0xf] %vm1213_vm2, %v1474_v53  ;;  %v1472_v21 = vpack.c.bf16 %v954_v37, %v954_v37 }
 0x14d   :  { %1243 = vst.msk [vmem:[%s2590_s3 + $0x74] sm:$0xf] %vm1213_vm2, %v1440_v34 }
 0x14e   :  { %1275 = vst.msk [vmem:[%s2590_s3 + $0xf4] sm:$0xf] %vm1213_vm2, %v1472_v21 }

// kernel: sppf_forward_pallas.3
= control target key start
LH: loop header
LB: loop body
LE: loop exit
PB: predicated region body
PF: predicated region fallthrough
CT: control target
= control target key end

     0   :  { %s7797_s12 = smov 0   ;;  %s12828_s0 = inlined_call_operand.vmem [shape: bf16[2,16,16,2], index: 0, kind: input, shape index: {}]   ;;  %s12829_s1 = inlined_call_operand.vmem [shape: bf16[4,2,8], index: 1, kind: input, shape index: {}]   ;;  %s12830_s2 = inlined_call_operand.vmem [shape: f32[1,8], index: 2, kind: input, shape index: {}]   ;;  %s12831_s3 = inlined_call_operand.vmem [shape: f32[2,16,16,8], index: 3, kind: output, shape index: {}]  }
   0x1 LB: > { %s7219_s13 = sadd.s32 4294967295, %s7774_s12   ;;  %p7223_p0 = scmp.ge.s32.totalorder %s7774_s12, 1  ;;  %s7774_s12 = sphi %s7797_s12, %s13_s12  }
   0x2   : > { %p137_p1 = scmp.lt.s32.totalorder %s7774_s12, 3 }
   0x4   : > { %p138_p2 = pnand %p7223_p0, %p137_p1 }
   0x6   : > { %141 = sbr.rel (%p138_p2) target bundleno = 1248 (0x4e0), region = 32 }
   0xb   : > { %vm294_vm0 = vcmask 1040384   ;;  %v5787_v0 = vld [vmem:[%s12829_s1] sm:$0x1]  ;;  %v7348_v1 = vld [vmem:[%s12829_s1 + $0x1] sm:$0x1]  ;;  %p161_p3 = scmp.lt.s32.totalorder %s7219_s13, 1 }
   0xc   : > { %7689 = vmatprep.subr.msk.bf16.mxu1 %vm294_vm0, %v5787_v0  ;;  %v6149_v2 = vsel %vm294_vm0, %v5787_v0, 0  ;;  %7688 = vmatprep.subr.msk.bf16.mxu0 %vm294_vm0, %v7348_v1  ;;  %v5889_v3 = vsel %vm294_vm0, %v7348_v1, 0  ;;  %vm173_vm1 = vcmask 11264   ;;  %vm188_vm2 = vcmask 8192   ;;  %v7413_v5 = vld [vmem:[%s12829_s1 + $0x2] sm:$0x1] }
   0xd   : > { %7587 = vmatpush3.bf16.msra.mxu1 %v6149_v2  ;;  %7553 = vmatpush3.bf16.msra.mxu0 %v5889_v3  ;;  %vm176_vm3 = vcmask 9216   ;;  %s13609_s13 = smov (!%p161_p3, %s7219_s13), 1  ;;  %v7776_v4 = vmov 4286644096   ;;  %vm209_vm4 = vcmask 9217   ;;  %vm295_vm5 = vcmask 1044484  }
   0xe   : > { %174 = vst.msk [vmem:[#allocation2] sm:$0xf] %vm173_vm1, %v7776_v4  ;;  %175 = vst.msk [vmem:[#allocation2 + $0x4] sm:$0xf] %vm173_vm1, %v7776_v4  ;;  %s7482_s18 = sshll.u32 %s13609_s13, 7  ;;  %vm426_vm6 = vcmask 11265   ;;  %7690 = vmatprep.subr.msk.bf16.mxu0 %vm294_vm0, %v7413_v5 }
   0xf   : > { %177 = vst.msk [vmem:[#allocation2 + $0x8] sm:$0x3] %vm176_vm3, %v7776_v4  ;;  %180 = vst.msk [vmem:[#allocation2 + $0x14] sm:$0x3] %vm176_vm3, %v7776_v4  ;;  %s7876_s23 = scalar_lea.vmem %s12828_s0, %s7482_s18  ;;  %vm5838_vm7 = vcmask 15360   ;;  %v7880_v6 = vsel %vm294_vm0, %v7413_v5, 0 }
  0x10   : > { %178 = vst.msk [vmem:[#allocation2 + $0xc] sm:$0xf] %vm173_vm1, %v7776_v4  ;;  %179 = vst.msk [vmem:[#allocation2 + $0x10] sm:$0xf] %vm173_vm1, %v7776_v4  ;;  %v7446_v7 = vld [vmem:[%s12829_s1 + $0x3] sm:$0x1] }
  0x11   : > { %191 = vst.msk [vmem:[#allocation2 + $0x18] sm:$0x1] %vm188_vm2, %v7776_v4  ;;  %192 = vst.msk [vmem:[#allocation2 + $0x24] sm:$0x1] %vm188_vm2, %v7776_v4  ;;  %v230_v8 = vld [vmem:[%s7876_s23] sm:$0xf]  ;;  %7691 = vmatprep.subr.msk.bf16.mxu1 %vm294_vm0, %v7446_v7 }
  0x12   : > { %193 = vst.msk [vmem:[#allocation2 + $0x30] sm:$0x1] %vm188_vm2, %v7776_v4  ;;  %194 = vst.msk [vmem:[#allocation2 + $0x3c] sm:$0x1] %vm188_vm2, %v7776_v4  ;;  %v231_v9 = vld [vmem:[%s7876_s23 + $0x4] sm:$0xf] }
  0x13   : > { %182 = vst.msk [vmem:[#allocation2 + $0xd8] sm:$0xf] %vm173_vm1, %v7776_v4  ;;  %183 = vst.msk [vmem:[#allocation2 + $0xdc] sm:$0xf] %vm173_vm1, %v7776_v4  ;;  %v232_v10 = vld [vmem:[%s7876_s23 + $0x8] sm:$0xf]  ;;  %v7381_v13 = vcombine.low %v230_v8, %v231_v9 }
  0x14   : > { %184 = vst.msk [vmem:[#allocation2 + $0xe0] sm:$0x3] %vm176_vm3, %v7776_v4  ;;  %187 = vst.msk [vmem:[#allocation2 + $0xec] sm:$0x3] %vm176_vm3, %v7776_v4  ;;  %vm535_vm8 = vsmask.f32 3328 }
  0x15   : > { %185 = vst.msk [vmem:[#allocation2 + $0xe4] sm:$0xf] %vm173_vm1, %v7776_v4  ;;  %186 = vst.msk [vmem:[#allocation2 + $0xe8] sm:$0xf] %vm173_vm1, %v7776_v4  ;;  %vm536_vm9 = vsmask.f32 7440  ;;  %7588 = vmatprep.mubr.msk.bf16.mxu1 %vm5838_vm7, %v7381_v13 }
  0x16   : > { %195 = vst.msk [vmem:[#allocation2 + $0x48] sm:$0x1] %vm188_vm2, %v7776_v4  ;;  %196 = vst.msk [vmem:[#allocation2 + $0x54] sm:$0x1] %vm188_vm2, %v7776_v4  ;;  %v297_v11 = vrot.slane %v230_v8, 7  ;;  %v299_v12 = vrot.slane %v231_v9, 7 }
  0x17   : > { %197 = vst.msk [vmem:[#allocation2 + $0x60] sm:$0x1] %vm188_vm2, %v7776_v4  ;;  %198 = vst.msk [vmem:[#allocation2 + $0x6c] sm:$0x1] %vm188_vm2, %v7776_v4  ;;  %v233_v14 = vld [vmem:[%s7876_s23 + $0xc] sm:$0xf] }
  0x18   : > { %199 = vst.msk [vmem:[#allocation2 + $0x78] sm:$0x1] %vm188_vm2, %v7776_v4  ;;  %200 = vst.msk [vmem:[#allocation2 + $0x84] sm:$0x1] %vm188_vm2, %v7776_v4  ;;  %v302_v15 = vrot.slane %v232_v10, 7  ;;  %v13073_v16 = vmov 0  ;;  %v7382_v18 = vcombine.low %v232_v10, %v233_v14 }
  0x19   : > { %201 = vst.msk [vmem:[#allocation2 + $0x90] sm:$0x1] %vm188_vm2, %v7776_v4  ;;  %202 = vst.msk [vmem:[#allocation2 + $0x9c] sm:$0x1] %vm188_vm2, %v7776_v4  ;;  %v304_v17 = vrot.slane %v233_v14, 7  ;;  %v6737_v21 = vsel %vm294_vm0, %v7446_v7, 0 }
  0x1a   : > { %203 = vst.msk [vmem:[#allocation2 + $0xa8] sm:$0x1] %vm188_vm2, %v7776_v4  ;;  %204 = vst.msk [vmem:[#allocation2 + $0xb4] sm:$0x1] %vm188_vm2, %v7776_v4  ;;  %v234_v19 = vld [vmem:[%s7876_s23 + $0x10] sm:$0xf]  ;;  %7589 = vmatmul.mubr.msk.bf16.vlgmr.msra.gmra.mxu1 %vm5838_vm7, %v7382_v18 }
  0x1b   : > { %205 = vst.msk [vmem:[#allocation2 + $0xc0] sm:$0x1] %vm188_vm2, %v7776_v4  ;;  %206 = vst.msk [vmem:[#allocation2 + $0xcc] sm:$0x1] %vm188_vm2, %v7776_v4  ;;  %v235_v20 = vld [vmem:[%s7876_s23 + $0x14] sm:$0xf]  ;;  %7655 = vmatpush3.bf16.msra.mxu1 %v6737_v21 }
  0x1c   : > { %189 = vst.msk [vmem:[#allocation2] sm:$0x1] %vm188_vm2, %v7776_v4  ;;  %190 = vst.msk [vmem:[#allocation2 + $0xc] sm:$0x1] %vm188_vm2, %v7776_v4  ;;  %v298_v22 = vrot.slane %v297_v11, 4  ;;  %v301_v23 = vrot.slane %v299_v12, 4  ;;  %v7383_v31 = vcombine.low %v234_v19, %v235_v20 }
  0x1d   : > { %210 = vst.msk [vmem:[#allocation2 + $0x8] sm:$0x2] %vm209_vm4, %v7776_v4  ;;  %211 = vst.msk [vmem:[#allocation2 + $0x14] sm:$0x2] %vm209_vm4, %v7776_v4  ;;  %v303_v24 = vrot.slane %v302_v15, 4  ;;  %v307_v25 = vrot.slane %v234_v19, 7 }
  0x1e   : > { %212 = vst.msk [vmem:[#allocation2 + $0x20] sm:$0x2] %vm209_vm4, %v7776_v4  ;;  %213 = vst.msk [vmem:[#allocation2 + $0x2c] sm:$0x2] %vm209_vm4, %v7776_v4  ;;  %v7902_v26 = vld [vmem:[#allocation2 + $0x4] sm:$0xf]  ;;  %7592 = vmatprep.mubr.msk.bf16.mxu1 %vm5838_vm7, %v7383_v31 }
  0x1f   : > { %214 = vst.msk [vmem:[#allocation2 + $0x38] sm:$0x2] %vm209_vm4, %v7776_v4  ;;  %215 = vst.msk [vmem:[#allocation2 + $0x44] sm:$0x2] %vm209_vm4, %v7776_v4  ;;  %v306_v27 = vrot.slane %v304_v17, 4  ;;  %v309_v28 = vrot.slane %v235_v20, 7 }
  0x20   : > { %216 = vst.msk [vmem:[#allocation2 + $0x50] sm:$0x2] %vm209_vm4, %v7776_v4  ;;  %217 = vst.msk [vmem:[#allocation2 + $0x5c] sm:$0x2] %vm209_vm4, %v7776_v4  ;;  %v308_v34 = vrot.slane %v307_v25, 4  ;;  %v548_v40 = vshll.u32 %v7902_v26, 16 }
  0x21   : > { %218 = vst.msk [vmem:[#allocation2 + $0x68] sm:$0x2] %vm209_vm4, %v7776_v4  ;;  %219 = vst.msk [vmem:[#allocation2 + $0x74] sm:$0x2] %vm209_vm4, %v7776_v4  ;;  %v311_v37 = vrot.slane %v309_v28, 4  ;;  %v552_v41 = vshrl.u32 %v7902_v26, 16 }
  0x22   : > { %220 = vst.msk [vmem:[#allocation2 + $0x80] sm:$0x2] %vm209_vm4, %v7776_v4  ;;  %221 = vst.msk [vmem:[#allocation2 + $0x8c] sm:$0x2] %vm209_vm4, %v7776_v4  ;;  %v7921_v38 = vld [vmem:[#allocation2 + $0x10] sm:$0xf] }
  0x23   : > { %222 = vst.msk [vmem:[#allocation2 + $0x98] sm:$0x2] %vm209_vm4, %v7776_v4  ;;  %223 = vst.msk [vmem:[#allocation2 + $0xa4] sm:$0x2] %vm209_vm4, %v7776_v4  ;;  %v7905_v29 = vld [vmem:[#allocation2] sm:$0xf] }
  0x24   : > { %224 = vst.msk [vmem:[#allocation2 + $0xb0] sm:$0x2] %vm209_vm4, %v7776_v4  ;;  %225 = vst.msk [vmem:[#allocation2 + $0xbc] sm:$0x2] %vm209_vm4, %v7776_v4  ;;  %v7907_v30 = vld [vmem:[#allocation2 + $0x8] sm:$0x3] }
  0x25   : > { %226 = vst.msk [vmem:[#allocation2 + $0xc8] sm:$0x2] %vm209_vm4, %v7776_v4  ;;  %227 = vst.msk [vmem:[#allocation2 + $0xd4] sm:$0x2] %vm209_vm4, %v7776_v4  ;;  %v7915_v35 = vld [vmem:[#allocation2 + $0xc] sm:$0xf] }
  0x26   : > { %207 = vst.msk [vmem:[#allocation2 + $0xd8] sm:$0x1] %vm188_vm2, %v7776_v4  ;;  %208 = vst.msk [vmem:[#allocation2 + $0xe4] sm:$0x1] %vm188_vm2, %v7776_v4  ;;  %v539_v36 = vshrl.u32 %v7905_v29, 16  ;;  %v542_v39 = vshll.u32 %v7905_v29, 16 }
  0x27   : > { %228 = vst.msk [vmem:[#allocation2 + $0xe0] sm:$0x2] %vm209_vm4, %v7776_v4  ;;  %229 = vst.msk [vmem:[#allocation2 + $0xec] sm:$0x2] %vm209_vm4, %v7776_v4  ;;  %v7929_v43 = vld [vmem:[#allocation2 + $0x14] sm:$0x3] }
  0x28   : > { %13072 = vst [vmem:[#allocation3_spill] sm:$0xff] %v7880_v6  ;;  %vm7892_vm10 = vmor %vm294_vm0, %vm295_vm5  ;;  %v541_v44 = vrot.slane %v539_v36, 4  ;;  %v558_v45 = vshll.u32 %v7907_v30, 16  ;;  %v563_v46 = vshrl.u32 %v7915_v35, 16  ;;  %v544_v47 = vrot.slane %v542_v39, 5  ;;  %s7483_s28 = sshll.u32 %s13609_s13, 8 }
  0x29   : > { %v13074_v16 = vsel %vm7892_vm10, 4294967295, %v13073_v16  ;;  %427 = vst.msk [vmem:[#allocation2 + $0x18] sm:$0xe] %vm426_vm6, %v297_v11  ;;  %430 = vst.msk [vmem:[#allocation2 + $0x24] sm:$0xe] %vm426_vm6, %v302_v15  ;;  %v300_v32 = vsel %vm7892_vm10, %v298_v22, %v299_v12  ;;  %v305_v33 = vsel %vm7892_vm10, %v303_v24, %v304_v17  ;;  %v310_v42 = vsel %vm7892_vm10, %v308_v34, %v309_v28  ;;  %s12687_s4 = scalar_lea.vmem %s12831_s3, %s7483_s28 }
  0x2a   : > { %13075 = vst [vmem:[#allocation4_spill] sm:$0xff] %v13074_v16  ;;  %429 = vst.msk [vmem:[#allocation2 + $0x20] sm:$0x1] %vm188_vm2, %v301_v23  ;;  %v550_v48 = vrot.slane %v548_v40, 5  ;;  %v554_v49 = vrot.slane %v552_v41, 4  ;;  %v566_v50 = vshll.u32 %v7915_v35, 16  ;;  %v545_v56 = vor.u32 %v544_v47, %v541_v44 }
  0x2b   : > { %433 = vst.msk [vmem:[#allocation2 + $0x30] sm:$0xe] %vm426_vm6, %v307_v25  ;;  %v560_v51 = vrot.slane %v558_v45, 5  ;;  %v565_v52 = vrot.slane %v563_v46, 4  ;;  %v572_v53 = vshll.u32 %v7921_v38, 16  ;;  %v576_v54 = vshrl.u32 %v7921_v38, 16  ;;  %vm7960_vm11 = vmor %vm535_vm8, %vm536_vm9 }
  0x2c   : > { %428 = vst.msk [vmem:[#allocation2 + $0x1c] sm:$0xf] %vm173_vm1, %v300_v32  ;;  %431 = vst.msk [vmem:[#allocation2 + $0x28] sm:$0xf] %vm173_vm1, %v305_v33  ;;  %v555_v57 = vor.u32 %v554_v49, %v550_v48  ;;  %v568_v58 = vrot.slane %v566_v50, 5  ;;  %v582_v59 = vshll.u32 %v7929_v43, 16 }
  0x2d   : > { %432 = vst.msk [vmem:[#allocation2 + $0x2c] sm:$0x1] %vm188_vm2, %v306_v27  ;;  %435 = vst.msk [vmem:[#allocation2 + $0x38] sm:$0x1] %vm188_vm2, %v311_v37  ;;  %v7956_v60 = vld [vmem:[%s7876_s23 + $0x18] sm:$0xf] }
  0x2e   : > { %434 = vst.msk [vmem:[#allocation2 + $0x34] sm:$0xf] %vm173_vm1, %v310_v42  ;;  %13076 = vst [vmem:[#allocation5_spill] sm:$0xff] %v7956_v60  ;;  %v13077_v61 = vmov 0  ;;  %v7966_v62 = vrot.slane %v572_v53, 5  ;;  %v578_v63 = vrot.slane %v576_v54, 4  ;;  %v569_v5 = vor.u32 %v568_v58, %v565_v52 }
  0x2f   : > { %v13078_v61 = vsel %vm7960_vm11, 4294967295, %v13077_v61  ;;  %v7973_v2 = vld [vmem:[%s7876_s23 + $0x1c] sm:$0xf]  ;;  %v546_v3 = vrot.slane %v545_v56, 4  ;;  %v556_v4 = vrot.slane %v555_v57, 4  ;;  %v584_v19 = vrot.slane %v582_v59, 5 }
  0x30   : > { %v7950_v55 = vld [vmem:[#allocation2 + $0x18] sm:$0xf]  ;;  %13079 = vst [vmem:[#allocation6_spill] sm:$0xff] %v13078_v61  ;;  %13080 = vst [vmem:[#allocation7_spill] sm:$0xff] %v7973_v2  ;;  %v7384_v7 = vcombine.low %v7956_v60, %v7973_v2  ;;  %v7978_v8 = vld [vmem:[%s7876_s23 + $0x20] sm:$0xf]  ;;  %v579_v11 = vor.u32 %v578_v63, %v7966_v62 }
  0x31   : > { %v12846_v0 = vshrl.u32 %v7950_v55, 16  ;;  %v12845_v1 = vshll.u32 %v7950_v55, 16  ;;  %13081 = vst [vmem:[#allocation8_spill] sm:$0xff] %v7978_v8  ;;  %v7981_v9 = vld [vmem:[%s7876_s23 + $0x24] sm:$0xf]  ;;  %v551_v15 = vsel %vm7960_vm11, %v546_v3, %v550_v48  ;;  %v561_v17 = vsel %vm7960_vm11, %v556_v4, %v560_v51 }
  0x32   : > { %13082 = vst [vmem:[#allocation9_spill] sm:$0xff] %v7981_v9  ;;  %v7385_v12 = vcombine.low %v7978_v8, %v7981_v9  ;;  %v7988_v13 = vld [vmem:[#allocation2 + $0x20] sm:$0x3]  ;;  %v7990_v14 = vld [vmem:[#allocation2 + $0x24] sm:$0xf]  ;;  %v570_v18 = vrot.slane %v569_v5, 4  ;;  %7593 = vmatmul.mubr.msk.bf16.gmra.mxu1 %vm5838_vm7, %v7384_v7  ;;  %v8004_v23 = vmax.bf16 %v551_v15, %v7905_v29  ;;  %v8007_v24 = vmax.bf16 %v561_v17, %v7902_v26 }
  0x33   : > { %v7983_v10 = vld [vmem:[#allocation2 + $0x1c] sm:$0xf]  ;;  %v7999_v20 = vld [vmem:[#allocation2 + $0x28] sm:$0xf]  ;;  %v580_v21 = vrot.slane %v579_v11, 4  ;;  %v589_v22 = vrot.slane %v12846_v0, 4 }
  0x34   : > { %7596 = vmatprep.mubr.msk.bf16.mxu1 %vm5838_vm7, %v7385_v12  ;;  %v575_v25 = vsel %vm7960_vm11, %v570_v18, %v7966_v62  ;;  %v592_v27 = vrot.slane %v12845_v1, 5  ;;  %v12843_v28 = vshll.u32 %v7983_v10, 16  ;;  %v12844_v31 = vshrl.u32 %v7983_v10, 16  ;;  %v8017_v32 = vld [vmem:[#allocation2 + $0x2c] sm:$0x3] }
  0x35   : > { %vm1158_vm12 = vcmask 1042432   ;;  %vm1159_vm13 = vcmask 1046532   ;;  %v585_v33 = vsel %vm7960_vm11, %v580_v21, %v584_v19  ;;  %v12842_v34 = vshll.u32 %v7988_v13, 16  ;;  %v8024_v44 = vld [vmem:[#allocation2 + $0x30] sm:$0xf] }
  0x36   : > { %v12841_v37 = vshrl.u32 %v7990_v14, 16  ;;  %v12840_v42 = vshll.u32 %v7990_v14, 16  ;;  %v593_v47 = vor.u32 %v592_v27, %v589_v22  ;;  %v598_v48 = vrot.slane %v12843_v28, 5  ;;  %v8031_v52 = vld [vmem:[#allocation2 + $0x34] sm:$0xf]  ;;  %vm8089_vm14 = vmor %vm1158_vm12, %vm1159_vm13 }
  0x37   : > { %v602_v49 = vrot.slane %v12844_v31, 4  ;;  %v12838_v51 = vshll.u32 %v7999_v20, 16  ;;  %v608_v56 = vrot.slane %v12842_v34, 5  ;;  %v12839_v62 = vshrl.u32 %v7999_v20, 16  ;;  %v8043_v7 = vld [vmem:[#allocation2 + $0x38] sm:$0x3] }
  0x38   : > { %v613_v57 = vrot.slane %v12841_v37, 4  ;;  %v616_v58 = vrot.slane %v12840_v42, 5  ;;  %v594_v63 = vrot.slane %v593_v47, 4  ;;  %v12832_v5 = vshll.u32 %v8017_v32, 16 }
  0x39   : > { %v603_v3 = vor.u32 %v602_v49, %v598_v48  ;;  %v622_v4 = vrot.slane %v12838_v51, 5  ;;  %v626_v12 = vrot.slane %v12839_v62, 4  ;;  %v12833_v15 = vshrl.u32 %v8024_v44, 16 }
  0x3a   : > { %v617_v11 = vor.u32 %v616_v58, %v613_v57  ;;  %v12834_v17 = vshll.u32 %v8024_v44, 16  ;;  %v599_v18 = vsel %vm7960_vm11, %v594_v63, %v598_v48  ;;  %v632_v21 = vrot.slane %v12832_v5, 5 }
  0x3b   : > { %v604_v19 = vrot.slane %v603_v3, 4  ;;  %v12835_v22 = vshll.u32 %v8031_v52, 16  ;;  %v627_v47 = vor.u32 %v626_v12, %v622_v4  ;;  %v637_v49 = vrot.slane %v12833_v15, 4 }
  0x3c   : > { %v618_v27 = vrot.slane %v617_v11, 4  ;;  %v640_v57 = vrot.slane %v12834_v17, 5  ;;  %v12837_v63 = vshrl.u32 %v8031_v52, 16  ;;  %v12836_v3 = vshll.u32 %v8043_v7, 16 }
  0x3d   : > { %v609_v58 = vsel %vm7960_vm11, %v604_v19, %v608_v56  ;;  %v646_v48 = vrot.slane %v12835_v22, 5  ;;  %v628_v12 = vrot.slane %v627_v47, 4  ;;  %v8067_v15 = vmax.bf16 %v575_v25, %v7915_v35 }
  0x3e   : > { %v623_v11 = vsel %vm7960_vm11, %v618_v27, %v622_v4  ;;  %v641_v5 = vor.u32 %v640_v57, %v637_v49  ;;  %v650_v17 = vrot.slane %v12837_v63, 4  ;;  %v656_v56 = vrot.slane %v12836_v3, 5 }
  0x3f   : > { %v8074_v19 = vmax.bf16 %v585_v33, %v7921_v38  ;;  %v8077_v22 = vmax.bf16 %v599_v18, %v7950_v55  ;;  %v633_v4 = vsel %vm7960_vm11, %v628_v12, %v632_v21  ;;  %v8082_v47 = vmax.bf16 %v609_v58, %v7983_v10 }
  0x40   : > { %v642_v27 = vrot.slane %v641_v5, 4  ;;  %v8085_v25 = vmax.bf16 %v623_v11, %v7990_v14  ;;  %v13083_v49 = vmov 0  ;;  %v651_v33 = vor.u32 %v650_v17, %v646_v48 }
  0x41   : > { %v13084_v49 = vsel %vm8089_vm14, 4294967295, %v13083_v49  ;;  %v8094_v18 = vmax.bf16 %v633_v4, %v7999_v20  ;;  %v7228_v57 = vrot.slane %v7905_v29, 9  ;;  %v1163_v5 = vrot.slane %v7902_v26, 5 }
  0x42   : > { %13085 = vst [vmem:[#allocation10_spill] sm:$0xff] %v13084_v49  ;;  %v647_v21 = vsel %vm7960_vm11, %v642_v27, %v646_v48  ;;  %v1166_v58 = vrot.slane %v7907_v30, 5  ;;  %v7229_v11 = vrot.slane %v7915_v35, 9  ;;  %v1170_v12 = vrot.slane %v7921_v38, 5 }
  0x43   : > { %v652_v3 = vrot.slane %v651_v33, 4  ;;  %v8104_v63 = vmax.bf16 %v647_v21, %v8024_v44  ;;  %v8108_v17 = vsel %vm8089_vm14, %v7228_v57, %v1163_v5  ;;  %v1165_v4 = vrot.slane %v1163_v5, 4 }
  0x44   : > { %v8112_v51 = vsel %vm8089_vm14, %v7229_v11, %v1170_v12  ;;  %v1172_v48 = vrot.slane %v1170_v12, 4  ;;  %v1173_v27 = vrot.slane %v7929_v43, 5  ;;  %v7230_v62 = vrot.slane %v7950_v55, 9 }
  0x45   : > { %vm1381_vm15 = vsmask.f32 2304  ;;  %vm1382_vm0 = vsmask.f32 6416  ;;  %v657_v33 = vsel %vm7960_vm11, %v652_v3, %v656_v56  ;;  %v8120_v21 = vsel %vm8089_vm14, %v1165_v4, %v1166_v58 }
  0x46   : > { %v1177_v57 = vrot.slane %v7983_v10, 5  ;;  %v1180_v5 = vrot.slane %v7988_v13, 5  ;;  %v8125_v11 = vmax.bf16 %v657_v33, %v8031_v52  ;;  %v8129_v12 = vsel %vm8089_vm14, %v1172_v48, %v1173_v27  ;;  %vm8198_vm3 = vmor %vm1381_vm15, %vm1382_vm0 }
  0x47   : > { %v7231_v42 = vrot.slane %v7990_v14, 9  ;;  %v1184_v37 = vrot.slane %v7999_v20, 5  ;;  %v1187_v58 = vrot.slane %v8017_v32, 5  ;;  %v7232_v4 = vrot.slane %v8024_v44, 9 }
  0x48   : > { %v8135_v3 = vsel %vm8089_vm14, %v7230_v62, %v1177_v57  ;;  %v1179_v56 = vrot.slane %v1177_v57, 4  ;;  %v1191_v48 = vrot.slane %v8031_v52, 5  ;;  %v1194_v27 = vrot.slane %v8043_v7, 5 }
  0x49   : > { %v8141_v33 = vsel %vm8089_vm14, %v7231_v42, %v1184_v37  ;;  %v1186_v34 = vrot.slane %v1184_v37, 4  ;;  %v1388_v31 = vrot.slane %v552_v41, 5  ;;  %v13086_v57 = vmov 0 }
  0x4a   : > { %v8147_v28 = vsel %vm8089_vm14, %v1179_v56, %v1180_v5  ;;  %v8161_v42 = vsel %vm8089_vm14, %v7232_v4, %v1191_v48  ;;  %v1193_v1 = vrot.slane %v1191_v48, 4  ;;  %v1384_v48 = vrot.slane %v539_v36, 5 }
  0x4b   : > { %v8157_v37 = vsel %vm8089_vm14, %v1186_v34, %v1187_v58  ;;  %v1385_v56 = vrot.slane %v542_v39, 6  ;;  %v1389_v34 = vrot.slane %v548_v40, 6  ;;  %v1396_v4 = vrot.slane %v558_v45, 6 }
  0x4c   : > { %v8175_v58 = vsel %vm8089_vm14, %v1193_v1, %v1194_v27  ;;  %v1393_v1 = vshrl.u32 %v7907_v30, 16  ;;  %v1399_v36 = vrot.slane %v563_v46, 5  ;;  %v1400_v39 = vrot.slane %v566_v50, 6 }
  0x4d   : > { %v1386_v27 = vor.u32 %v1385_v56, %v1384_v48  ;;  %v13087_v57 = vsel %vm8198_vm3, 4294967295, %v13086_v57  ;;  %v1390_v41 = vor.u32 %v1389_v34, %v1388_v31  ;;  %v1403_v56 = vrot.slane %v576_v54, 5 }
  0x4e   : > { %13088 = vst [vmem:[#allocation11_spill] sm:$0xff] %v13087_v57  ;;  %v1395_v40 = vrot.slane %v1393_v1, 5  ;;  %v1404_v45 = vrot.slane %v572_v53, 6  ;;  %v1401_v5 = vor.u32 %v1400_v39, %v1399_v36  ;;  %v1408_v46 = vshrl.u32 %v7929_v43, 16 }
  0x4f   : > { %v1387_v48 = vrot.slane %v1386_v27, 4  ;;  %v1411_v50 = vrot.slane %v582_v59, 6  ;;  %v1392_v62 = vrot.slane %v1390_v41, 4  ;;  %v13089_v61 = vshrl.u32 %v7950_v55, 16 }
  0x50   : > { %v1397_v0 = vor.u32 %v1396_v4, %v1395_v40  ;;  %v1405_v6 = vor.u32 %v1404_v45, %v1403_v56  ;;  %v1402_v54 = vrot.slane %v1401_v5, 4  ;;  %v1410_v1 = vrot.slane %v1408_v46, 5 }
  0x51   : > { %v1414_v31 = vrot.slane %v13089_v61, 5  ;;  %v1391_v34 = vsel %vm8198_vm3, %v1387_v48, %v1390_v41  ;;  %v13090_v53 = vshll.u32 %v7950_v55, 16  ;;  %v13091_v59 = vshrl.u32 %v7983_v10, 16 }
  0x52   : > { %v1398_v36 = vsel %vm8198_vm3, %v1392_v62, %v1397_v0  ;;  %v1407_v39 = vrot.slane %v1405_v6, 4  ;;  %v13092_v4 = vshll.u32 %v7983_v10, 16  ;;  %v1406_v61 = vsel %vm8198_vm3, %v1402_v54, %v1405_v6 }
  0x53   : > { %v1415_v27 = vrot.slane %v13090_v53, 6  ;;  %v1418_v49 = vrot.slane %v13091_v59, 5  ;;  %v1412_v56 = vor.u32 %v1411_v50, %v1410_v1  ;;  %v1423_v5 = vshrl.u32 %v7988_v13, 16 }
  0x54   : > { %v1419_v40 = vrot.slane %v13092_v4, 6  ;;  %vm1764_vm4 = vcmask 1041408   ;;  %vm1765_vm5 = vcmask 1045508   ;;  %v13093_v48 = vshll.u32 %v7988_v13, 16 }
  0x55   : > { %v1416_v41 = vor.u32 %v1415_v27, %v1414_v31  ;;  %v13094_v62 = vshrl.u32 %v7990_v14, 16  ;;  %v13095_v53 = vshll.u32 %v7990_v14, 16  ;;  %v1413_v4 = vsel %vm8198_vm3, %v1407_v39, %v1412_v56  ;;  %vm8286_vm8 = vmor %vm1764_vm4, %vm1765_vm5 }
  0x56   : > { %v1420_v45 = vor.u32 %v1419_v40, %v1418_v49  ;;  %v1426_v0 = vrot.slane %v13093_v48, 6  ;;  %v1425_v50 = vrot.slane %v1423_v5, 5  ;;  %v13096_v31 = vshrl.u32 %v7999_v20, 16 }
  0x57   : > { %v1429_v46 = vrot.slane %v13094_v62, 5  ;;  %v1430_v59 = vrot.slane %v13095_v53, 6  ;;  %v1417_v6 = vrot.slane %v1416_v41, 4  ;;  %v13097_v49 = vshll.u32 %v7999_v20, 16 }
  0x58   : > { %v1433_v54 = vrot.slane %v13096_v31, 5  ;;  %v1422_v1 = vrot.slane %v1420_v45, 4  ;;  %v1438_v48 = vshrl.u32 %v8017_v32, 16  ;;  %v1427_v16 = vor.u32 %v1426_v0, %v1425_v50 }
  0x59   : > { %v1431_v27 = vor.u32 %v1430_v59, %v1429_v46  ;;  %v1434_v40 = vrot.slane %v13097_v49, 6  ;;  %v1421_v62 = vsel %vm8198_vm3, %v1417_v6, %v1420_v45  ;;  %v13098_v53 = vshll.u32 %v8017_v32, 16 }
  0x5a   : > { %v13099_v39 = vshrl.u32 %v8024_v44, 16  ;;  %v1440_v31 = vrot.slane %v1438_v48, 5  ;;  %v13100_v46 = vshll.u32 %v8024_v44, 16  ;;  %v1428_v49 = vsel %vm8198_vm3, %v1422_v1, %v1427_v16 }
  0x5b   : > { %v1441_v9 = vrot.slane %v13098_v53, 6  ;;  %v1432_v41 = vrot.slane %v1431_v27, 4  ;;  %v1435_v5 = vor.u32 %v1434_v40, %v1433_v54  ;;  %v13101_v8 = vshrl.u32 %v8031_v52, 16 }
  0x5c   : > { %v1444_v56 = vrot.slane %v13099_v39, 5  ;;  %v1445_v59 = vrot.slane %v13100_v46, 6  ;;  %v13102_v45 = vshll.u32 %v8031_v52, 16  ;;  %v1453_v6 = vshrl.u32 %v8043_v7, 16 }
  0x5d   : > { %v1448_v2 = vrot.slane %v13101_v8, 5  ;;  %v1436_v50 = vsel %vm8198_vm3, %v1432_v41, %v1435_v5  ;;  %v1437_v27 = vrot.slane %v1435_v5, 4  ;;  %v1442_v54 = vor.u32 %v1441_v9, %v1440_v31 }
  0x5e   : > { %v1449_v0 = vrot.slane %v13102_v45, 6  ;;  %v1446_v40 = vor.u32 %v1445_v59, %v1444_v56  ;;  %v1455_v53 = vrot.slane %v1453_v6, 5  ;;  %v13103_v39 = vshll.u32 %v8043_v7, 16 }
  0x5f   : > { %v13104_v16 = vmax.bf16 %v8108_v17, %v8004_v23  ;;  %v1443_v1 = vsel %vm8198_vm3, %v1437_v27, %v1442_v54  ;;  %v13105_v60 = vmax.bf16 %v8120_v21, %v8007_v24  ;;  %v13106_v9 = vmax.bf16 %v8112_v51, %v8067_v15 }
  0x60   : > { %v1450_v48 = vor.u32 %v1449_v0, %v1448_v2  ;;  %v1456_v46 = vrot.slane %v13103_v39, 6  ;;  %v1447_v45 = vrot.slane %v1446_v40, 4  ;;  %v13107_v31 = vmax.bf16 %v8129_v12, %v8074_v19 }
  0x61   : > { %v1724_v8 = vmax.bf16 %v1391_v34, %v13104_v16  ;;  %v1725_v41 = vmax.bf16 %v1398_v36, %v13105_v60  ;;  %v1726_v2 = vmax.bf16 %v1406_v61, %v13106_v9  ;;  %v13108_v23 = vmax.bf16 %v8135_v3, %v8077_v22 }
  0x62   : > { %v1452_v56 = vrot.slane %v1450_v48, 4  ;;  %v1457_v5 = vor.u32 %v1456_v46, %v1455_v53  ;;  %v1727_v59 = vmax.bf16 %v1413_v4, %v13107_v31  ;;  %v1451_v34 = vsel %vm8198_vm3, %v1447_v45, %v1450_v48 }
  0x63   : > { %v1728_v17 = vmax.bf16 %v1421_v62, %v13108_v23  ;;  %v13109_v60 = vmax.bf16 %v8147_v28, %v8082_v47  ;;  %v13110_v51 = vmax.bf16 %v8141_v33, %v8085_v25  ;;  %v13111_v21 = vmax.bf16 %v8157_v37, %v8094_v18  ;;  %v13118_v23 = vld [vmem:[#allocation7_spill] sm:$0xff] }
  0x64   : > { %v13112_v22 = vmov 0  ;;  %v1458_v12 = vsel %vm8198_vm3, %v1452_v56, %v1457_v5  ;;  %v13115_v28 = vmax.bf16 %v8161_v42, %v8104_v63  ;;  %v7248_v25 = vrot.slane %v7905_v29, 10  ;;  %v13117_v56 = vld [vmem:[#allocation5_spill] sm:$0xff] }
  0x65   : > { %v1729_v24 = vmax.bf16 %v1428_v49, %v13109_v60  ;;  %v1730_v15 = vmax.bf16 %v1436_v50, %v13110_v51  ;;  %v1731_v19 = vmax.bf16 %v1443_v1, %v13111_v21  ;;  %v13113_v22 = vsel %vm8286_vm8, 4294967295, %v13112_v22  ;;  %v13120_v21 = vld [vmem:[#allocation9_spill] sm:$0xff] }
  0x66   : > { %13114 = vst [vmem:[#allocation12_spill] sm:$0xff] %v13113_v22  ;;  %v1732_v47 = vmax.bf16 %v1451_v34, %v13115_v28  ;;  %v1769_v3 = vrot.slane %v7902_v26, 6  ;;  %v13116_v18 = vmax.bf16 %v8175_v58, %v8125_v11  ;;  %v1772_v37 = vrot.slane %v7907_v30, 6  ;;  %v13119_v34 = vld [vmem:[#allocation8_spill] sm:$0xff] }
  0x67   : > { %v7249_v36 = vrot.slane %v7915_v35, 10  ;;  %v1776_v61 = vrot.slane %v7921_v38, 6  ;;  %v1779_v63 = vrot.slane %v7929_v43, 6  ;;  %v7250_v29 = vrot.slane %v7950_v55, 10 }
  0x68   : > { %v1733_v33 = vmax.bf16 %v1458_v12, %v13116_v18  ;;  %v1770_v4 = vsel %vm8286_vm8, %v7248_v25, %v1769_v3  ;;  %v1771_v62 = vrot.slane %v1769_v3, 4  ;;  %v1783_v11 = vrot.slane %v7983_v10, 6  ;;  %v240_v3 = vld [vmem:[%s7876_s23 + $0x28] sm:$0xf]  ;;  %v241_v18 = vld [vmem:[%s7876_s23 + $0x2c] sm:$0xf] }
  0x69   : > { %v1777_v26 = vsel %vm8286_vm8, %v7249_v36, %v1776_v61  ;;  %v1778_v42 = vrot.slane %v1776_v61, 4  ;;  %v1786_v30 = vrot.slane %v7988_v13, 6  ;;  %v7251_v38 = vrot.slane %v7990_v14, 10 }
  0x6a   : > { %v1773_v35 = vsel %vm8286_vm8, %v1771_v62, %v1772_v37  ;;  %v1790_v58 = vrot.slane %v7999_v20, 6  ;;  %v1793_v49 = vrot.slane %v8017_v32, 6  ;;  %v1784_v55 = vsel %vm8286_vm8, %v7250_v29, %v1783_v11 }
  0x6b   : > { %v1780_v43 = vsel %vm8286_vm8, %v1778_v42, %v1779_v63  ;;  %v1785_v0 = vrot.slane %v1783_v11, 4  ;;  %v7252_v10 = vrot.slane %v8024_v44, 10  ;;  %v1797_v50 = vrot.slane %v8031_v52, 6 }
  0x6c   : > { %v1791_v13 = vsel %vm8286_vm8, %v7251_v38, %v1790_v58  ;;  %v1792_v6 = vrot.slane %v1790_v58, 4  ;;  %v1800_v14 = vrot.slane %v8043_v7, 6  ;;  %v1947_v32 = vmax.bf16 %v1770_v4, %v1724_v8  ;;  %v8376_v38 = vld [vmem:[%s7876_s23 + $0x30] sm:$0xf] }
  0x6d   : > { %v1787_v20 = vsel %vm8286_vm8, %v1785_v0, %v1786_v30  ;;  %v1948_v27 = vmax.bf16 %v1773_v35, %v1725_v41  ;;  %v1949_v54 = vmax.bf16 %v1777_v26, %v1726_v2  ;;  %v1798_v44 = vsel %vm8286_vm8, %v7252_v10, %v1797_v50 }
  0x6e   : > { %v1794_v40 = vsel %vm8286_vm8, %v1792_v6, %v1793_v49  ;;  %v1799_v48 = vrot.slane %v1797_v50, 4  ;;  %v1950_v53 = vmax.bf16 %v1780_v43, %v1727_v59  ;;  %v1951_v39 = vmax.bf16 %v1784_v55, %v1728_v17 }
  0x6f   : > { %v1952_v46 = vmax.bf16 %v1787_v20, %v1729_v24  ;;  %v8331_v16 = vmax.bf16 %v1791_v13, %v1730_v15  ;;  %v8333_v52 = vmax.bf16 %v1794_v40, %v1731_v19  ;;  %v8337_v8 = vmax.bf16 %v1798_v44, %v1732_v47 }
  0x70   : > { %v1801_v7 = vsel %vm8286_vm8, %v1799_v48, %v1800_v14  ;;  %v1987_v1 = vmax.bf16 %v1949_v54, %v1947_v32  ;;  %v1988_v45 = vmax.bf16 %v1950_v53, %v1948_v27  ;;  %v1989_v9 = vmax.bf16 %v1951_v39, %v1949_v54 }
  0x71   : > { %v8339_v41 = vmax.bf16 %v1801_v7, %v1733_v33  ;;  %v1990_v2 = vmax.bf16 %v1952_v46, %v1950_v53  ;;  %v312_v5 = vrot.slane %v13117_v56, 7  ;;  %v314_v17 = vrot.slane %v13118_v23, 7 }
  0x72   : > { %v2019_v31 = vmax.bf16 %v1987_v1, %v1951_v39  ;;  %v2020_v59 = vmax.bf16 %v1988_v45, %v1952_v46  ;;  %v317_v60 = vrot.slane %v13119_v34, 7  ;;  %v8346_v51 = vmax.bf16 %v1989_v9, %v8331_v16  ;;  %v8401_v45 = vld [vmem:[%s7876_s23 + $0x34] sm:$0xf] }
  0x73   : > { %v313_v24 = vrot.slane %v312_v5, 4  ;;  %436 = vst.msk [vmem:[#allocation2 + $0x3c] sm:$0xe] %vm426_vm6, %v312_v5  ;;  %v8349_v15 = vmax.bf16 %v1990_v2, %v8333_v52  ;;  %v319_v19 = vrot.slane %v13120_v21, 7  ;;  %v316_v47 = vrot.slane %v314_v17, 4 }
  0x74   : > { %v2051_v12 = vmax.bf16 %v2019_v31, %v8331_v16  ;;  %v2052_v28 = vmax.bf16 %v2020_v59, %v8333_v52  ;;  %v318_v25 = vrot.slane %v317_v60, 4  ;;  %439 = vst.msk [vmem:[#allocation2 + $0x48] sm:$0xe] %vm426_vm6, %v317_v60  ;;  %v2053_v36 = vmax.bf16 %v8346_v51, %v8337_v8 }
  0x75   : > { %v315_v37 = vsel %vm7892_vm10, %v313_v24, %v314_v17  ;;  %v2054_v61 = vmax.bf16 %v8349_v15, %v8339_v41  ;;  %v321_v4 = vrot.slane %v319_v19, 4  ;;  %438 = vst.msk [vmem:[#allocation2 + $0x44] sm:$0x1] %vm188_vm2, %v316_v47  ;;  %v1991_v26 = vmax.bf16 %v8331_v16, %v1951_v39 }
  0x76   : > { %v2083_v62 = vmax.bf16 %v2051_v12, %v8337_v8  ;;  %v2084_v63 = vmax.bf16 %v2052_v28, %v8339_v41  ;;  %437 = vst.msk [vmem:[#allocation2 + $0x40] sm:$0xf] %vm173_vm1, %v315_v37  ;;  %v320_v29 = vsel %vm7892_vm10, %v318_v25, %v319_v19  ;;  %v1992_v42 = vmax.bf16 %v8333_v52, %v1952_v46 }
  0x77   : > { %440 = vst.msk [vmem:[#allocation2 + $0x4c] sm:$0xf] %vm173_vm1, %v320_v29  ;;  %v322_v11 = vrot.slane %v240_v3, 7  ;;  %v324_v30 = vrot.slane %v241_v18, 7  ;;  %v1993_v35 = vmax.bf16 %v8337_v8, %v8331_v16  ;;  %v8379_v55 = vmax.bf16 %v1991_v26, %v8337_v8 }
  0x78   : > { %441 = vst.msk [vmem:[#allocation2 + $0x50] sm:$0x1] %vm188_vm2, %v321_v4  ;;  %v2147_v58 = vrot.slane %v2083_v62, 7  ;;  %v2149_v49 = vrot.slane %v2084_v63, 7  ;;  %v7349_v43 = vcombine.low %v2083_v62, %v2084_v63  ;;  %v8382_v0 = vmax.bf16 %v1992_v42, %v8339_v41 }
  0x79   : > { %v323_v10 = vrot.slane %v322_v11, 4  ;;  %v326_v13 = vrot.slane %v324_v30, 4  ;;  %442 = vst.msk [vmem:[#allocation2 + $0x54] sm:$0xe] %vm426_vm6, %v322_v11  ;;  %v1994_v6 = vmax.bf16 %v8339_v41, %v8333_v52  ;;  %v7386_v32 = vcombine.low %v240_v3, %v241_v18 }
  0x7a   : > { %v2148_v50 = vrot.slane %v2147_v58, 4  ;;  %v2151_v14 = vrot.slane %v2149_v49, 4  ;;  %2275 = vst.msk [vmem:[#allocation2 + $0x18] sm:$0xe] %vm426_vm6, %v2147_v58  ;;  %7554 = vmatprep.mubr.msk.bf16.mxu0 %vm5838_vm7, %v7349_v43  ;;  %v490_v20 = vld [vmem:[#allocation2 + $0x3c] sm:$0xf]  ;;  %v7387_v59 = vcombine.low %v8376_v38, %v8401_v45 }
  0x7b   : > { %v327_v27 = vrot.slane %v8376_v38, 7  ;;  %v659_v54 = vshrl.u32 %v490_v20, 16  ;;  %v662_v40 = vshll.u32 %v490_v20, 16  ;;  %v7233_v44 = vrot.slane %v490_v20, 9  ;;  %v8390_v53 = vld [vmem:[#allocation2 + $0x48] sm:$0xf]  ;;  %7597 = vmatmul.mubr.msk.bf16.gmra.mxu1 %vm5838_vm7, %v7386_v32 }
  0x7c   : > { %v7253_v48 = vrot.slane %v490_v20, 10  ;;  %444 = vst.msk [vmem:[#allocation2 + $0x5c] sm:$0x1] %vm188_vm2, %v326_v13  ;;  %v2150_v39 = vsel %vm7892_vm10, %v2148_v50, %v2149_v49  ;;  %2277 = vst.msk [vmem:[#allocation2 + $0x20] sm:$0x1] %vm188_vm2, %v2151_v14  ;;  %v683_v46 = vshrl.u32 %v8390_v53, 16  ;;  %v325_v31 = vsel %vm7892_vm10, %v323_v10, %v324_v30  ;;  %7600 = vmatprep.mubr.msk.bf16.mxu1 %vm5838_vm7, %v7387_v59 }
  0x7d   : > { %v686_v7 = vshll.u32 %v8390_v53, 16  ;;  %v7234_v1 = vrot.slane %v8390_v53, 9  ;;  %445 = vst.msk [vmem:[#allocation2 + $0x60] sm:$0xe] %vm426_vm6, %v327_v27  ;;  %v491_v9 = vld [vmem:[#allocation2 + $0x40] sm:$0xf] }
  0x7e   : > { %2276 = vst.msk [vmem:[#allocation2 + $0x1c] sm:$0xf] %vm173_vm1, %v2150_v39  ;;  %v492_v2 = vld [vmem:[#allocation2 + $0x44] sm:$0x3]  ;;  %v661_v56 = vrot.slane %v659_v54, 4  ;;  %v664_v5 = vrot.slane %v662_v40, 5 }
  0x7f   : > { %v668_v23 = vshll.u32 %v491_v9, 16  ;;  %v672_v17 = vshrl.u32 %v491_v9, 16  ;;  %v678_v34 = vshll.u32 %v492_v2, 16  ;;  %v1198_v60 = vrot.slane %v491_v9, 5  ;;  %443 = vst.msk [vmem:[#allocation2 + $0x58] sm:$0xf] %vm173_vm1, %v325_v31 }
  0x80   : > { %v665_v24 = vor.u32 %v664_v5, %v661_v56  ;;  %v1201_v21 = vrot.slane %v492_v2, 5  ;;  %v1459_v19 = vrot.slane %v659_v54, 5  ;;  %v1460_v12 = vrot.slane %v662_v40, 6  ;;  %v8419_v54 = vld [vmem:[#allocation2 + $0x4c] sm:$0xf] }
  0x81   : > { %v670_v28 = vrot.slane %v668_v23, 5  ;;  %v674_v47 = vrot.slane %v672_v17, 4  ;;  %v680_v25 = vrot.slane %v678_v34, 5  ;;  %v1199_v18 = vsel %vm8089_vm14, %v7233_v44, %v1198_v60  ;;  %v8423_v56 = vld [vmem:[#allocation2 + $0x50] sm:$0x3] }
  0x82   : > { %v666_v37 = vrot.slane %v665_v24, 4  ;;  %v1200_v4 = vrot.slane %v1198_v60, 4  ;;  %v1461_v62 = vor.u32 %v1460_v12, %v1459_v19  ;;  %v1463_v63 = vrot.slane %v672_v17, 5 }
  0x83   : > { %v675_v29 = vor.u32 %v674_v47, %v670_v28  ;;  %v1464_v26 = vrot.slane %v668_v23, 6  ;;  %v1468_v42 = vshrl.u32 %v492_v2, 16  ;;  %v1471_v11 = vrot.slane %v678_v34, 6 }
  0x84   : > { %v671_v58 = vsel %vm7960_vm11, %v666_v37, %v670_v28  ;;  %v1202_v49 = vsel %vm8089_vm14, %v1200_v4, %v1201_v21  ;;  %v1462_v43 = vrot.slane %v1461_v62, 4  ;;  %v1804_v10 = vrot.slane %v491_v9, 6 }
  0x85   : > { %v676_v13 = vrot.slane %v675_v29, 4  ;;  %v1068_v50 = vmax.bf16 %v671_v58, %v490_v20  ;;  %v1465_v14 = vor.u32 %v1464_v26, %v1463_v63  ;;  %v1470_v32 = vrot.slane %v1468_v42, 5 }
  0x86   : > { %v1805_v40 = vsel %vm8286_vm8, %v7253_v48, %v1804_v10  ;;  %v1806_v44 = vrot.slane %v1804_v10, 4  ;;  %v1807_v39 = vrot.slane %v492_v2, 6  ;;  %v685_v5 = vrot.slane %v683_v46, 4 }
  0x87   : > { %v681_v31 = vsel %vm7960_vm11, %v676_v13, %v680_v25  ;;  %v1351_v59 = vmax.bf16 %v1199_v18, %v1068_v50  ;;  %v1466_v20 = vsel %vm8198_vm3, %v1462_v43, %v1465_v14  ;;  %v1467_v23 = vrot.slane %v1465_v14, 4 }
  0x88   : > { %v1069_v17 = vmax.bf16 %v681_v31, %v491_v9  ;;  %v1472_v34 = vor.u32 %v1471_v11, %v1470_v32  ;;  %v1808_v48 = vsel %vm8286_vm8, %v1806_v44, %v1807_v39  ;;  %v688_v2 = vrot.slane %v686_v7, 5 }
  0x89   : > { %v1734_v60 = vmax.bf16 %v1466_v20, %v1351_v59  ;;  %v692_v24 = vshll.u32 %v8419_v54, 16  ;;  %v696_v21 = vshrl.u32 %v8419_v54, 16  ;;  %v702_v19 = vshll.u32 %v8423_v56, 16 }
  0x8a   : > { %v1352_v12 = vmax.bf16 %v1202_v49, %v1069_v17  ;;  %v1473_v28 = vsel %vm8198_vm3, %v1467_v23, %v1472_v34  ;;  %v689_v47 = vor.u32 %v688_v2, %v685_v5  ;;  %v1205_v9 = vrot.slane %v8419_v54, 5 }
  0x8b   : > { %v8441_v25 = vmax.bf16 %v1805_v40, %v1734_v60  ;;  %v694_v18 = vrot.slane %v692_v24, 5  ;;  %v698_v37 = vrot.slane %v696_v21, 4  ;;  %v704_v4 = vrot.slane %v702_v19, 5 }
  0x8c   : > { %v1735_v62 = vmax.bf16 %v1473_v28, %v1352_v12  ;;  %v690_v63 = vrot.slane %v689_v47, 4  ;;  %v1206_v29 = vsel %vm8089_vm14, %v7234_v1, %v1205_v9  ;;  %v1207_v26 = vrot.slane %v1205_v9, 4  ;;  %v8480_v12 = vld [vmem:[#allocation2 + $0x58] sm:$0xf]  ;;  %v13124_v28 = vld [vmem:[#allocation3_spill] sm:$0xff] }
  0x8d   : > { %v2085_v42 = vmax.bf16 %v2053_v36, %v8441_v25  ;;  %v699_v11 = vor.u32 %v698_v37, %v694_v18  ;;  %v1208_v58 = vrot.slane %v8423_v56, 5  ;;  %v1474_v49 = vrot.slane %v683_v46, 5 }
  0x8e   : > { %v8454_v43 = vmax.bf16 %v1808_v48, %v1735_v62  ;;  %v695_v10 = vsel %vm7960_vm11, %v690_v63, %v694_v18  ;;  %v1475_v1 = vrot.slane %v686_v7, 6  ;;  %v1478_v13 = vrot.slane %v696_v21, 5  ;;  %v8493_v62 = vld [vmem:[#allocation2 + $0x5c] sm:$0x3] }
  0x8f   : > { %v2152_v50 = vrot.slane %v2085_v42, 7  ;;  %v700_v14 = vrot.slane %v699_v11, 4  ;;  %v1070_v51 = vmax.bf16 %v695_v10, %v8390_v53  ;;  %v1209_v36 = vsel %vm8089_vm14, %v1207_v26, %v1208_v58 }
  0x90   : > { %v2086_v46 = vmax.bf16 %v2054_v61, %v8454_v43  ;;  %v1476_v32 = vor.u32 %v1475_v1, %v1474_v49  ;;  %v1479_v40 = vrot.slane %v692_v24, 6  ;;  %v1483_v44 = vshrl.u32 %v8423_v56, 16 }
  0x91   : > { %v2153_v39 = vrot.slane %v2152_v50, 4  ;;  %2278 = vst.msk [vmem:[#allocation2 + $0x24] sm:$0xe] %vm426_vm6, %v2152_v50  ;;  %v705_v7 = vsel %vm7960_vm11, %v700_v14, %v704_v4  ;;  %v1353_v5 = vmax.bf16 %v1206_v29, %v1070_v51  ;;  %v1486_v31 = vrot.slane %v702_v19, 6  ;;  %v8478_v19 = vld [vmem:[#allocation2 + $0x54] sm:$0xf] }
  0x92   : > { %v2154_v59 = vrot.slane %v2086_v46, 7  ;;  %v7350_v20 = vcombine.low %v2085_v42, %v2086_v46  ;;  %v1071_v23 = vmax.bf16 %v705_v7, %v8419_v54  ;;  %v1477_v17 = vrot.slane %v1476_v32, 4 }
  0x93   : > { %v1480_v34 = vor.u32 %v1479_v40, %v1478_v13  ;;  %v1485_v15 = vrot.slane %v1483_v44, 5  ;;  %v7254_v61 = vrot.slane %v8390_v53, 10  ;;  %v1811_v48 = vrot.slane %v8419_v54, 6 }
  0x94   : > { %v2155_v2 = vsel %vm7892_vm10, %v2153_v39, %v2154_v59  ;;  %v2156_v60 = vrot.slane %v2154_v59, 4  ;;  %7555 = vmatmul.mubr.msk.bf16.vlgmr.msra.gmra.mxu0 %vm5838_vm7, %v7350_v20  ;;  %v1354_v24 = vmax.bf16 %v1209_v36, %v1071_v23  ;;  %v1814_v21 = vrot.slane %v8423_v56, 6 }
  0x95   : > { %2279 = vst.msk [vmem:[#allocation2 + $0x28] sm:$0xf] %vm173_vm1, %v2155_v2  ;;  %7621 = vmatpush3.bf16.msra.mxu0 %v13124_v28  ;;  %v1481_v53 = vsel %vm8198_vm3, %v1477_v17, %v1480_v34  ;;  %v1482_v54 = vrot.slane %v1480_v34, 4  ;;  %v1487_v47 = vor.u32 %v1486_v31, %v1485_v15  ;;  %v1812_v9 = vsel %vm8286_vm8, %v7254_v61, %v1811_v48 }
  0x96   : > { %2280 = vst.msk [vmem:[#allocation2 + $0x2c] sm:$0x1] %vm188_vm2, %v2156_v60  ;;  %v1736_v18 = vmax.bf16 %v1481_v53, %v1353_v5  ;;  %v1813_v56 = vrot.slane %v1811_v48, 4  ;;  %v2055_v37 = vmax.bf16 %v8379_v55, %v8441_v25  ;;  %v2056_v4 = vmax.bf16 %v8382_v0, %v8454_v43 }
  0x97   : > { %v1488_v63 = vsel %vm8198_vm3, %v1482_v54, %v1487_v47  ;;  %v707_v29 = vshrl.u32 %v8478_v19, 16  ;;  %v710_v26 = vshll.u32 %v8478_v19, 16  ;;  %v716_v42 = vshll.u32 %v8480_v12, 16 }
  0x98   : > { %v1737_v11 = vmax.bf16 %v1488_v63, %v1354_v24  ;;  %v1815_v58 = vsel %vm8286_vm8, %v1813_v56, %v1814_v21  ;;  %v8502_v49 = vmax.bf16 %v1812_v9, %v1736_v18  ;;  %v720_v55 = vshrl.u32 %v8480_v12, 16 }
  0x99   : > { %v709_v0 = vrot.slane %v707_v29, 4  ;;  %v712_v10 = vrot.slane %v710_v26, 5  ;;  %v718_v1 = vrot.slane %v716_v42, 5  ;;  %v726_v13 = vshll.u32 %v8493_v62, 16 }
  0x9a   : > { %v8506_v50 = vmax.bf16 %v1815_v58, %v1737_v11  ;;  %v2087_v14 = vmax.bf16 %v2055_v37, %v8502_v49  ;;  %v722_v51 = vrot.slane %v720_v55, 4  ;;  %v7235_v36 = vrot.slane %v8478_v19, 9 }
  0x9b   : > { %v713_v46 = vor.u32 %v712_v10, %v709_v0  ;;  %v728_v32 = vrot.slane %v726_v13, 5  ;;  %v1212_v40 = vrot.slane %v8480_v12, 5  ;;  %v1215_v44 = vrot.slane %v8493_v62, 5 }
  0x9c   : > { %v2088_v39 = vmax.bf16 %v2056_v4, %v8506_v50  ;;  %v2157_v7 = vrot.slane %v2087_v14, 7  ;;  %v723_v5 = vor.u32 %v722_v51, %v718_v1  ;;  %v1489_v31 = vrot.slane %v707_v29, 5 }
  0x9d   : > { %v714_v59 = vrot.slane %v713_v46, 4  ;;  %v1213_v20 = vsel %vm8089_vm14, %v7235_v36, %v1212_v40  ;;  %v1214_v23 = vrot.slane %v1212_v40, 4  ;;  %v1490_v17 = vrot.slane %v710_v26, 6 }
  0x9e   : > { %v2158_v34 = vrot.slane %v2157_v7, 4  ;;  %v2159_v15 = vrot.slane %v2088_v39, 7  ;;  %2281 = vst.msk [vmem:[#allocation2 + $0x30] sm:$0xe] %vm426_vm6, %v2157_v7  ;;  %v7351_v61 = vcombine.low %v2087_v14, %v2088_v39  ;;  %v724_v48 = vrot.slane %v723_v5, 4 }
  0x9f   : > { %v719_v2 = vsel %vm7960_vm11, %v714_v59, %v718_v1  ;;  %v1216_v60 = vsel %vm8089_vm14, %v1214_v23, %v1215_v44  ;;  %v1491_v24 = vor.u32 %v1490_v17, %v1489_v31  ;;  %v1493_v21 = vrot.slane %v720_v55, 5  ;;  %v244_v7 = vld [vmem:[%s7876_s23 + $0x38] sm:$0xf]  ;;  %v245_v23 = vld [vmem:[%s7876_s23 + $0x3c] sm:$0xf] }
  0xa0   : > { %v2160_v28 = vsel %vm7892_vm10, %v2158_v34, %v2159_v15  ;;  %v2161_v53 = vrot.slane %v2159_v15, 4  ;;  %7558 = vmatprep.mubr.msk.bf16.mxu0 %vm5838_vm7, %v7351_v61  ;;  %v729_v54 = vsel %vm7960_vm11, %v724_v48, %v728_v32  ;;  %v1072_v47 = vmax.bf16 %v719_v2, %v8478_v19 }
  0xa1   : > { %2282 = vst.msk [vmem:[#allocation2 + $0x34] sm:$0xf] %vm173_vm1, %v2160_v28  ;;  %v1073_v9 = vmax.bf16 %v729_v54, %v8480_v12  ;;  %v1492_v18 = vrot.slane %v1491_v24, 4  ;;  %v1494_v56 = vrot.slane %v716_v42, 6  ;;  %v1498_v37 = vshrl.u32 %v8493_v62, 16 }
  0xa2   : > { %2283 = vst.msk [vmem:[#allocation2 + $0x38] sm:$0x1] %vm188_vm2, %v2161_v53  ;;  %v1355_v4 = vmax.bf16 %v1213_v20, %v1072_v47  ;;  %v1501_v63 = vrot.slane %v726_v13, 6  ;;  %v7255_v29 = vrot.slane %v8478_v19, 10  ;;  %v1818_v26 = vrot.slane %v8480_v12, 6 }
  0xa3   : > { %v1356_v11 = vmax.bf16 %v1216_v60, %v1073_v9  ;;  %v1495_v58 = vor.u32 %v1494_v56, %v1493_v21  ;;  %v1500_v55 = vrot.slane %v1498_v37, 5  ;;  %v1821_v0 = vrot.slane %v8493_v62, 6  ;;  %v8543_v12 = vld [vmem:[#allocation2 + $0x60] sm:$0xf] }
  0xa4   : > { %v1819_v10 = vsel %vm8286_vm8, %v7255_v29, %v1818_v26  ;;  %v1820_v1 = vrot.slane %v1818_v26, 4  ;;  %v2025_v42 = vmax.bf16 %v1993_v35, %v8441_v25  ;;  %v2026_v19 = vmax.bf16 %v1994_v6, %v8454_v43 }
  0xa5   : > { %v1496_v13 = vsel %vm8198_vm3, %v1492_v18, %v1495_v58  ;;  %v1497_v62 = vrot.slane %v1495_v58, 4  ;;  %v1502_v14 = vor.u32 %v1501_v63, %v1500_v55  ;;  %v328_v51 = vrot.slane %v327_v27, 4  ;;  %v8590_v63 = vld [vmem:[%s7876_s23 + $0x44] sm:$0xf] }
  0xa6   : > { %v1738_v36 = vmax.bf16 %v1496_v13, %v1355_v4  ;;  %v1822_v16 = vsel %vm8286_vm8, %v1820_v1, %v1821_v0  ;;  %v2057_v35 = vmax.bf16 %v2025_v42, %v8502_v49  ;;  %v2058_v52 = vmax.bf16 %v2026_v19, %v8506_v50 }
  0xa7   : > { %v1503_v6 = vsel %vm8198_vm3, %v1497_v62, %v1502_v14  ;;  %v329_v46 = vrot.slane %v8401_v45, 7  ;;  %v731_v32 = vshrl.u32 %v8543_v12, 16  ;;  %v734_v40 = vshll.u32 %v8543_v12, 16 }
  0xa8   : > { %v1739_v38 = vmax.bf16 %v1503_v6, %v1356_v11  ;;  %v8558_v27 = vmax.bf16 %v1819_v10, %v1738_v36  ;;  %v7236_v44 = vrot.slane %v8543_v12, 9  ;;  %v7256_v39 = vrot.slane %v8543_v12, 10 }
  0xa9   : > { %v330_v5 = vsel %vm7892_vm10, %v328_v51, %v329_v46  ;;  %v331_v31 = vrot.slane %v329_v46, 4  ;;  %v733_v59 = vrot.slane %v731_v32, 4  ;;  %v736_v20 = vrot.slane %v734_v40, 5 }
  0xaa   : > { %v8566_v45 = vmax.bf16 %v1822_v16, %v1739_v38  ;;  %v2089_v17 = vmax.bf16 %v2057_v35, %v8558_v27  ;;  %446 = vst.msk [vmem:[#allocation2 + $0x64] sm:$0xf] %vm173_vm1, %v330_v5  ;;  %v1504_v34 = vrot.slane %v731_v32, 5  ;;  %v1505_v15 = vrot.slane %v734_v40, 6 }
  0xab   : > { %447 = vst.msk [vmem:[#allocation2 + $0x68] sm:$0x1] %vm188_vm2, %v331_v31  ;;  %v737_v61 = vor.u32 %v736_v20, %v733_v59  ;;  %v1995_v48 = vmax.bf16 %v8441_v25, %v8337_v8  ;;  %v1996_v2 = vmax.bf16 %v8454_v43, %v8339_v41  ;;  %v332_v60 = vrot.slane %v244_v7, 7  ;;  %v8584_v8 = vld [vmem:[%s7876_s23 + $0x40] sm:$0xf] }
  0xac   : > { %v2090_v24 = vmax.bf16 %v2058_v52, %v8566_v45  ;;  %v2162_v21 = vrot.slane %v2089_v17, 7  ;;  %v1506_v28 = vor.u32 %v1505_v15, %v1504_v34  ;;  %v334_v53 = vrot.slane %v245_v23, 7 }
  0xad   : > { %v738_v54 = vrot.slane %v737_v61, 4  ;;  %v8577_v47 = vmax.bf16 %v1995_v48, %v8502_v49  ;;  %v8580_v9 = vmax.bf16 %v1996_v2, %v8506_v50  ;;  %v333_v18 = vrot.slane %v332_v60, 4  ;;  %448 = vst.msk [vmem:[#allocation2 + $0x6c] sm:$0xe] %vm426_vm6, %v332_v60 }
  0xae   : > { %v2163_v41 = vrot.slane %v2162_v21, 4  ;;  %v2164_v56 = vrot.slane %v2090_v24, 7  ;;  %2284 = vst.msk [vmem:[#allocation2 + $0x3c] sm:$0xe] %vm426_vm6, %v2162_v21  ;;  %v7352_v37 = vcombine.low %v2089_v17, %v2090_v24  ;;  %v8587_v4 = vrot.slane %v1506_v28, 4 }
  0xaf   : > { %v2059_v29 = vmax.bf16 %v8577_v47, %v8558_v27  ;;  %v2060_v26 = vmax.bf16 %v8580_v9, %v8566_v45  ;;  %v335_v11 = vsel %vm7892_vm10, %v333_v18, %v334_v53  ;;  %v336_v58 = vrot.slane %v334_v53, 4 }
  0xb0   : > { %v2165_v55 = vsel %vm7892_vm10, %v2163_v41, %v2164_v56  ;;  %v2166_v0 = vrot.slane %v2164_v56, 4  ;;  %7559 = vmatmul.mubr.msk.bf16.gmra.mxu0 %vm5838_vm7, %v7352_v37  ;;  %449 = vst.msk [vmem:[#allocation2 + $0x70] sm:$0xf] %vm173_vm1, %v335_v11  ;;  %v1997_v10 = vmax.bf16 %v8502_v49, %v8441_v25  ;;  %v1998_v1 = vmax.bf16 %v8506_v50, %v8454_v43 }
  0xb1   : > { %2285 = vst.msk [vmem:[#allocation2 + $0x40] sm:$0xf] %vm173_vm1, %v2165_v55  ;;  %v500_v42 = vld [vmem:[#allocation2 + $0x64] sm:$0xf]  ;;  %v7388_v19 = vcombine.low %v244_v7, %v245_v23  ;;  %v337_v13 = vrot.slane %v8584_v8, 7  ;;  %v339_v62 = vrot.slane %v8590_v63, 7  ;;  %v1999_v14 = vmax.bf16 %v8558_v27, %v8502_v49 }
  0xb2   : > { %450 = vst.msk [vmem:[#allocation2 + $0x74] sm:$0x1] %vm188_vm2, %v336_v58  ;;  %2286 = vst.msk [vmem:[#allocation2 + $0x44] sm:$0x1] %vm188_vm2, %v2166_v0  ;;  %v501_v51 = vld [vmem:[#allocation2 + $0x68] sm:$0x3]  ;;  %v8636_v18 = vmax.bf16 %v1997_v10, %v8558_v27 }
  0xb3   : > { %v740_v25 = vshll.u32 %v500_v42, 16  ;;  %v744_v36 = vshrl.u32 %v500_v42, 16  ;;  %v1219_v16 = vrot.slane %v500_v42, 5  ;;  %v1825_v35 = vrot.slane %v500_v42, 6  ;;  %7601 = vmatmul.mubr.msk.bf16.gmra.mxu1 %vm5838_vm7, %v7388_v19  ;;  %451 = vst.msk [vmem:[#allocation2 + $0x78] sm:$0xe] %vm426_vm6, %v337_v13 }
  0xb4   : > { %v750_v52 = vshll.u32 %v501_v51, 16  ;;  %v1222_v6 = vrot.slane %v501_v51, 5  ;;  %v1513_v46 = vshrl.u32 %v501_v51, 16  ;;  %v1828_v32 = vrot.slane %v501_v51, 6  ;;  %v8621_v17 = vld [vmem:[#allocation2 + $0x6c] sm:$0xf] }
  0xb5   : > { %v742_v40 = vrot.slane %v740_v25, 5  ;;  %v746_v38 = vrot.slane %v744_v36, 4  ;;  %v1220_v7 = vsel %vm8089_vm14, %v7236_v44, %v1219_v16  ;;  %v1221_v5 = vrot.slane %v1219_v16, 4 }
  0xb6   : > { %v752_v31 = vrot.slane %v750_v52, 5  ;;  %v1508_v59 = vrot.slane %v744_v36, 5  ;;  %v1509_v20 = vrot.slane %v740_v25, 6  ;;  %v1515_v23 = vrot.slane %v1513_v46, 5 }
  0xb7   : > { %v743_v34 = vsel %vm7960_vm11, %v738_v54, %v742_v40  ;;  %v747_v15 = vor.u32 %v746_v38, %v742_v40  ;;  %v1223_v61 = vsel %vm8089_vm14, %v1221_v5, %v1222_v6  ;;  %v1516_v48 = vrot.slane %v750_v52, 6  ;;  %v8632_v21 = vld [vmem:[#allocation2 + $0x70] sm:$0xf] }
  0xb8   : > { %v1074_v2 = vmax.bf16 %v743_v34, %v8543_v12  ;;  %v1510_v60 = vor.u32 %v1509_v20, %v1508_v59  ;;  %v1826_v44 = vsel %vm8286_vm8, %v7256_v39, %v1825_v35  ;;  %v1827_v24 = vrot.slane %v1825_v35, 4 }
  0xb9   : > { %v748_v28 = vrot.slane %v747_v15, 4  ;;  %v1517_v53 = vor.u32 %v1516_v48, %v1515_v23  ;;  %v755_v54 = vshrl.u32 %v8621_v17, 16  ;;  %v8643_v39 = vld [vmem:[#allocation2 + $0x74] sm:$0x3]  ;;  %v758_v55 = vshll.u32 %v8621_v17, 16 }
  0xba   : > { %v1357_v41 = vmax.bf16 %v1220_v7, %v1074_v2  ;;  %v1511_v56 = vsel %vm8198_vm3, %v8587_v4, %v1510_v60  ;;  %v1512_v37 = vrot.slane %v1510_v60, 4  ;;  %v1829_v12 = vsel %vm8286_vm8, %v1827_v24, %v1828_v32 }
  0xbb   : > { %v753_v11 = vsel %vm7960_vm11, %v748_v28, %v752_v31  ;;  %v757_v58 = vrot.slane %v755_v54, 4  ;;  %v764_v0 = vshll.u32 %v8632_v21, 16  ;;  %v768_v4 = vshrl.u32 %v8632_v21, 16 }
  0xbc   : > { %v1075_v10 = vmax.bf16 %v753_v11, %v500_v42  ;;  %v1518_v19 = vsel %vm8198_vm3, %v1512_v37, %v1517_v53  ;;  %v1740_v51 = vmax.bf16 %v1511_v56, %v1357_v41  ;;  %v760_v25 = vrot.slane %v758_v55, 5 }
  0xbd   : > { %v766_v36 = vrot.slane %v764_v0, 5  ;;  %v774_v16 = vshll.u32 %v8643_v39, 16  ;;  %v7237_v35 = vrot.slane %v8621_v17, 9  ;;  %v770_v46 = vrot.slane %v768_v4, 4 }
  0xbe   : > { %v1358_v52 = vmax.bf16 %v1223_v61, %v1075_v10  ;;  %v8654_v6 = vmax.bf16 %v1826_v44, %v1740_v51  ;;  %v1226_v32 = vrot.slane %v8632_v21, 5  ;;  %v761_v40 = vor.u32 %v760_v25, %v757_v58  ;;  %v8683_v25 = vld [vmem:[#allocation2 + $0x78] sm:$0xf] }
  0xbf   : > { %v776_v42 = vrot.slane %v774_v16, 5  ;;  %v1229_v38 = vrot.slane %v8643_v39, 5  ;;  %v1519_v7 = vrot.slane %v755_v54, 5  ;;  %v771_v59 = vor.u32 %v770_v46, %v766_v36 }
  0xc0   : > { %v1741_v5 = vmax.bf16 %v1518_v19, %v1358_v52  ;;  %v2091_v31 = vmax.bf16 %v2059_v29, %v8654_v6  ;;  %v1227_v20 = vsel %vm8089_vm14, %v7237_v35, %v1226_v32  ;;  %v762_v23 = vrot.slane %v761_v40, 4 }
  0xc1   : > { %v1228_v34 = vrot.slane %v1226_v32, 4  ;;  %v1520_v15 = vrot.slane %v758_v55, 6  ;;  %v1523_v61 = vrot.slane %v768_v4, 5  ;;  %v772_v60 = vrot.slane %v771_v59, 4 }
  0xc2   : > { %v8664_v48 = vmax.bf16 %v1829_v12, %v1741_v5  ;;  %v2167_v2 = vrot.slane %v2091_v31, 7  ;;  %v1524_v44 = vrot.slane %v764_v0, 6  ;;  %v767_v24 = vsel %vm7960_vm11, %v762_v23, %v766_v36  ;;  %v8720_v23 = vld [vmem:[%s7876_s23 + $0x4c] sm:$0xf] }
  0xc3   : > { %v1230_v47 = vsel %vm8089_vm14, %v1228_v34, %v1229_v38  ;;  %v1521_v29 = vor.u32 %v1520_v15, %v1519_v7  ;;  %v1528_v28 = vshrl.u32 %v8643_v39, 16  ;;  %v777_v41 = vsel %vm7960_vm11, %v772_v60, %v776_v42 }
  0xc4   : > { %v2092_v53 = vmax.bf16 %v2060_v26, %v8664_v48  ;;  %v2168_v54 = vrot.slane %v2167_v2, 4  ;;  %2287 = vst.msk [vmem:[#allocation2 + $0x48] sm:$0xe] %vm426_vm6, %v2167_v2  ;;  %v1076_v56 = vmax.bf16 %v767_v24, %v8621_v17  ;;  %v1077_v37 = vmax.bf16 %v777_v41, %v8632_v21 }
  0xc5   : > { %v1522_v12 = vrot.slane %v1521_v29, 4  ;;  %v1525_v11 = vor.u32 %v1524_v44, %v1523_v61  ;;  %v1530_v58 = vrot.slane %v1528_v28, 5  ;;  %v1531_v19 = vrot.slane %v774_v16, 6 }
  0xc6   : > { %v2169_v55 = vrot.slane %v2092_v53, 7  ;;  %v7353_v0 = vcombine.low %v2091_v31, %v2092_v53  ;;  %v1359_v10 = vmax.bf16 %v1227_v20, %v1076_v56  ;;  %v1360_v51 = vmax.bf16 %v1230_v47, %v1077_v37  ;;  %v8717_v20 = vld [vmem:[%s7876_s23 + $0x48] sm:$0xf] }
  0xc7   : > { %v1526_v9 = vsel %vm8198_vm3, %v1522_v12, %v1525_v11  ;;  %v1527_v26 = vrot.slane %v1525_v11, 4  ;;  %v7257_v4 = vrot.slane %v8621_v17, 10  ;;  %v1532_v52 = vor.u32 %v1531_v19, %v1530_v58 }
  0xc8   : > { %v2170_v36 = vsel %vm7892_vm10, %v2168_v54, %v2169_v55  ;;  %v2171_v35 = vrot.slane %v2169_v55, 4  ;;  %7562 = vmatprep.mubr.msk.bf16.mxu0 %vm5838_vm7, %v7353_v0  ;;  %v1742_v46 = vmax.bf16 %v1526_v9, %v1359_v10  ;;  %v1832_v16 = vrot.slane %v8632_v21, 6 }
  0xc9   : > { %2288 = vst.msk [vmem:[#allocation2 + $0x4c] sm:$0xf] %vm173_vm1, %v2170_v36  ;;  %v1835_v32 = vrot.slane %v8643_v39, 6  ;;  %v2030_v17 = vmax.bf16 %v1998_v1, %v8566_v45  ;;  %v2061_v40 = vmax.bf16 %v8636_v18, %v8654_v6  ;;  %v1533_v42 = vsel %vm8198_vm3, %v1527_v26, %v1532_v52 }
  0xca   : > { %2289 = vst.msk [vmem:[#allocation2 + $0x50] sm:$0x1] %vm188_vm2, %v2171_v35  ;;  %v338_v21 = vrot.slane %v337_v13, 4  ;;  %v341_v39 = vrot.slane %v339_v62, 4  ;;  %v779_v38 = vshrl.u32 %v8683_v25, 16  ;;  %v1743_v43 = vmax.bf16 %v1533_v42, %v1360_v51 }
  0xcb   : > { %v1833_v1 = vsel %vm8286_vm8, %v7257_v4, %v1832_v16  ;;  %v1834_v7 = vrot.slane %v1832_v16, 4  ;;  %v2062_v18 = vmax.bf16 %v2030_v17, %v8664_v48  ;;  %v782_v59 = vshll.u32 %v8683_v25, 16 }
  0xcc   : > { %v8708_v5 = vmax.bf16 %v1833_v1, %v1742_v46  ;;  %v340_v31 = vsel %vm7892_vm10, %v338_v21, %v339_v62  ;;  %453 = vst.msk [vmem:[#allocation2 + $0x80] sm:$0x1] %vm188_vm2, %v341_v39  ;;  %v781_v13 = vrot.slane %v779_v38, 4  ;;  %v7238_v15 = vrot.slane %v8683_v25, 9 }
  0xcd   : > { %v1836_v34 = vsel %vm8286_vm8, %v1834_v7, %v1835_v32  ;;  %452 = vst.msk [vmem:[#allocation2 + $0x7c] sm:$0xf] %vm173_vm1, %v340_v31  ;;  %v1534_v61 = vrot.slane %v779_v38, 5  ;;  %v7258_v2 = vrot.slane %v8683_v25, 10  ;;  %v784_v44 = vrot.slane %v782_v59, 5 }
  0xce   : > { %v8727_v62 = vmax.bf16 %v1836_v34, %v1743_v43  ;;  %v2093_v60 = vmax.bf16 %v2061_v40, %v8708_v5  ;;  %v1535_v24 = vrot.slane %v782_v59, 6  ;;  %v2000_v47 = vmax.bf16 %v8566_v45, %v8506_v50 }
  0xcf   : > { %v8736_v29 = vmax.bf16 %v1999_v14, %v8654_v6  ;;  %v342_v28 = vrot.slane %v8717_v20, 7  ;;  %v344_v53 = vrot.slane %v8720_v23, 7  ;;  %v785_v56 = vor.u32 %v784_v44, %v781_v13 }
  0xd0   : > { %v2094_v54 = vmax.bf16 %v2062_v18, %v8727_v62  ;;  %v2172_v41 = vrot.slane %v2093_v60, 7  ;;  %v1536_v37 = vor.u32 %v1535_v24, %v1534_v61  ;;  %v8742_v12 = vmax.bf16 %v2000_v47, %v8664_v48 }
  0xd1   : > { %v2063_v50 = vmax.bf16 %v8736_v29, %v8708_v5  ;;  %v343_v11 = vrot.slane %v342_v28, 4  ;;  %v346_v58 = vrot.slane %v344_v53, 4  ;;  %454 = vst.msk [vmem:[#allocation2 + $0x84] sm:$0xe] %vm426_vm6, %v342_v28  ;;  %v786_v0 = vrot.slane %v785_v56, 4 }
  0xd2   : > { %v2173_v49 = vrot.slane %v2172_v41, 4  ;;  %v2174_v14 = vrot.slane %v2094_v54, 7  ;;  %2290 = vst.msk [vmem:[#allocation2 + $0x54] sm:$0xe] %vm426_vm6, %v2172_v41  ;;  %v7354_v55 = vcombine.low %v2093_v60, %v2094_v54  ;;  %v1537_v19 = vrot.slane %v1536_v37, 4 }
  0xd3   : > { %v507_v10 = vld [vmem:[#allocation2 + $0x80] sm:$0x3]  ;;  %v2064_v51 = vmax.bf16 %v8742_v12, %v8727_v62  ;;  %v345_v9 = vsel %vm7892_vm10, %v343_v11, %v344_v53  ;;  %456 = vst.msk [vmem:[#allocation2 + $0x8c] sm:$0x1] %vm188_vm2, %v346_v58  ;;  %v2001_v26 = vmax.bf16 %v8654_v6, %v8558_v27 }
  0xd4   : > { %v2175_v4 = vsel %vm7892_vm10, %v2173_v49, %v2174_v14  ;;  %v2176_v36 = vrot.slane %v2174_v14, 4  ;;  %7563 = vmatmul.mubr.msk.bf16.gmra.mxu0 %vm5838_vm7, %v7354_v55  ;;  %v506_v35 = vld [vmem:[#allocation2 + $0x7c] sm:$0xf]  ;;  %v798_v52 = vshll.u32 %v507_v10, 16  ;;  %v1236_v46 = vrot.slane %v507_v10, 5 }
  0xd5   : > { %455 = vst.msk [vmem:[#allocation2 + $0x88] sm:$0xf] %vm173_vm1, %v345_v9  ;;  %2291 = vst.msk [vmem:[#allocation2 + $0x58] sm:$0xf] %vm173_vm1, %v2175_v4  ;;  %v788_v16 = vshll.u32 %v506_v35, 16  ;;  %v792_v32 = vshrl.u32 %v506_v35, 16 }
  0xd6   : > { %v1233_v17 = vrot.slane %v506_v35, 5  ;;  %v1543_v40 = vshrl.u32 %v507_v10, 16  ;;  %2292 = vst.msk [vmem:[#allocation2 + $0x5c] sm:$0x1] %vm188_vm2, %v2176_v36  ;;  %v800_v42 = vrot.slane %v798_v52, 5  ;;  %v1546_v21 = vrot.slane %v798_v52, 6 }
  0xd7   : > { %v1839_v39 = vrot.slane %v506_v35, 6  ;;  %v1842_v38 = vrot.slane %v507_v10, 6  ;;  %v790_v43 = vrot.slane %v788_v16, 5  ;;  %v794_v1 = vrot.slane %v792_v32, 4 }
  0xd8   : > { %v1234_v7 = vsel %vm8089_vm14, %v7238_v15, %v1233_v17  ;;  %v1235_v18 = vrot.slane %v1233_v17, 4  ;;  %v1538_v31 = vrot.slane %v792_v32, 5  ;;  %v1539_v13 = vrot.slane %v788_v16, 6  ;;  %v8765_v61 = vld [vmem:[#allocation2 + $0x84] sm:$0xf] }
  0xd9   : > { %v1545_v59 = vrot.slane %v1543_v40, 5  ;;  %v1840_v34 = vsel %vm8286_vm8, %v7258_v2, %v1839_v39  ;;  %v791_v60 = vsel %vm7960_vm11, %v786_v0, %v790_v43  ;;  %v795_v44 = vor.u32 %v794_v1, %v790_v43 }
  0xda   : > { %v1237_v24 = vsel %vm8089_vm14, %v1235_v18, %v1236_v46  ;;  %v1841_v47 = vrot.slane %v1839_v39, 4  ;;  %v1078_v28 = vmax.bf16 %v791_v60, %v8683_v25  ;;  %v1540_v15 = vor.u32 %v1539_v13, %v1538_v31  ;;  %v8772_v54 = vld [vmem:[#allocation2 + $0x8c] sm:$0x3] }
  0xdb   : > { %v1547_v53 = vor.u32 %v1546_v21, %v1545_v59  ;;  %v803_v41 = vshrl.u32 %v8765_v61, 16  ;;  %v796_v56 = vrot.slane %v795_v44, 4  ;;  %v806_v11 = vshll.u32 %v8765_v61, 16 }
  0xdc   : > { %v1843_v2 = vsel %vm8286_vm8, %v1841_v47, %v1842_v38  ;;  %v8777_v37 = vld [vmem:[#allocation2 + $0x88] sm:$0xf]  ;;  %v822_v58 = vshll.u32 %v8772_v54, 16  ;;  %v1361_v49 = vmax.bf16 %v1234_v7, %v1078_v28  ;;  %v1541_v25 = vsel %vm8198_vm3, %v1537_v19, %v1540_v15 }
  0xdd   : > { %v1542_v14 = vrot.slane %v1540_v15, 4  ;;  %v805_v55 = vrot.slane %v803_v41, 4  ;;  %v801_v0 = vsel %vm7960_vm11, %v796_v56, %v800_v42  ;;  %v808_v10 = vrot.slane %v806_v11, 5 }
  0xde   : > { %v812_v9 = vshll.u32 %v8777_v37, 16  ;;  %v816_v4 = vshrl.u32 %v8777_v37, 16  ;;  %v1079_v36 = vmax.bf16 %v801_v0, %v506_v35  ;;  %v1744_v46 = vmax.bf16 %v1541_v25, %v1361_v49 }
  0xdf   : > { %v1548_v52 = vsel %vm8198_vm3, %v1542_v14, %v1547_v53  ;;  %v824_v16 = vrot.slane %v822_v58, 5  ;;  %v809_v32 = vor.u32 %v808_v10, %v805_v55  ;;  %v7239_v19 = vrot.slane %v8765_v61, 9 }
  0xe0   : > { %v814_v17 = vrot.slane %v812_v9, 5  ;;  %v818_v40 = vrot.slane %v816_v4, 4  ;;  %v1362_v21 = vmax.bf16 %v1237_v24, %v1079_v36  ;;  %v8790_v39 = vmax.bf16 %v1840_v34, %v1744_v46 }
  0xe1   : > { %v1240_v42 = vrot.slane %v8777_v37, 5  ;;  %v1243_v38 = vrot.slane %v8772_v54, 5  ;;  %v810_v43 = vrot.slane %v809_v32, 4  ;;  %v1549_v35 = vrot.slane %v803_v41, 5 }
  0xe2   : > { %v819_v1 = vor.u32 %v818_v40, %v814_v17  ;;  %v1550_v7 = vrot.slane %v806_v11, 6  ;;  %v1745_v18 = vmax.bf16 %v1548_v52, %v1362_v21  ;;  %v2095_v31 = vmax.bf16 %v2063_v50, %v8790_v39  ;;  %v8827_v40 = vld [vmem:[%s7876_s23 + $0x50] sm:$0xf] }
  0xe3   : > { %v1241_v13 = vsel %vm8089_vm14, %v7239_v19, %v1240_v42  ;;  %v1242_v59 = vrot.slane %v1240_v42, 4  ;;  %v815_v34 = vsel %vm7960_vm11, %v810_v43, %v814_v17  ;;  %v1553_v24 = vrot.slane %v816_v4, 5 }
  0xe4   : > { %v820_v60 = vrot.slane %v819_v1, 4  ;;  %v1551_v44 = vor.u32 %v1550_v7, %v1549_v35  ;;  %v8802_v47 = vmax.bf16 %v1843_v2, %v1745_v18  ;;  %v2177_v28 = vrot.slane %v2095_v31, 7  ;;  %v8846_v35 = vld [vmem:[%s7876_s23 + $0x54] sm:$0xf] }
  0xe5   : > { %v1080_v15 = vmax.bf16 %v815_v34, %v8765_v61  ;;  %v1244_v53 = vsel %vm8089_vm14, %v1242_v59, %v1243_v38  ;;  %v1554_v41 = vrot.slane %v812_v9, 6  ;;  %v1558_v56 = vshrl.u32 %v8772_v54, 16 }
  0xe6   : > { %v825_v29 = vsel %vm7960_vm11, %v820_v60, %v824_v16  ;;  %v1552_v50 = vrot.slane %v1551_v44, 4  ;;  %v2096_v11 = vmax.bf16 %v2064_v51, %v8802_v47  ;;  %v2178_v2 = vrot.slane %v2177_v28, 4  ;;  %2293 = vst.msk [vmem:[#allocation2 + $0x60] sm:$0xe] %vm426_vm6, %v2177_v28  ;;  %v8867_v60 = vld [vmem:[%s7876_s23 + $0x58] sm:$0xf] }
  0xe7   : > { %v1081_v49 = vmax.bf16 %v825_v29, %v8777_v37  ;;  %v1363_v25 = vmax.bf16 %v1241_v13, %v1080_v15  ;;  %v1555_v14 = vor.u32 %v1554_v41, %v1553_v24  ;;  %v1560_v55 = vrot.slane %v1558_v56, 5 }
  0xe8   : > { %v1561_v0 = vrot.slane %v822_v58, 6  ;;  %v7259_v10 = vrot.slane %v8765_v61, 10  ;;  %v2179_v9 = vrot.slane %v2096_v11, 7  ;;  %v7355_v4 = vcombine.low %v2095_v31, %v2096_v11 }
  0xe9   : > { %v1364_v36 = vmax.bf16 %v1244_v53, %v1081_v49  ;;  %v1846_v52 = vrot.slane %v8777_v37, 6  ;;  %v1556_v12 = vsel %vm8198_vm3, %v1552_v50, %v1555_v14  ;;  %v1557_v51 = vrot.slane %v1555_v14, 4 }
  0xea   : > { %v1562_v46 = vor.u32 %v1561_v0, %v1560_v55  ;;  %v1849_v16 = vrot.slane %v8772_v54, 6  ;;  %v2180_v32 = vsel %vm7892_vm10, %v2178_v2, %v2179_v9  ;;  %v2181_v17 = vrot.slane %v2179_v9, 4  ;;  %7566 = vmatprep.mubr.msk.bf16.mxu0 %vm5838_vm7, %v7355_v4 }
  0xeb   : > { %v1746_v61 = vmax.bf16 %v1556_v12, %v1363_v25  ;;  %v1847_v58 = vsel %vm8286_vm8, %v7259_v10, %v1846_v52  ;;  %2294 = vst.msk [vmem:[#allocation2 + $0x64] sm:$0xf] %vm173_vm1, %v2180_v32  ;;  %v1848_v19 = vrot.slane %v1846_v52, 4  ;;  %v2002_v54 = vmax.bf16 %v8664_v48, %v8566_v45 }
  0xec   : > { %v1563_v37 = vsel %vm8198_vm3, %v1557_v51, %v1562_v46  ;;  %v2033_v21 = vmax.bf16 %v2001_v26, %v8708_v5  ;;  %2295 = vst.msk [vmem:[#allocation2 + $0x68] sm:$0x1] %vm188_vm2, %v2181_v17  ;;  %v7389_v43 = vcombine.low %v8584_v8, %v8590_v63  ;;  %v7390_v1 = vcombine.low %v8717_v20, %v8720_v23 }
  0xed   : > { %v1747_v42 = vmax.bf16 %v1563_v37, %v1364_v36  ;;  %v8839_v38 = vmax.bf16 %v1847_v58, %v1746_v61  ;;  %v8848_v7 = vld [vmem:[#allocation2 + $0x60] sm:$0xf]  ;;  %v1850_v27 = vsel %vm8286_vm8, %v1848_v19, %v1849_v16  ;;  %v2034_v45 = vmax.bf16 %v2002_v54, %v8727_v62 }
  0xee   : > { %13125 = vst [vmem:[#allocation5_spill] sm:$0xff] %v8848_v7  ;;  %v2065_v26 = vmax.bf16 %v2033_v21, %v8790_v39  ;;  %v347_v18 = vrot.slane %v8827_v40, 7  ;;  %v2576_v31 = vshrl.u32 %v8848_v7, 16  ;;  %v2579_v8 = vshll.u32 %v8848_v7, 16  ;;  %7604 = vmatprep.mubr.msk.bf16.mxu1 %vm5838_vm7, %v7389_v43 }
  0xef   : > { %v8858_v20 = vmax.bf16 %v1850_v27, %v1747_v42  ;;  %v2066_v23 = vmax.bf16 %v2034_v45, %v8802_v47  ;;  %7605 = vmatmul.mubr.msk.bf16.gmra.mxu1 %vm5838_vm7, %v7390_v1  ;;  %v349_v34 = vrot.slane %v8846_v35, 7  ;;  %v2003_v2 = vmax.bf16 %v8708_v5, %v8654_v6 }
  0xf0   : > { %v2097_v13 = vmax.bf16 %v2065_v26, %v8839_v38  ;;  %v348_v59 = vrot.slane %v347_v18, 4  ;;  %457 = vst.msk [vmem:[#allocation2 + $0x90] sm:$0xe] %vm426_vm6, %v347_v18  ;;  %v8869_v44 = vrot.slane %v2576_v31, 4  ;;  %v8871_v24 = vrot.slane %v2579_v8, 5 }
  0xf1   : > { %v8873_v28 = vrot.slane %v2576_v31, 5  ;;  %v8875_v15 = vrot.slane %v2579_v8, 6  ;;  %v2098_v53 = vmax.bf16 %v2066_v23, %v8858_v20  ;;  %v351_v41 = vrot.slane %v349_v34, 4 }
  0xf2   : > { %13126 = vst [vmem:[#allocation7_spill] sm:$0xff] %v8869_v44  ;;  %13127 = vst [vmem:[#allocation8_spill] sm:$0xff] %v8871_v24  ;;  %v2182_v29 = vrot.slane %v2097_v13, 7  ;;  %v350_v50 = vsel %vm7892_vm10, %v348_v59, %v349_v34  ;;  %v8880_v56 = vld [vmem:[#allocation2 + $0x64] sm:$0xf]  ;;  %v2004_v49 = vmax.bf16 %v8727_v62, %v8664_v48  ;;  %v352_v25 = vrot.slane %v8867_v60, 7 }
  0xf3   : > { %13128 = vst [vmem:[#allocation9_spill] sm:$0xff] %v8873_v28  ;;  %13129 = vst [vmem:[#allocation3_spill] sm:$0xff] %v8875_v15  ;;  %v8890_v14 = vld [vmem:[#allocation2 + $0x68] sm:$0x3]  ;;  %v12857_v55 = vshll.u32 %v8880_v56, 16  ;;  %v12858_v0 = vshrl.u32 %v8880_v56, 16  ;;  %v7356_v51 = vcombine.low %v2097_v13, %v2098_v53  ;;  %v8910_v46 = vmax.bf16 %v2003_v2, %v8790_v39 }
  0xf4   : > { %13130 = vst [vmem:[#allocation13_spill] sm:$0xff] %v8880_v56  ;;  %458 = vst.msk [vmem:[#allocation2 + $0x94] sm:$0xf] %vm173_vm1, %v350_v50  ;;  %v2183_v9 = vrot.slane %v2182_v29, 4  ;;  %v2595_v6 = vshll.u32 %v8890_v14, 16  ;;  %v3352_v48 = vshrl.u32 %v8890_v14, 16  ;;  %v8929_v43 = vmax.bf16 %v2004_v49, %v8802_v47 }
  0xf5   : > { %13131 = vst [vmem:[#allocation14_spill] sm:$0xff] %v8890_v14  ;;  %2296 = vst.msk [vmem:[#allocation2 + $0x6c] sm:$0xe] %vm426_vm6, %v2182_v29  ;;  %v2184_v36 = vrot.slane %v2098_v53, 7  ;;  %v8903_v52 = vrot.slane %v12857_v55, 5  ;;  %v8907_v12 = vrot.slane %v12858_v0, 4  ;;  %7567 = vmatmul.mubr.msk.bf16.gmra.mxu0 %vm5838_vm7, %v7356_v51 }
  0xf6   : > { %459 = vst.msk [vmem:[#allocation2 + $0x98] sm:$0x1] %vm188_vm2, %v351_v41  ;;  %v8912_v16 = vrot.slane %v2595_v6, 5  ;;  %v8914_v32 = vrot.slane %v3352_v48, 5  ;;  %v8916_v17 = vrot.slane %v2595_v6, 6  ;;  %v8933_v27 = vrot.slane %v352_v25, 4 }
  0xf7   : > { %460 = vst.msk [vmem:[#allocation2 + $0x9c] sm:$0xe] %vm426_vm6, %v352_v25  ;;  %13132 = vst [vmem:[#allocation15_spill] sm:$0xff] %v8903_v52  ;;  %v2185_v61 = vsel %vm7892_vm10, %v2183_v9, %v2184_v36  ;;  %v8920_v58 = vld [vmem:[#allocation2 + $0x90] sm:$0xf]  ;;  %v2186_v37 = vrot.slane %v2184_v36, 4 }
  0xf8   : > { %13133 = vst [vmem:[#allocation16_spill] sm:$0xff] %v8907_v12  ;;  %13134 = vst [vmem:[#allocation17_spill] sm:$0xff] %v8912_v16  ;;  %v827_v19 = vshrl.u32 %v8920_v58, 16  ;;  %v830_v54 = vshll.u32 %v8920_v58, 16 }
  0xf9   : > { %13135 = vst [vmem:[#allocation18_spill] sm:$0xff] %v8914_v32  ;;  %13136 = vst [vmem:[#allocation19_spill] sm:$0xff] %v8916_v17 }
  0xfa   : > { %2297 = vst.msk [vmem:[#allocation2 + $0x70] sm:$0xf] %vm173_vm1, %v2185_v61  ;;  %v829_v26 = vrot.slane %v827_v19, 4  ;;  %v832_v18 = vrot.slane %v830_v54, 5  ;;  %v8938_v31 = vrot.slane %v827_v19, 5  ;;  %v8940_v8 = vrot.slane %v830_v54, 6 }
  0xfb   : > { %2298 = vst.msk [vmem:[#allocation2 + $0x74] sm:$0x1] %vm188_vm2, %v2186_v37  ;;  %v8936_v45 = vld [vmem:[#allocation2 + $0x94] sm:$0xf] }
  0xfc   : > { %v2350_v23 = vld [vmem:[#allocation2 + $0x6c] sm:$0xf]  ;;  %v12860_v59 = vshll.u32 %v8936_v45, 16  ;;  %v12861_v34 = vshrl.u32 %v8936_v45, 16  ;;  %v833_v25 = vor.u32 %v832_v18, %v829_v26  ;;  %v1247_v26 = vrot.slane %v8936_v45, 5 }
  0xfd   : > { %v8942_v13 = vld [vmem:[#allocation2 + $0x98] sm:$0x3]  ;;  %v2600_v50 = vshrl.u32 %v2350_v23, 16  ;;  %v2603_v41 = vshll.u32 %v2350_v23, 16  ;;  %v7277_v2 = vrot.slane %v2350_v23, 9  ;;  %v7297_v49 = vrot.slane %v2350_v23, 10 }
  0xfe   : > { %v838_v9 = vrot.slane %v12860_v59, 5  ;;  %v842_v6 = vrot.slane %v12861_v34, 4  ;;  %v12859_v48 = vshll.u32 %v8942_v13, 16  ;;  %v834_v54 = vrot.slane %v833_v25, 4 }
  0xff   : > { %v2602_v36 = vrot.slane %v2600_v50, 4  ;;  %v2605_v51 = vrot.slane %v2603_v41, 5  ;;  %v3358_v61 = vrot.slane %v2600_v50, 5  ;;  %v3359_v37 = vrot.slane %v2603_v41, 6 }
 0x100   : > { %v843_v55 = vor.u32 %v842_v6, %v838_v9  ;;  %v848_v0 = vrot.slane %v12859_v48, 5  ;;  %v839_v1 = vsel %vm7960_vm11, %v834_v54, %v838_v9 }
 0x101   : > { %v2351_v19 = vld [vmem:[#allocation2 + $0x70] sm:$0xf]  ;;  %v2606_v18 = vor.u32 %v2605_v51, %v2602_v36  ;;  %v3360_v53 = vor.u32 %v3359_v37, %v3358_v61 }
 0x102   : > { %v2609_v4 = vshll.u32 %v2351_v19, 16  ;;  %v2613_v63 = vshrl.u32 %v2351_v19, 16  ;;  %v3068_v10 = vrot.slane %v2351_v19, 5  ;;  %v2352_v11 = vld [vmem:[#allocation2 + $0x74] sm:$0x3]  ;;  %v3668_v29 = vrot.slane %v2351_v19, 6 }
 0x103   : > { %v844_v50 = vrot.slane %v843_v55, 4  ;;  %v2607_v41 = vrot.slane %v2606_v18, 4  ;;  %v2619_v6 = vshll.u32 %v2352_v11, 16  ;;  %v3071_v34 = vrot.slane %v2352_v11, 5 }
 0x104   : > { %v2611_v42 = vrot.slane %v2609_v4, 5  ;;  %v2615_v25 = vrot.slane %v2613_v63, 4  ;;  %v3069_v48 = vsel %vm8089_vm14, %v7277_v2, %v3068_v10  ;;  %v3070_v59 = vrot.slane %v3068_v10, 4 }
 0x105   : > { %v3361_v36 = vrot.slane %v3360_v53, 4  ;;  %v2621_v61 = vrot.slane %v2619_v6, 5  ;;  %v3362_v37 = vrot.slane %v2613_v63, 5  ;;  %v3363_v9 = vrot.slane %v2609_v4, 6 }
 0x106   : > { %v2612_v51 = vsel %vm7960_vm11, %v2607_v41, %v2611_v42  ;;  %v2616_v21 = vor.u32 %v2615_v25, %v2611_v42  ;;  %v3072_v55 = vsel %vm8089_vm14, %v3070_v59, %v3071_v34  ;;  %v3367_v54 = vshrl.u32 %v2352_v11, 16 }
 0x107   : > { %v2921_v17 = vmax.bf16 %v2612_v51, %v2350_v23  ;;  %v3370_v32 = vrot.slane %v2619_v6, 6  ;;  %v3669_v2 = vsel %vm8286_vm8, %v7297_v49, %v3668_v29  ;;  %v3670_v10 = vrot.slane %v3668_v29, 4 }
 0x108   : > { %v2617_v18 = vrot.slane %v2616_v21, 4  ;;  %v3364_v53 = vor.u32 %v3363_v9, %v3362_v37  ;;  %v3369_v28 = vrot.slane %v3367_v54, 5  ;;  %v3671_v14 = vrot.slane %v2352_v11, 6 }
 0x109   : > { %v3201_v15 = vmax.bf16 %v3069_v48, %v2921_v17  ;;  %v849_v63 = vsel %vm7960_vm11, %v844_v50, %v848_v0  ;;  %v1082_v23 = vmax.bf16 %v839_v1, %v8920_v58  ;;  %v13137_v4 = vrot.slane %v8920_v58, 9 }
 0x10a   : > { %v2622_v42 = vsel %vm7960_vm11, %v2617_v18, %v2621_v61  ;;  %v3365_v17 = vsel %vm8198_vm3, %v3361_v36, %v3364_v53  ;;  %v3366_v34 = vrot.slane %v3364_v53, 4  ;;  %v3371_v11 = vor.u32 %v3370_v32, %v3369_v28  ;;  %v253_v36 = vld [vmem:[%s7876_s23 + $0x5c] sm:$0xf] }
 0x10b   : > { %v1248_v21 = vsel %vm8089_vm14, %v13137_v4, %v1247_v26  ;;  %v2922_v59 = vmax.bf16 %v2622_v42, %v2351_v19  ;;  %v3581_v29 = vmax.bf16 %v3365_v17, %v3201_v15  ;;  %v3672_v49 = vsel %vm8286_vm8, %v3670_v10, %v3671_v14  ;;  %v9003_v42 = vld [vmem:[#allocation2 + $0x9c] sm:$0xf] }
 0x10c   : > { %v1083_v0 = vmax.bf16 %v849_v63, %v8936_v45  ;;  %v1249_v48 = vrot.slane %v1247_v26, 4  ;;  %v3372_v50 = vsel %vm8198_vm3, %v3366_v34, %v3371_v11  ;;  %v1250_v41 = vrot.slane %v8942_v13, 5 }
 0x10d   : > { %v3202_v1 = vmax.bf16 %v3072_v55, %v2922_v59  ;;  %v1365_v19 = vmax.bf16 %v1248_v21, %v1082_v23  ;;  %v8985_v25 = vmax.bf16 %v3669_v2, %v3581_v29  ;;  %v1566_v6 = vor.u32 %v8940_v8, %v8938_v31 }
 0x10e   : > { %v13139_v28 = vshrl.u32 %v8936_v45, 16  ;;  %v13140_v14 = vshll.u32 %v8936_v45, 16  ;;  %v1251_v51 = vsel %vm8089_vm14, %v1249_v48, %v1250_v41  ;;  %v1573_v61 = vshrl.u32 %v8942_v13, 16 }
 0x10f   : > { %13138 = vst [vmem:[#allocation20_spill] sm:$0xff] %v8985_v25  ;;  %v3582_v26 = vmax.bf16 %v3372_v50, %v3202_v1  ;;  %v13141_v37 = vshll.u32 %v8942_v13, 16  ;;  %v1366_v9 = vmax.bf16 %v1251_v51, %v1083_v0  ;;  %v1567_v54 = vrot.slane %v1566_v6, 4 }
 0x110   : > { %v1568_v15 = vrot.slane %v13139_v28, 5  ;;  %v1569_v32 = vrot.slane %v13140_v14, 6  ;;  %v1853_v31 = vrot.slane %v8936_v45, 6  ;;  %v1575_v2 = vrot.slane %v1573_v61, 5  ;;  %v9029_v28 = vld [vmem:[%s7876_s23 + $0x60] sm:$0xf] }
 0x111   : > { %v1576_v55 = vrot.slane %v13141_v37, 6  ;;  %v9000_v8 = vmax.bf16 %v3672_v49, %v3582_v26  ;;  %v1856_v10 = vrot.slane %v8942_v13, 6  ;;  %v354_v53 = vrot.slane %v253_v36, 7  ;;  %v9045_v61 = vld [vmem:[%s7876_s23 + $0x64] sm:$0xf] }
 0x112   : > { %v1570_v18 = vor.u32 %v1569_v32, %v1568_v15  ;;  %v13143_v4 = vrot.slane %v8920_v58, 10  ;;  %v1855_v59 = vrot.slane %v1853_v31, 4  ;;  %v851_v29 = vshrl.u32 %v9003_v42, 16 }
 0x113   : > { %13142 = vst [vmem:[#allocation21_spill] sm:$0xff] %v9000_v8  ;;  %v1577_v17 = vor.u32 %v1576_v55, %v1575_v2  ;;  %v355_v34 = vsel %vm7892_vm10, %v8933_v27, %v354_v53  ;;  %v356_v13 = vrot.slane %v354_v53, 4  ;;  %v854_v58 = vshll.u32 %v9003_v42, 16 }
 0x114   : > { %v1571_v63 = vsel %vm8198_vm3, %v1567_v54, %v1570_v18  ;;  %v1572_v23 = vrot.slane %v1570_v18, 4  ;;  %v1854_v21 = vsel %vm8286_vm8, %v13143_v4, %v1853_v31  ;;  %v1857_v11 = vsel %vm8286_vm8, %v1855_v59, %v1856_v10  ;;  %461 = vst.msk [vmem:[#allocation2 + $0xa0] sm:$0xf] %vm173_vm1, %v355_v34 }
 0x115   : > { %v1748_v45 = vmax.bf16 %v1571_v63, %v1365_v19  ;;  %v7241_v49 = vrot.slane %v9003_v42, 9  ;;  %462 = vst.msk [vmem:[#allocation2 + $0xa4] sm:$0x1] %vm188_vm2, %v356_v13  ;;  %v7261_v27 = vrot.slane %v9003_v42, 10  ;;  %v2006_v1 = vmax.bf16 %v8802_v47, %v8727_v62 }
 0x116   : > { %v1578_v0 = vsel %vm8198_vm3, %v1572_v23, %v1577_v17  ;;  %v853_v41 = vrot.slane %v851_v29, 4  ;;  %v856_v19 = vrot.slane %v854_v58, 5  ;;  %v1579_v6 = vrot.slane %v851_v29, 5 }
 0x117   : > { %v9022_v48 = vmax.bf16 %v1854_v21, %v1748_v45  ;;  %v1749_v50 = vmax.bf16 %v1578_v0, %v1366_v9  ;;  %v13144_v15 = vmax.bf16 %v8910_v46, %v8839_v38  ;;  %v1580_v32 = vrot.slane %v854_v58, 6 }
 0x118   : > { %v13145_v26 = vmax.bf16 %v8790_v39, %v8708_v5  ;;  %v9042_v62 = vmax.bf16 %v2006_v1, %v8858_v20  ;;  %v857_v55 = vor.u32 %v856_v19, %v853_v41  ;;  %v7391_v9 = vcombine.low %v8827_v40, %v8846_v35 }
 0x119   : > { %v2099_v14 = vmax.bf16 %v13144_v15, %v9022_v48  ;;  %v9047_v37 = vmax.bf16 %v1857_v11, %v1749_v50  ;;  %v7392_v46 = vcombine.low %v8867_v60, %v253_v36  ;;  %v1581_v18 = vor.u32 %v1580_v32, %v1579_v6 }
 0x11a   : > { %v9039_v51 = vmax.bf16 %v13145_v26, %v8839_v38  ;;  %v357_v31 = vrot.slane %v9029_v28, 7  ;;  %v13146_v2 = vmax.bf16 %v8929_v43, %v8858_v20  ;;  %v858_v53 = vrot.slane %v857_v55, 4  ;;  %7608 = vmatprep.mubr.msk.bf16.mxu1 %vm5838_vm7, %v7391_v9 }
 0x11b   : > { %v2187_v54 = vrot.slane %v2099_v14, 7  ;;  %v12863_v40 = vrot.slane %v9045_v61, 7  ;;  %v9064_v60 = vld [vmem:[#allocation2 + $0xa0] sm:$0xf]  ;;  %v1582_v36 = vrot.slane %v1581_v18, 4  ;;  %7609 = vmatmul.mubr.msk.bf16.gmra.mxu1 %vm5838_vm7, %v7392_v46 }
 0x11c   : > { %v2100_v10 = vmax.bf16 %v13146_v2, %v9047_v37  ;;  %v358_v23 = vrot.slane %v357_v31, 4  ;;  %463 = vst.msk [vmem:[#allocation2 + $0xa8] sm:$0xe] %vm426_vm6, %v357_v31  ;;  %v9070_v59 = vld [vmem:[#allocation2 + $0xa4] sm:$0x3]  ;;  %v860_v17 = vshll.u32 %v9064_v60, 16 }
 0x11d   : > { %v2188_v35 = vrot.slane %v2187_v54, 4  ;;  %2299 = vst.msk [vmem:[#allocation2 + $0x78] sm:$0xe] %vm426_vm6, %v2187_v54  ;;  %v864_v45 = vshrl.u32 %v9064_v60, 16  ;;  %v870_v34 = vshll.u32 %v9070_v59, 16  ;;  %v1254_v13 = vrot.slane %v9064_v60, 5 }
 0x11e   : > { %v2189_v4 = vrot.slane %v2100_v10, 7  ;;  %v7357_v21 = vcombine.low %v2099_v14, %v2100_v10  ;;  %v1257_v11 = vrot.slane %v9070_v59, 5  ;;  %v1588_v29 = vshrl.u32 %v9070_v59, 16 }
 0x11f   : > { %v862_v1 = vrot.slane %v860_v17, 5  ;;  %v866_v50 = vrot.slane %v864_v45, 4  ;;  %v872_v41 = vrot.slane %v870_v34, 5  ;;  %v1255_v19 = vsel %vm8089_vm14, %v7241_v49, %v1254_v13 }
 0x120   : > { %v2190_v58 = vsel %vm7892_vm10, %v2188_v35, %v2189_v4  ;;  %v2191_v0 = vrot.slane %v2189_v4, 4  ;;  %7570 = vmatprep.mubr.msk.bf16.mxu0 %vm5838_vm7, %v7357_v21  ;;  %v1256_v6 = vrot.slane %v1254_v13, 4  ;;  %v1583_v15 = vrot.slane %v864_v45, 5 }
 0x121   : > { %2300 = vst.msk [vmem:[#allocation2 + $0x7c] sm:$0xf] %vm173_vm1, %v2190_v58  ;;  %v863_v14 = vsel %vm7960_vm11, %v858_v53, %v862_v1  ;;  %v867_v32 = vor.u32 %v866_v50, %v862_v1  ;;  %v1584_v26 = vrot.slane %v860_v17, 6  ;;  %v9087_v55 = vrot.slane %v1588_v29, 5 }
 0x122   : > { %2301 = vst.msk [vmem:[#allocation2 + $0x80] sm:$0x1] %vm188_vm2, %v2191_v0  ;;  %v1084_v9 = vmax.bf16 %v863_v14, %v9003_v42  ;;  %v9092_v46 = vsel %vm8089_vm14, %v1256_v6, %v1257_v11  ;;  %v9094_v54 = vrot.slane %v870_v34, 6  ;;  %v1860_v49 = vrot.slane %v9064_v60, 6 }
 0x123   : > { %v868_v31 = vrot.slane %v867_v32, 4  ;;  %v1585_v2 = vor.u32 %v1584_v26, %v1583_v15  ;;  %v360_v53 = vsel %vm7892_vm10, %v358_v23, %v12863_v40 }
 0x124   : > { %v2353_v18 = vld [vmem:[#allocation2 + $0x78] sm:$0xf]  ;;  %464 = vst.msk [vmem:[#allocation2 + $0xac] sm:$0xf] %vm173_vm1, %v360_v53  ;;  %v1367_v34 = vmax.bf16 %v1255_v19, %v1084_v9  ;;  %v1592_v6 = vor.u32 %v9094_v54, %v9087_v55 }
 0x125   : > { %v2624_v35 = vshrl.u32 %v2353_v18, 16  ;;  %v2627_v4 = vshll.u32 %v2353_v18, 16  ;;  %v7278_v21 = vrot.slane %v2353_v18, 9  ;;  %v7298_v17 = vrot.slane %v2353_v18, 10 }
 0x126   : > { %v873_v45 = vsel %vm7960_vm11, %v868_v31, %v872_v41  ;;  %v1586_v13 = vsel %vm8198_vm3, %v1582_v36, %v1585_v2  ;;  %v1587_v11 = vrot.slane %v1585_v2, 4  ;;  %v1861_v41 = vsel %vm8286_vm8, %v7261_v27, %v1860_v49 }
 0x127   : > { %v2626_v29 = vrot.slane %v2624_v35, 4  ;;  %v2629_v58 = vrot.slane %v2627_v4, 5  ;;  %v3373_v0 = vrot.slane %v2624_v35, 5  ;;  %v3374_v1 = vrot.slane %v2627_v4, 6 }
 0x128   : > { %v2354_v50 = vld [vmem:[#allocation2 + $0x7c] sm:$0xf]  ;;  %v1085_v23 = vmax.bf16 %v873_v45, %v9064_v60  ;;  %v1750_v15 = vmax.bf16 %v1586_v13, %v1367_v34  ;;  %v13150_v60 = vmax.bf16 %v9039_v51, %v9022_v48  ;;  %v13152_v51 = vmax.bf16 %v9042_v62, %v9047_v37 }
 0x129   : > { %v2355_v36 = vld [vmem:[#allocation2 + $0x80] sm:$0x3]  ;;  %v2630_v19 = vor.u32 %v2629_v58, %v2626_v29  ;;  %v2633_v14 = vshll.u32 %v2354_v50, 16  ;;  %v2637_v32 = vshrl.u32 %v2354_v50, 16  ;;  %v3075_v26 = vrot.slane %v2354_v50, 5 }
 0x12a   : > { %v2643_v9 = vshll.u32 %v2355_v36, 16  ;;  %v3078_v31 = vrot.slane %v2355_v36, 5  ;;  %v3375_v2 = vor.u32 %v3374_v1, %v3373_v0  ;;  %v3382_v53 = vshrl.u32 %v2355_v36, 16 }
 0x12b   : > { %v2631_v35 = vrot.slane %v2630_v19, 4  ;;  %v2635_v4 = vrot.slane %v2633_v14, 5  ;;  %v2639_v55 = vrot.slane %v2637_v32, 4  ;;  %v3076_v54 = vsel %vm8089_vm14, %v7278_v21, %v3075_v26 }
 0x12c   : > { %v2645_v45 = vrot.slane %v2643_v9, 5  ;;  %v3077_v42 = vrot.slane %v3075_v26, 4  ;;  %v3376_v34 = vrot.slane %v3375_v2, 4  ;;  %v3377_v13 = vrot.slane %v2637_v32, 5 }
 0x12d   : > { %v2636_v27 = vsel %vm7960_vm11, %v2631_v35, %v2635_v4  ;;  %v2640_v29 = vor.u32 %v2639_v55, %v2635_v4  ;;  %v3378_v58 = vrot.slane %v2633_v14, 6  ;;  %v3384_v43 = vrot.slane %v3382_v53, 5  ;;  %v9131_v53 = vld [vmem:[#allocation2 + $0xa8] sm:$0xf] }
 0x12e   : > { %v2923_v63 = vmax.bf16 %v2636_v27, %v2353_v18  ;;  %v3079_v0 = vsel %vm8089_vm14, %v3077_v42, %v3078_v31  ;;  %v3385_v1 = vrot.slane %v2643_v9, 6  ;;  %v3675_v19 = vrot.slane %v2354_v50, 6 }
 0x12f   : > { %v2641_v5 = vrot.slane %v2640_v29, 4  ;;  %v3379_v10 = vor.u32 %v3378_v58, %v3377_v13  ;;  %v3678_v40 = vrot.slane %v2355_v36, 6  ;;  %v1368_v21 = vmax.bf16 %v9092_v46, %v1085_v23 }
 0x130   : > { %v3203_v26 = vmax.bf16 %v3076_v54, %v2923_v63  ;;  %v3386_v2 = vor.u32 %v3385_v1, %v3384_v43  ;;  %v3676_v32 = vsel %vm8286_vm8, %v7298_v17, %v3675_v19  ;;  %v3677_v35 = vrot.slane %v3675_v19, 4  ;;  %v9135_v17 = vld [vmem:[#allocation2 + $0xac] sm:$0xf] }
 0x131   : > { %v2646_v14 = vsel %vm7960_vm11, %v2641_v5, %v2645_v45  ;;  %v3380_v18 = vsel %vm8198_vm3, %v3376_v34, %v3379_v10  ;;  %v3381_v31 = vrot.slane %v3379_v10, 4  ;;  %v1593_v9 = vsel %vm8198_vm3, %v1587_v11, %v1592_v6 }
 0x132   : > { %v2924_v36 = vmax.bf16 %v2646_v14, %v2354_v50  ;;  %v3583_v46 = vmax.bf16 %v3380_v18, %v3203_v26  ;;  %v3679_v63 = vsel %vm8286_vm8, %v3677_v35, %v3678_v40  ;;  %v1751_v43 = vmax.bf16 %v1593_v9, %v1368_v21 }
 0x133   : > { %v3387_v5 = vsel %vm8198_vm3, %v3381_v31, %v3386_v2  ;;  %v1862_v23 = vrot.slane %v1860_v49, 4  ;;  %v9141_v10 = vmax.bf16 %v1861_v41, %v1750_v15  ;;  %v13147_v11 = vrot.slane %v9045_v61, 7 }
 0x134   : > { %v3204_v4 = vmax.bf16 %v3079_v0, %v2924_v36  ;;  %v9145_v50 = vmax.bf16 %v3676_v32, %v3583_v46  ;;  %v875_v55 = vshrl.u32 %v9131_v53, 16  ;;  %v878_v40 = vshll.u32 %v9131_v53, 16 }
 0x135   : > { %v361_v6 = vrot.slane %v13147_v11, 4  ;;  %v13149_v54 = vrot.slane %v9070_v59, 6  ;;  %v2101_v49 = vmax.bf16 %v13150_v60, %v9141_v10  ;;  %v884_v15 = vshll.u32 %v9135_v17, 16 }
 0x136   : > { %13148 = vst [vmem:[#allocation22_spill] sm:$0xff] %v9145_v50  ;;  %v888_v41 = vshrl.u32 %v9135_v17, 16  ;;  %v3584_v42 = vmax.bf16 %v3387_v5, %v3204_v4  ;;  %v3841_v34 = vmax.bf16 %v9145_v50, %v8985_v25  ;;  %v877_v59 = vrot.slane %v875_v55, 4 }
 0x137   : > { %v1864_v45 = vsel %vm8286_vm8, %v1862_v23, %v13149_v54  ;;  %465 = vst.msk [vmem:[#allocation2 + $0xb0] sm:$0x1] %vm188_vm2, %v361_v6  ;;  %v2192_v27 = vrot.slane %v2101_v49, 7  ;;  %v880_v29 = vrot.slane %v878_v40, 5  ;;  %v886_v58 = vrot.slane %v884_v15, 5 }
 0x138   : > { %v9162_v13 = vmax.bf16 %v1864_v45, %v1751_v43  ;;  %v890_v0 = vrot.slane %v888_v41, 4  ;;  %v9164_v1 = vmax.bf16 %v3679_v63, %v3584_v42  ;;  %v7242_v21 = vrot.slane %v9131_v53, 9 }
 0x139   : > { %v1261_v26 = vrot.slane %v9135_v17, 5  ;;  %v2193_v2 = vrot.slane %v2192_v27, 4  ;;  %2302 = vst.msk [vmem:[#allocation2 + $0x84] sm:$0xe] %vm426_vm6, %v2192_v27  ;;  %v881_v32 = vor.u32 %v880_v29, %v877_v59  ;;  %v1594_v14 = vrot.slane %v875_v55, 5 }
 0x13a   : > { %13151 = vst [vmem:[#allocation23_spill] sm:$0xff] %v9164_v1  ;;  %v2102_v19 = vmax.bf16 %v13152_v51, %v9162_v13  ;;  %v891_v35 = vor.u32 %v890_v0, %v886_v58  ;;  %v1595_v43 = vrot.slane %v878_v40, 6  ;;  %v1598_v6 = vrot.slane %v888_v41, 5 }
 0x13b   : > { %v1262_v36 = vsel %vm8089_vm14, %v7242_v21, %v1261_v26  ;;  %v882_v62 = vrot.slane %v881_v32, 4  ;;  %v1263_v63 = vrot.slane %v1261_v26, 4  ;;  %v1599_v4 = vrot.slane %v884_v15, 6 }
 0x13c   : > { %v2194_v31 = vrot.slane %v2102_v19, 7  ;;  %v7358_v9 = vcombine.low %v2101_v49, %v2102_v19  ;;  %v892_v46 = vrot.slane %v891_v35, 4  ;;  %v1596_v40 = vor.u32 %v1595_v43, %v1594_v14 }
 0x13d   : > { %v887_v55 = vsel %vm7960_vm11, %v882_v62, %v886_v58  ;;  %v1600_v49 = vor.u32 %v1599_v4, %v1598_v6  ;;  %v7262_v41 = vrot.slane %v9131_v53, 10  ;;  %v1867_v21 = vrot.slane %v9135_v17, 6 }
 0x13e   : > { %v2195_v5 = vsel %vm7892_vm10, %v2193_v2, %v2194_v31  ;;  %v2196_v23 = vrot.slane %v2194_v31, 4  ;;  %7571 = vmatmul.mubr.msk.bf16.gmra.mxu0 %vm5838_vm7, %v7358_v9  ;;  %v9180_v11 = vld [vmem:[#allocation2 + $0xb0] sm:$0x3]  ;;  %v1086_v60 = vmax.bf16 %v887_v55, %v9131_v53  ;;  %v1597_v27 = vrot.slane %v1596_v40, 4 }
 0x13f   : > { %2303 = vst.msk [vmem:[#allocation2 + $0x88] sm:$0xf] %vm173_vm1, %v2195_v5  ;;  %v894_v54 = vshll.u32 %v9180_v11, 16  ;;  %v1264_v45 = vrot.slane %v9180_v11, 5  ;;  %v1603_v42 = vshrl.u32 %v9180_v11, 16  ;;  %v1602_v51 = vrot.slane %v1600_v49, 4 }
 0x140   : > { %2304 = vst.msk [vmem:[#allocation2 + $0x8c] sm:$0x1] %vm188_vm2, %v2196_v23  ;;  %v2356_v58 = vld [vmem:[#allocation2 + $0x84] sm:$0xf]  ;;  %v1369_v0 = vmax.bf16 %v1262_v36, %v1086_v60  ;;  %v1601_v53 = vsel %vm8198_vm3, %v1597_v27, %v1600_v49  ;;  %v1868_v9 = vsel %vm8286_vm8, %v7262_v41, %v1867_v21  ;;  %v1869_v55 = vrot.slane %v1867_v21, 4 }
 0x141   : > { %v896_v15 = vrot.slane %v894_v54, 5  ;;  %v1265_v59 = vsel %vm8089_vm14, %v1263_v63, %v1264_v45  ;;  %v1606_v29 = vrot.slane %v894_v54, 6  ;;  %v1605_v19 = vrot.slane %v1603_v42, 5 }
 0x142   : > { %v2648_v26 = vshrl.u32 %v2356_v58, 16  ;;  %v2651_v2 = vshll.u32 %v2356_v58, 16  ;;  %v7279_v32 = vrot.slane %v2356_v58, 9  ;;  %v7299_v35 = vrot.slane %v2356_v58, 10 }
 0x143   : > { %v897_v14 = vsel %vm7960_vm11, %v892_v46, %v896_v15  ;;  %v1607_v31 = vor.u32 %v1606_v29, %v1605_v19  ;;  %v1752_v4 = vmax.bf16 %v1601_v53, %v1369_v0 }
 0x144   : > { %v2650_v62 = vrot.slane %v2648_v26, 4  ;;  %v2653_v36 = vrot.slane %v2651_v2, 5  ;;  %v3388_v63 = vrot.slane %v2648_v26, 5  ;;  %v3389_v43 = vrot.slane %v2651_v2, 6 }
 0x145   : > { %v1087_v23 = vmax.bf16 %v897_v14, %v9135_v17  ;;  %v1608_v6 = vsel %vm8198_vm3, %v1602_v51, %v1607_v31 }
 0x146   : > { %v2357_v5 = vld [vmem:[#allocation2 + $0x88] sm:$0xf]  ;;  %v2654_v54 = vor.u32 %v2653_v36, %v2650_v62  ;;  %v3390_v41 = vor.u32 %v3389_v43, %v3388_v63 }
 0x147   : > { %v2358_v46 = vld [vmem:[#allocation2 + $0x8c] sm:$0x3]  ;;  %v2657_v45 = vshll.u32 %v2357_v5, 16  ;;  %v2661_v40 = vshrl.u32 %v2357_v5, 16  ;;  %v3082_v60 = vrot.slane %v2357_v5, 5  ;;  %v3682_v43 = vrot.slane %v2357_v5, 6 }
 0x148   : > { %v2667_v49 = vshll.u32 %v2358_v46, 16  ;;  %v3085_v42 = vrot.slane %v2358_v46, 5  ;;  %v3397_v15 = vshrl.u32 %v2358_v46, 16  ;;  %v2655_v27 = vrot.slane %v2654_v54, 4 }
 0x149   : > { %v2659_v29 = vrot.slane %v2657_v45, 5  ;;  %v2663_v19 = vrot.slane %v2661_v40, 4  ;;  %v3083_v17 = vsel %vm8089_vm14, %v7279_v32, %v3082_v60  ;;  %v3084_v2 = vrot.slane %v3082_v60, 4 }
 0x14a   : > { %v2669_v26 = vrot.slane %v2667_v49, 5  ;;  %v3391_v51 = vrot.slane %v3390_v41, 4  ;;  %v3392_v0 = vrot.slane %v2661_v40, 5  ;;  %v3393_v53 = vrot.slane %v2657_v45, 6 }
 0x14b   : > { %v2660_v21 = vsel %vm7960_vm11, %v2655_v27, %v2659_v29  ;;  %v2664_v14 = vor.u32 %v2663_v19, %v2659_v29  ;;  %v3399_v31 = vrot.slane %v3397_v15, 5  ;;  %v3086_v36 = vsel %vm8089_vm14, %v3084_v2, %v3085_v42  ;;  %v256_v15 = vld [vmem:[%s7876_s23 + $0x68] sm:$0xf] }
 0x14c   : > { %v2925_v62 = vmax.bf16 %v2660_v21, %v2356_v58  ;;  %v3400_v63 = vrot.slane %v2667_v49, 6  ;;  %v3394_v18 = vor.u32 %v3393_v53, %v3392_v0  ;;  %v3685_v32 = vrot.slane %v2358_v46, 6  ;;  %v257_v46 = vld [vmem:[%s7876_s23 + $0x6c] sm:$0xf] }
 0x14d   : > { %v2665_v54 = vrot.slane %v2664_v14, 4  ;;  %v1370_v60 = vmax.bf16 %v1265_v59, %v1087_v23  ;;  %v3683_v27 = vsel %vm8286_vm8, %v7299_v35, %v3682_v43  ;;  %v3684_v29 = vrot.slane %v3682_v43, 4  ;;  %v9252_v43 = vld [vmem:[%s7876_s23 + $0x70] sm:$0xf] }
 0x14e   : > { %v3205_v41 = vmax.bf16 %v3083_v17, %v2925_v62  ;;  %v3401_v40 = vor.u32 %v3400_v63, %v3399_v31  ;;  %v3395_v45 = vsel %vm8198_vm3, %v3391_v51, %v3394_v18  ;;  %v3396_v42 = vrot.slane %v3394_v18, 4 }
 0x14f   : > { %v2670_v58 = vsel %vm7960_vm11, %v2665_v54, %v2669_v26  ;;  %v1753_v49 = vmax.bf16 %v1608_v6, %v1370_v60  ;;  %v3686_v59 = vsel %vm8286_vm8, %v3684_v29, %v3685_v32  ;;  %v1870_v23 = vrot.slane %v9180_v11, 6  ;;  %v9269_v29 = vld [vmem:[%s7876_s23 + $0x74] sm:$0xf] }
 0x150   : > { %v2926_v19 = vmax.bf16 %v2670_v58, %v2357_v5  ;;  %v3585_v2 = vmax.bf16 %v3395_v45, %v3205_v41  ;;  %v3402_v35 = vsel %vm8198_vm3, %v3396_v42, %v3401_v40  ;;  %v9222_v17 = vmax.bf16 %v1868_v9, %v1752_v4  ;;  %v9285_v42 = vld [vmem:[%s7876_s23 + $0x78] sm:$0xf] }
 0x151   : > { %v2008_v26 = vmax.bf16 %v8858_v20, %v8802_v47  ;;  %v13153_v18 = vmax.bf16 %v8839_v38, %v8790_v39  ;;  %v1871_v11 = vsel %vm8286_vm8, %v1869_v55, %v1870_v23  ;;  %v362_v0 = vrot.slane %v256_v15, 7 }
 0x152   : > { %v3206_v6 = vmax.bf16 %v3086_v36, %v2926_v19  ;;  %v9230_v51 = vmax.bf16 %v3683_v27, %v3585_v2  ;;  %v9234_v21 = vmax.bf16 %v1871_v11, %v1753_v49  ;;  %v364_v47 = vrot.slane %v257_v46, 7 }
 0x153   : > { %v2039_v5 = vmax.bf16 %v13153_v18, %v9022_v48  ;;  %v2040_v9 = vmax.bf16 %v2008_v26, %v9047_v37  ;;  %v363_v31 = vrot.slane %v362_v0, 4  ;;  %466 = vst.msk [vmem:[#allocation2 + $0xb4] sm:$0xe] %vm426_vm6, %v362_v0  ;;  %v2009_v63 = vmax.bf16 %v9022_v48, %v8839_v38 }
 0x154   : > { %13154 = vst [vmem:[#allocation24_spill] sm:$0xff] %v9230_v51  ;;  %v3586_v14 = vmax.bf16 %v3402_v35, %v3206_v6  ;;  %v9244_v53 = vmax.bf16 %v3841_v34, %v9230_v51  ;;  %v366_v36 = vrot.slane %v364_v47, 4  ;;  %v2010_v32 = vmax.bf16 %v9047_v37, %v8858_v20 }
 0x155   : > { %v2071_v4 = vmax.bf16 %v2039_v5, %v9141_v10  ;;  %v2072_v55 = vmax.bf16 %v2040_v9, %v9162_v13  ;;  %v365_v34 = vsel %vm7892_vm10, %v363_v31, %v364_v47  ;;  %v7393_v60 = vcombine.low %v9029_v28, %v9045_v61 }
 0x156   : > { %v9254_v54 = vmax.bf16 %v3686_v59, %v3586_v14  ;;  %467 = vst.msk [vmem:[#allocation2 + $0xb8] sm:$0xf] %vm173_vm1, %v365_v34  ;;  %v9266_v38 = vmax.bf16 %v2009_v63, %v9141_v10  ;;  %v7394_v27 = vcombine.low %v256_v15, %v257_v46  ;;  %v13156_v20 = vmax.bf16 %v9164_v1, %v9000_v8 }
 0x157   : > { %v2103_v62 = vmax.bf16 %v2071_v4, %v9222_v17  ;;  %v2104_v41 = vmax.bf16 %v2072_v55, %v9234_v21  ;;  %468 = vst.msk [vmem:[#allocation2 + $0xbc] sm:$0x1] %vm188_vm2, %v366_v36  ;;  %v9280_v61 = vmax.bf16 %v2010_v32, %v9162_v13  ;;  %7612 = vmatprep.mubr.msk.bf16.mxu1 %vm5838_vm7, %v7393_v60  ;;  %v367_v45 = vrot.slane %v9252_v43, 7 }
 0x158   : > { %13155 = vst [vmem:[#allocation25_spill] sm:$0xff] %v9254_v54  ;;  %v9277_v28 = vmax.bf16 %v13156_v20, %v9254_v54  ;;  %7613 = vmatmul.mubr.msk.bf16.gmra.mxu1 %vm5838_vm7, %v7394_v27  ;;  %v369_v46 = vrot.slane %v9269_v29, 7  ;;  %v2011_v35 = vmax.bf16 %v9141_v10, %v9022_v48  ;;  %v2012_v6 = vmax.bf16 %v9162_v13, %v9047_v37 }
 0x159   : > { %v2197_v40 = vrot.slane %v2103_v62, 7  ;;  %v2199_v15 = vrot.slane %v2104_v41, 7  ;;  %v7359_v19 = vcombine.low %v2103_v62, %v2104_v41  ;;  %v368_v23 = vrot.slane %v367_v45, 4  ;;  %469 = vst.msk [vmem:[#allocation2 + $0xc0] sm:$0xe] %vm426_vm6, %v367_v45 }
 0x15a   : > { %v9300_v5 = vld [vmem:[#allocation2 + $0xb4] sm:$0xf]  ;;  %v12864_v11 = vrot.slane %v9285_v42, 7  ;;  %v371_v14 = vrot.slane %v369_v46, 4  ;;  %v9314_v37 = vmax.bf16 %v2011_v35, %v9222_v17  ;;  %v9317_v31 = vmax.bf16 %v2012_v6, %v9234_v21 }
 0x15b   : > { %v2198_v49 = vrot.slane %v2197_v40, 4  ;;  %2305 = vst.msk [vmem:[#allocation2 + $0x90] sm:$0xe] %vm426_vm6, %v2197_v40  ;;  %v2201_v18 = vrot.slane %v2199_v15, 4  ;;  %7574 = vmatprep.mubr.msk.bf16.mxu0 %vm5838_vm7, %v7359_v19  ;;  %v899_v0 = vshrl.u32 %v9300_v5, 16  ;;  %v902_v9 = vshll.u32 %v9300_v5, 16 }
 0x15c   : > { %v370_v47 = vsel %vm7892_vm10, %v368_v23, %v369_v46  ;;  %472 = vst.msk [vmem:[#allocation2 + $0xcc] sm:$0xe] %vm426_vm6, %v12864_v11 }
 0x15d   : > { %v2200_v26 = vsel %vm7892_vm10, %v2198_v49, %v2199_v15  ;;  %2307 = vst.msk [vmem:[#allocation2 + $0x98] sm:$0x1] %vm188_vm2, %v2201_v18  ;;  %v9322_v55 = vld [vmem:[#allocation2 + $0xb8] sm:$0xf]  ;;  %v901_v36 = vrot.slane %v899_v0, 4  ;;  %v904_v63 = vrot.slane %v902_v9, 5 }
 0x15e   : > { %2306 = vst.msk [vmem:[#allocation2 + $0x94] sm:$0xf] %vm173_vm1, %v2200_v26  ;;  %v9324_v62 = vld [vmem:[#allocation2 + $0xbc] sm:$0x3]  ;;  %470 = vst.msk [vmem:[#allocation2 + $0xc4] sm:$0xf] %vm173_vm1, %v370_v47 }
 0x15f   : > { %v12865_v60 = vshll.u32 %v9322_v55, 16  ;;  %v12866_v41 = vshrl.u32 %v9322_v55, 16  ;;  %v12867_v40 = vshll.u32 %v9324_v62, 16  ;;  %471 = vst.msk [vmem:[#allocation2 + $0xc8] sm:$0x1] %vm188_vm2, %v371_v14  ;;  %v905_v45 = vor.u32 %v904_v63, %v901_v36 }
 0x160   : > { %v9337_v15 = vrot.slane %v899_v0, 5  ;;  %v9339_v19 = vrot.slane %v902_v9, 6 }
 0x161   : > { %v906_v18 = vrot.slane %v905_v45, 4  ;;  %v910_v6 = vrot.slane %v12865_v60, 5  ;;  %v914_v47 = vrot.slane %v12866_v41, 4  ;;  %v920_v14 = vrot.slane %v12867_v40, 5 }
 0x162   : > { %v2359_v20 = vld [vmem:[#allocation2 + $0x90] sm:$0xf] }
 0x163   : > { %v2672_v23 = vshrl.u32 %v2359_v20, 16  ;;  %v2675_v46 = vshll.u32 %v2359_v20, 16  ;;  %v7280_v35 = vrot.slane %v2359_v20, 9  ;;  %v7300_v26 = vrot.slane %v2359_v20, 10 }
 0x164   : > { %v2361_v34 = vld [vmem:[#allocation2 + $0x98] sm:$0x3] }
 0x165   : > { %v2360_v36 = vld [vmem:[#allocation2 + $0x94] sm:$0xf]  ;;  %v2674_v63 = vrot.slane %v2672_v23, 4  ;;  %v2677_v0 = vrot.slane %v2675_v46, 5  ;;  %v3403_v32 = vrot.slane %v2672_v23, 5  ;;  %v3404_v9 = vrot.slane %v2675_v46, 6 }
 0x166   : > { %v2681_v11 = vshll.u32 %v2360_v36, 16  ;;  %v2685_v59 = vshrl.u32 %v2360_v36, 16  ;;  %v3089_v2 = vrot.slane %v2360_v36, 5  ;;  %v3689_v4 = vrot.slane %v2360_v36, 6 }
 0x167   : > { %v2678_v45 = vor.u32 %v2677_v0, %v2674_v63  ;;  %v2691_v58 = vshll.u32 %v2361_v34, 16  ;;  %v3092_v39 = vrot.slane %v2361_v34, 5  ;;  %v3405_v60 = vor.u32 %v3404_v9, %v3403_v32 }
 0x168   : > { %v2683_v49 = vrot.slane %v2681_v11, 5  ;;  %v2687_v48 = vrot.slane %v2685_v59, 4  ;;  %v3090_v41 = vsel %vm8089_vm14, %v7280_v35, %v3089_v2  ;;  %v3091_v40 = vrot.slane %v3089_v2, 4 }
 0x169   : > { %v2679_v27 = vrot.slane %v2678_v45, 4  ;;  %v2693_v8 = vrot.slane %v2691_v58, 5  ;;  %v3406_v25 = vrot.slane %v3405_v60, 4  ;;  %v3407_v23 = vrot.slane %v2685_v59, 5 }
 0x16a   : > { %v2688_v46 = vor.u32 %v2687_v48, %v2683_v49  ;;  %v3093_v7 = vsel %vm8089_vm14, %v3091_v40, %v3092_v39  ;;  %v3408_v56 = vrot.slane %v2681_v11, 6  ;;  %v3412_v16 = vshrl.u32 %v2361_v34, 16 }
 0x16b   : > { %v2684_v63 = vsel %vm7960_vm11, %v2679_v27, %v2683_v49  ;;  %v3415_v32 = vrot.slane %v2691_v58, 6  ;;  %v3690_v0 = vsel %vm8286_vm8, %v7300_v26, %v3689_v4  ;;  %v3691_v9 = vrot.slane %v3689_v4, 4 }
 0x16c   : > { %v2689_v35 = vrot.slane %v2688_v46, 4  ;;  %v2927_v2 = vmax.bf16 %v2684_v63, %v2359_v20  ;;  %v3409_v45 = vor.u32 %v3408_v56, %v3407_v23  ;;  %v3414_v12 = vrot.slane %v3412_v16, 5 }
 0x16d   : > { %v3692_v60 = vrot.slane %v2361_v34, 6  ;;  %v911_v59 = vsel %vm7960_vm11, %v906_v18, %v910_v6  ;;  %v915_v48 = vor.u32 %v914_v47, %v910_v6  ;;  %v13157_v39 = vrot.slane %v9322_v55, 5 }
 0x16e   : > { %v13158_v11 = vrot.slane %v9300_v5, 9  ;;  %v2694_v40 = vsel %vm7960_vm11, %v2689_v35, %v2693_v8  ;;  %v3207_v4 = vmax.bf16 %v3090_v41, %v2927_v2  ;;  %v3410_v56 = vsel %vm8198_vm3, %v3406_v25, %v3409_v45 }
 0x16f   : > { %v3411_v16 = vrot.slane %v3409_v45, 4  ;;  %v2928_v34 = vmax.bf16 %v2694_v40, %v2360_v36  ;;  %v3416_v27 = vor.u32 %v3415_v32, %v3414_v12  ;;  %v3693_v20 = vsel %vm8286_vm8, %v3691_v9, %v3692_v60  ;;  %v9392_v60 = vld [vmem:[#allocation2 + $0xc4] sm:$0xf] }
 0x170   : > { %v1269_v58 = vsel %vm8089_vm14, %v13158_v11, %v13157_v39  ;;  %v916_v49 = vrot.slane %v915_v48, 4  ;;  %v3587_v26 = vmax.bf16 %v3410_v56, %v3207_v4  ;;  %v1088_v18 = vmax.bf16 %v911_v59, %v9300_v5 }
 0x171   : > { %v13159_v6 = vmov %v13157_v39  ;;  %v1611_v8 = vor.u32 %v9339_v19, %v9337_v15  ;;  %v3208_v41 = vmax.bf16 %v3093_v7, %v2928_v34  ;;  %v3417_v25 = vsel %vm8198_vm3, %v3411_v16, %v3416_v27  ;;  %v9387_v7 = vld [vmem:[#allocation2 + $0xc0] sm:$0xf] }
 0x172   : > { %v1270_v47 = vrot.slane %v13159_v6, 4  ;;  %v921_v12 = vsel %vm7960_vm11, %v916_v49, %v920_v14  ;;  %v13160_v36 = vshrl.u32 %v9322_v55, 16  ;;  %v9380_v46 = vmax.bf16 %v3690_v0, %v3587_v26 }
 0x173   : > { %v1089_v63 = vmax.bf16 %v921_v12, %v9322_v55  ;;  %v13162_v32 = vrot.slane %v9324_v62, 5  ;;  %v1371_v15 = vmax.bf16 %v1269_v58, %v1088_v18  ;;  %v3588_v19 = vmax.bf16 %v3417_v25, %v3208_v41 }
 0x174   : > { %v1613_v23 = vrot.slane %v13160_v36, 5  ;;  %13161 = vst [vmem:[#allocation26_spill] sm:$0xff] %v9380_v46  ;;  %v1612_v35 = vrot.slane %v1611_v8, 4  ;;  %v13163_v2 = vshll.u32 %v9322_v55, 16  ;;  %v1618_v45 = vshrl.u32 %v9324_v62, 16 }
 0x175   : > { %v1272_v9 = vsel %vm8089_vm14, %v1270_v47, %v13162_v32  ;;  %v13164_v0 = vmax.bf16 %v9230_v51, %v9145_v50  ;;  %v13166_v11 = vshll.u32 %v9324_v62, 16  ;;  %v9404_v40 = vmax.bf16 %v3693_v20, %v3588_v19 }
 0x176   : > { %v1614_v14 = vrot.slane %v13163_v2, 6  ;;  %v1372_v39 = vmax.bf16 %v1272_v9, %v1089_v63  ;;  %v1620_v56 = vrot.slane %v1618_v45, 5  ;;  %v1874_v16 = vrot.slane %v9322_v55, 6 }
 0x177   : > { %v9398_v59 = vmax.bf16 %v13164_v0, %v9380_v46  ;;  %v1621_v58 = vrot.slane %v13166_v11, 6  ;;  %13167 = vst [vmem:[#allocation28_spill] sm:$0xff] %v9404_v40  ;;  %v1877_v34 = vrot.slane %v9324_v62, 6  ;;  %v923_v27 = vshrl.u32 %v9387_v7, 16  ;;  %v9421_v62 = vld [vmem:[#allocation2 + $0xc8] sm:$0x3] }
 0x178   : > { %v1615_v4 = vor.u32 %v1614_v14, %v1613_v23  ;;  %v926_v49 = vshll.u32 %v9387_v7, 16  ;;  %v932_v26 = vshll.u32 %v9392_v60, 16  ;;  %v13168_v18 = vmax.bf16 %v9254_v54, %v9164_v1 }
 0x179   : > { %13165 = vst [vmem:[#allocation27_spill] sm:$0xff] %v9398_v59  ;;  %v1622_v8 = vor.u32 %v1621_v58, %v1620_v56  ;;  %v13170_v25 = vrot.slane %v9300_v5, 10  ;;  %v1876_v36 = vrot.slane %v1874_v16, 4  ;;  %v925_v23 = vrot.slane %v923_v27, 4 }
 0x17a   : > { %v9415_v6 = vmax.bf16 %v13168_v18, %v9404_v40  ;;  %v1616_v55 = vsel %vm8198_vm3, %v1612_v35, %v1615_v4  ;;  %v1617_v47 = vrot.slane %v1615_v4, 4  ;;  %v928_v63 = vrot.slane %v926_v49, 5 }
 0x17b   : > { %v1754_v41 = vmax.bf16 %v1616_v55, %v1371_v15  ;;  %v1875_v12 = vsel %vm8286_vm8, %v13170_v25, %v1874_v16  ;;  %v934_v32 = vrot.slane %v932_v26, 5  ;;  %v936_v9 = vshrl.u32 %v9392_v60, 16 }
 0x17c   : > { %13169 = vst [vmem:[#allocation29_spill] sm:$0xff] %v9415_v6  ;;  %v1623_v19 = vsel %vm8198_vm3, %v1617_v47, %v1622_v8  ;;  %v1878_v35 = vsel %vm8286_vm8, %v1876_v36, %v1877_v34  ;;  %v942_v15 = vshll.u32 %v9421_v62, 16  ;;  %v929_v14 = vor.u32 %v928_v63, %v925_v23 }
 0x17d   : > { %v9432_v2 = vmax.bf16 %v1875_v12, %v1754_v41  ;;  %v1755_v5 = vmax.bf16 %v1623_v19, %v1372_v39  ;;  %v938_v45 = vrot.slane %v936_v9, 4  ;;  %v7244_v0 = vrot.slane %v9387_v7, 9 }
 0x17e   : > { %v13171_v11 = vmax.bf16 %v9266_v38, %v9222_v17  ;;  %v944_v4 = vrot.slane %v942_v15, 5  ;;  %v1275_v56 = vrot.slane %v9392_v60, 5  ;;  %v1278_v16 = vrot.slane %v9421_v62, 5 }
 0x17f   : > { %v9442_v34 = vmax.bf16 %v1878_v35, %v1755_v5  ;;  %v930_v18 = vrot.slane %v929_v14, 4  ;;  %v939_v55 = vor.u32 %v938_v45, %v934_v32  ;;  %v1624_v47 = vrot.slane %v923_v27, 5 }
 0x180   : > { %v2105_v58 = vmax.bf16 %v13171_v11, %v9432_v2  ;;  %v1276_v8 = vsel %vm8089_vm14, %v7244_v0, %v1275_v56  ;;  %v1277_v41 = vrot.slane %v1275_v56, 4  ;;  %v1625_v25 = vrot.slane %v926_v49, 6 }
 0x181   : > { %v13172_v38 = vmax.bf16 %v9280_v61, %v9234_v21  ;;  %v935_v36 = vsel %vm7960_vm11, %v930_v18, %v934_v32  ;;  %v940_v23 = vrot.slane %v939_v55, 4  ;;  %v1628_v63 = vrot.slane %v936_v9, 5 }
 0x182   : > { %v2202_v39 = vrot.slane %v2105_v58, 7  ;;  %v1090_v27 = vmax.bf16 %v935_v36, %v9387_v7  ;;  %v1279_v35 = vsel %vm8089_vm14, %v1277_v41, %v1278_v16  ;;  %v1626_v49 = vor.u32 %v1625_v25, %v1624_v47  ;;  %v9464_v47 = vld [vmem:[%s7876_s23 + $0x7c] sm:$0xf] }
 0x183   : > { %v2106_v12 = vmax.bf16 %v13172_v38, %v9442_v34  ;;  %v945_v61 = vsel %vm7960_vm11, %v940_v23, %v944_v4  ;;  %v1629_v45 = vrot.slane %v932_v26, 6  ;;  %v1633_v11 = vshrl.u32 %v9421_v62, 16 }
 0x184   : > { %v2203_v19 = vrot.slane %v2202_v39, 4  ;;  %2308 = vst.msk [vmem:[#allocation2 + $0x9c] sm:$0xe] %vm426_vm6, %v2202_v39  ;;  %v1091_v32 = vmax.bf16 %v945_v61, %v9392_v60  ;;  %v1373_v0 = vmax.bf16 %v1276_v8, %v1090_v27  ;;  %v1627_v9 = vrot.slane %v1626_v49, 4  ;;  %v9469_v8 = vld [vmem:[#allocation2 + $0xcc] sm:$0xf] }
 0x185   : > { %v2204_v5 = vrot.slane %v2106_v12, 7  ;;  %v7360_v14 = vcombine.low %v2105_v58, %v2106_v12  ;;  %v1630_v16 = vor.u32 %v1629_v45, %v1628_v63  ;;  %v1636_v55 = vrot.slane %v942_v15, 6 }
 0x186   : > { %v1374_v58 = vmax.bf16 %v1279_v35, %v1091_v32  ;;  %v1635_v26 = vrot.slane %v1633_v11, 5  ;;  %v7264_v4 = vrot.slane %v9387_v7, 10  ;;  %v1881_v39 = vrot.slane %v9392_v60, 6 }
 0x187   : > { %v2205_v56 = vsel %vm7892_vm10, %v2203_v19, %v2204_v5  ;;  %v2206_v18 = vrot.slane %v2204_v5, 4  ;;  %7575 = vmatmul.mubr.msk.bf16.gmra.mxu0 %vm5838_vm7, %v7360_v14  ;;  %v1631_v41 = vsel %vm8198_vm3, %v1627_v9, %v1630_v16  ;;  %v1632_v25 = vrot.slane %v1630_v16, 4 }
 0x188   : > { %2309 = vst.msk [vmem:[#allocation2 + $0xa0] sm:$0xf] %vm173_vm1, %v2205_v56  ;;  %v1884_v15 = vrot.slane %v9421_v62, 6  ;;  %v2075_v38 = vmax.bf16 %v9314_v37, %v9432_v2  ;;  %v1637_v12 = vor.u32 %v1636_v55, %v1635_v26  ;;  %v1756_v36 = vmax.bf16 %v1631_v41, %v1373_v0 }
 0x189   : > { %2310 = vst.msk [vmem:[#allocation2 + $0xa4] sm:$0x1] %vm188_vm2, %v2206_v18  ;;  %v1882_v7 = vsel %vm8286_vm8, %v7264_v4, %v1881_v39  ;;  %v1883_v23 = vrot.slane %v1881_v39, 4  ;;  %v2076_v63 = vmax.bf16 %v9317_v31, %v9442_v34  ;;  %v13173_v19 = vrot.slane %v9285_v42, 7 }
 0x18a   : > { %v374_v35 = vrot.slane %v9464_v47, 7  ;;  %v12875_v62 = vshrl.u32 %v9469_v8, 16  ;;  %v1638_v61 = vsel %vm8198_vm3, %v1632_v25, %v1637_v12  ;;  %v9489_v32 = vmax.bf16 %v1882_v7, %v1756_v36 }
 0x18b   : > { %v2362_v60 = vld [vmem:[#allocation2 + $0x9c] sm:$0xf]  ;;  %v373_v27 = vrot.slane %v13173_v19, 4  ;;  %v1885_v45 = vsel %vm8286_vm8, %v1883_v23, %v1884_v15  ;;  %v1757_v16 = vmax.bf16 %v1638_v61, %v1374_v58 }
 0x18c   : > { %v2696_v49 = vshrl.u32 %v2362_v60, 16  ;;  %v2699_v5 = vshll.u32 %v2362_v60, 16  ;;  %v7281_v37 = vrot.slane %v2362_v60, 9  ;;  %v7301_v14 = vrot.slane %v2362_v60, 10 }
 0x18d   : > { %v375_v31 = vsel %vm7892_vm10, %v373_v27, %v374_v35  ;;  %v2107_v55 = vmax.bf16 %v2075_v38, %v9489_v32  ;;  %v376_v26 = vrot.slane %v374_v35, 4  ;;  %v9497_v4 = vrot.slane %v12875_v62, 4 }
 0x18e   : > { %v2698_v0 = vrot.slane %v2696_v49, 4  ;;  %v2701_v9 = vrot.slane %v2699_v5, 5  ;;  %v3418_v11 = vrot.slane %v2696_v49, 5  ;;  %v3419_v56 = vrot.slane %v2699_v5, 6  ;;  %473 = vst.msk [vmem:[#allocation2 + $0xd0] sm:$0xf] %vm173_vm1, %v375_v31 }
 0x18f   : > { %v2363_v18 = vld [vmem:[#allocation2 + $0xa0] sm:$0xf]  ;;  %474 = vst.msk [vmem:[#allocation2 + $0xd4] sm:$0x1] %vm188_vm2, %v376_v26 }
 0x190   : > { %v2364_v39 = vld [vmem:[#allocation2 + $0xa4] sm:$0x3]  ;;  %v2702_v41 = vor.u32 %v2701_v9, %v2698_v0  ;;  %v2705_v25 = vshll.u32 %v2363_v18, 16  ;;  %v2709_v15 = vshrl.u32 %v2363_v18, 16  ;;  %v3096_v12 = vrot.slane %v2363_v18, 5 }
 0x191   : > { %v2715_v36 = vshll.u32 %v2364_v39, 16  ;;  %v3099_v7 = vrot.slane %v2364_v39, 5  ;;  %v3420_v23 = vor.u32 %v3419_v56, %v3418_v11  ;;  %v3427_v19 = vshrl.u32 %v2364_v39, 16 }
 0x192   : > { %v2703_v27 = vrot.slane %v2702_v41, 4  ;;  %v2707_v58 = vrot.slane %v2705_v25, 5  ;;  %v2711_v49 = vrot.slane %v2709_v15, 4  ;;  %v3097_v38 = vsel %vm8089_vm14, %v7281_v37, %v3096_v12 }
 0x193   : > { %v2717_v35 = vrot.slane %v2715_v36, 5  ;;  %v3098_v5 = vrot.slane %v3096_v12, 4  ;;  %v3421_v61 = vrot.slane %v3420_v23, 4  ;;  %v3422_v31 = vrot.slane %v2709_v15, 5 }
 0x194   : > { %v2708_v0 = vsel %vm7960_vm11, %v2703_v27, %v2707_v58  ;;  %v2712_v9 = vor.u32 %v2711_v49, %v2707_v58  ;;  %v3423_v20 = vrot.slane %v2705_v25, 6  ;;  %v3429_v62 = vrot.slane %v3427_v19, 5 }
 0x195   : > { %v2929_v11 = vmax.bf16 %v2708_v0, %v2362_v60  ;;  %v3100_v56 = vsel %vm8089_vm14, %v3098_v5, %v3099_v7  ;;  %v3430_v26 = vrot.slane %v2715_v36, 6  ;;  %v3696_v41 = vrot.slane %v2363_v18, 6  ;;  %v9515_v19 = vld [vmem:[#allocation2 + $0xd0] sm:$0xf] }
 0x196   : > { %v2713_v48 = vrot.slane %v2712_v9, 4  ;;  %v3424_v1 = vor.u32 %v3423_v20, %v3422_v31  ;;  %v3699_v50 = vrot.slane %v2364_v39, 6  ;;  %v9506_v37 = vmax.bf16 %v1885_v45, %v1757_v16  ;;  %v9519_v39 = vld [vmem:[#allocation2 + $0xd4] sm:$0x3] }
 0x197   : > { %v3209_v12 = vmax.bf16 %v3097_v38, %v2929_v11  ;;  %v3431_v23 = vor.u32 %v3430_v26, %v3429_v62  ;;  %v3697_v15 = vsel %vm8286_vm8, %v7301_v14, %v3696_v41  ;;  %v3698_v27 = vrot.slane %v3696_v41, 4 }
 0x198   : > { %v2718_v25 = vsel %vm7960_vm11, %v2713_v48, %v2717_v35  ;;  %v3425_v60 = vsel %vm8198_vm3, %v3421_v61, %v3424_v1  ;;  %v3426_v7 = vrot.slane %v3424_v1, 4  ;;  %v2108_v36 = vmax.bf16 %v2076_v63, %v9506_v37 }
 0x199   : > { %v2930_v20 = vmax.bf16 %v2718_v25, %v2363_v18  ;;  %v3589_v45 = vmax.bf16 %v3425_v60, %v3209_v12  ;;  %v3700_v62 = vsel %vm8286_vm8, %v3698_v27, %v3699_v50  ;;  %v2207_v16 = vrot.slane %v2107_v55, 7 }
 0x19a   : > { %v3432_v14 = vsel %vm8198_vm3, %v3426_v7, %v3431_v23  ;;  %v2209_v48 = vrot.slane %v2108_v36, 7  ;;  %v7361_v58 = vcombine.low %v2107_v55, %v2108_v36  ;;  %v950_v49 = vshll.u32 %v9469_v8, 16 }
 0x19b   : > { %v3210_v1 = vmax.bf16 %v3100_v56, %v2930_v20  ;;  %v9524_v38 = vmax.bf16 %v3697_v15, %v3589_v45  ;;  %v2208_v63 = vrot.slane %v2207_v16, 4  ;;  %2311 = vst.msk [vmem:[#allocation2 + $0xa8] sm:$0xe] %vm426_vm6, %v2207_v16  ;;  %v12881_v18 = vshll.u32 %v9515_v19, 16 }
 0x19c   : > { %v2211_v35 = vrot.slane %v2209_v48, 4  ;;  %7578 = vmatprep.mubr.msk.bf16.mxu0 %vm5838_vm7, %v7361_v58  ;;  %v952_v50 = vrot.slane %v950_v49, 5  ;;  %v960_v5 = vshrl.u32 %v9515_v19, 16  ;;  %v12880_v61 = vshll.u32 %v9519_v39, 16 }
 0x19d   : > { %13174 = vst [vmem:[#allocation30_spill] sm:$0xff] %v9524_v38  ;;  %v3590_v31 = vmax.bf16 %v3432_v14, %v3210_v1  ;;  %v13175_v0 = vmax.bf16 %v9244_v53, %v9380_v46  ;;  %v2210_v11 = vsel %vm7892_vm10, %v2208_v63, %v2209_v48  ;;  %v958_v26 = vrot.slane %v12881_v18, 5 }
 0x19e   : > { %2312 = vst.msk [vmem:[#allocation2 + $0xac] sm:$0xf] %vm173_vm1, %v2210_v11  ;;  %v953_v56 = vor.u32 %v952_v50, %v9497_v4  ;;  %v962_v41 = vrot.slane %v960_v5, 4  ;;  %v968_v12 = vrot.slane %v12880_v61, 5  ;;  %v7245_v53 = vrot.slane %v9469_v8, 9 }
 0x19f   : > { %v9537_v9 = vmax.bf16 %v13175_v0, %v9524_v38  ;;  %2313 = vst.msk [vmem:[#allocation2 + $0xb0] sm:$0x1] %vm188_vm2, %v2211_v35  ;;  %v9548_v23 = vmax.bf16 %v3700_v62, %v3590_v31  ;;  %v1282_v15 = vrot.slane %v9515_v19, 5  ;;  %v1285_v27 = vrot.slane %v9519_v39, 5 }
 0x1a0   : > { %v954_v25 = vrot.slane %v953_v56, 4  ;;  %v963_v60 = vor.u32 %v962_v41, %v958_v26  ;;  %v13178_v7 = vshrl.u32 %v9469_v8, 16  ;;  %v1640_v36 = vrot.slane %v950_v49, 6 }
 0x1a1   : > { %13176 = vst [vmem:[#allocation31_spill] sm:$0xff] %v9537_v9  ;;  %13177 = vst [vmem:[#allocation32_spill] sm:$0xff] %v9548_v23  ;;  %v13179_v45 = vmax.bf16 %v9277_v28, %v9404_v40  ;;  %v9565_v16 = vsel %vm8089_vm14, %v7245_v53, %v1282_v15  ;;  %v1284_v14 = vrot.slane %v1282_v15, 4  ;;  %v9569_v63 = vrot.slane %v960_v5, 5 }
 0x1a2   : > { %v1639_v4 = vrot.slane %v13178_v7, 5  ;;  %v2365_v48 = vld [vmem:[#allocation2 + $0xa8] sm:$0xf]  ;;  %v959_v58 = vsel %vm7960_vm11, %v954_v25, %v958_v26  ;;  %v964_v1 = vrot.slane %v963_v60, 4 }
 0x1a3   : > { %v9561_v62 = vmax.bf16 %v13179_v45, %v9548_v23  ;;  %v2720_v35 = vshrl.u32 %v2365_v48, 16  ;;  %v2723_v50 = vshll.u32 %v2365_v48, 16  ;;  %v7282_v31 = vrot.slane %v2365_v48, 9 }
 0x1a4   : > { %v1641_v49 = vor.u32 %v1640_v36, %v1639_v4  ;;  %v7302_v0 = vrot.slane %v2365_v48, 10  ;;  %v969_v28 = vsel %vm7960_vm11, %v964_v1, %v968_v12  ;;  %v9574_v11 = vmax.bf16 %v959_v58, %v9469_v8 }
 0x1a5   : > { %13180 = vst [vmem:[#allocation33_spill] sm:$0xff] %v9561_v62  ;;  %v9578_v56 = vsel %vm8089_vm14, %v1284_v14, %v1285_v27  ;;  %v2366_v26 = vld [vmem:[#allocation2 + $0xac] sm:$0xf]  ;;  %v2722_v5 = vrot.slane %v2720_v35, 4  ;;  %v2725_v15 = vrot.slane %v2723_v50, 5  ;;  %v9583_v25 = vmax.bf16 %v969_v28, %v9515_v19 }
 0x1a6   : > { %v9580_v41 = vrot.slane %v1641_v49, 4  ;;  %v2367_v53 = vld [vmem:[#allocation2 + $0xb0] sm:$0x3]  ;;  %v13181_v12 = vmax.bf16 %v9222_v17, %v9141_v10  ;;  %v2729_v7 = vshll.u32 %v2366_v26, 16  ;;  %v2733_v4 = vshrl.u32 %v2366_v26, 16 }
 0x1a7   : > { %v2739_v36 = vshll.u32 %v2367_v53, 16  ;;  %v3103_v27 = vrot.slane %v2366_v26, 5  ;;  %v2726_v45 = vor.u32 %v2725_v15, %v2722_v5  ;;  %v3106_v14 = vrot.slane %v2367_v53, 5 }
 0x1a8   : > { %v9589_v60 = vmax.bf16 %v13181_v12, %v9432_v2  ;;  %v3433_v58 = vrot.slane %v2720_v35, 5  ;;  %v3434_v1 = vrot.slane %v2723_v50, 6  ;;  %v2731_v49 = vrot.slane %v2729_v7, 5 }
 0x1a9   : > { %v2735_v20 = vrot.slane %v2733_v4, 4  ;;  %v2741_v55 = vrot.slane %v2739_v36, 5  ;;  %v3104_v28 = vsel %vm8089_vm14, %v7282_v31, %v3103_v27  ;;  %v2727_v61 = vrot.slane %v2726_v45, 4 }
 0x1aa   : > { %v3105_v18 = vrot.slane %v3103_v27, 4  ;;  %v3435_v62 = vor.u32 %v3434_v1, %v3433_v58  ;;  %v3437_v10 = vrot.slane %v2733_v4, 5  ;;  %v3438_v9 = vrot.slane %v2729_v7, 6 }
 0x1ab   : > { %v2736_v12 = vor.u32 %v2735_v20, %v2731_v49  ;;  %v3442_v52 = vshrl.u32 %v2367_v53, 16  ;;  %v3445_v44 = vrot.slane %v2739_v36, 6  ;;  %v2732_v5 = vsel %vm7960_vm11, %v2727_v61, %v2731_v49 }
 0x1ac   : > { %v3107_v35 = vsel %vm8089_vm14, %v3105_v18, %v3106_v14  ;;  %v3436_v50 = vrot.slane %v3435_v62, 4  ;;  %v3703_v15 = vrot.slane %v2366_v26, 6  ;;  %v2931_v6 = vmax.bf16 %v2732_v5, %v2365_v48 }
 0x1ad   : > { %v2737_v24 = vrot.slane %v2736_v12, 4  ;;  %v3439_v59 = vor.u32 %v3438_v9, %v3437_v10  ;;  %v3444_v31 = vrot.slane %v3442_v52, 5  ;;  %v3706_v7 = vrot.slane %v2367_v53, 6 }
 0x1ae   : > { %v9599_v27 = vsel %vm8286_vm8, %v7302_v0, %v3703_v15  ;;  %v3705_v20 = vrot.slane %v3703_v15, 4  ;;  %v1375_v4 = vmax.bf16 %v9565_v16, %v9574_v11  ;;  %v3211_v36 = vmax.bf16 %v3104_v28, %v2931_v6 }
 0x1af   : > { %13182 = vst [vmem:[#allocation34_spill] sm:$0xff] %v9599_v27  ;;  %v2742_v61 = vsel %vm7960_vm11, %v2737_v24, %v2741_v55  ;;  %v3440_v18 = vsel %vm8198_vm3, %v3436_v50, %v3439_v59  ;;  %v3441_v62 = vrot.slane %v3439_v59, 4  ;;  %v3446_v9 = vor.u32 %v3445_v44, %v3444_v31 }
 0x1b0   : > { %v2932_v48 = vmax.bf16 %v2742_v61, %v2366_v26  ;;  %v9609_v52 = vsel %vm8286_vm8, %v3705_v20, %v3706_v7  ;;  %v1376_v0 = vmax.bf16 %v9578_v56, %v9583_v25  ;;  %v9613_v53 = vmax.bf16 %v3440_v18, %v3211_v36 }
 0x1b1   : > { %13183 = vst [vmem:[#allocation35_spill] sm:$0xff] %v9609_v52  ;;  %v13185_v16 = vshll.u32 %v9515_v19, 16  ;;  %v1648_v24 = vshrl.u32 %v9519_v39, 16  ;;  %v13186_v6 = vshll.u32 %v9519_v39, 16  ;;  %v3447_v44 = vsel %vm8198_vm3, %v3441_v62, %v3446_v9 }
 0x1b2   : > { %13184 = vst [vmem:[#allocation36_spill] sm:$0xff] %v9613_v53  ;;  %v3212_v59 = vmax.bf16 %v3107_v35, %v2932_v48  ;;  %v7265_v26 = vrot.slane %v9469_v8, 10  ;;  %v1888_v45 = vrot.slane %v9515_v19, 6  ;;  %v1891_v14 = vrot.slane %v9519_v39, 6  ;;  %v9636_v19 = vld [vmem:[#allocation2 + $0xd8] sm:$0xf] }
 0x1b3   : > { %v1644_v11 = vrot.slane %v13185_v16, 6  ;;  %v1651_v55 = vrot.slane %v13186_v6, 6  ;;  %v1650_v25 = vrot.slane %v1648_v24, 5  ;;  %v13187_v58 = vmax.bf16 %v9234_v21, %v9162_v13  ;;  %v9644_v35 = vld [vmem:[#allocation2 + $0xe0] sm:$0x3] }
 0x1b4   : > { %v9630_v49 = vmax.bf16 %v3447_v44, %v3212_v59  ;;  %v1889_v28 = vsel %vm8286_vm8, %v7265_v26, %v1888_v45  ;;  %v1890_v10 = vrot.slane %v1888_v45, 4  ;;  %v2077_v8 = vmax.bf16 %v9589_v60, %v9489_v32 }
 0x1b5   : > { %v1645_v56 = vor.u32 %v1644_v11, %v9569_v63  ;;  %v2046_v1 = vmax.bf16 %v13187_v58, %v9442_v34  ;;  %v9638_v63 = vld [vmem:[#allocation2 + $0xdc] sm:$0xf]  ;;  %v1652_v13 = vor.u32 %v1651_v55, %v1650_v25  ;;  %v7395_v60 = vcombine.low %v9252_v43, %v9269_v29 }
 0x1b6   : > { %13188 = vst [vmem:[#allocation37_spill] sm:$0xff] %v9630_v49  ;;  %v1892_v15 = vsel %vm8286_vm8, %v1890_v10, %v1891_v14  ;;  %v7396_v31 = vcombine.low %v9285_v42, %v9464_v47  ;;  %v974_v7 = vshll.u32 %v9636_v19, 16  ;;  %v980_v61 = vshll.u32 %v9638_v63, 16 }
 0x1b7   : > { %v1646_v39 = vsel %vm8198_vm3, %v9580_v41, %v1645_v56  ;;  %v1647_v12 = vrot.slane %v1645_v56, 4  ;;  %v2078_v5 = vmax.bf16 %v2046_v1, %v9506_v37  ;;  %v971_v41 = vshrl.u32 %v9636_v19, 16  ;;  %7616 = vmatprep.mubr.msk.bf16.mxu1 %vm5838_vm7, %v7395_v60 }
 0x1b8   : > { %v1758_v50 = vmax.bf16 %v1646_v39, %v1375_v4  ;;  %v984_v18 = vshrl.u32 %v9638_v63, 16  ;;  %v990_v43 = vshll.u32 %v9644_v35, 16  ;;  %7617 = vmatmul.mubr.msk.bf16.gmra.mxu1 %vm5838_vm7, %v7396_v31  ;;  %v976_v42 = vrot.slane %v974_v7, 5 }
 0x1b9   : > { %v1653_v20 = vsel %vm8198_vm3, %v1647_v12, %v1652_v13  ;;  %v973_v29 = vrot.slane %v971_v41, 4  ;;  %v982_v47 = vrot.slane %v980_v61, 5  ;;  %v7246_v62 = vrot.slane %v9636_v19, 9 }
 0x1ba   : > { %v1759_v36 = vmax.bf16 %v1653_v20, %v1376_v0  ;;  %v9657_v4 = vmax.bf16 %v1889_v28, %v1758_v50  ;;  %v986_v0 = vrot.slane %v984_v18, 4  ;;  %v992_v16 = vrot.slane %v990_v43, 5 }
 0x1bb   : > { %v977_v11 = vor.u32 %v976_v42, %v973_v29  ;;  %v1289_v24 = vrot.slane %v9638_v63, 5  ;;  %v1292_v6 = vrot.slane %v9644_v35, 5  ;;  %v1654_v55 = vrot.slane %v971_v41, 5 }
 0x1bc   : > { %v9664_v48 = vmax.bf16 %v1892_v15, %v1759_v36  ;;  %v2109_v9 = vmax.bf16 %v2077_v8, %v9657_v4  ;;  %v987_v26 = vor.u32 %v986_v0, %v982_v47  ;;  %v1655_v45 = vrot.slane %v974_v7, 6 }
 0x1bd   : > { %v978_v56 = vrot.slane %v977_v11, 4  ;;  %v1290_v25 = vsel %vm8089_vm14, %v7246_v62, %v1289_v24  ;;  %v1291_v14 = vrot.slane %v1289_v24, 4  ;;  %v1658_v58 = vrot.slane %v984_v18, 5 }
 0x1be   : > { %v2110_v59 = vmax.bf16 %v2078_v5, %v9664_v48  ;;  %v2212_v44 = vrot.slane %v2109_v9, 7  ;;  %v988_v8 = vrot.slane %v987_v26, 4  ;;  %v1656_v13 = vor.u32 %v1655_v45, %v1654_v55 }
 0x1bf   : > { %v983_v39 = vsel %vm7960_vm11, %v978_v56, %v982_v47  ;;  %v9677_v12 = vsel %vm8089_vm14, %v1291_v14, %v1292_v6  ;;  %v1659_v5 = vrot.slane %v980_v61, 6  ;;  %v1663_v36 = vshrl.u32 %v9644_v35, 16  ;;  %v9691_v47 = vld [vmem:[#allocation2 + $0xe4] sm:$0xf] }
 0x1c0   : > { %v2213_v1 = vrot.slane %v2212_v44, 4  ;;  %v2214_v28 = vrot.slane %v2110_v59, 7  ;;  %2314 = vst.msk [vmem:[#allocation2 + $0xb4] sm:$0xe] %vm426_vm6, %v2212_v44  ;;  %v7362_v10 = vcombine.low %v2109_v9, %v2110_v59  ;;  %v993_v60 = vsel %vm7960_vm11, %v988_v8, %v992_v16 }
 0x1c1   : > { %v1094_v31 = vmax.bf16 %v983_v39, %v9636_v19  ;;  %v1095_v20 = vmax.bf16 %v993_v60, %v9638_v63  ;;  %v1657_v41 = vrot.slane %v1656_v13, 4  ;;  %v1660_v7 = vor.u32 %v1659_v5, %v1658_v58 }
 0x1c2   : > { %v2215_v50 = vsel %vm7892_vm10, %v2213_v1, %v2214_v28  ;;  %v2216_v15 = vrot.slane %v2214_v28, 4  ;;  %7579 = vmatmul.mubr.msk.bf16.gmra.mxu0 %vm5838_vm7, %v7362_v10  ;;  %v1666_v18 = vrot.slane %v990_v43, 6  ;;  %v7266_v29 = vrot.slane %v9636_v19, 10 }
 0x1c3   : > { %2315 = vst.msk [vmem:[#allocation2 + $0xb8] sm:$0xf] %vm173_vm1, %v2215_v50  ;;  %v1377_v61 = vmax.bf16 %v1290_v25, %v1094_v31  ;;  %v1895_v42 = vrot.slane %v9638_v63, 6  ;;  %v1378_v62 = vmax.bf16 %v9677_v12, %v1095_v20  ;;  %v1661_v9 = vsel %vm8198_vm3, %v1657_v41, %v1660_v7  ;;  %v9841_v31 = vld [vmem:[#allocation2 + $0xe0] sm:$0x3] }
 0x1c4   : > { %2316 = vst.msk [vmem:[#allocation2 + $0xbc] sm:$0x1] %vm188_vm2, %v2216_v15  ;;  %v1662_v0 = vrot.slane %v1660_v7, 4  ;;  %v1665_v16 = vrot.slane %v1663_v36, 5  ;;  %v1898_v43 = vrot.slane %v9644_v35, 6  ;;  %v2015_v63 = vmax.bf16 %v9432_v2, %v9222_v17 }
 0x1c5   : > { %v1760_v11 = vmax.bf16 %v1661_v9, %v1377_v61  ;;  %v1896_v24 = vsel %vm8286_vm8, %v7266_v29, %v1895_v42  ;;  %v1897_v6 = vrot.slane %v1895_v42, 4  ;;  %v2016_v59 = vmax.bf16 %v9442_v34, %v9234_v21 }
 0x1c6   : > { %v1667_v19 = vor.u32 %v1666_v18, %v1665_v16  ;;  %v995_v44 = vshrl.u32 %v9691_v47, 16  ;;  %v2047_v21 = vmax.bf16 %v2015_v63, %v9489_v32 }
 0x1c7   : > { %v9699_v55 = vld [vmem:[#allocation2 + $0xb4] sm:$0xf]  ;;  %v1899_v14 = vsel %vm8286_vm8, %v1897_v6, %v1898_v43  ;;  %v9714_v17 = vmax.bf16 %v1896_v24, %v1760_v11  ;;  %v2048_v63 = vmax.bf16 %v2016_v59, %v9506_v37 }
 0x1c8   : > { %v2744_v26 = vshrl.u32 %v9699_v55, 16  ;;  %v2747_v45 = vshll.u32 %v9699_v55, 16  ;;  %v7283_v56 = vrot.slane %v9699_v55, 9  ;;  %v1668_v35 = vsel %vm8198_vm3, %v1662_v0, %v1667_v19 }
 0x1c9   : > { %v1761_v19 = vmax.bf16 %v1668_v35, %v1378_v62  ;;  %v997_v62 = vrot.slane %v995_v44, 4 }
 0x1ca   : > { %v9717_v58 = vld [vmem:[#allocation2 + $0xb8] sm:$0xf]  ;;  %v2746_v1 = vrot.slane %v2744_v26, 4  ;;  %v2749_v28 = vrot.slane %v2747_v45, 5  ;;  %v3448_v10 = vrot.slane %v2744_v26, 5  ;;  %v3449_v8 = vrot.slane %v2747_v45, 6 }
 0x1cb   : > { %v9719_v39 = vld [vmem:[#allocation2 + $0xbc] sm:$0x3]  ;;  %v2753_v12 = vshll.u32 %v9717_v58, 16  ;;  %v2757_v13 = vshrl.u32 %v9717_v58, 16  ;;  %v3110_v5 = vrot.slane %v9717_v58, 5 }
 0x1cc   : > { %13189 = vst [vmem:[#allocation38_spill] sm:$0xff] %v9719_v39  ;;  %v2750_v15 = vor.u32 %v2749_v28, %v2746_v1  ;;  %v2763_v60 = vshll.u32 %v9719_v39, 16  ;;  %v3450_v20 = vor.u32 %v3449_v8, %v3448_v10  ;;  %v3457_v11 = vshrl.u32 %v9719_v39, 16  ;;  %v533_v28 = vld [vmem:[#allocation2 + $0xe8] sm:$0xf] }
 0x1cd   : > { %v2755_v41 = vrot.slane %v2753_v12, 5  ;;  %v2759_v7 = vrot.slane %v2757_v13, 4  ;;  %v9729_v36 = vsel %vm8089_vm14, %v7283_v56, %v3110_v5  ;;  %v9731_v61 = vrot.slane %v3110_v5, 4 }
 0x1ce   : > { %v2751_v18 = vrot.slane %v2750_v15, 4  ;;  %v2765_v29 = vrot.slane %v2763_v60, 5  ;;  %v9733_v42 = vrot.slane %v3450_v20, 4  ;;  %v3452_v9 = vrot.slane %v2757_v13, 5  ;;  %v9753_v13 = vld [vmem:[#allocation2 + $0xec] sm:$0x3] }
 0x1cf   : > { %v2760_v0 = vor.u32 %v2759_v7, %v2755_v41  ;;  %v3453_v16 = vrot.slane %v2753_v12, 6  ;;  %v9736_v24 = vrot.slane %v2763_v60, 6  ;;  %v9747_v1 = vrot.slane %v3457_v11, 5 }
 0x1d0   : > { %v2756_v6 = vsel %vm7960_vm11, %v2751_v18, %v2755_v41  ;;  %v9749_v10 = vmax.bf16 %v1899_v14, %v1761_v19  ;;  %v2079_v8 = vmax.bf16 %v2047_v21, %v9657_v4  ;;  %v2080_v12 = vmax.bf16 %v2048_v63, %v9664_v48 }
 0x1d1   : > { %v2761_v26 = vrot.slane %v2760_v0, 4  ;;  %v9743_v45 = vmax.bf16 %v2756_v6, %v9699_v55  ;;  %v9745_v56 = vor.u32 %v3453_v16, %v3452_v9  ;;  %v998_v14 = vshll.u32 %v9691_v47, 16 }
 0x1d2   : > { %v2111_v15 = vmax.bf16 %v2079_v8, %v9714_v17  ;;  %v2112_v60 = vmax.bf16 %v2080_v12, %v9749_v10  ;;  %v1004_v20 = vshll.u32 %v533_v28, 16  ;;  %v1008_v7 = vshrl.u32 %v533_v28, 16 }
 0x1d3   : > { %v2766_v59 = vsel %vm7960_vm11, %v2761_v26, %v2765_v29  ;;  %v1000_v41 = vrot.slane %v998_v14, 5  ;;  %v1014_v18 = vshll.u32 %v9753_v13, 16  ;;  %v7247_v29 = vrot.slane %v9691_v47, 9 }
 0x1d4   : > { %v9765_v21 = vmax.bf16 %v2766_v59, %v9717_v58  ;;  %v2217_v9 = vrot.slane %v2111_v15, 7  ;;  %v2219_v0 = vrot.slane %v2112_v60, 7  ;;  %v7363_v16 = vcombine.low %v2111_v15, %v2112_v60 }
 0x1d5   : > { %v1006_v11 = vrot.slane %v1004_v20, 5  ;;  %v1001_v6 = vor.u32 %v1000_v41, %v997_v62  ;;  %v1010_v19 = vrot.slane %v1008_v7, 4  ;;  %v1016_v63 = vrot.slane %v1014_v18, 5 }
 0x1d6   : > { %v1296_v26 = vrot.slane %v533_v28, 5  ;;  %v2218_v59 = vrot.slane %v2217_v9, 4  ;;  %v2221_v43 = vrot.slane %v2219_v0, 4  ;;  %2317 = vst.msk [vmem:[#allocation2 + $0xc0] sm:$0xe] %vm426_vm6, %v2217_v9  ;;  %7582 = vmatprep.mubr.msk.bf16.mxu0 %vm5838_vm7, %v7363_v16  ;;  %v1299_v8 = vrot.slane %v9753_v13, 5 }
 0x1d7   : > { %v1669_v12 = vrot.slane %v995_v44, 5  ;;  %v1002_v25 = vrot.slane %v1001_v6, 4  ;;  %v1011_v50 = vor.u32 %v1010_v19, %v1006_v11  ;;  %v1670_v41 = vrot.slane %v998_v14, 6 }
 0x1d8   : > { %v1297_v15 = vsel %vm8089_vm14, %v7247_v29, %v1296_v26  ;;  %v1298_v62 = vrot.slane %v1296_v26, 4  ;;  %v2220_v60 = vsel %vm7892_vm10, %v2218_v59, %v2219_v0  ;;  %2319 = vst.msk [vmem:[#allocation2 + $0xc8] sm:$0x1] %vm188_vm2, %v2221_v43  ;;  %v1673_v9 = vrot.slane %v1008_v7, 5 }
 0x1d9   : > { %v1674_v35 = vrot.slane %v1004_v20, 6  ;;  %2318 = vst.msk [vmem:[#allocation2 + $0xc4] sm:$0xf] %vm173_vm1, %v2220_v60  ;;  %v1007_v16 = vsel %vm7960_vm11, %v1002_v25, %v1006_v11  ;;  %v1012_v44 = vrot.slane %v1011_v50, 4  ;;  %v1678_v29 = vshrl.u32 %v9753_v13, 16 }
 0x1da   : > { %v1300_v6 = vsel %vm8089_vm14, %v1298_v62, %v1299_v8  ;;  %v1096_v19 = vmax.bf16 %v1007_v16, %v9691_v47  ;;  %v1671_v26 = vor.u32 %v1670_v41, %v1669_v12  ;;  %v1681_v59 = vrot.slane %v1014_v18, 6 }
 0x1db   : > { %v1675_v0 = vor.u32 %v1674_v35, %v1673_v9  ;;  %v1017_v43 = vsel %vm7960_vm11, %v1012_v44, %v1016_v63  ;;  %v1680_v14 = vrot.slane %v1678_v29, 5  ;;  %v7267_v20 = vrot.slane %v9691_v47, 10 }
 0x1dc   : > { %v1902_v7 = vrot.slane %v533_v28, 6  ;;  %v1097_v60 = vmax.bf16 %v1017_v43, %v533_v28  ;;  %v1379_v25 = vmax.bf16 %v1297_v15, %v1096_v19  ;;  %v1672_v50 = vrot.slane %v1671_v26, 4  ;;  %v9838_v43 = vld [vmem:[#allocation2 + $0xdc] sm:$0xf] }
 0x1dd   : > { %v1677_v11 = vrot.slane %v1675_v0, 4  ;;  %v9791_v5 = vld [vmem:[#allocation2 + $0xc0] sm:$0xf]  ;;  %v1682_v8 = vor.u32 %v1681_v59, %v1680_v14  ;;  %v1905_v35 = vrot.slane %v9753_v13, 6  ;;  %v2017_v13 = vmax.bf16 %v9489_v32, %v9432_v2 }
 0x1de   : > { %v1903_v62 = vsel %vm8286_vm8, %v7267_v20, %v1902_v7  ;;  %v1904_v12 = vrot.slane %v1902_v7, 4  ;;  %v2768_v18 = vshrl.u32 %v9791_v5, 16  ;;  %v2771_v63 = vshll.u32 %v9791_v5, 16 }
 0x1df   : > { %v1380_v41 = vmax.bf16 %v1300_v6, %v1097_v60  ;;  %v9799_v28 = vld [vmem:[#allocation2 + $0xc8] sm:$0x3]  ;;  %v1676_v15 = vsel %vm8198_vm3, %v1672_v50, %v1675_v0  ;;  %v1683_v9 = vsel %vm8198_vm3, %v1677_v11, %v1682_v8  ;;  %v2049_v47 = vmax.bf16 %v2017_v13, %v9657_v4  ;;  %v9850_v4 = vld [vmem:[#allocation2 + $0xe4] sm:$0xf] }
 0x1e0   : > { %13190 = vst [vmem:[#allocation39_spill] sm:$0xff] %v9799_v28  ;;  %v1906_v16 = vsel %vm8286_vm8, %v1904_v12, %v1905_v35  ;;  %v9809_v44 = vld [vmem:[#allocation2 + $0xc4] sm:$0xf]  ;;  %v2770_v29 = vrot.slane %v2768_v18, 4  ;;  %v2773_v19 = vrot.slane %v2771_v63, 5  ;;  %v2787_v6 = vshll.u32 %v9799_v28, 16 }
 0x1e1   : > { %v2777_v59 = vshll.u32 %v9809_v44, 16  ;;  %v2781_v0 = vshrl.u32 %v9809_v44, 16  ;;  %v9816_v14 = vrot.slane %v2768_v18, 5  ;;  %v9820_v2 = vrot.slane %v2771_v63, 6  ;;  %v9829_v12 = vld [vmem:[#allocation2 + $0xd8] sm:$0xf] }
 0x1e2   : > { %v2774_v20 = vor.u32 %v2773_v19, %v2770_v29  ;;  %v9818_v7 = vrot.slane %v2787_v6, 5  ;;  %v3472_v32 = vshrl.u32 %v9799_v28, 16  ;;  %v9833_v18 = vrot.slane %v2787_v6, 6 }
 0x1e3   : > { %v9823_v60 = vrot.slane %v2777_v59, 5  ;;  %v2783_v50 = vrot.slane %v2781_v0, 4  ;;  %v9825_v11 = vrot.slane %v2781_v0, 5  ;;  %v9827_v8 = vrot.slane %v2777_v59, 6 }
 0x1e4   : > { %v2775_v35 = vrot.slane %v2774_v20, 4  ;;  %v9831_v26 = vrot.slane %v3472_v32, 5  ;;  %v1762_v29 = vmax.bf16 %v1676_v15, %v1379_v25  ;;  %v1763_v19 = vmax.bf16 %v1683_v9, %v1380_v41 }
 0x1e5   : > { %v2018_v63 = vmax.bf16 %v9506_v37, %v9442_v34  ;;  %v2784_v0 = vor.u32 %v2783_v50, %v9823_v60  ;;  %v12894_v6 = vshrl.u32 %v9829_v12, 16  ;;  %v12893_v25 = vshll.u32 %v9829_v12, 16 }
 0x1e6   : > { %v1985_v59 = vmax.bf16 %v1903_v62, %v1762_v29  ;;  %v2780_v20 = vsel %vm7960_vm11, %v2775_v35, %v9823_v60  ;;  %v1986_v41 = vmax.bf16 %v1906_v16, %v1763_v19  ;;  %v2081_v37 = vmax.bf16 %v2049_v47, %v9714_v17 }
 0x1e7   : > { %v2050_v34 = vmax.bf16 %v2018_v63, %v9664_v48  ;;  %v2785_v15 = vrot.slane %v2784_v0, 4  ;;  %v2818_v62 = vrot.slane %v12894_v6, 4  ;;  %v2821_v9 = vrot.slane %v12893_v25, 5  ;;  %v9861_v48 = vld [vmem:[#allocation2 + $0xe8] sm:$0xf] }
 0x1e8   : > { %v12889_v13 = vshll.u32 %v9838_v43, 16  ;;  %v12892_v32 = vshrl.u32 %v9838_v43, 16  ;;  %v9859_v16 = vmax.bf16 %v2081_v37, %v1985_v59  ;;  %v12890_v47 = vshll.u32 %v9841_v31, 16  ;;  %v9875_v0 = vld [vmem:[#allocation2 + $0xec] sm:$0x3] }
 0x1e9   : > { %v2082_v60 = vmax.bf16 %v2050_v34, %v9749_v10  ;;  %v2790_v17 = vsel %vm7960_vm11, %v2785_v15, %v9818_v7  ;;  %v2822_v50 = vor.u32 %v2821_v9, %v2818_v62  ;;  %v12891_v19 = vshrl.u32 %v9850_v4, 16 }
 0x1ea   : > { %13191 = vst [vmem:[#allocation40_spill] sm:$0xff] %v9859_v16  ;;  %v2827_v35 = vrot.slane %v12889_v13, 5  ;;  %v2831_v29 = vrot.slane %v12892_v32, 4  ;;  %v2222_v63 = vrot.slane %v9859_v16, 7  ;;  %v2837_v7 = vrot.slane %v12890_v47, 5 }
 0x1eb   : > { %v9872_v10 = vmax.bf16 %v2082_v60, %v1986_v41  ;;  %v12895_v59 = vshll.u32 %v9850_v4, 16  ;;  %v2823_v34 = vrot.slane %v2822_v50, 4  ;;  %v2842_v15 = vrot.slane %v12891_v19, 4 }
 0x1ec   : > { %v2832_v37 = vor.u32 %v2831_v29, %v2827_v35  ;;  %v12897_v62 = vshll.u32 %v9861_v48, 16  ;;  %v2223_v9 = vrot.slane %v2222_v63, 4  ;;  %2320 = vst.msk [vmem:[#allocation2 + $0xcc] sm:$0xe] %vm426_vm6, %v2222_v63  ;;  %v12898_v13 = vshrl.u32 %v9861_v48, 16 }
 0x1ed   : > { %13192 = vst [vmem:[#allocation41_spill] sm:$0xff] %v9872_v10  ;;  %v2224_v41 = vrot.slane %v9872_v10, 7  ;;  %v2845_v60 = vrot.slane %v12895_v59, 5  ;;  %v2828_v47 = vsel %vm7960_vm11, %v2823_v34, %v2827_v35  ;;  %v12896_v19 = vshll.u32 %v9875_v0, 16 }
 0x1ee   : > { %v2833_v50 = vrot.slane %v2832_v37, 4  ;;  %v2851_v29 = vrot.slane %v12897_v62, 5  ;;  %v2855_v63 = vrot.slane %v12898_v13, 4  ;;  %v9903_v34 = vmax.bf16 %v2780_v20, %v9791_v5 }
 0x1ef   : > { %v2225_v32 = vsel %vm7892_vm10, %v2223_v9, %v2224_v41  ;;  %v2226_v25 = vrot.slane %v2224_v41, 4  ;;  %v2846_v6 = vor.u32 %v2845_v60, %v2842_v15  ;;  %v2861_v35 = vrot.slane %v12896_v19, 5 }
 0x1f0   : > { %2321 = vst.msk [vmem:[#allocation2 + $0xd0] sm:$0xf] %vm173_vm1, %v2225_v32  ;;  %v2838_v59 = vsel %vm7960_vm11, %v2833_v50, %v2837_v7  ;;  %v9906_v37 = vmax.bf16 %v2790_v17, %v9809_v44  ;;  %v2856_v9 = vor.u32 %v2855_v63, %v2851_v29  ;;  %v9910_v41 = vmax.bf16 %v2828_v47, %v9829_v12 }
 0x1f1   : > { %2322 = vst.msk [vmem:[#allocation2 + $0xd4] sm:$0x1] %vm188_vm2, %v2226_v25  ;;  %v2847_v15 = vrot.slane %v2846_v6, 4  ;;  %v9913_v32 = vmax.bf16 %v2838_v59, %v9838_v43  ;;  %v13193_v7 = vrot.slane %v9719_v39, 5  ;;  %v13194_v17 = vrot.slane %v9809_v44, 5 }
 0x1f2   : > { %v13195_v60 = vrot.slane %v9791_v5, 9  ;;  %v7286_v59 = vrot.slane %v9829_v12, 9  ;;  %v2857_v63 = vrot.slane %v2856_v9, 4 }
 0x1f3   : > { %v9920_v20 = vsel %vm8089_vm14, %v9731_v61, %v13193_v7  ;;  %v13196_v25 = vmov %v13194_v17  ;;  %v2852_v50 = vsel %vm7960_vm11, %v2847_v15, %v2851_v29  ;;  %v3131_v61 = vrot.slane %v9838_v43, 5  ;;  %v9937_v19 = vld [vmem:[#allocation2 + $0xcc] sm:$0xf] }
 0x1f4   : > { %v9928_v6 = vsel %vm8089_vm14, %v13195_v60, %v13194_v17  ;;  %v3119_v47 = vrot.slane %v13196_v25, 4  ;;  %v3134_v7 = vrot.slane %v9841_v31, 5  ;;  %v9940_v62 = vmax.bf16 %v2852_v50, %v9850_v4 }
 0x1f5   : > { %v13197_v17 = vrot.slane %v9799_v28, 5  ;;  %v7287_v25 = vrot.slane %v9850_v4, 9  ;;  %v3138_v29 = vrot.slane %v9861_v48, 5  ;;  %v2792_v15 = vshrl.u32 %v9937_v19, 16 }
 0x1f6   : > { %v2795_v9 = vshll.u32 %v9937_v19, 16  ;;  %v2862_v13 = vsel %vm7960_vm11, %v2857_v63, %v2861_v35  ;;  %v7285_v50 = vrot.slane %v9937_v19, 9  ;;  %v3141_v35 = vrot.slane %v9875_v0, 5 }
 0x1f7   : > { %v9946_v60 = vsel %vm8089_vm14, %v3119_v47, %v13197_v17  ;;  %v9956_v16 = vmax.bf16 %v2862_v13, %v9861_v48  ;;  %v9960_v47 = vsel %vm8089_vm14, %v7286_v59, %v3131_v61  ;;  %v3133_v17 = vrot.slane %v3131_v61, 4  ;;  %v9966_v33 = vld [vmem:[#allocation2 + $0xd0] sm:$0xf] }
 0x1f8   : > { %v9964_v10 = vsel %vm8089_vm14, %v7287_v25, %v3138_v29  ;;  %v2794_v23 = vrot.slane %v2792_v15, 4  ;;  %v2797_v38 = vrot.slane %v2795_v9, 5  ;;  %v3140_v40 = vrot.slane %v3138_v29, 4  ;;  %v9969_v63 = vld [vmem:[#allocation2 + $0xd4] sm:$0x3] }
 0x1f9   : > { %v2801_v13 = vshll.u32 %v9966_v33, 16  ;;  %v2805_v54 = vshrl.u32 %v9966_v33, 16  ;;  %v3124_v59 = vrot.slane %v9966_v33, 5  ;;  %v9976_v61 = vsel %vm8089_vm14, %v3133_v17, %v3134_v7 }
 0x1fa   : > { %v2798_v25 = vor.u32 %v2797_v38, %v2794_v23  ;;  %v2811_v46 = vshll.u32 %v9969_v63, 16  ;;  %v3127_v51 = vrot.slane %v9969_v63, 5  ;;  %v9982_v29 = vsel %vm8089_vm14, %v3140_v40, %v3141_v35 }
 0x1fb   : > { %v2803_v52 = vrot.slane %v2801_v13, 5  ;;  %v2807_v49 = vrot.slane %v2805_v54, 4  ;;  %v9986_v27 = vsel %vm8089_vm14, %v7285_v50, %v3124_v59  ;;  %v3126_v53 = vrot.slane %v3124_v59, 4 }
 0x1fc   : > { %v2799_v39 = vrot.slane %v2798_v25, 4  ;;  %v2813_v28 = vrot.slane %v2811_v46, 5  ;;  %v3214_v38 = vmax.bf16 %v9920_v20, %v9765_v21  ;;  %v3455_v50 = vsel %vm8198_vm3, %v9733_v42, %v9745_v56 }
 0x1fd   : > { %v2808_v7 = vor.u32 %v2807_v49, %v2803_v52  ;;  %v9994_v40 = vsel %vm8089_vm14, %v3126_v53, %v3127_v51  ;;  %v3456_v17 = vrot.slane %v9745_v56, 4  ;;  %v3476_v25 = vor.u32 %v9833_v18, %v9831_v26 }
 0x1fe   : > { %v2804_v35 = vsel %vm7960_vm11, %v2799_v39, %v2803_v52  ;;  %v3465_v52 = vor.u32 %v9820_v2, %v9816_v14  ;;  %v3469_v39 = vor.u32 %v9827_v8, %v9825_v11  ;;  %v3478_v49 = vrot.slane %v2792_v15, 5 }
 0x1ff   : > { %v2809_v51 = vrot.slane %v2808_v7, 4  ;;  %v2937_v53 = vmax.bf16 %v2804_v35, %v9937_v19  ;;  %v13198_v42 = vor.u32 %v9736_v24, %v9747_v1  ;;  %v3479_v59 = vrot.slane %v2795_v9, 6 }
 0x200   : > { %v3466_v2 = vrot.slane %v3465_v52, 4  ;;  %v3471_v11 = vrot.slane %v3469_v39, 4  ;;  %v3482_v8 = vrot.slane %v2805_v54, 5  ;;  %v3483_v26 = vrot.slane %v2801_v13, 6 }
 0x201   : > { %v2814_v7 = vsel %vm7960_vm11, %v2809_v51, %v2813_v28  ;;  %v3217_v35 = vmax.bf16 %v9986_v27, %v2937_v53  ;;  %v3462_v56 = vsel %vm8198_vm3, %v3456_v17, %v13198_v42  ;;  %v3480_v23 = vor.u32 %v3479_v59, %v3478_v49 }
 0x202   : > { %v2938_v14 = vmax.bf16 %v2814_v7, %v9966_v33  ;;  %v3487_v18 = vshrl.u32 %v9969_v63, 16  ;;  %v3490_v15 = vrot.slane %v2811_v46, 6  ;;  %v3470_v27 = vsel %vm8198_vm3, %v3466_v2, %v3469_v39 }
 0x203   : > { %v3477_v24 = vsel %vm8198_vm3, %v3471_v11, %v3476_v25  ;;  %v13199_v1 = vshrl.u32 %v9829_v12, 16  ;;  %v3481_v17 = vrot.slane %v3480_v23, 4  ;;  %v3484_v51 = vor.u32 %v3483_v26, %v3482_v8 }
 0x204   : > { %v3218_v28 = vmax.bf16 %v9994_v40, %v2938_v14  ;;  %v3489_v53 = vrot.slane %v3487_v18, 5  ;;  %v13200_v54 = vshll.u32 %v9829_v12, 16  ;;  %v13201_v59 = vshrl.u32 %v9838_v43, 16 }
 0x205   : > { %v3493_v9 = vrot.slane %v13199_v1, 5  ;;  %v13202_v40 = vshll.u32 %v9838_v43, 16  ;;  %v3502_v52 = vshrl.u32 %v9841_v31, 16  ;;  %v13203_v39 = vshll.u32 %v9841_v31, 16 }
 0x206   : > { %v3494_v13 = vrot.slane %v13200_v54, 6  ;;  %v3497_v46 = vrot.slane %v13201_v59, 5  ;;  %v3485_v7 = vsel %vm8198_vm3, %v3481_v17, %v3484_v51  ;;  %v3486_v23 = vrot.slane %v3484_v51, 4 }
 0x207   : > { %v3498_v49 = vrot.slane %v13202_v40, 6  ;;  %v3505_v25 = vrot.slane %v13203_v39, 6  ;;  %v3491_v42 = vor.u32 %v3490_v15, %v3489_v53  ;;  %v3504_v11 = vrot.slane %v3502_v52, 5 }
 0x208   : > { %v3495_v14 = vor.u32 %v3494_v13, %v3493_v9  ;;  %v13204_v8 = vshrl.u32 %v9850_v4, 16  ;;  %v13205_v18 = vshll.u32 %v9850_v4, 16  ;;  %v13206_v40 = vshrl.u32 %v9861_v48, 16 }
 0x209   : > { %v3499_v2 = vor.u32 %v3498_v49, %v3497_v46  ;;  %v3492_v54 = vsel %vm8198_vm3, %v3486_v23, %v3491_v42  ;;  %v13207_v17 = vshll.u32 %v9861_v48, 16  ;;  %v3506_v9 = vor.u32 %v3505_v25, %v3504_v11 }
 0x20a   : > { %v3508_v26 = vrot.slane %v13204_v8, 5  ;;  %v3509_v1 = vrot.slane %v13205_v18, 6  ;;  %v3496_v59 = vrot.slane %v3495_v14, 4  ;;  %v3512_v39 = vrot.slane %v13206_v40, 5 }
 0x20b   : > { %v3513_v51 = vrot.slane %v13207_v17, 6  ;;  %v3501_v15 = vrot.slane %v3499_v2, 4  ;;  %v3517_v13 = vshrl.u32 %v9875_v0, 16  ;;  %v13208_v52 = vshll.u32 %v9875_v0, 16 }
 0x20c   : > { %v3510_v53 = vor.u32 %v3509_v1, %v3508_v26  ;;  %v3500_v46 = vsel %vm8198_vm3, %v3496_v59, %v3499_v2  ;;  %v13209_v23 = vmax.bf16 %v9729_v36, %v9743_v45  ;;  %v3594_v25 = vmax.bf16 %v3462_v56, %v3214_v38 }
 0x20d   : > { %v3514_v49 = vor.u32 %v3513_v51, %v3512_v39  ;;  %v3520_v8 = vrot.slane %v13208_v52, 6  ;;  %v3507_v14 = vsel %vm8198_vm3, %v3501_v15, %v3506_v9  ;;  %v3519_v40 = vrot.slane %v3517_v13, 5  ;;  %v13222_v52 = vld [vmem:[#allocation36_spill] sm:$0xff] }
 0x20e   : > { %v3593_v42 = vmax.bf16 %v3455_v50, %v13209_v23  ;;  %v3511_v18 = vrot.slane %v3510_v53, 4  ;;  %v13210_v2 = vmax.bf16 %v9928_v6, %v9903_v34  ;;  %v13211_v1 = vmax.bf16 %v9946_v60, %v9906_v37 }
 0x20f   : > { %v3516_v11 = vrot.slane %v3514_v49, 4  ;;  %v3597_v36 = vmax.bf16 %v3485_v7, %v3217_v35  ;;  %v3521_v50 = vor.u32 %v3520_v8, %v3519_v40  ;;  %v3598_v39 = vmax.bf16 %v3492_v54, %v3218_v28 }
 0x210   : > { %v3595_v26 = vmax.bf16 %v3470_v27, %v13210_v2  ;;  %v3596_v59 = vmax.bf16 %v3477_v24, %v13211_v1  ;;  %v3515_v45 = vsel %vm8198_vm3, %v3511_v18, %v3514_v49  ;;  %v13212_v17 = vmax.bf16 %v9960_v47, %v9910_v41 }
 0x211   : > { %v13213_v20 = vmax.bf16 %v9976_v61, %v9913_v32  ;;  %v13214_v34 = vmax.bf16 %v9964_v10, %v9940_v62  ;;  %v13215_v37 = vrot.slane %v9717_v58, 6  ;;  %v13216_v60 = vrot.slane %v9699_v55, 10  ;;  %v13218_v10 = vld [vmem:[#allocation39_spill] sm:$0xff]  ;;  %v13220_v55 = vld [vmem:[#allocation38_spill] sm:$0xff] }
 0x212   : > { %v3599_v21 = vmax.bf16 %v3500_v46, %v13212_v17  ;;  %v3522_v47 = vsel %vm8198_vm3, %v3516_v11, %v3521_v50  ;;  %v7304_v32 = vrot.slane %v9791_v5, 10  ;;  %v3717_v61 = vrot.slane %v9809_v44, 6 }
 0x213   : > { %v3600_v38 = vmax.bf16 %v3507_v14, %v13213_v20  ;;  %v10088_v6 = vmax.bf16 %v3515_v45, %v13214_v34  ;;  %v3711_v35 = vsel %vm8286_vm8, %v13216_v60, %v13215_v37  ;;  %v13217_v56 = vmov %v13215_v37  ;;  %v13224_v14 = vld [vmem:[#allocation37_spill] sm:$0xff]  ;;  %v13226_v60 = vld [vmem:[#allocation24_spill] sm:$0xff] }
 0x214   : > { %v3712_v41 = vrot.slane %v13217_v56, 4  ;;  %v3720_v62 = vrot.slane %v13218_v10, 6  ;;  %v13219_v28 = vmax.bf16 %v9982_v29, %v9956_v16  ;;  %v13221_v24 = vrot.slane %v13220_v55, 6  ;;  %v13227_v56 = vld [vmem:[#allocation26_spill] sm:$0xff] }
 0x215   : > { %v7305_v7 = vrot.slane %v9937_v19, 10  ;;  %v3724_v54 = vrot.slane %v9966_v33, 6  ;;  %v3718_v5 = vsel %vm8286_vm8, %v7304_v32, %v3717_v61  ;;  %v3719_v44 = vrot.slane %v3717_v61, 4 }
 0x216   : > { %v10106_v27 = vmax.bf16 %v3522_v47, %v13219_v28  ;;  %v3714_v58 = vsel %vm8286_vm8, %v3712_v41, %v13221_v24  ;;  %v3727_v51 = vrot.slane %v9969_v63, 6  ;;  %v7306_v15 = vrot.slane %v9829_v12, 10  ;;  %v13229_v41 = vld [vmem:[#allocation28_spill] sm:$0xff] }
 0x217   : > { %v3725_v16 = vsel %vm8286_vm8, %v7305_v7, %v3724_v54  ;;  %v3726_v29 = vrot.slane %v3724_v54, 4  ;;  %v3731_v9 = vrot.slane %v9838_v43, 6  ;;  %v3734_v53 = vrot.slane %v9841_v31, 6  ;;  %v13223_v43 = vld [vmem:[#allocation34_spill] sm:$0xff] }
 0x218   : > { %v3721_v19 = vsel %vm8286_vm8, %v3719_v44, %v3720_v62  ;;  %v7307_v33 = vrot.slane %v9850_v4, 10  ;;  %v3738_v13 = vrot.slane %v9861_v48, 6  ;;  %v3741_v46 = vrot.slane %v9875_v0, 6  ;;  %v13225_v4 = vld [vmem:[#allocation35_spill] sm:$0xff] }
 0x219   : > { %v3728_v12 = vsel %vm8286_vm8, %v3726_v29, %v3727_v51  ;;  %v3732_v63 = vsel %vm8286_vm8, %v7306_v15, %v3731_v9  ;;  %v3733_v49 = vrot.slane %v3731_v9, 4  ;;  %v3811_v8 = vmax.bf16 %v13223_v43, %v13222_v52 }
 0x21a   : > { %v3739_v31 = vsel %vm8286_vm8, %v7307_v33, %v3738_v13  ;;  %v3740_v23 = vrot.slane %v3738_v13, 4  ;;  %v3812_v18 = vmax.bf16 %v13225_v4, %v13224_v14  ;;  %v3813_v48 = vmax.bf16 %v3711_v35, %v3593_v42  ;;  %v13228_v35 = vld [vmem:[#allocation25_spill] sm:$0xff] }
 0x21b   : > { %v3735_v0 = vsel %vm8286_vm8, %v3733_v49, %v3734_v53  ;;  %v3814_v40 = vmax.bf16 %v3714_v58, %v3594_v25  ;;  %v3815_v11 = vmax.bf16 %v3718_v5, %v3595_v26  ;;  %v3816_v2 = vmax.bf16 %v3721_v19, %v3596_v59  ;;  %v13230_v25 = vld [vmem:[#allocation30_spill] sm:$0xff]  ;;  %v13231_v59 = vld [vmem:[#allocation32_spill] sm:$0xff]  ;;  %v13235_v49 = vld [vmem:[#allocation29_spill] sm:$0xff] }
 0x21c   : > { %v3742_v1 = vsel %vm8286_vm8, %v3740_v23, %v3741_v46  ;;  %v3817_v45 = vmax.bf16 %v3725_v16, %v3597_v36  ;;  %v3818_v50 = vmax.bf16 %v3728_v12, %v3598_v39  ;;  %v3819_v17 = vmax.bf16 %v3732_v63, %v3599_v21  ;;  %v13232_v46 = vld [vmem:[#allocation27_spill] sm:$0xff] }
 0x21d   : > { %v3820_v20 = vmax.bf16 %v3735_v0, %v3600_v38  ;;  %v3821_v34 = vmax.bf16 %v3739_v31, %v10088_v6  ;;  %v3822_v37 = vmax.bf16 %v3742_v1, %v10106_v27  ;;  %v3845_v42 = vmax.bf16 %v13227_v56, %v13226_v60 }
 0x21e   : > { %v3846_v47 = vmax.bf16 %v13229_v41, %v13228_v35  ;;  %v3847_v26 = vmax.bf16 %v13230_v25, %v13227_v56  ;;  %v3848_v32 = vmax.bf16 %v13231_v59, %v13229_v41  ;;  %v3849_v36 = vmax.bf16 %v3811_v8, %v13230_v25  ;;  %v10460_v41 = vld [vmem:[#allocation2 + $0x5c] sm:$0x3] }
 0x21f   : > { %v3850_v39 = vmax.bf16 %v3812_v18, %v13231_v59  ;;  %v3851_v21 = vmax.bf16 %v3813_v48, %v3811_v8  ;;  %v3852_v38 = vmax.bf16 %v3814_v40, %v3812_v18  ;;  %v3853_v6 = vmax.bf16 %v3815_v11, %v3813_v48 }
 0x220   : > { %v3854_v61 = vmax.bf16 %v3816_v2, %v3814_v40  ;;  %v3877_v10 = vmax.bf16 %v3845_v42, %v13230_v25  ;;  %v3878_v62 = vmax.bf16 %v3846_v47, %v13231_v59  ;;  %v3879_v28 = vmax.bf16 %v3847_v26, %v3811_v8 }
 0x221   : > { %v3880_v27 = vmax.bf16 %v3848_v32, %v3812_v18  ;;  %v3881_v55 = vmax.bf16 %v3849_v36, %v3813_v48  ;;  %v3882_v24 = vmax.bf16 %v3850_v39, %v3814_v40  ;;  %v3883_v58 = vmax.bf16 %v3851_v21, %v3815_v11 }
 0x222   : > { %v3884_v7 = vmax.bf16 %v3852_v38, %v3816_v2  ;;  %v3885_v54 = vmax.bf16 %v3853_v6, %v3817_v45  ;;  %v3886_v5 = vmax.bf16 %v3854_v61, %v3818_v50  ;;  %v3909_v44 = vmax.bf16 %v3877_v10, %v3811_v8  ;;  %v10205_v38 = vld [vmem:[#allocation2 + $0x4] sm:$0xf]  ;;  %v10448_v6 = vld [vmem:[#allocation2 + $0x58] sm:$0xf] }
 0x223   : > { %v3910_v51 = vmax.bf16 %v3878_v62, %v3812_v18  ;;  %v3911_v15 = vmax.bf16 %v3879_v28, %v3813_v48  ;;  %v3912_v16 = vmax.bf16 %v3880_v27, %v3814_v40  ;;  %v3913_v29 = vmax.bf16 %v3881_v55, %v3815_v11  ;;  %13251 = vst [vmem:[#allocation47_spill] sm:$0xff] %v10205_v38  ;;  %v10212_v27 = vld [vmem:[#allocation2 + $0x8] sm:$0x3] }
 0x224   : > { %v3914_v9 = vmax.bf16 %v3882_v24, %v3816_v2  ;;  %v3915_v53 = vmax.bf16 %v3883_v58, %v3817_v45  ;;  %v3916_v19 = vmax.bf16 %v3884_v7, %v3818_v50  ;;  %v3917_v33 = vmax.bf16 %v3885_v54, %v3819_v17  ;;  %13253 = vst [vmem:[#allocation48_spill] sm:$0xff] %v10212_v27  ;;  %v13254_v58 = vld [vmem:[#allocation41_spill] sm:$0xff]  ;;  %v13255_v7 = vld [vmem:[#allocation40_spill] sm:$0xff] }
 0x225   : > { %v3918_v13 = vmax.bf16 %v3886_v5, %v3820_v20  ;;  %v13233_v12 = vmax.bf16 %v13232_v46, %v13230_v25  ;;  %v13236_v52 = vmax.bf16 %v13235_v49, %v13231_v59  ;;  %v10165_v31 = vmax.bf16 %v3909_v44, %v3813_v48  ;;  %v10201_v59 = vld [vmem:[#allocation2 + $0xc] sm:$0xf]  ;;  %13277 = vst [vmem:[#allocation65_spill] sm:$0xff] %v10448_v6 }
 0x226   : > { %v10167_v23 = vmax.bf16 %v3910_v51, %v3814_v40  ;;  %v10169_v14 = vmax.bf16 %v3911_v15, %v3815_v11  ;;  %v10171_v4 = vmax.bf16 %v3912_v16, %v3816_v2  ;;  %v10173_v0 = vmax.bf16 %v3913_v29, %v3817_v45  ;;  %13250 = vst [vmem:[#allocation46_spill] sm:$0xff] %v10201_v59  ;;  %v10228_v15 = vld [vmem:[#allocation2 + $0x10] sm:$0xf] }
 0x227   : > { %v10158_v63 = vmax.bf16 %v13233_v12, %v3811_v8  ;;  %v10163_v43 = vmax.bf16 %v13236_v52, %v3812_v18  ;;  %13238 = vst [vmem:[#allocation36_spill] sm:$0xff] %v10165_v31  ;;  %v10175_v1 = vmax.bf16 %v3914_v9, %v3818_v50  ;;  %v10177_v42 = vmax.bf16 %v3915_v53, %v3819_v17  ;;  %v10233_v9 = vld [vmem:[#allocation2 + $0x14] sm:$0x3]  ;;  %v10243_v12 = vld [vmem:[#allocation2 + $0x18] sm:$0xf] }
 0x228   : > { %13239 = vst [vmem:[#allocation34_spill] sm:$0xff] %v10167_v23  ;;  %13240 = vst [vmem:[#allocation37_spill] sm:$0xff] %v10169_v14  ;;  %v10179_v8 = vmax.bf16 %v3916_v19, %v3820_v20  ;;  %v10181_v47 = vmax.bf16 %v3917_v33, %v3821_v34  ;;  %v10183_v18 = vmax.bf16 %v3918_v13, %v3822_v37  ;;  %v4038_v48 = vrot.slane %v10165_v31, 7  ;;  %v10192_v20 = vld [vmem:[#allocation2] sm:$0xf] }
 0x229   : > { %13234 = vst [vmem:[#allocation39_spill] sm:$0xff] %v10158_v63  ;;  %13237 = vst [vmem:[#allocation38_spill] sm:$0xff] %v10163_v43  ;;  %v12916_v40 = vrot.slane %v10167_v23, 7  ;;  %v4043_v11 = vrot.slane %v10169_v14, 7  ;;  %v4045_v2 = vrot.slane %v10171_v4, 7  ;;  %v4048_v45 = vrot.slane %v10173_v0, 7 }
 0x22a   : > { %13241 = vst [vmem:[#allocation35_spill] sm:$0xff] %v10171_v4  ;;  %13242 = vst [vmem:[#allocation30_spill] sm:$0xff] %v10173_v0  ;;  %v4050_v50 = vrot.slane %v10175_v1, 7  ;;  %v4053_v17 = vrot.slane %v10177_v42, 7  ;;  %v10194_v34 = vrot.slane %v4038_v48, 4  ;;  %v4055_v26 = vrot.slane %v10179_v8, 7 }
 0x22b   : > { %13243 = vst [vmem:[#allocation32_spill] sm:$0xff] %v10175_v1  ;;  %13244 = vst [vmem:[#allocation27_spill] sm:$0xff] %v10177_v42  ;;  %v4042_v37 = vrot.slane %v12916_v40, 4  ;;  %v4044_v25 = vrot.slane %v4043_v11, 4  ;;  %v4047_v32 = vrot.slane %v4045_v2, 4  ;;  %v4049_v36 = vrot.slane %v4048_v45, 4 }
 0x22c   : > { %13245 = vst [vmem:[#allocation29_spill] sm:$0xff] %v10179_v8  ;;  %13246 = vst [vmem:[#allocation42_spill] sm:$0xff] %v10181_v47  ;;  %v4052_v39 = vrot.slane %v4050_v50, 4  ;;  %v4054_v21 = vrot.slane %v4053_v17, 4  ;;  %v4057_v10 = vrot.slane %v4055_v26, 4  ;;  %v4058_v62 = vrot.slane %v10181_v47, 7 }
 0x22d   : > { %13247 = vst [vmem:[#allocation43_spill] sm:$0xff] %v10183_v18  ;;  %13248 = vst [vmem:[#allocation44_spill] sm:$0xff] %v10192_v20  ;;  %v4046_v61 = vsel %vm7892_vm10, %v4044_v25, %v4045_v2  ;;  %v4060_v28 = vrot.slane %v10183_v18, 7  ;;  %v4051_v55 = vsel %vm7892_vm10, %v4049_v36, %v4050_v50  ;;  %v7364_v54 = vcombine.low %v13255_v7, %v13254_v58  ;;  %v10285_v58 = vld [vmem:[#allocation2 + $0x24] sm:$0xf] }
 0x22e   : > { %13249 = vst [vmem:[#allocation45_spill] sm:$0xff] %v10194_v34  ;;  %4144 = vst.msk [vmem:[#allocation2 + $0x9c] sm:$0xe] %vm426_vm6, %v4038_v48  ;;  %v4056_v24 = vsel %vm7892_vm10, %v4054_v21, %v4055_v26  ;;  %v12932_v5 = vshrl.u32 %v10192_v20, 16  ;;  %v4059_v44 = vrot.slane %v4058_v62, 4  ;;  %v12930_v16 = vshll.u32 %v10192_v20, 16 }
 0x22f   : > { %4147 = vst.msk [vmem:[#allocation2 + $0xa8] sm:$0xe] %vm426_vm6, %v4043_v11  ;;  %4153 = vst.msk [vmem:[#allocation2 + $0xc0] sm:$0xe] %vm426_vm6, %v4053_v17  ;;  %v4062_v51 = vrot.slane %v4060_v28, 4  ;;  %v12928_v29 = vshll.u32 %v10205_v38, 16  ;;  %7583 = vmatmul.mubr.msk.bf16.gmra.mxu0 %vm5838_vm7, %v7364_v54 }
 0x230   : > { %4150 = vst.msk [vmem:[#allocation2 + $0xb4] sm:$0xe] %vm426_vm6, %v4048_v45  ;;  %4156 = vst.msk [vmem:[#allocation2 + $0xcc] sm:$0xe] %vm426_vm6, %v4058_v62  ;;  %v2386_v53 = vrot.slane %v12932_v5, 4  ;;  %v12929_v19 = vshrl.u32 %v10205_v38, 16  ;;  %v4061_v46 = vsel %vm7892_vm10, %v4059_v44, %v4060_v28 }
 0x231   : > { %4146 = vst.msk [vmem:[#allocation2 + $0xa4] sm:$0x1] %vm188_vm2, %v4042_v37  ;;  %4149 = vst.msk [vmem:[#allocation2 + $0xb0] sm:$0x1] %vm188_vm2, %v4047_v32  ;;  %v12927_v33 = vshll.u32 %v10212_v27, 16  ;;  %v12925_v13 = vshrl.u32 %v10201_v59, 16 }
 0x232   : > { %4148 = vst.msk [vmem:[#allocation2 + $0xac] sm:$0xf] %vm173_vm1, %v4046_v61  ;;  %4151 = vst.msk [vmem:[#allocation2 + $0xb8] sm:$0xf] %vm173_vm1, %v4051_v55  ;;  %v2389_v49 = vrot.slane %v12930_v16, 5  ;;  %v10249_v52 = vrot.slane %v12928_v29, 5 }
 0x233   : > { %4152 = vst.msk [vmem:[#allocation2 + $0xbc] sm:$0x1] %vm188_vm2, %v4052_v39  ;;  %4155 = vst.msk [vmem:[#allocation2 + $0xc8] sm:$0x1] %vm188_vm2, %v4057_v10  ;;  %v12923_v48 = vshll.u32 %v10201_v59, 16  ;;  %v2399_v11 = vrot.slane %v12929_v19, 4 }
 0x234   : > { %4154 = vst.msk [vmem:[#allocation2 + $0xc4] sm:$0xf] %vm173_vm1, %v4056_v24  ;;  %13256 = vst [vmem:[#allocation41_spill] sm:$0xff] %v10228_v15  ;;  %v10257_v2 = vrot.slane %v12927_v33, 5  ;;  %v2410_v45 = vrot.slane %v12925_v13, 4  ;;  %v12921_v50 = vshll.u32 %v10228_v15, 16  ;;  %v2390_v37 = vor.u32 %v2389_v49, %v2386_v53 }
 0x235   : > { %13257 = vst [vmem:[#allocation40_spill] sm:$0xff] %v10233_v9  ;;  %4158 = vst.msk [vmem:[#allocation2 + $0xd4] sm:$0x1] %vm188_vm2, %v4062_v51  ;;  %v10262_v17 = vld [vmem:[#allocation2 + $0x1c] sm:$0xf]  ;;  %v2413_v25 = vrot.slane %v12923_v48, 5  ;;  %v2400_v36 = vor.u32 %v2399_v11, %v10249_v52 }
 0x236   : > { %13258 = vst [vmem:[#allocation49_spill] sm:$0xff] %v10243_v12  ;;  %4157 = vst.msk [vmem:[#allocation2 + $0xd0] sm:$0xf] %vm173_vm1, %v4061_v46  ;;  %v12922_v26 = vshrl.u32 %v10228_v15, 16  ;;  %v12920_v32 = vshll.u32 %v10233_v9, 16  ;;  %v10271_v39 = vrot.slane %v12921_v50, 5 }
 0x237   : > { %13259 = vst [vmem:[#allocation50_spill] sm:$0xff] %v10262_v17  ;;  %v12918_v21 = vshrl.u32 %v10243_v12, 16  ;;  %v12917_v61 = vshll.u32 %v10243_v12, 16  ;;  %v10275_v10 = vld [vmem:[#allocation2 + $0x20] sm:$0x3]  ;;  %v10277_v62 = vrot.slane %v2390_v37, 4  ;;  %v2414_v28 = vor.u32 %v2413_v25, %v2410_v45 }
 0x238   : > { %13260 = vst [vmem:[#allocation51_spill] sm:$0xff] %v10275_v10  ;;  %v2423_v55 = vrot.slane %v12922_v26, 4  ;;  %v10283_v24 = vrot.slane %v12920_v32, 5  ;;  %13261 = vst [vmem:[#allocation52_spill] sm:$0xff] %v10285_v58  ;;  %v10287_v7 = vrot.slane %v2400_v36, 4  ;;  %v12919_v51 = vshll.u32 %v10262_v17, 16 }
 0x239   : > { %v2434_v54 = vrot.slane %v12918_v21, 4  ;;  %v2437_v44 = vrot.slane %v12917_v61, 5  ;;  %v10294_v53 = vld [vmem:[#allocation2 + $0x28] sm:$0xf]  ;;  %v10300_v49 = vrot.slane %v2414_v28, 4  ;;  %v12924_v45 = vshrl.u32 %v10262_v17, 16 }
 0x23a   : > { %13262 = vst [vmem:[#allocation53_spill] sm:$0xff] %v10294_v53  ;;  %v2424_v11 = vor.u32 %v2423_v55, %v10271_v39  ;;  %v10310_v36 = vrot.slane %v12919_v51, 5  ;;  %v12926_v40 = vshll.u32 %v10275_v10, 16  ;;  %v10313_v61 = vld [vmem:[#allocation2 + $0x2c] sm:$0x3]  ;;  %v12933_v50 = vshll.u32 %v10285_v58, 16 }
 0x23b   : > { %v2438_v25 = vor.u32 %v2437_v44, %v2434_v54  ;;  %13263 = vst [vmem:[#allocation54_spill] sm:$0xff] %v10313_v61  ;;  %v2447_v21 = vrot.slane %v12924_v45, 4  ;;  %v12931_v54 = vshrl.u32 %v10285_v58, 16  ;;  %v10324_v44 = vld [vmem:[#allocation2 + $0x30] sm:$0xf]  ;;  %v12934_v26 = vshll.u32 %v10294_v53, 16 }
 0x23c   : > { %v10319_v55 = vrot.slane %v2424_v11, 4  ;;  %13264 = vst [vmem:[#allocation55_spill] sm:$0xff] %v10324_v44  ;;  %v10330_v32 = vrot.slane %v12926_v40, 5  ;;  %v10334_v48 = vld [vmem:[#allocation2 + $0x34] sm:$0xf]  ;;  %v12935_v13 = vshrl.u32 %v10294_v53, 16 }
 0x23d   : > { %v10326_v51 = vrot.slane %v2438_v25, 4  ;;  %13265 = vst [vmem:[#allocation56_spill] sm:$0xff] %v10334_v48  ;;  %v2448_v45 = vor.u32 %v2447_v21, %v10310_v36  ;;  %v2458_v25 = vrot.slane %v12931_v54, 4  ;;  %v2461_v33 = vrot.slane %v12933_v50, 5  ;;  %v10355_v21 = vld [vmem:[#allocation2 + $0x38] sm:$0x3] }
 0x23e   : > { %v10352_v29 = vrot.slane %v12934_v26, 5  ;;  %v12936_v19 = vshll.u32 %v10313_v61, 16  ;;  %13266 = vst [vmem:[#allocation57_spill] sm:$0xff] %v10355_v21  ;;  %v2471_v54 = vrot.slane %v12935_v13, 4  ;;  %v12941_v5 = vshrl.u32 %v10324_v44, 16 }
 0x23f   : > { %v10357_v16 = vrot.slane %v2448_v45, 4  ;;  %v12942_v40 = vshll.u32 %v10324_v44, 16  ;;  %v10363_v11 = vld [vmem:[#allocation2 + $0x3c] sm:$0xf]  ;;  %v2462_v50 = vor.u32 %v2461_v33, %v2458_v25  ;;  %v12943_v28 = vshll.u32 %v10334_v48, 16 }
 0x240   : > { %13267 = vst [vmem:[#allocation58_spill] sm:$0xff] %v10363_v11  ;;  %v10367_v26 = vrot.slane %v12936_v19, 5  ;;  %v10371_v45 = vld [vmem:[#allocation2 + $0x40] sm:$0xf]  ;;  %v2472_v46 = vor.u32 %v2471_v54, %v10352_v29  ;;  %v2482_v33 = vrot.slane %v12941_v5, 4  ;;  %v13269_v47 = vshrl.u32 %v10334_v48, 16 }
 0x241   : > { %13268 = vst [vmem:[#allocation59_spill] sm:$0xff] %v10371_v45  ;;  %v2485_v25 = vrot.slane %v12942_v40, 5  ;;  %v10382_v19 = vrot.slane %v2462_v50, 4  ;;  %v10386_v37 = vrot.slane %v12943_v28, 5  ;;  %v12947_v42 = vshll.u32 %v10355_v21, 16  ;;  %v13282_v21 = vld [vmem:[#allocation16_spill] sm:$0xff] }
 0x242   : > { %v2495_v18 = vrot.slane %v13269_v47, 4  ;;  %v10391_v13 = vld [vmem:[#allocation2 + $0x44] sm:$0x3]  ;;  %v10393_v54 = vrot.slane %v2472_v46, 4  ;;  %v12950_v5 = vshrl.u32 %v10363_v11, 16  ;;  %v12951_v46 = vshll.u32 %v10371_v45, 16 }
 0x243   : > { %13270 = vst [vmem:[#allocation60_spill] sm:$0xff] %v10391_v13  ;;  %v2486_v8 = vor.u32 %v2485_v25, %v2482_v33  ;;  %v10397_v50 = vld [vmem:[#allocation2 + $0x48] sm:$0xf]  ;;  %v10406_v0 = vrot.slane %v12947_v42, 5  ;;  %v10409_v33 = vld [vmem:[#allocation2 + $0x4c] sm:$0xf] }
 0x244   : > { %13271 = vst [vmem:[#allocation61_spill] sm:$0xff] %v10397_v50  ;;  %v2496_v47 = vor.u32 %v2495_v18, %v10386_v37  ;;  %13272 = vst [vmem:[#allocation62_spill] sm:$0xff] %v10409_v33  ;;  %v2506_v28 = vrot.slane %v12950_v5, 4  ;;  %v13273_v18 = vshll.u32 %v10363_v11, 16  ;;  %v10425_v42 = vrot.slane %v12951_v46, 5 }
 0x245   : > { %v10415_v40 = vrot.slane %v2486_v8, 4  ;;  %v12957_v4 = vshrl.u32 %v10371_v45, 16  ;;  %v10429_v34 = vld [vmem:[#allocation2 + $0x54] sm:$0xf]  ;;  %v10431_v8 = vld [vmem:[#allocation2 + $0x50] sm:$0x3] }
 0x246   : > { %v2509_v1 = vrot.slane %v13273_v18, 5  ;;  %v10421_v14 = vrot.slane %v2496_v47, 4  ;;  %13274 = vst [vmem:[#allocation63_spill] sm:$0xff] %v10429_v34  ;;  %13275 = vst [vmem:[#allocation64_spill] sm:$0xff] %v10431_v8  ;;  %v12959_v47 = vshrl.u32 %v10397_v50, 16  ;;  %v12960_v25 = vshll.u32 %v10397_v50, 16 }
 0x247   : > { %v2492_v5 = vsel %vm7960_vm11, %v10415_v40, %v10386_v37  ;;  %v2519_v31 = vrot.slane %v12957_v4, 4  ;;  %v13276_v23 = vshll.u32 %v10391_v13, 16  ;;  %v12962_v63 = vshll.u32 %v10409_v33, 16 }
 0x248   : > { %v2510_v18 = vor.u32 %v2509_v1, %v2506_v28  ;;  %v2502_v46 = vsel %vm7960_vm11, %v10421_v14, %v10406_v0  ;;  %v2530_v40 = vrot.slane %v12959_v47, 4  ;;  %v2533_v37 = vrot.slane %v12960_v25, 5 }
 0x249   : > { %v2525_v43 = vrot.slane %v13276_v23, 5  ;;  %v12968_v28 = vshrl.u32 %v10409_v33, 16  ;;  %v2520_v14 = vor.u32 %v2519_v31, %v10425_v42  ;;  %v2539_v0 = vrot.slane %v12962_v63, 5 }
 0x24a   : > { %v2511_v1 = vrot.slane %v2510_v18, 4  ;;  %v12967_v23 = vshll.u32 %v10431_v8, 16  ;;  %v12969_v4 = vshrl.u32 %v10429_v34, 16  ;;  %v2534_v47 = vor.u32 %v2533_v37, %v2530_v40 }
 0x24b   : > { %v2543_v25 = vrot.slane %v12968_v28, 4  ;;  %v12974_v56 = vshll.u32 %v10429_v34, 16  ;;  %v2521_v31 = vrot.slane %v2520_v14, 4  ;;  %v12975_v60 = vshll.u32 %v10448_v6, 16  ;;  %v13279_v28 = vld [vmem:[#allocation7_spill] sm:$0xff] }
 0x24c   : > { %v2516_v18 = vsel %vm7960_vm11, %v2511_v1, %v10425_v42  ;;  %v2549_v63 = vrot.slane %v12967_v23, 5  ;;  %v2554_v35 = vrot.slane %v12969_v4, 4  ;;  %v2535_v22 = vrot.slane %v2534_v47, 4  ;;  %v13278_v23 = vld [vmem:[#allocation8_spill] sm:$0xff] }
 0x24d   : > { %v2544_v57 = vor.u32 %v2543_v25, %v2539_v0  ;;  %v2557_v42 = vrot.slane %v12974_v56, 5  ;;  %v12981_v1 = vshrl.u32 %v10448_v6, 16  ;;  %v2526_v40 = vsel %vm7960_vm11, %v2521_v31, %v2525_v43  ;;  %v13281_v31 = vld [vmem:[#allocation15_spill] sm:$0xff] }
 0x24e   : > { %v2563_v37 = vrot.slane %v12975_v60, 5  ;;  %v12980_v14 = vshll.u32 %v10460_v41, 16  ;;  %v13280_v4 = vor.u32 %v13278_v23, %v13279_v28  ;;  %v2540_v25 = vsel %vm7960_vm11, %v2535_v22, %v2539_v0 }
 0x24f   : > { %v2545_v47 = vrot.slane %v2544_v57, 4  ;;  %v2558_v13 = vor.u32 %v2557_v42, %v2554_v35  ;;  %v2567_v56 = vrot.slane %v12981_v1, 4  ;;  %v2592_v61 = vor.u32 %v13282_v21, %v13281_v31 }
 0x250   : > { %v2583_v8 = vrot.slane %v13280_v4, 4  ;;  %v2573_v43 = vrot.slane %v12980_v14, 5  ;;  %v13283_v57 = vsel %vm7960_vm11, %v10277_v62, %v10249_v52  ;;  %v13285_v52 = vsel %vm7960_vm11, %v10300_v49, %v10271_v39 }
 0x251   : > { %v10501_v22 = vmax.bf16 %v13283_v57, %v10192_v20  ;;  %v2550_v35 = vsel %vm7960_vm11, %v2545_v47, %v2549_v63  ;;  %v2559_v4 = vrot.slane %v2558_v13, 4  ;;  %v2568_v28 = vor.u32 %v2567_v56, %v2563_v37 }
 0x252   : > { %v2588_v60 = vsel %vm7960_vm11, %v2583_v8, %v13281_v31  ;;  %v13284_v8 = vsel %vm7960_vm11, %v10287_v7, %v10257_v2  ;;  %v2593_v0 = vrot.slane %v2592_v61, 4  ;;  %v10519_v62 = vmax.bf16 %v13285_v52, %v10201_v59 }
 0x253   : > { %v10511_v21 = vmax.bf16 %v13284_v8, %v10205_v38  ;;  %v13286_v56 = vsel %vm7960_vm11, %v10319_v55, %v10283_v24  ;;  %v13287_v13 = vsel %vm7960_vm11, %v10326_v51, %v10310_v36  ;;  %v2564_v39 = vsel %vm7960_vm11, %v2559_v4, %v2563_v37  ;;  %v13290_v36 = vld [vmem:[#allocation17_spill] sm:$0xff] }
 0x254   : > { %v10527_v63 = vmax.bf16 %v13286_v56, %v10228_v15  ;;  %v10535_v2 = vmax.bf16 %v13287_v13, %v10243_v12  ;;  %v2569_v61 = vrot.slane %v2568_v28, 4  ;;  %v13288_v24 = vsel %vm7960_vm11, %v10357_v16, %v10330_v32 }
 0x255   : > { %v10545_v7 = vmax.bf16 %v13288_v24, %v10262_v17  ;;  %v13289_v51 = vsel %vm7960_vm11, %v10382_v19, %v10352_v29  ;;  %v2598_v55 = vsel %vm7960_vm11, %v2593_v0, %v13290_v36  ;;  %v13291_v16 = vsel %vm7960_vm11, %v10393_v54, %v10367_v26 }
 0x256   : > { %v10553_v49 = vmax.bf16 %v13289_v51, %v10285_v58  ;;  %v10564_v32 = vmax.bf16 %v13291_v16, %v10294_v53  ;;  %v10567_v23 = vmax.bf16 %v2492_v5, %v10324_v44  ;;  %v10570_v42 = vmax.bf16 %v2502_v46, %v10334_v48  ;;  %v10592_v46 = vld [vmem:[#allocation2 + $0x60] sm:$0xf]  ;;  %v13302_v16 = vld [vmem:[#allocation54_spill] sm:$0xff] }
 0x257   : > { %v2574_v29 = vsel %vm7960_vm11, %v2569_v61, %v2573_v43  ;;  %v10575_v19 = vmax.bf16 %v2516_v18, %v10363_v11  ;;  %v10578_v37 = vmax.bf16 %v2526_v40, %v10371_v45  ;;  %v10581_v47 = vmax.bf16 %v2540_v25, %v10397_v50  ;;  %13298 = vst [vmem:[#allocation67_spill] sm:$0xff] %v10592_v46  ;;  %v10597_v43 = vld [vmem:[#allocation2 + $0x64] sm:$0xf] }
 0x258   : > { %v10584_v26 = vmax.bf16 %v2550_v35, %v10409_v33  ;;  %v10587_v5 = vmax.bf16 %v2564_v39, %v10429_v34  ;;  %v10590_v54 = vmax.bf16 %v2574_v29, %v10448_v6  ;;  %v10595_v18 = vmax.bf16 %v10592_v46, %v2588_v60  ;;  %13300 = vst [vmem:[#allocation69_spill] sm:$0xff] %v10597_v43 }
 0x259   : > { %13292 = vst [vmem:[#allocation8_spill] sm:$0xff] %v10575_v19  ;;  %13293 = vst [vmem:[#allocation7_spill] sm:$0xff] %v10578_v37  ;;  %v10600_v40 = vmax.bf16 %v10597_v43, %v2598_v55  ;;  %v7268_v25 = vrot.slane %v10192_v20, 9  ;;  %v3005_v31 = vrot.slane %v10205_v38, 5  ;;  %v3008_v57 = vrot.slane %v10212_v27, 5  ;;  %v13305_v43 = vld [vmem:[#allocation64_spill] sm:$0xff] }
 0x25a   : > { %13294 = vst [vmem:[#allocation15_spill] sm:$0xff] %v10581_v47  ;;  %13295 = vst [vmem:[#allocation16_spill] sm:$0xff] %v10584_v26  ;;  %v7269_v35 = vrot.slane %v10201_v59, 9  ;;  %v3012_v4 = vrot.slane %v10228_v15, 5  ;;  %v3015_v28 = vrot.slane %v10233_v9, 5  ;;  %v7270_v60 = vrot.slane %v10243_v12, 9 }
 0x25b   : > { %13296 = vst [vmem:[#allocation17_spill] sm:$0xff] %v10587_v5  ;;  %13297 = vst [vmem:[#allocation66_spill] sm:$0xff] %v10590_v54  ;;  %v10611_v8 = vsel %vm8089_vm14, %v7268_v25, %v3005_v31  ;;  %v3007_v0 = vrot.slane %v3005_v31, 4  ;;  %v3019_v52 = vrot.slane %v10262_v17, 5  ;;  %v3022_v56 = vrot.slane %v10275_v10, 5  ;;  %v13365_v19 = vld [vmem:[#allocation65_spill] sm:$0xff] }
 0x25c   : > { %13299 = vst [vmem:[#allocation68_spill] sm:$0xff] %v10595_v18  ;;  %13301 = vst [vmem:[#allocation70_spill] sm:$0xff] %v10600_v40  ;;  %v10617_v13 = vsel %vm8089_vm14, %v7269_v35, %v3012_v4  ;;  %v3014_v39 = vrot.slane %v3012_v4, 4  ;;  %v7271_v61 = vrot.slane %v10285_v58, 9  ;;  %v3026_v24 = vrot.slane %v10294_v53, 5 }
 0x25d   : > { %v10623_v51 = vsel %vm8089_vm14, %v3007_v0, %v3008_v57  ;;  %v10627_v36 = vsel %vm8089_vm14, %v7270_v60, %v3019_v52  ;;  %v3021_v55 = vrot.slane %v3019_v52, 4  ;;  %v3029_v29 = vrot.slane %v13302_v16, 5  ;;  %v13303_v0 = vld [vmem:[#allocation57_spill] sm:$0xff] }
 0x25e   : > { %v10632_v25 = vsel %vm8089_vm14, %v3014_v39, %v3015_v28  ;;  %v10636_v31 = vsel %vm8089_vm14, %v7271_v61, %v3026_v24  ;;  %v3028_v35 = vrot.slane %v3026_v24, 4  ;;  %v7272_v4 = vrot.slane %v10324_v44, 9  ;;  %v13304_v61 = vld [vmem:[#allocation60_spill] sm:$0xff] }
 0x25f   : > { %v10641_v57 = vsel %vm8089_vm14, %v3021_v55, %v3022_v56  ;;  %v3033_v60 = vrot.slane %v10334_v48, 5  ;;  %v3036_v52 = vrot.slane %v13303_v0, 5  ;;  %v7273_v14 = vrot.slane %v10363_v11, 9 }
 0x260   : > { %v10648_v28 = vsel %vm8089_vm14, %v3028_v35, %v3029_v29  ;;  %v3040_v39 = vrot.slane %v10371_v45, 5  ;;  %v3043_v24 = vrot.slane %v13304_v61, 5  ;;  %v7274_v1 = vrot.slane %v10397_v50, 9 }
 0x261   : > { %v10655_v56 = vsel %vm8089_vm14, %v7272_v4, %v3033_v60  ;;  %v3035_v55 = vrot.slane %v3033_v60, 4  ;;  %v3047_v30 = vrot.slane %v10409_v33, 5  ;;  %v3050_v46 = vrot.slane %v13305_v43, 5 }
 0x262   : > { %v10661_v11 = vsel %vm8089_vm14, %v7273_v14, %v3040_v39  ;;  %v3042_v29 = vrot.slane %v3040_v39, 4  ;;  %v7275_v35 = vrot.slane %v10429_v34, 9  ;;  %v3054_v61 = vrot.slane %v10448_v6, 5  ;;  %v13310_v34 = vld [vmem:[#allocation13_spill] sm:$0xff] }
 0x263   : > { %13306 = vst [vmem:[#allocation71_spill] sm:$0xff] %v10661_v11  ;;  %v10667_v50 = vsel %vm8089_vm14, %v3035_v55, %v3036_v52  ;;  %v10671_v4 = vsel %vm8089_vm14, %v7274_v1, %v3047_v30  ;;  %v3049_v60 = vrot.slane %v3047_v30, 4  ;;  %v3057_v43 = vrot.slane %v10460_v41, 5  ;;  %v13312_v52 = vld [vmem:[#allocation5_spill] sm:$0xff] }
 0x264   : > { %13307 = vst [vmem:[#allocation72_spill] sm:$0xff] %v10671_v4  ;;  %v10676_v14 = vsel %vm8089_vm14, %v3042_v29, %v3043_v24  ;;  %v10680_v39 = vsel %vm8089_vm14, %v7275_v35, %v3054_v61  ;;  %v3056_v6 = vrot.slane %v3054_v61, 4  ;;  %v13311_v33 = vrot.slane %v13310_v34, 5 }
 0x265   : > { %13308 = vst [vmem:[#allocation73_spill] sm:$0xff] %v10676_v14  ;;  %13309 = vst [vmem:[#allocation74_spill] sm:$0xff] %v10680_v39  ;;  %v13313_v55 = vrot.slane %v13312_v52, 9  ;;  %v10692_v30 = vsel %vm8089_vm14, %v3049_v60, %v3050_v46  ;;  %v3232_v46 = vshrl.u32 %v10212_v27, 16  ;;  %v13325_v54 = vshll.u32 %v10212_v27, 16 }
 0x266   : > { %13315 = vst [vmem:[#allocation5_spill] sm:$0xff] %v10692_v30  ;;  %v13316_v24 = vmov %v13311_v33  ;;  %v10702_v52 = vsel %vm8089_vm14, %v3056_v6, %v3057_v43  ;;  %v13323_v6 = vshrl.u32 %v10205_v38, 16  ;;  %v13324_v43 = vshll.u32 %v10205_v38, 16 }
 0x267   : > { %v10688_v1 = vsel %vm8089_vm14, %v13313_v55, %v13311_v33  ;;  %v3063_v29 = vrot.slane %v13316_v24, 4  ;;  %13317 = vst [vmem:[#allocation75_spill] sm:$0xff] %v10702_v52  ;;  %v13318_v55 = vld [vmem:[#allocation14_spill] sm:$0xff]  ;;  %v3235_v60 = vrot.slane %v13325_v54, 6  ;;  %v3247_v52 = vshrl.u32 %v10233_v9, 16 }
 0x268   : > { %13314 = vst [vmem:[#allocation13_spill] sm:$0xff] %v10688_v1  ;;  %v13319_v24 = vrot.slane %v13318_v55, 5  ;;  %v3227_v3 = vrot.slane %v13323_v6, 5  ;;  %v3228_v5 = vrot.slane %v13324_v43, 6  ;;  %v13326_v55 = vshrl.u32 %v10201_v59, 16 }
 0x269   : > { %v3234_v6 = vrot.slane %v3232_v46, 5  ;;  %v13329_v43 = vshll.u32 %v10228_v15, 16  ;;  %v13366_v11 = vshrl.u32 %v13365_v19, 16 }
 0x26a   : > { %v10714_v35 = vsel %vm8089_vm14, %v3063_v29, %v13319_v24  ;;  %v13321_v29 = vshrl.u32 %v10192_v20, 16  ;;  %v13322_v24 = vshll.u32 %v10192_v20, 16  ;;  %v3238_v40 = vrot.slane %v13326_v55, 5 }
 0x26b   : > { %13320 = vst [vmem:[#allocation14_spill] sm:$0xff] %v10714_v35  ;;  %v10759_v1 = vor.u32 %v3228_v5, %v3227_v3  ;;  %v3243_v38 = vrot.slane %v13329_v43, 6  ;;  %v13331_v55 = vshrl.u32 %v10243_v12, 16  ;;  %v3249_v5 = vrot.slane %v3247_v52, 5 }
 0x26c   : > { %v3223_v61 = vrot.slane %v13321_v29, 5  ;;  %v3224_v33 = vrot.slane %v13322_v24, 6  ;;  %v13327_v29 = vshll.u32 %v10201_v59, 16  ;;  %v13328_v24 = vshrl.u32 %v10228_v15, 16 }
 0x26d   : > { %v3231_v59 = vrot.slane %v10759_v1, 4  ;;  %v13335_v52 = vshll.u32 %v10262_v17, 16 }
 0x26e   : > { %v3225_v18 = vor.u32 %v3224_v33, %v3223_v61  ;;  %v3239_v35 = vrot.slane %v13327_v29, 6  ;;  %v3242_v20 = vrot.slane %v13328_v24, 5  ;;  %v13330_v61 = vshll.u32 %v10233_v9, 16 }
 0x26f   : > { %v3253_v29 = vrot.slane %v13331_v55, 5  ;;  %v3236_v24 = vor.u32 %v3235_v60, %v3234_v6  ;;  %v3258_v60 = vrot.slane %v13335_v52, 6  ;;  %v13338_v52 = vshll.u32 %v10285_v58, 16 }
 0x270   : > { %v10764_v27 = vrot.slane %v3225_v18, 4  ;;  %v3240_v54 = vor.u32 %v3239_v35, %v3238_v40  ;;  %v3250_v33 = vrot.slane %v13330_v61, 6  ;;  %v10771_v3 = vor.u32 %v3243_v38, %v3242_v20 }
 0x271   : > { %v13333_v40 = vshll.u32 %v10243_v12, 16  ;;  %v13334_v61 = vshrl.u32 %v10262_v17, 16  ;;  %v10785_v55 = vsel %vm8198_vm3, %v3231_v59, %v3236_v24  ;;  %v3269_v17 = vrot.slane %v13338_v52, 6 }
 0x272   : > { %v10777_v18 = vrot.slane %v3240_v54, 4  ;;  %v3246_v20 = vrot.slane %v10771_v3, 4  ;;  %v3251_v38 = vor.u32 %v3250_v33, %v3249_v5  ;;  %v13337_v33 = vshrl.u32 %v10285_v58, 16 }
 0x273   : > { %v3254_v35 = vrot.slane %v13333_v40, 6  ;;  %v3257_v9 = vrot.slane %v13334_v61, 5  ;;  %v3262_v40 = vshrl.u32 %v10275_v10, 16  ;;  %v13336_v61 = vshll.u32 %v10275_v10, 16 }
 0x274   : > { %v10799_v59 = vsel %vm8198_vm3, %v3246_v20, %v3251_v38  ;;  %v3268_v5 = vrot.slane %v13337_v33, 5 }
 0x275   : > { %v3255_v54 = vor.u32 %v3254_v35, %v3253_v29  ;;  %v3265_v43 = vrot.slane %v13336_v61, 6  ;;  %v10801_v24 = vor.u32 %v3258_v60, %v3257_v9  ;;  %v3264_v29 = vrot.slane %v3262_v40, 5 }
 0x276   : > { %v13339_v35 = vshrl.u32 %v10294_v53, 16  ;;  %v13340_v61 = vshll.u32 %v10294_v53, 16  ;;  %v3270_v38 = vor.u32 %v3269_v17, %v3268_v5  ;;  %v3277_v9 = vshrl.u32 %v13302_v16, 16 }
 0x277   : > { %v10807_v12 = vrot.slane %v3255_v54, 4  ;;  %v3261_v20 = vrot.slane %v10801_v24, 4  ;;  %v13341_v60 = vshll.u32 %v13302_v16, 16  ;;  %v3266_v40 = vor.u32 %v3265_v43, %v3264_v29 }
 0x278   : > { %v3272_v6 = vrot.slane %v13339_v35, 5  ;;  %v3273_v10 = vrot.slane %v13340_v61, 6  ;;  %v13342_v35 = vshrl.u32 %v10324_v44, 16  ;;  %v10825_v61 = vrot.slane %v3270_v38, 4 }
 0x279   : > { %v3280_v33 = vrot.slane %v13341_v60, 6  ;;  %v3279_v58 = vrot.slane %v3277_v9, 5  ;;  %v13343_v17 = vshll.u32 %v10324_v44, 16  ;;  %v13344_v16 = vshrl.u32 %v10334_v48, 16 }
 0x27a   : > { %v10821_v52 = vor.u32 %v3273_v10, %v3272_v6  ;;  %v3283_v53 = vrot.slane %v13342_v35, 5  ;;  %v10833_v15 = vsel %vm8198_vm3, %v3261_v20, %v3266_v40  ;;  %v13345_v10 = vshll.u32 %v10334_v48, 16  ;;  %v13347_v40 = vld [vmem:[#allocation58_spill] sm:$0xff] }
 0x27b   : > { %v3284_v5 = vrot.slane %v13343_v17, 6  ;;  %v3287_v60 = vrot.slane %v13344_v16, 5  ;;  %v3292_v29 = vshrl.u32 %v13303_v0, 16  ;;  %v3281_v9 = vor.u32 %v3280_v33, %v3279_v58 }
 0x27c   : > { %v3276_v43 = vrot.slane %v10821_v52, 4  ;;  %v3288_v6 = vrot.slane %v13345_v10, 6  ;;  %v13346_v16 = vshll.u32 %v13303_v0, 16  ;;  %v13348_v44 = vshrl.u32 %v13347_v40, 16 }
 0x27d   : > { %v3285_v35 = vor.u32 %v3284_v5, %v3283_v53  ;;  %v3294_v20 = vrot.slane %v3292_v29, 5  ;;  %v13349_v10 = vshll.u32 %v13347_v40, 16  ;;  %v13350_v38 = vshrl.u32 %v10371_v45, 16  ;;  %v13352_v29 = vld [vmem:[#allocation60_spill] sm:$0xff] }
 0x27e   : > { %v3295_v17 = vrot.slane %v13346_v16, 6  ;;  %v10845_v54 = vor.u32 %v3288_v6, %v3287_v60  ;;  %v3298_v39 = vrot.slane %v13348_v44, 5  ;;  %v3282_v26 = vsel %vm8198_vm3, %v3276_v43, %v3281_v9 }
 0x27f   : > { %v3299_v48 = vrot.slane %v13349_v10, 6  ;;  %v3286_v30 = vrot.slane %v3285_v35, 4  ;;  %v3302_v58 = vrot.slane %v13350_v38, 5  ;;  %v13351_v53 = vshll.u32 %v10371_v45, 16  ;;  %v13354_v35 = vld [vmem:[#allocation61_spill] sm:$0xff] }
 0x280   : > { %v3291_v5 = vrot.slane %v10845_v54, 4  ;;  %v3296_v60 = vor.u32 %v3295_v17, %v3294_v20  ;;  %v3307_v16 = vshrl.u32 %v13352_v29, 16  ;;  %v13353_v43 = vshll.u32 %v13352_v29, 16  ;;  %v13357_v20 = vld [vmem:[#allocation62_spill] sm:$0xff] }
 0x281   : > { %v3303_v33 = vrot.slane %v13351_v53, 6  ;;  %v3300_v6 = vor.u32 %v3299_v48, %v3298_v39  ;;  %v3290_v44 = vsel %vm8198_vm3, %v3286_v30, %v10845_v54  ;;  %v13355_v40 = vshrl.u32 %v13354_v35, 16 }
 0x282   : > { %v3310_v9 = vrot.slane %v13353_v43, 6  ;;  %v3297_v53 = vsel %vm8198_vm3, %v3291_v5, %v3296_v60  ;;  %v3309_v0 = vrot.slane %v3307_v16, 5  ;;  %v13356_v48 = vshll.u32 %v13354_v35, 16 }
 0x283   : > { %v3304_v10 = vor.u32 %v3303_v33, %v3302_v58  ;;  %v3313_v38 = vrot.slane %v13355_v40, 5  ;;  %v3301_v45 = vrot.slane %v3300_v6, 4  ;;  %v13358_v47 = vshrl.u32 %v13357_v20, 16  ;;  %v13360_v58 = vld [vmem:[#allocation64_spill] sm:$0xff] }
 0x284   : > { %v3314_v39 = vrot.slane %v13356_v48, 6  ;;  %v13359_v30 = vshll.u32 %v13357_v20, 16  ;;  %v3322_v33 = vshrl.u32 %v13360_v58, 16  ;;  %v3311_v43 = vor.u32 %v3310_v9, %v3309_v0  ;;  %v13362_v48 = vld [vmem:[#allocation63_spill] sm:$0xff] }
 0x285   : > { %v3306_v17 = vrot.slane %v3304_v10, 4  ;;  %v3317_v4 = vrot.slane %v13358_v47, 5  ;;  %v3305_v40 = vsel %vm8198_vm3, %v3301_v45, %v3304_v10  ;;  %v13361_v5 = vshll.u32 %v13360_v58, 16 }
 0x286   : > { %v3318_v54 = vrot.slane %v13359_v30, 6  ;;  %v3315_v29 = vor.u32 %v3314_v39, %v3313_v38  ;;  %v3324_v16 = vrot.slane %v3322_v33, 5  ;;  %v13363_v35 = vshrl.u32 %v13362_v48, 16 }
 0x287   : > { %v3325_v60 = vrot.slane %v13361_v5, 6  ;;  %v13364_v47 = vshll.u32 %v13362_v48, 16  ;;  %v3312_v30 = vsel %vm8198_vm3, %v3306_v17, %v3311_v43  ;;  %v3332_v45 = vrot.slane %v13366_v11, 5  ;;  %v13369_v17 = vld [vmem:[#allocation9_spill] sm:$0xff] }
 0x288   : > { %v3319_v6 = vor.u32 %v3318_v54, %v3317_v4  ;;  %v3328_v37 = vrot.slane %v13363_v35, 5  ;;  %v3316_v20 = vrot.slane %v3315_v29, 4  ;;  %v13367_v0 = vshll.u32 %v13365_v19, 16  ;;  %v13370_v29 = vld [vmem:[#allocation3_spill] sm:$0xff] }
 0x289   : > { %v3329_v14 = vrot.slane %v13364_v47, 6  ;;  %v3326_v38 = vor.u32 %v3325_v60, %v3324_v16  ;;  %v3337_v39 = vshrl.u32 %v10460_v41, 16  ;;  %v13368_v33 = vshll.u32 %v10460_v41, 16 }
 0x28a   : > { %v3333_v10 = vrot.slane %v13367_v0, 6  ;;  %v3321_v9 = vrot.slane %v3319_v6, 4  ;;  %v3320_v35 = vsel %vm8198_vm3, %v3316_v20, %v3319_v6  ;;  %v3345_v43 = vor.u32 %v13370_v29, %v13369_v17  ;;  %v13373_v6 = vld [vmem:[#allocation18_spill] sm:$0xff]  ;;  %v13395_v29 = vld [vmem:[#allocation72_spill] sm:$0xff] }
 0x28b   : > { %v3330_v4 = vor.u32 %v3329_v14, %v3328_v37  ;;  %v3340_v5 = vrot.slane %v13368_v33, 6  ;;  %v3339_v0 = vrot.slane %v3337_v39, 5  ;;  %v13371_v60 = vshrl.u32 %v13310_v34, 16 }
 0x28c   : > { %v3334_v54 = vor.u32 %v3333_v10, %v3332_v45  ;;  %v3327_v11 = vsel %vm8198_vm3, %v3321_v9, %v3326_v38  ;;  %v3346_v16 = vrot.slane %v3345_v43, 4  ;;  %v13372_v19 = vshll.u32 %v13310_v34, 16  ;;  %v13374_v45 = vld [vmem:[#allocation19_spill] sm:$0xff] }
 0x28d   : > { %v3331_v47 = vrot.slane %v3330_v4, 4  ;;  %v3347_v37 = vrot.slane %v13371_v60, 5  ;;  %v3356_v10 = vor.u32 %v13374_v45, %v13373_v6  ;;  %v3341_v17 = vor.u32 %v3340_v5, %v3339_v0  ;;  %v13396_v43 = vld [vmem:[#allocation15_spill] sm:$0xff]  ;;  %v13402_v0 = vld [vmem:[#allocation17_spill] sm:$0xff]  ;;  %v13408_v6 = vld [vmem:[#allocation68_spill] sm:$0xff] }
 0x28e   : > { %v3336_v14 = vrot.slane %v3334_v54, 4  ;;  %v3348_v20 = vrot.slane %v13372_v19, 6  ;;  %v13375_v9 = vmax.bf16 %v10611_v8, %v10501_v22  ;;  %v13376_v38 = vsel %vm8198_vm3, %v10764_v27, %v10759_v1 }
 0x28f   : > { %v3335_v33 = vsel %vm8198_vm3, %v3331_v47, %v3334_v54  ;;  %v13377_v34 = vmax.bf16 %v10623_v51, %v10511_v21  ;;  %v13378_v54 = vmax.bf16 %v10617_v13, %v10519_v62  ;;  %v13379_v22 = vsel %vm8198_vm3, %v10777_v18, %v10771_v3  ;;  %v13399_v47 = vld [vmem:[#allocation16_spill] sm:$0xff] }
 0x290   : > { %v10914_v4 = vmax.bf16 %v13376_v38, %v13375_v9  ;;  %v3349_v39 = vor.u32 %v3348_v20, %v3347_v37  ;;  %v13380_v27 = vmax.bf16 %v10632_v25, %v10527_v63  ;;  %v13381_v21 = vmax.bf16 %v10627_v36, %v10535_v2  ;;  %v13411_v9 = vld [vmem:[#allocation70_spill] sm:$0xff] }
 0x291   : > { %v10920_v19 = vmax.bf16 %v10785_v55, %v13377_v34  ;;  %v10930_v8 = vmax.bf16 %v13379_v22, %v13378_v54  ;;  %v13382_v62 = vsel %vm8198_vm3, %v10807_v12, %v10801_v24  ;;  %v3342_v51 = vsel %vm8198_vm3, %v3336_v14, %v3341_v17  ;;  %v13390_v24 = vld [vmem:[#allocation8_spill] sm:$0xff]  ;;  %v13405_v14 = vld [vmem:[#allocation66_spill] sm:$0xff]  ;;  %v13414_v54 = vld [vmem:[#allocation47_spill] sm:$0xff] }
 0x292   : > { %v10936_v1 = vmax.bf16 %v10799_v59, %v13380_v27  ;;  %v10946_v13 = vmax.bf16 %v13382_v62, %v13381_v21  ;;  %v13383_v3 = vmax.bf16 %v10641_v57, %v10545_v7  ;;  %v13384_v25 = vmax.bf16 %v10636_v31, %v10553_v49  ;;  %v13389_v59 = vld [vmem:[#allocation71_spill] sm:$0xff]  ;;  %v13415_v22 = vld [vmem:[#allocation48_spill] sm:$0xff]  ;;  %v13416_v21 = vld [vmem:[#allocation46_spill] sm:$0xff] }
 0x293   : > { %v13385_v2 = vsel %vm8198_vm3, %v10825_v61, %v10821_v52  ;;  %v13386_v36 = vmax.bf16 %v10648_v28, %v10564_v32  ;;  %v3350_v7 = vsel %vm8198_vm3, %v3346_v16, %v3349_v39  ;;  %v13387_v57 = vmax.bf16 %v10655_v56, %v10567_v23  ;;  %v13393_v28 = vld [vmem:[#allocation7_spill] sm:$0xff] }
 0x294   : > { %v10954_v63 = vmax.bf16 %v10833_v15, %v13383_v3  ;;  %v10964_v12 = vmax.bf16 %v13385_v2, %v13384_v25  ;;  %v3351_v15 = vrot.slane %v3349_v39, 4  ;;  %v13388_v31 = vmax.bf16 %v10667_v50, %v10570_v42  ;;  %v13418_v25 = vld [vmem:[#allocation40_spill] sm:$0xff] }
 0x295   : > { %v10969_v18 = vmax.bf16 %v3282_v26, %v13386_v36  ;;  %v10976_v49 = vmax.bf16 %v3290_v44, %v13387_v57  ;;  %v13391_v52 = vmax.bf16 %v13389_v59, %v13390_v24  ;;  %v13392_v26 = vld [vmem:[#allocation73_spill] sm:$0xff]  ;;  %v13397_v23 = vmax.bf16 %v13395_v29, %v13396_v43  ;;  %v13421_v59 = vld [vmem:[#allocation50_spill] sm:$0xff]  ;;  %v13423_v29 = vld [vmem:[#allocation52_spill] sm:$0xff] }
 0x296   : > { %v10981_v55 = vmax.bf16 %v3297_v53, %v13388_v31  ;;  %v13394_v61 = vmax.bf16 %v13392_v26, %v13393_v28  ;;  %v13398_v44 = vld [vmem:[#allocation5_spill] sm:$0xff]  ;;  %v3357_v53 = vsel %vm8198_vm3, %v3351_v15, %v3356_v10  ;;  %v13413_v10 = vld [vmem:[#allocation44_spill] sm:$0xff]  ;;  %v3608_v27 = vrot.slane %v13415_v22, 6 }
 0x297   : > { %v10986_v32 = vmax.bf16 %v3305_v40, %v13391_v52  ;;  %v10996_v56 = vmax.bf16 %v3320_v35, %v13397_v23  ;;  %v13400_v50 = vmax.bf16 %v13398_v44, %v13399_v47  ;;  %v13401_v40 = vld [vmem:[#allocation74_spill] sm:$0xff]  ;;  %v13407_v35 = vld [vmem:[#allocation13_spill] sm:$0xff]  ;;  %v7288_v39 = vrot.slane %v13413_v10, 10  ;;  %v13422_v52 = vld [vmem:[#allocation51_spill] sm:$0xff] }
 0x298   : > { %v10991_v5 = vmax.bf16 %v3312_v30, %v13394_v61  ;;  %v13403_v60 = vmax.bf16 %v13401_v40, %v13402_v0  ;;  %v13404_v30 = vld [vmem:[#allocation75_spill] sm:$0xff]  ;;  %v13409_v45 = vmax.bf16 %v13407_v35, %v13408_v6  ;;  %v7289_v62 = vrot.slane %v13416_v21, 10  ;;  %v13419_v36 = vld [vmem:[#allocation49_spill] sm:$0xff]  ;;  %v13425_v40 = vld [vmem:[#allocation54_spill] sm:$0xff] }
 0x299   : > { %v11001_v42 = vmax.bf16 %v3327_v11, %v13400_v50  ;;  %v13406_v16 = vmax.bf16 %v13404_v30, %v13405_v14  ;;  %v13410_v11 = vld [vmem:[#allocation14_spill] sm:$0xff]  ;;  %v3615_v2 = vrot.slane %v13418_v25, 6  ;;  %v3619_v24 = vrot.slane %v13421_v59, 6  ;;  %v13424_v23 = vld [vmem:[#allocation53_spill] sm:$0xff] }
 0x29a   : > { %v11008_v37 = vmax.bf16 %v3335_v33, %v13403_v60  ;;  %v11018_v17 = vmax.bf16 %v3350_v7, %v13409_v45  ;;  %v13412_v38 = vmax.bf16 %v13410_v11, %v13411_v9  ;;  %v3605_v33 = vrot.slane %v13414_v54, 6  ;;  %v13427_v45 = vld [vmem:[#allocation56_spill] sm:$0xff]  ;;  %v13428_v9 = vld [vmem:[#allocation57_spill] sm:$0xff]  ;;  %v13429_v10 = vld [vmem:[#allocation58_spill] sm:$0xff] }
 0x29b   : > { %v11013_v20 = vmax.bf16 %v3342_v51, %v13406_v16  ;;  %v13417_v51 = vld [vmem:[#allocation41_spill] sm:$0xff]  ;;  %v7290_v7 = vrot.slane %v13419_v36, 10  ;;  %v3622_v26 = vrot.slane %v13422_v52, 6  ;;  %v7291_v43 = vrot.slane %v13423_v29, 10  ;;  %v13426_v16 = vld [vmem:[#allocation55_spill] sm:$0xff] }
 0x29c   : > { %v11023_v34 = vmax.bf16 %v3357_v53, %v13412_v38  ;;  %v3612_v3 = vrot.slane %v13417_v51, 6  ;;  %v11034_v57 = vsel %vm8286_vm8, %v7288_v39, %v3605_v33  ;;  %v3607_v31 = vrot.slane %v3605_v33, 4  ;;  %v13430_v33 = vld [vmem:[#allocation59_spill] sm:$0xff]  ;;  %v13434_v52 = vld [vmem:[#allocation65_spill] sm:$0xff] }
 0x29d   : > { %v3626_v44 = vrot.slane %v13424_v23, 6  ;;  %v3620_v50 = vsel %vm8286_vm8, %v7290_v7, %v3619_v24  ;;  %v3621_v53 = vrot.slane %v3619_v24, 4  ;;  %v3629_v0 = vrot.slane %v13425_v40, 6  ;;  %v13435_v40 = vld [vmem:[#allocation67_spill] sm:$0xff] }
 0x29e   : > { %v3613_v28 = vsel %vm8286_vm8, %v7289_v62, %v3612_v3  ;;  %v3614_v61 = vrot.slane %v3612_v3, 4  ;;  %v3609_v47 = vsel %vm8286_vm8, %v3607_v31, %v3608_v27  ;;  %v7292_v35 = vrot.slane %v13426_v16, 10  ;;  %v13431_v27 = vld [vmem:[#allocation60_spill] sm:$0xff]  ;;  %v13432_v62 = vld [vmem:[#allocation61_spill] sm:$0xff] }
 0x29f   : > { %v3627_v30 = vsel %vm8286_vm8, %v7291_v43, %v3626_v44  ;;  %v3628_v14 = vrot.slane %v3626_v44, 4  ;;  %v3623_v6 = vsel %vm8286_vm8, %v3621_v53, %v3622_v26  ;;  %v3633_v11 = vrot.slane %v13427_v45, 6 }
 0x2a0   : > { %v3616_v60 = vsel %vm8286_vm8, %v3614_v61, %v3615_v2  ;;  %v3636_v38 = vrot.slane %v13428_v9, 6  ;;  %v7293_v39 = vrot.slane %v13429_v10, 10  ;;  %v3640_v22 = vrot.slane %v13430_v33, 6  ;;  %v13433_v2 = vld [vmem:[#allocation62_spill] sm:$0xff] }
 0x2a1   : > { %v3630_v54 = vsel %vm8286_vm8, %v3628_v14, %v3629_v0  ;;  %v3643_v21 = vrot.slane %v13431_v27, 6  ;;  %v7294_v51 = vrot.slane %v13432_v62, 10  ;;  %v3634_v3 = vsel %vm8286_vm8, %v7292_v35, %v3633_v11  ;;  %v13436_v14 = vld [vmem:[#allocation69_spill] sm:$0xff]  ;;  %v7767_v35 = vld [vmem:[#allocation2 + $0x68] sm:$0x3] }
 0x2a2   : > { %v3635_v25 = vrot.slane %v3633_v11, 4  ;;  %v3647_v36 = vrot.slane %v13433_v2, 6  ;;  %v3650_v7 = vrot.slane %v13360_v58, 6  ;;  %v3641_v31 = vsel %vm8286_vm8, %v7293_v39, %v3640_v22  ;;  %v13438_v2 = vld [vmem:[#allocation21_spill] sm:$0xff] }
 0x2a3   : > { %v3642_v59 = vrot.slane %v3640_v22, 4  ;;  %v7295_v24 = vrot.slane %v13362_v48, 10  ;;  %v3654_v26 = vrot.slane %v13434_v52, 6  ;;  %v3657_v23 = vrot.slane %v10460_v41, 6 }
 0x2a4   : > { %v3637_v61 = vsel %vm8286_vm8, %v3635_v25, %v3636_v38  ;;  %v3648_v29 = vsel %vm8286_vm8, %v7294_v51, %v3647_v36  ;;  %v3649_v43 = vrot.slane %v3647_v36, 4  ;;  %v7296_v48 = vrot.slane %v13435_v40, 10 }
 0x2a5   : > { %v3644_v58 = vsel %vm8286_vm8, %v3642_v59, %v3643_v21  ;;  %v3655_v44 = vsel %vm8286_vm8, %v7295_v24, %v3654_v26  ;;  %v3656_v53 = vrot.slane %v3654_v26, 4  ;;  %v3661_v16 = vrot.slane %v13436_v14, 6  ;;  %v13439_v14 = vld [vmem:[#allocation22_spill] sm:$0xff] }
 0x2a6   : > { %v3651_v0 = vsel %vm8286_vm8, %v3649_v43, %v3650_v7  ;;  %v3664_v45 = vrot.slane %v7767_v35, 6  ;;  %v3783_v11 = vmax.bf16 %v11034_v57, %v10914_v4  ;;  %v3784_v9 = vmax.bf16 %v3609_v47, %v10920_v19  ;;  %v13440_v35 = vld [vmem:[#allocation23_spill] sm:$0xff] }
 0x2a7   : > { %v3658_v41 = vsel %vm8286_vm8, %v3656_v53, %v3657_v23  ;;  %v3785_v38 = vmax.bf16 %v3613_v28, %v10930_v8  ;;  %v3786_v10 = vmax.bf16 %v3616_v60, %v10936_v1  ;;  %v3662_v39 = vsel %vm8286_vm8, %v7296_v48, %v3661_v16 }
 0x2a8   : > { %v3663_v33 = vrot.slane %v3661_v16, 4  ;;  %v3787_v22 = vmax.bf16 %v3620_v50, %v10946_v13  ;;  %v3788_v27 = vmax.bf16 %v3623_v6, %v10954_v63  ;;  %v3789_v21 = vmax.bf16 %v3627_v30, %v10964_v12 }
 0x2a9   : > { %v3790_v4 = vmax.bf16 %v3630_v54, %v10969_v18  ;;  %v11097_v57 = vmax.bf16 %v3634_v3, %v10976_v49  ;;  %v11100_v19 = vmax.bf16 %v3637_v61, %v10981_v55  ;;  %v11105_v1 = vmax.bf16 %v3641_v31, %v10986_v32  ;;  %v13437_v3 = vld [vmem:[#allocation20_spill] sm:$0xff] }
 0x2aa   : > { %v3665_v8 = vsel %vm8286_vm8, %v3663_v33, %v3664_v45  ;;  %v11108_v13 = vmax.bf16 %v3644_v58, %v10991_v5  ;;  %v11111_v63 = vmax.bf16 %v3648_v29, %v10996_v56  ;;  %v11114_v12 = vmax.bf16 %v3651_v0, %v11001_v42 }
 0x2ab   : > { %v11117_v18 = vmax.bf16 %v3655_v44, %v11008_v37  ;;  %v11120_v49 = vmax.bf16 %v3658_v41, %v11013_v20  ;;  %v11123_v55 = vmax.bf16 %v3662_v39, %v11018_v17  ;;  %v11126_v32 = vmax.bf16 %v3665_v8, %v11023_v34 }
 0x2ac   : > { %v3823_v5 = vmax.bf16 %v3785_v38, %v3783_v11  ;;  %v3824_v28 = vmax.bf16 %v3786_v10, %v3784_v9  ;;  %v3825_v47 = vmax.bf16 %v3787_v22, %v3785_v38  ;;  %v3826_v56 = vmax.bf16 %v3788_v27, %v3786_v10 }
 0x2ad   : > { %v3827_v50 = vmax.bf16 %v3789_v21, %v3787_v22  ;;  %v3828_v60 = vmax.bf16 %v3790_v4, %v3788_v27  ;;  %v3829_v42 = vmax.bf16 %v11097_v57, %v3789_v21  ;;  %v3830_v37 = vmax.bf16 %v11100_v19, %v3790_v4 }
 0x2ae   : > { %v3831_v20 = vmax.bf16 %v11105_v1, %v11097_v57  ;;  %v3832_v17 = vmax.bf16 %v11108_v13, %v11100_v19  ;;  %v3833_v34 = vmax.bf16 %v11111_v63, %v11105_v1  ;;  %v3834_v30 = vmax.bf16 %v11114_v12, %v11108_v13 }
 0x2af   : > { %v3835_v6 = vmax.bf16 %v11117_v18, %v11111_v63  ;;  %v3836_v54 = vmax.bf16 %v11120_v49, %v11114_v12  ;;  %v3837_v62 = vmax.bf16 %v11123_v55, %v11117_v18  ;;  %v3838_v51 = vmax.bf16 %v11126_v32, %v11120_v49 }
 0x2b0   : > { %v3839_v25 = vmax.bf16 %v13437_v3, %v11123_v55  ;;  %v3840_v36 = vmax.bf16 %v13438_v2, %v11126_v32  ;;  %v3855_v7 = vmax.bf16 %v3823_v5, %v3787_v22  ;;  %v3856_v31 = vmax.bf16 %v3824_v28, %v3788_v27 }
 0x2b1   : > { %v11150_v59 = vmax.bf16 %v3825_v47, %v3789_v21  ;;  %v11152_v24 = vmax.bf16 %v3826_v56, %v3790_v4  ;;  %v3859_v52 = vmax.bf16 %v3827_v50, %v11097_v57  ;;  %v3860_v26 = vmax.bf16 %v3828_v60, %v11100_v19  ;;  %v13441_v47 = vld [vmem:[#allocation24_spill] sm:$0xff]  ;;  %v13442_v50 = vld [vmem:[#allocation25_spill] sm:$0xff] }
 0x2b2   : > { %v3861_v61 = vmax.bf16 %v3829_v42, %v11105_v1  ;;  %v3862_v29 = vmax.bf16 %v3830_v37, %v11108_v13  ;;  %v3863_v43 = vmax.bf16 %v3831_v20, %v11111_v63  ;;  %v3864_v23 = vmax.bf16 %v3832_v17, %v11114_v12 }
 0x2b3   : > { %v3865_v58 = vmax.bf16 %v3833_v34, %v11117_v18  ;;  %v3866_v44 = vmax.bf16 %v3834_v30, %v11120_v49  ;;  %v3867_v53 = vmax.bf16 %v3835_v6, %v11123_v55  ;;  %v3868_v40 = vmax.bf16 %v3836_v54, %v11126_v32 }
 0x2b4   : > { %v3869_v48 = vmax.bf16 %v3837_v62, %v13437_v3  ;;  %v3870_v0 = vmax.bf16 %v3838_v51, %v13438_v2  ;;  %v3871_v16 = vmax.bf16 %v3839_v25, %v13439_v14  ;;  %v3872_v45 = vmax.bf16 %v3840_v36, %v13440_v35 }
 0x2b5   : > { %v3887_v11 = vmax.bf16 %v3855_v7, %v3789_v21  ;;  %v3888_v41 = vmax.bf16 %v3856_v31, %v3790_v4  ;;  %v3891_v9 = vmax.bf16 %v3859_v52, %v11105_v1  ;;  %v3892_v38 = vmax.bf16 %v3860_v26, %v11108_v13 }
 0x2b6   : > { %v3893_v10 = vmax.bf16 %v3861_v61, %v11111_v63  ;;  %v3894_v39 = vmax.bf16 %v3862_v29, %v11114_v12  ;;  %v3895_v33 = vmax.bf16 %v3863_v43, %v11117_v18  ;;  %v3896_v22 = vmax.bf16 %v3864_v23, %v11120_v49 }
 0x2b7   : > { %v3897_v27 = vmax.bf16 %v3865_v58, %v11123_v55  ;;  %v3898_v8 = vmax.bf16 %v3866_v44, %v11126_v32  ;;  %v3899_v5 = vmax.bf16 %v3867_v53, %v13437_v3  ;;  %v3900_v21 = vmax.bf16 %v3868_v40, %v13438_v2 }
 0x2b8   : > { %v3901_v4 = vmax.bf16 %v3869_v48, %v13439_v14  ;;  %v3902_v28 = vmax.bf16 %v3870_v0, %v13440_v35  ;;  %v3903_v56 = vmax.bf16 %v3871_v16, %v13441_v47  ;;  %v3904_v60 = vmax.bf16 %v3872_v45, %v13442_v50 }
 0x2b9   : > { %v11183_v42 = vmax.bf16 %v3887_v11, %v11097_v57  ;;  %v11186_v37 = vmax.bf16 %v3888_v41, %v11100_v19  ;;  %v11189_v20 = vmax.bf16 %v3891_v9, %v11111_v63  ;;  %v11192_v17 = vmax.bf16 %v3892_v38, %v11114_v12 }
 0x2ba   : > { %v11195_v34 = vmax.bf16 %v3893_v10, %v11117_v18  ;;  %v11198_v30 = vmax.bf16 %v3894_v39, %v11120_v49  ;;  %v11201_v6 = vmax.bf16 %v3895_v33, %v11123_v55  ;;  %v11204_v54 = vmax.bf16 %v3896_v22, %v11126_v32  ;;  %v13451_v32 = vld [vmem:[#allocation26_spill] sm:$0xff] }
 0x2bb   : > { %v11207_v62 = vmax.bf16 %v3897_v27, %v13437_v3  ;;  %v11210_v63 = vmax.bf16 %v3898_v8, %v13438_v2  ;;  %v11213_v12 = vmax.bf16 %v3899_v5, %v13439_v14  ;;  %v11216_v18 = vmax.bf16 %v3900_v21, %v13440_v35  ;;  %v13453_v3 = vld [vmem:[#allocation28_spill] sm:$0xff]  ;;  %v11265_v27 = vld [vmem:[#allocation2] sm:$0xf] }
 0x2bc   : > { %13443 = vst [vmem:[#allocation11_spill] sm:$0xff] %v11201_v6  ;;  %13444 = vst [vmem:[#allocation64_spill] sm:$0xff] %v11204_v54  ;;  %v11219_v49 = vmax.bf16 %v3901_v4, %v13441_v47  ;;  %v11222_v55 = vmax.bf16 %v3902_v28, %v13442_v50  ;;  %v11225_v51 = vmax.bf16 %v3903_v56, %v13451_v32  ;;  %v3983_v2 = vrot.slane %v11183_v42, 7  ;;  %v11270_v28 = vld [vmem:[#allocation2 + $0x4] sm:$0xf] }
 0x2bd   : > { %13445 = vst [vmem:[#allocation63_spill] sm:$0xff] %v11207_v62  ;;  %13446 = vst [vmem:[#allocation9_spill] sm:$0xff] %v11210_v63  ;;  %v11228_v25 = vmax.bf16 %v3904_v60, %v13453_v3  ;;  %v3985_v36 = vrot.slane %v11186_v37, 7  ;;  %v3993_v7 = vrot.slane %v11189_v20, 7  ;;  %v3995_v31 = vrot.slane %v11192_v17, 7 }
 0x2be   : > { %13447 = vst [vmem:[#allocation3_spill] sm:$0xff] %v11213_v12  ;;  %13448 = vst [vmem:[#allocation18_spill] sm:$0xff] %v11216_v18  ;;  %v3998_v52 = vrot.slane %v11195_v34, 7  ;;  %v4000_v26 = vrot.slane %v11198_v30, 7  ;;  %v4003_v61 = vrot.slane %v11201_v6, 7  ;;  %v3984_v29 = vrot.slane %v3983_v2, 4 }
 0x2bf   : > { %13449 = vst [vmem:[#allocation19_spill] sm:$0xff] %v11219_v49  ;;  %13450 = vst [vmem:[#allocation71_spill] sm:$0xff] %v11222_v55  ;;  %v3987_v43 = vrot.slane %v3985_v36, 4  ;;  %v3994_v23 = vrot.slane %v3993_v7, 4  ;;  %v4005_v58 = vrot.slane %v11204_v54, 7  ;;  %v3997_v44 = vrot.slane %v3995_v31, 4 }
 0x2c0   : > { %13452 = vst [vmem:[#allocation8_spill] sm:$0xff] %v11225_v51  ;;  %13454 = vst [vmem:[#allocation73_spill] sm:$0xff] %v11228_v25  ;;  %v3999_v53 = vrot.slane %v3998_v52, 4  ;;  %v4002_v40 = vrot.slane %v4000_v26, 4  ;;  %v4004_v48 = vrot.slane %v4003_v61, 4  ;;  %v3986_v14 = vsel %vm7892_vm10, %v3984_v29, %v3985_v36 }
 0x2c1   : > { %4111 = vst.msk [vmem:[#allocation2 + $0x18] sm:$0xe] %vm426_vm6, %v3983_v2  ;;  %4117 = vst.msk [vmem:[#allocation2 + $0x30] sm:$0xe] %vm426_vm6, %v3993_v7  ;;  %v3996_v16 = vsel %vm7892_vm10, %v3994_v23, %v3995_v31  ;;  %v4007_v35 = vrot.slane %v4005_v58, 4  ;;  %v4008_v45 = vrot.slane %v11207_v62, 7  ;;  %v7414_v7 = vcombine.low %v11183_v42, %v11186_v37 }
 0x2c2   : > { %4120 = vst.msk [vmem:[#allocation2 + $0x3c] sm:$0xe] %vm426_vm6, %v3998_v52  ;;  %4123 = vst.msk [vmem:[#allocation2 + $0x48] sm:$0xe] %vm426_vm6, %v4003_v61  ;;  %v4001_v11 = vsel %vm7892_vm10, %v3999_v53, %v4000_v26  ;;  %v4006_v41 = vsel %vm7892_vm10, %v4004_v48, %v4005_v58  ;;  %v4010_v9 = vrot.slane %v11210_v63, 7  ;;  %v4013_v38 = vrot.slane %v11213_v12, 7 }
 0x2c3   : > { %4113 = vst.msk [vmem:[#allocation2 + $0x20] sm:$0x1] %vm188_vm2, %v3987_v43  ;;  %4119 = vst.msk [vmem:[#allocation2 + $0x38] sm:$0x1] %vm188_vm2, %v3997_v44  ;;  %v4009_v10 = vrot.slane %v4008_v45, 4  ;;  %v4015_v39 = vrot.slane %v11216_v18, 7  ;;  %v3889_v52 = vmax.bf16 %v11150_v59, %v11097_v57  ;;  %v3890_v42 = vmax.bf16 %v11152_v24, %v11100_v19  ;;  %7622 = vmatprep.mubr.msk.bf16.mxu0 %vm5838_vm7, %v7414_v7 }
 0x2c4   : > { %4112 = vst.msk [vmem:[#allocation2 + $0x1c] sm:$0xf] %vm173_vm1, %v3986_v14  ;;  %4118 = vst.msk [vmem:[#allocation2 + $0x34] sm:$0xf] %vm173_vm1, %v3996_v16  ;;  %v4018_v33 = vrot.slane %v11219_v49, 7  ;;  %v4020_v22 = vrot.slane %v11222_v55, 7  ;;  %v7416_v24 = vcombine.low %v11189_v20, %v11192_v17  ;;  %v7417_v23 = vcombine.low %v11195_v34, %v11198_v30 }
 0x2c5   : > { %4122 = vst.msk [vmem:[#allocation2 + $0x44] sm:$0x1] %vm188_vm2, %v4002_v40  ;;  %4125 = vst.msk [vmem:[#allocation2 + $0x50] sm:$0x1] %vm188_vm2, %v4007_v35  ;;  %v4012_v8 = vrot.slane %v4010_v9, 4  ;;  %v4014_v5 = vrot.slane %v4013_v38, 4  ;;  %v4011_v47 = vsel %vm7892_vm10, %v4009_v10, %v4010_v9  ;;  %v3921_v57 = vmax.bf16 %v3889_v52, %v11105_v1 }
 0x2c6   : > { %4121 = vst.msk [vmem:[#allocation2 + $0x40] sm:$0xf] %vm173_vm1, %v4001_v11  ;;  %4124 = vst.msk [vmem:[#allocation2 + $0x4c] sm:$0xf] %vm173_vm1, %v4006_v41  ;;  %v4023_v21 = vrot.slane %v11225_v51, 7  ;;  %v13033_v4 = vrot.slane %v11228_v25, 7  ;;  %v3922_v19 = vmax.bf16 %v3890_v42, %v11108_v13 }
 0x2c7   : > { %4126 = vst.msk [vmem:[#allocation2 + $0x54] sm:$0xe] %vm426_vm6, %v4008_v45  ;;  %4129 = vst.msk [vmem:[#allocation2 + $0x60] sm:$0xe] %vm426_vm6, %v4013_v38  ;;  %v4017_v56 = vrot.slane %v4015_v39, 4  ;;  %v4019_v50 = vrot.slane %v4018_v33, 4  ;;  %v4016_v3 = vsel %vm7892_vm10, %v4014_v5, %v4015_v39 }
 0x2c8   : > { %v4022_v60 = vrot.slane %v4020_v22, 4  ;;  %4132 = vst.msk [vmem:[#allocation2 + $0x6c] sm:$0xe] %vm426_vm6, %v4018_v33  ;;  %v11275_v32 = vld [vmem:[#allocation2 + $0x8] sm:$0x3]  ;;  %v11279_v2 = vrot.slane %v4023_v21, 4  ;;  %v7415_v17 = vcombine.low %v3921_v57, %v3922_v19 }
 0x2c9   : > { %v4027_v36 = vrot.slane %v13033_v4, 4  ;;  %4127 = vst.msk [vmem:[#allocation2 + $0x58] sm:$0xf] %vm173_vm1, %v4011_v47  ;;  %v4021_v31 = vsel %vm7892_vm10, %v4019_v50, %v4020_v22  ;;  %4130 = vst.msk [vmem:[#allocation2 + $0x64] sm:$0xf] %vm173_vm1, %v4016_v3  ;;  %v4220_v37 = vshrl.u32 %v11265_v27, 16 }
 0x2ca   : > { %13456 = vst [vmem:[#allocation7_spill] sm:$0xff] %v11279_v2  ;;  %4128 = vst.msk [vmem:[#allocation2 + $0x5c] sm:$0x1] %vm188_vm2, %v4012_v8  ;;  %v4223_v26 = vshll.u32 %v11265_v27, 16  ;;  %v13055_v61 = vshll.u32 %v11270_v28, 16  ;;  %v4233_v29 = vshrl.u32 %v11270_v28, 16  ;;  %7623 = vmatmul.mubr.msk.bf16.vlgmr.msra.gmra.mxu0 %vm5838_vm7, %v7415_v17 }
 0x2cb   : > { %4135 = vst.msk [vmem:[#allocation2 + $0x78] sm:$0xe] %vm426_vm6, %v4023_v21  ;;  %v13054_v43 = vshll.u32 %v11275_v32, 16  ;;  %v11307_v59 = vld [vmem:[#allocation2 + $0xc] sm:$0xf]  ;;  %v4222_v44 = vrot.slane %v4220_v37, 4  ;;  %7626 = vmatprep.mubr.msk.bf16.mxu0 %vm5838_vm7, %v7416_v24 }
 0x2cc   : > { %4131 = vst.msk [vmem:[#allocation2 + $0x68] sm:$0x1] %vm188_vm2, %v4017_v56  ;;  %4134 = vst.msk [vmem:[#allocation2 + $0x74] sm:$0x1] %vm188_vm2, %v4022_v60  ;;  %v11313_v58 = vld [vmem:[#allocation2 + $0x10] sm:$0xf] }
 0x2cd   : > { %4133 = vst.msk [vmem:[#allocation2 + $0x70] sm:$0xf] %vm173_vm1, %v4021_v31  ;;  %v4225_v53 = vrot.slane %v4223_v26, 5  ;;  %v11321_v1 = vrot.slane %v13055_v61, 5  ;;  %v4235_v13 = vrot.slane %v4233_v29, 4  ;;  %v3988_v40 = vrot.slane %v3921_v57, 7 }
 0x2ce   : > { %4137 = vst.msk [vmem:[#allocation2 + $0x80] sm:$0x1] %vm188_vm2, %v4027_v36  ;;  %v3990_v20 = vrot.slane %v3922_v19, 7  ;;  %v11327_v34 = vrot.slane %v13054_v43, 5  ;;  %v11329_v30 = vld [vmem:[#allocation2 + $0x14] sm:$0x3] }
 0x2cf   : > { %v4226_v48 = vor.u32 %v4225_v53, %v4222_v44  ;;  %v4236_v14 = vor.u32 %v4235_v13, %v11321_v1  ;;  %v13053_v16 = vshrl.u32 %v11307_v59, 16  ;;  %v13052_v35 = vshll.u32 %v11307_v59, 16  ;;  %4114 = vst.msk [vmem:[#allocation2 + $0x24] sm:$0xe] %vm426_vm6, %v3988_v40  ;;  %v11336_v41 = vld [vmem:[#allocation2 + $0x18] sm:$0xf] }
 0x2d0   : > { %v3989_v45 = vrot.slane %v3988_v40, 4  ;;  %v3992_v11 = vrot.slane %v3990_v20, 4  ;;  %v13050_v9 = vshll.u32 %v11313_v58, 16  ;;  %v13051_v38 = vshrl.u32 %v11313_v58, 16  ;;  %v11340_v10 = vld [vmem:[#allocation2 + $0x1c] sm:$0xf] }
 0x2d1   : > { %v11342_v39 = vrot.slane %v4226_v48, 4  ;;  %v11344_v33 = vrot.slane %v4236_v14, 4  ;;  %v4246_v22 = vrot.slane %v13053_v16, 4  ;;  %v4249_v8 = vrot.slane %v13052_v35, 5  ;;  %v11354_v21 = vld [vmem:[#allocation2 + $0x20] sm:$0x3] }
 0x2d2   : > { %v3991_v5 = vsel %vm7892_vm10, %v3989_v45, %v3990_v20  ;;  %4116 = vst.msk [vmem:[#allocation2 + $0x2c] sm:$0x1] %vm188_vm2, %v3992_v11  ;;  %v11358_v47 = vrot.slane %v13050_v9, 5  ;;  %v4259_v56 = vrot.slane %v13051_v38, 4  ;;  %v13049_v50 = vshll.u32 %v11329_v30, 16  ;;  %7627 = vmatmul.mubr.msk.bf16.gmra.mxu0 %vm5838_vm7, %v7417_v23 }
 0x2d3   : > { %4115 = vst.msk [vmem:[#allocation2 + $0x28] sm:$0xf] %vm173_vm1, %v3991_v5  ;;  %v11364_v60 = vld [vmem:[#allocation2 + $0x30] sm:$0xf]  ;;  %v4232_v36 = vsel %vm7960_vm11, %v11342_v39, %v11321_v1  ;;  %v4242_v7 = vsel %vm7960_vm11, %v11344_v33, %v11327_v34  ;;  %v4250_v31 = vor.u32 %v4249_v8, %v4246_v22  ;;  %v13042_v52 = vshrl.u32 %v11336_v41, 16 }
 0x2d4   : > { %v4260_v42 = vor.u32 %v4259_v56, %v11358_v47  ;;  %v4265_v57 = vrot.slane %v13049_v50, 5  ;;  %v13041_v19 = vshll.u32 %v11336_v41, 16  ;;  %v13037_v24 = vshll.u32 %v11340_v10, 16  ;;  %v11384_v40 = vld [vmem:[#allocation2 + $0x34] sm:$0xf] }
 0x2d5   : > { %v4251_v44 = vrot.slane %v4250_v31, 4  ;;  %v4270_v53 = vrot.slane %v13042_v52, 4  ;;  %v13038_v1 = vshrl.u32 %v11340_v10, 16  ;;  %v13034_v13 = vshll.u32 %v11354_v21, 16  ;;  %13458 = vst [vmem:[#allocation72_spill] sm:$0xff] %v11384_v40 }
 0x2d6   : > { %v4261_v20 = vrot.slane %v4260_v42, 4  ;;  %v4273_v17 = vrot.slane %v13041_v19, 5  ;;  %v4279_v34 = vrot.slane %v13037_v24, 5  ;;  %v13035_v48 = vshrl.u32 %v11364_v60, 16  ;;  %v11391_v14 = vld [vmem:[#allocation2 + $0x24] sm:$0xf] }
 0x2d7   : > { %v4256_v45 = vsel %vm7960_vm11, %v4251_v44, %v11358_v47  ;;  %v4283_v11 = vrot.slane %v13038_v1, 4  ;;  %v4289_v39 = vrot.slane %v13034_v13, 5  ;;  %v13036_v33 = vshll.u32 %v11364_v60, 16 }
 0x2d8   : > { %v4266_v22 = vsel %vm7960_vm11, %v4261_v20, %v4265_v57  ;;  %v4274_v8 = vor.u32 %v4273_v17, %v4270_v53  ;;  %v13039_v5 = vshrl.u32 %v11391_v14, 16  ;;  %v13040_v56 = vshll.u32 %v11391_v14, 16  ;;  %v11420_v17 = vld [vmem:[#allocation2 + $0x38] sm:$0x3] }
 0x2d9   : > { %v11406_v31 = vld [vmem:[#allocation2 + $0x2c] sm:$0x3]  ;;  %v4284_v47 = vor.u32 %v4283_v11, %v4279_v34  ;;  %v4318_v42 = vrot.slane %v13035_v48, 4  ;;  %v4321_v44 = vrot.slane %v13036_v33, 5  ;;  %v13043_v4 = vshll.u32 %v11384_v40, 16 }
 0x2da   : > { %v11413_v13 = vld [vmem:[#allocation2 + $0x28] sm:$0xf]  ;;  %v4275_v57 = vrot.slane %v4274_v8, 4  ;;  %v4294_v53 = vrot.slane %v13039_v5, 4  ;;  %v4297_v23 = vrot.slane %v13040_v56, 5  ;;  %v13044_v20 = vshll.u32 %v11406_v31, 16 }
 0x2db   : > { %v4285_v11 = vrot.slane %v4284_v47, 4  ;;  %v13047_v48 = vshll.u32 %v11413_v13, 16  ;;  %v13048_v33 = vshrl.u32 %v11413_v13, 16  ;;  %v4322_v24 = vor.u32 %v4321_v44, %v4318_v42 }
 0x2dc   : > { %v4280_v1 = vsel %vm7960_vm11, %v4275_v57, %v4279_v34  ;;  %v4298_v8 = vor.u32 %v4297_v23, %v4294_v53  ;;  %v4313_v5 = vrot.slane %v13044_v20, 5  ;;  %v4327_v56 = vrot.slane %v13043_v4, 5 }
 0x2dd   : > { %v4290_v19 = vsel %vm7960_vm11, %v4285_v11, %v4289_v39  ;;  %v4303_v47 = vrot.slane %v13047_v48, 5  ;;  %v4307_v52 = vrot.slane %v13048_v33, 4  ;;  %v4323_v42 = vrot.slane %v4322_v24, 4 }
 0x2de   : > { %v4299_v44 = vrot.slane %v4298_v8, 4  ;;  %v13045_v34 = vshrl.u32 %v11384_v40, 16  ;;  %v13046_v57 = vshll.u32 %v11420_v17, 16  ;;  %v11439_v53 = vmax.bf16 %v4232_v36, %v11265_v27 }
 0x2df   : > { %v4308_v23 = vor.u32 %v4307_v52, %v4303_v47  ;;  %v4328_v4 = vsel %vm7960_vm11, %v4323_v42, %v4327_v56  ;;  %v11444_v39 = vmax.bf16 %v4242_v7, %v11270_v28  ;;  %v11447_v11 = vmax.bf16 %v4256_v45, %v11307_v59 }
 0x2e0   : > { %v4304_v24 = vsel %vm7960_vm11, %v4299_v44, %v4303_v47  ;;  %v4331_v8 = vrot.slane %v13045_v34, 4  ;;  %v4337_v36 = vrot.slane %v13046_v57, 5  ;;  %v11456_v52 = vmax.bf16 %v4266_v22, %v11313_v58 }
 0x2e1   : > { %v4309_v20 = vrot.slane %v4308_v23, 4  ;;  %v11459_v42 = vmax.bf16 %v4280_v1, %v11336_v41  ;;  %v11462_v7 = vmax.bf16 %v4290_v19, %v11340_v10  ;;  %v11465_v45 = vmax.bf16 %v4304_v24, %v11391_v14 }
 0x2e2   : > { %v4332_v47 = vor.u32 %v4331_v8, %v4327_v56  ;;  %v11468_v44 = vmax.bf16 %v4328_v4, %v11364_v60  ;;  %v7308_v34 = vrot.slane %v11265_v27, 9  ;;  %v4841_v57 = vrot.slane %v11270_v28, 5 }
 0x2e3   : > { %v4314_v22 = vsel %vm7960_vm11, %v4309_v20, %v4313_v5  ;;  %v4844_v1 = vrot.slane %v11275_v32, 5  ;;  %v7309_v23 = vrot.slane %v11307_v59, 9  ;;  %v4848_v19 = vrot.slane %v11313_v58, 5 }
 0x2e4   : > { %v4333_v48 = vrot.slane %v4332_v47, 4  ;;  %v11478_v24 = vmax.bf16 %v4314_v22, %v11413_v13  ;;  %v11482_v4 = vsel %vm8089_vm14, %v7308_v34, %v4841_v57  ;;  %v4843_v8 = vrot.slane %v4841_v57, 4 }
 0x2e5   : > { %v11486_v33 = vsel %vm8089_vm14, %v7309_v23, %v4848_v19  ;;  %v4850_v5 = vrot.slane %v4848_v19, 4  ;;  %v4851_v20 = vrot.slane %v11329_v30, 5  ;;  %v7310_v50 = vrot.slane %v11336_v41, 9 }
 0x2e6   : > { %v4338_v47 = vsel %vm7960_vm11, %v4333_v48, %v4337_v36  ;;  %v11494_v22 = vsel %vm8089_vm14, %v4843_v8, %v4844_v1  ;;  %v4855_v34 = vrot.slane %v11340_v10, 5  ;;  %v4858_v57 = vrot.slane %v11354_v21, 5 }
 0x2e7   : > { %v11499_v9 = vmax.bf16 %v4338_v47, %v11384_v40  ;;  %v11503_v23 = vsel %vm8089_vm14, %v4850_v5, %v4851_v20  ;;  %v7311_v19 = vrot.slane %v11391_v14, 9  ;;  %v4862_v38 = vrot.slane %v11413_v13, 5 }
 0x2e8   : > { %v11509_v48 = vsel %vm8089_vm14, %v7310_v50, %v4855_v34  ;;  %v4857_v36 = vrot.slane %v4855_v34, 4  ;;  %v4865_v1 = vrot.slane %v11406_v31, 5  ;;  %v7312_v8 = vrot.slane %v11364_v60, 9 }
 0x2e9   : > { %v11515_v47 = vsel %vm8089_vm14, %v7311_v19, %v4862_v38  ;;  %v4864_v35 = vrot.slane %v4862_v38, 4  ;;  %v4869_v5 = vrot.slane %v11384_v40, 5  ;;  %v4872_v20 = vrot.slane %v11420_v17, 5 }
 0x2ea   : > { %v11521_v16 = vsel %vm8089_vm14, %v4857_v36, %v4858_v57  ;;  %v5060_v36 = vrot.slane %v4223_v26, 6  ;;  %v5063_v43 = vrot.slane %v4233_v29, 5  ;;  %v13463_v26 = vshll.u32 %v11307_v59, 16 }
 0x2eb   : > { %v11531_v38 = vsel %vm8089_vm14, %v4864_v35, %v4865_v1  ;;  %v11535_v19 = vsel %vm8089_vm14, %v7312_v8, %v4869_v5  ;;  %v4871_v61 = vrot.slane %v4869_v5, 4  ;;  %v5059_v5 = vrot.slane %v4220_v37, 5 }
 0x2ec   : > { %v13460_v35 = vshll.u32 %v11270_v28, 16  ;;  %v13461_v8 = vshll.u32 %v11275_v32, 16  ;;  %v13462_v37 = vshrl.u32 %v11307_v59, 16  ;;  %v5075_v0 = vrot.slane %v13463_v26, 6 }
 0x2ed   : > { %v11549_v1 = vsel %vm8089_vm14, %v4871_v61, %v4872_v20  ;;  %v5068_v61 = vshrl.u32 %v11275_v32, 16  ;;  %v5061_v20 = vor.u32 %v5060_v36, %v5059_v5  ;;  %v13464_v25 = vshrl.u32 %v11313_v58, 16 }
 0x2ee   : > { %v5064_v57 = vrot.slane %v13460_v35, 6  ;;  %v5071_v50 = vrot.slane %v13461_v8, 6  ;;  %v5074_v51 = vrot.slane %v13462_v37, 5  ;;  %v13465_v49 = vshll.u32 %v11313_v58, 16 }
 0x2ef   : > { %v5070_v34 = vrot.slane %v5068_v61, 5  ;;  %v5078_v29 = vrot.slane %v13464_v25, 5  ;;  %v5062_v55 = vrot.slane %v5061_v20, 4  ;;  %v5083_v36 = vshrl.u32 %v11329_v30, 16 }
 0x2f0   : > { %v5065_v2 = vor.u32 %v5064_v57, %v5063_v43  ;;  %v5079_v35 = vrot.slane %v13465_v49, 6  ;;  %v5076_v12 = vor.u32 %v5075_v0, %v5074_v51  ;;  %v13466_v8 = vshll.u32 %v11329_v30, 16 }
 0x2f1   : > { %v5072_v37 = vor.u32 %v5071_v50, %v5070_v34  ;;  %v13467_v26 = vshrl.u32 %v11336_v41, 16  ;;  %v5085_v61 = vrot.slane %v5083_v36, 5  ;;  %v13468_v49 = vshll.u32 %v11336_v41, 16 }
 0x2f2   : > { %v5086_v5 = vrot.slane %v13466_v8, 6  ;;  %v5067_v18 = vrot.slane %v5065_v2, 4  ;;  %v5080_v62 = vor.u32 %v5079_v35, %v5078_v29  ;;  %v5066_v57 = vsel %vm8198_vm3, %v5062_v55, %v5065_v2 }
 0x2f3   : > { %v5089_v43 = vrot.slane %v13467_v26, 5  ;;  %v5077_v25 = vrot.slane %v5076_v12, 4  ;;  %v5090_v20 = vrot.slane %v13468_v49, 6  ;;  %v13469_v8 = vshrl.u32 %v11340_v10, 16 }
 0x2f4   : > { %v5073_v51 = vsel %vm8198_vm3, %v5067_v18, %v5072_v37  ;;  %v5082_v0 = vrot.slane %v5080_v62, 4  ;;  %v13470_v50 = vshll.u32 %v11340_v10, 16  ;;  %v5087_v35 = vor.u32 %v5086_v5, %v5085_v61 }
 0x2f5   : > { %v5093_v63 = vrot.slane %v13469_v8, 5  ;;  %v5081_v29 = vsel %vm8198_vm3, %v5077_v25, %v5080_v62  ;;  %v5091_v55 = vor.u32 %v5090_v20, %v5089_v43  ;;  %v5098_v12 = vshrl.u32 %v11354_v21, 16 }
 0x2f6   : > { %v5094_v34 = vrot.slane %v13470_v50, 6  ;;  %v13471_v36 = vshll.u32 %v11354_v21, 16  ;;  %v13472_v18 = vshrl.u32 %v11391_v14, 16  ;;  %v13473_v49 = vshll.u32 %v11391_v14, 16 }
 0x2f7   : > { %v5088_v50 = vsel %vm8198_vm3, %v5082_v0, %v5087_v35  ;;  %v5092_v6 = vrot.slane %v5091_v55, 4  ;;  %v5100_v54 = vrot.slane %v5098_v12, 5  ;;  %v13474_v62 = vshrl.u32 %v11413_v13, 16 }
 0x2f8   : > { %v5095_v2 = vor.u32 %v5094_v34, %v5093_v63  ;;  %v5101_v26 = vrot.slane %v13471_v36, 6  ;;  %v5104_v37 = vrot.slane %v13472_v18, 5  ;;  %v5105_v8 = vrot.slane %v13473_v49, 6 }
 0x2f9   : > { %v5108_v5 = vrot.slane %v13474_v62, 5  ;;  %v13475_v63 = vshll.u32 %v11413_v13, 16  ;;  %v5113_v20 = vshrl.u32 %v11406_v31, 16  ;;  %v13476_v18 = vshll.u32 %v11406_v31, 16 }
 0x2fa   : > { %v5097_v43 = vrot.slane %v5095_v2, 4  ;;  %v5106_v25 = vor.u32 %v5105_v8, %v5104_v37  ;;  %v5096_v34 = vsel %vm8198_vm3, %v5092_v6, %v5095_v2  ;;  %v5102_v36 = vor.u32 %v5101_v26, %v5100_v54 }
 0x2fb   : > { %v5109_v61 = vrot.slane %v13475_v63, 6  ;;  %v5116_v49 = vrot.slane %v13476_v18, 6  ;;  %v13477_v0 = vshrl.u32 %v11364_v60, 16  ;;  %v5115_v62 = vrot.slane %v5113_v20, 5 }
 0x2fc   : > { %v5107_v55 = vrot.slane %v5106_v25, 4  ;;  %v13478_v37 = vshll.u32 %v11364_v60, 16  ;;  %v5103_v63 = vsel %vm8198_vm3, %v5097_v43, %v5102_v36  ;;  %v13479_v3 = vshrl.u32 %v11384_v40, 16 }
 0x2fd   : > { %v5119_v35 = vrot.slane %v13477_v0, 5  ;;  %v5110_v12 = vor.u32 %v5109_v61, %v5108_v5  ;;  %v13480_v6 = vshll.u32 %v11384_v40, 16  ;;  %v5128_v2 = vshrl.u32 %v11420_v17, 16 }
 0x2fe   : > { %v5120_v8 = vrot.slane %v13478_v37, 6  ;;  %v5123_v56 = vrot.slane %v13479_v3, 5  ;;  %v5117_v5 = vor.u32 %v5116_v49, %v5115_v62  ;;  %v13481_v0 = vshll.u32 %v11420_v17, 16 }
 0x2ff   : > { %v5124_v54 = vrot.slane %v13480_v6, 6  ;;  %v5111_v26 = vsel %vm8198_vm3, %v5107_v55, %v5110_v12  ;;  %v5112_v25 = vrot.slane %v5110_v12, 4  ;;  %v5130_v18 = vrot.slane %v5128_v2, 5  ;;  %v13492_v2 = vld [vmem:[#allocation72_spill] sm:$0xff] }
 0x300   : > { %v5121_v61 = vor.u32 %v5120_v8, %v5119_v35  ;;  %v5131_v37 = vrot.slane %v13481_v0, 6  ;;  %v13482_v43 = vmax.bf16 %v11482_v4, %v11439_v53  ;;  %v13483_v40 = vmax.bf16 %v11494_v22, %v11444_v39  ;;  %v11693_v0 = vld [vmem:[#allocation2 + $0x3c] sm:$0xf] }
 0x301   : > { %v5125_v20 = vor.u32 %v5124_v54, %v5123_v56  ;;  %v5118_v36 = vsel %vm8198_vm3, %v5112_v25, %v5117_v5  ;;  %v13484_v49 = vmax.bf16 %v11486_v33, %v11447_v11  ;;  %v13485_v62 = vmax.bf16 %v11503_v23, %v11456_v52 }
 0x302   : > { %v5399_v3 = vmax.bf16 %v5066_v57, %v13482_v43  ;;  %v5122_v6 = vrot.slane %v5121_v61, 4  ;;  %v5400_v55 = vmax.bf16 %v5073_v51, %v13483_v40  ;;  %v5132_v12 = vor.u32 %v5131_v37, %v5130_v18 }
 0x303   : > { %v5401_v56 = vmax.bf16 %v5081_v29, %v13484_v49  ;;  %v5127_v35 = vrot.slane %v5125_v20, 4  ;;  %v5402_v8 = vmax.bf16 %v5088_v50, %v13485_v62  ;;  %v13486_v53 = vmax.bf16 %v11509_v48, %v11459_v42 }
 0x304   : > { %v5126_v57 = vsel %vm8198_vm3, %v5122_v6, %v5125_v20  ;;  %v13487_v40 = vmax.bf16 %v11521_v16, %v11462_v7  ;;  %v13488_v33 = vmax.bf16 %v11515_v47, %v11465_v45  ;;  %v13489_v22 = vmax.bf16 %v11531_v38, %v11478_v24 }
 0x305   : > { %v5403_v4 = vmax.bf16 %v5096_v34, %v13486_v53  ;;  %v5133_v23 = vsel %vm8198_vm3, %v5127_v35, %v5132_v12  ;;  %v13490_v42 = vmax.bf16 %v11535_v19, %v11468_v44  ;;  %v7328_v51 = vrot.slane %v11265_v27, 10 }
 0x306   : > { %v5404_v39 = vmax.bf16 %v5103_v63, %v13487_v40  ;;  %v5405_v11 = vmax.bf16 %v5111_v26, %v13488_v33  ;;  %v5406_v52 = vmax.bf16 %v5118_v36, %v13489_v22  ;;  %v5441_v16 = vrot.slane %v11270_v28, 6 }
 0x307   : > { %v5407_v48 = vmax.bf16 %v5126_v57, %v13490_v42  ;;  %v13491_v7 = vmax.bf16 %v11549_v1, %v11499_v9  ;;  %v5444_v47 = vrot.slane %v11275_v32, 6  ;;  %v7329_v24 = vrot.slane %v11307_v59, 10  ;;  %v11716_v57 = vld [vmem:[#allocation2 + $0x44] sm:$0x3] }
 0x308   : > { %v5448_v38 = vrot.slane %v11313_v58, 6  ;;  %v5442_v29 = vsel %vm8286_vm8, %v7328_v51, %v5441_v16  ;;  %v5443_v50 = vrot.slane %v5441_v16, 4  ;;  %v5451_v44 = vrot.slane %v11329_v30, 6 }
 0x309   : > { %v5408_v45 = vmax.bf16 %v5133_v23, %v13491_v7  ;;  %v7330_v27 = vrot.slane %v11336_v41, 10  ;;  %v5455_v9 = vrot.slane %v11340_v10, 6  ;;  %v5458_v32 = vrot.slane %v11354_v21, 6 }
 0x30a   : > { %v5449_v28 = vsel %vm8286_vm8, %v7329_v24, %v5448_v38  ;;  %v5450_v19 = vrot.slane %v5448_v38, 4  ;;  %v5445_v59 = vsel %vm8286_vm8, %v5443_v50, %v5444_v47  ;;  %v7331_v58 = vrot.slane %v11391_v14, 10 }
 0x30b   : > { %v5462_v1 = vrot.slane %v11413_v13, 6  ;;  %v5465_v34 = vrot.slane %v11406_v31, 6  ;;  %v5456_v41 = vsel %vm8286_vm8, %v7330_v27, %v5455_v9  ;;  %v5457_v63 = vrot.slane %v5455_v9, 4 }
 0x30c   : > { %v5452_v30 = vsel %vm8286_vm8, %v5450_v19, %v5451_v44  ;;  %v7332_v10 = vrot.slane %v11364_v60, 10  ;;  %v5469_v26 = vrot.slane %v13492_v2, 6  ;;  %v5472_v14 = vrot.slane %v11420_v17, 6 }
 0x30d   : > { %v5463_v21 = vsel %vm8286_vm8, %v7331_v58, %v5462_v1  ;;  %v5464_v54 = vrot.slane %v5462_v1, 4  ;;  %v5459_v13 = vsel %vm8286_vm8, %v5457_v63, %v5458_v32  ;;  %v5619_v31 = vmax.bf16 %v5442_v29, %v5399_v3  ;;  %v11703_v3 = vld [vmem:[#allocation2 + $0x40] sm:$0xf] }
 0x30e   : > { %v5620_v25 = vmax.bf16 %v5445_v59, %v5400_v55  ;;  %v5621_v5 = vmax.bf16 %v5449_v28, %v5401_v56  ;;  %v5470_v60 = vsel %vm8286_vm8, %v7332_v10, %v5469_v26  ;;  %v5471_v20 = vrot.slane %v5469_v26, 4 }
 0x30f   : > { %v5466_v61 = vsel %vm8286_vm8, %v5464_v54, %v5465_v34  ;;  %v5622_v18 = vmax.bf16 %v5452_v30, %v5402_v8  ;;  %v11695_v37 = vmax.bf16 %v5456_v41, %v5403_v4  ;;  %v11697_v43 = vmax.bf16 %v5459_v13, %v5404_v39 }
 0x310   : > { %v11699_v17 = vmax.bf16 %v5463_v21, %v5405_v11  ;;  %v11701_v36 = vmax.bf16 %v5466_v61, %v5406_v52  ;;  %v5473_v6 = vsel %vm8286_vm8, %v5471_v20, %v5472_v14  ;;  %v11707_v55 = vmax.bf16 %v5470_v60, %v5407_v48 }
 0x311   : > { %v5659_v49 = vmax.bf16 %v5621_v5, %v5619_v31  ;;  %v5660_v56 = vmax.bf16 %v5622_v18, %v5620_v25  ;;  %v11709_v35 = vmax.bf16 %v5473_v6, %v5408_v45  ;;  %v5661_v12 = vmax.bf16 %v11695_v37, %v5621_v5 }
 0x312   : > { %v5662_v62 = vmax.bf16 %v11697_v43, %v5622_v18  ;;  %v4340_v8 = vshrl.u32 %v11693_v0, 16  ;;  %v4343_v40 = vshll.u32 %v11693_v0, 16  ;;  %v4349_v39 = vshll.u32 %v11703_v3, 16  ;;  %v11749_v18 = vld [vmem:[#allocation2 + $0x48] sm:$0xf] }
 0x313   : > { %v5691_v53 = vmax.bf16 %v5659_v49, %v11695_v37  ;;  %v5692_v4 = vmax.bf16 %v5660_v56, %v11697_v43  ;;  %v11721_v33 = vmax.bf16 %v5661_v12, %v11699_v17  ;;  %v4353_v52 = vshrl.u32 %v11703_v3, 16 }
 0x314   : > { %v11724_v11 = vmax.bf16 %v5662_v62, %v11701_v36  ;;  %v4342_v22 = vrot.slane %v4340_v8, 4  ;;  %v4345_v48 = vrot.slane %v4343_v40, 5  ;;  %v4351_v51 = vrot.slane %v4349_v39, 5  ;;  %v11754_v62 = vld [vmem:[#allocation2 + $0x4c] sm:$0xf] }
 0x315   : > { %v5723_v23 = vmax.bf16 %v5691_v53, %v11699_v17  ;;  %v5724_v42 = vmax.bf16 %v5692_v4, %v11701_v36  ;;  %v4355_v16 = vrot.slane %v4353_v52, 4  ;;  %v4359_v7 = vshll.u32 %v11716_v57, 16 }
 0x316   : > { %v7313_v45 = vrot.slane %v11693_v0, 9  ;;  %v4876_v47 = vrot.slane %v11703_v3, 5  ;;  %v4346_v29 = vor.u32 %v4345_v48, %v4342_v22  ;;  %v4879_v50 = vrot.slane %v11716_v57, 5  ;;  %v11762_v22 = vld [vmem:[#allocation2 + $0x50] sm:$0x3] }
 0x317   : > { %v5755_v24 = vmax.bf16 %v5723_v23, %v11707_v55  ;;  %v5756_v38 = vmax.bf16 %v5724_v42, %v11709_v35  ;;  %v4356_v44 = vor.u32 %v4355_v16, %v4351_v51  ;;  %v4361_v27 = vrot.slane %v4359_v7, 5 }
 0x318   : > { %v4877_v19 = vsel %vm8089_vm14, %v7313_v45, %v4876_v47  ;;  %v4878_v9 = vrot.slane %v4876_v47, 4  ;;  %v4347_v59 = vrot.slane %v4346_v29, 4  ;;  %v5134_v58 = vrot.slane %v4340_v8, 5 }
 0x319   : > { %v7447_v32 = vcombine.low %v5755_v24, %v5756_v38  ;;  %v5135_v1 = vrot.slane %v4343_v40, 6  ;;  %v4357_v34 = vrot.slane %v4356_v44, 4  ;;  %v5138_v41 = vrot.slane %v4353_v52, 5 }
 0x31a   : > { %v4880_v30 = vsel %vm8089_vm14, %v4878_v9, %v4879_v50  ;;  %v5139_v63 = vrot.slane %v4349_v39, 6  ;;  %v4352_v21 = vsel %vm7960_vm11, %v4347_v59, %v4351_v51  ;;  %v5143_v2 = vshrl.u32 %v11716_v57, 16 }
 0x31b   : > { %7656 = vmatprep.mubr.msk.bf16.mxu1 %vm5838_vm7, %v7447_v32  ;;  %v5136_v54 = vor.u32 %v5135_v1, %v5134_v58  ;;  %v5146_v26 = vrot.slane %v4359_v7, 6  ;;  %v4362_v14 = vsel %vm7960_vm11, %v4357_v34, %v4361_v27  ;;  %v4749_v13 = vmax.bf16 %v4352_v21, %v11693_v0 }
 0x31c   : > { %v5140_v31 = vor.u32 %v5139_v63, %v5138_v41  ;;  %v7333_v25 = vrot.slane %v11693_v0, 10  ;;  %v4750_v5 = vmax.bf16 %v4362_v14, %v11703_v3  ;;  %v5145_v60 = vrot.slane %v5143_v2, 5 }
 0x31d   : > { %v5137_v61 = vrot.slane %v5136_v54, 4  ;;  %v5476_v20 = vrot.slane %v11703_v3, 6  ;;  %v5029_v6 = vmax.bf16 %v4877_v19, %v4749_v13  ;;  %v5479_v56 = vrot.slane %v11716_v57, 6 }
 0x31e   : > { %v5142_v49 = vrot.slane %v5140_v31, 4  ;;  %v5725_v12 = vmax.bf16 %v11721_v33, %v11707_v55  ;;  %v5030_v8 = vmax.bf16 %v4880_v30, %v4750_v5  ;;  %v5147_v53 = vor.u32 %v5146_v26, %v5145_v60 }
 0x31f   : > { %v5141_v0 = vsel %vm8198_vm3, %v5137_v61, %v5140_v31  ;;  %v5477_v4 = vsel %vm8286_vm8, %v7333_v25, %v5476_v20  ;;  %v5478_v40 = vrot.slane %v5476_v20, 4  ;;  %v5726_v39 = vmax.bf16 %v11724_v11, %v11709_v35 }
 0x320   : > { %v5409_v3 = vmax.bf16 %v5141_v0, %v5029_v6  ;;  %v4364_v57 = vshrl.u32 %v11749_v18, 16  ;;  %v5148_v33 = vsel %vm8198_vm3, %v5142_v49, %v5147_v53  ;;  %v4367_v52 = vshll.u32 %v11749_v18, 16  ;;  %v11797_v0 = vld [vmem:[#allocation2 + $0x54] sm:$0xf] }
 0x321   : > { %v4373_v23 = vshll.u32 %v11754_v62, 16  ;;  %v4377_v42 = vshrl.u32 %v11754_v62, 16  ;;  %v5410_v48 = vmax.bf16 %v5148_v33, %v5030_v8  ;;  %v5480_v51 = vsel %vm8286_vm8, %v5478_v40, %v5479_v56 }
 0x322   : > { %v11772_v16 = vmax.bf16 %v5477_v4, %v5409_v3  ;;  %v4366_v11 = vrot.slane %v4364_v57, 4  ;;  %v4369_v7 = vrot.slane %v4367_v52, 5  ;;  %v4383_v24 = vshll.u32 %v11762_v22, 16 }
 0x323   : > { %v4375_v45 = vrot.slane %v4373_v23, 5  ;;  %v4379_v47 = vrot.slane %v4377_v42, 4  ;;  %v11775_v38 = vmax.bf16 %v5480_v51, %v5410_v48  ;;  %v7314_v50 = vrot.slane %v11749_v18, 9 }
 0x324   : > { %v5757_v29 = vmax.bf16 %v5725_v12, %v11772_v16  ;;  %v4883_v44 = vrot.slane %v11754_v62, 5  ;;  %v4370_v27 = vor.u32 %v4369_v7, %v4366_v11  ;;  %v4385_v9 = vrot.slane %v4383_v24, 5  ;;  %v4182_v7 = vld [vmem:[#allocation2 + $0x5c] sm:$0x3] }
 0x325   : > { %v4380_v19 = vor.u32 %v4379_v47, %v4375_v45  ;;  %v4886_v32 = vrot.slane %v11762_v22, 5  ;;  %v5758_v59 = vmax.bf16 %v5726_v39, %v11775_v38  ;;  %v5149_v34 = vrot.slane %v4364_v57, 5 }
 0x326   : > { %v4884_v58 = vsel %vm8089_vm14, %v7314_v50, %v4883_v44  ;;  %v4885_v1 = vrot.slane %v4883_v44, 4  ;;  %v4371_v30 = vrot.slane %v4370_v27, 4  ;;  %v5150_v63 = vrot.slane %v4367_v52, 6  ;;  %v4181_v52 = vld [vmem:[#allocation2 + $0x58] sm:$0xf] }
 0x327   : > { %v4381_v41 = vrot.slane %v4380_v19, 4  ;;  %v5153_v21 = vrot.slane %v4377_v42, 5  ;;  %v7448_v54 = vcombine.low %v5757_v29, %v5758_v59  ;;  %v5154_v26 = vrot.slane %v4373_v23, 6 }
 0x328   : > { %v4887_v2 = vsel %vm8089_vm14, %v4885_v1, %v4886_v32  ;;  %v5158_v14 = vshrl.u32 %v11762_v22, 16  ;;  %v4376_v13 = vsel %vm7960_vm11, %v4371_v30, %v4375_v45  ;;  %v5151_v25 = vor.u32 %v5150_v63, %v5149_v34 }
 0x329   : > { %v4386_v31 = vsel %vm7960_vm11, %v4381_v41, %v4385_v9  ;;  %v5161_v5 = vrot.slane %v4383_v24, 6  ;;  %7657 = vmatmul.mubr.msk.bf16.vlgmr.msra.gmra.mxu1 %vm5838_vm7, %v7448_v54  ;;  %v4751_v61 = vmax.bf16 %v4376_v13, %v11749_v18  ;;  %v5155_v20 = vor.u32 %v5154_v26, %v5153_v21 }
 0x32a   : > { %v4752_v60 = vmax.bf16 %v4386_v31, %v11754_v62  ;;  %v5160_v6 = vrot.slane %v5158_v14, 5  ;;  %v5152_v49 = vrot.slane %v5151_v25, 4  ;;  %v7334_v56 = vrot.slane %v11749_v18, 10 }
 0x32b   : > { %v5483_v12 = vrot.slane %v11754_v62, 6  ;;  %v5486_v8 = vrot.slane %v11762_v22, 6  ;;  %v5031_v53 = vmax.bf16 %v4884_v58, %v4751_v61  ;;  %v5157_v3 = vrot.slane %v5155_v20, 4 }
 0x32c   : > { %v5032_v4 = vmax.bf16 %v4887_v2, %v4752_v60  ;;  %v5162_v40 = vor.u32 %v5161_v5, %v5160_v6  ;;  %v5156_v39 = vsel %vm8198_vm3, %v5152_v49, %v5155_v20  ;;  %v5663_v18 = vmax.bf16 %v11699_v17, %v11695_v37 }
 0x32d   : > { %v5484_v57 = vsel %vm8286_vm8, %v7334_v56, %v5483_v12  ;;  %v5485_v33 = vrot.slane %v5483_v12, 4  ;;  %v5411_v22 = vmax.bf16 %v5156_v39, %v5031_v53  ;;  %v5664_v23 = vmax.bf16 %v11701_v36, %v11697_v43 }
 0x32e   : > { %v5163_v62 = vsel %vm8198_vm3, %v5157_v3, %v5162_v40  ;;  %v4388_v42 = vshrl.u32 %v11797_v0, 16  ;;  %v5695_v11 = vmax.bf16 %v5663_v18, %v11707_v55  ;;  %v4391_v45 = vshll.u32 %v11797_v0, 16 }
 0x32f   : > { %v5412_v48 = vmax.bf16 %v5163_v62, %v5032_v4  ;;  %v5487_v51 = vsel %vm8286_vm8, %v5485_v33, %v5486_v8  ;;  %v11814_v37 = vmax.bf16 %v5484_v57, %v5411_v22  ;;  %v5696_v47 = vmax.bf16 %v5664_v23, %v11709_v35 }
 0x330   : > { %v4390_v24 = vrot.slane %v4388_v42, 4  ;;  %v4397_v29 = vshll.u32 %v4181_v52, 16  ;;  %v5727_v43 = vmax.bf16 %v5695_v11, %v11772_v16  ;;  %v4393_v44 = vrot.slane %v4391_v45, 5 }
 0x331   : > { %v11817_v50 = vmax.bf16 %v5487_v51, %v5412_v48  ;;  %v4401_v27 = vshrl.u32 %v4181_v52, 16  ;;  %v5728_v19 = vmax.bf16 %v5696_v47, %v11775_v38  ;;  %v4407_v32 = vshll.u32 %v4182_v7, 16  ;;  %v11845_v47 = vld [vmem:[#allocation2 + $0x64] sm:$0xf] }
 0x332   : > { %v4399_v9 = vrot.slane %v4397_v29, 5  ;;  %v7315_v59 = vrot.slane %v11797_v0, 9  ;;  %v5759_v58 = vmax.bf16 %v5727_v43, %v11814_v37  ;;  %v4394_v1 = vor.u32 %v4393_v44, %v4390_v24  ;;  %v13495_v43 = vld [vmem:[#allocation64_spill] sm:$0xff]  ;;  %v13496_v44 = vld [vmem:[#allocation11_spill] sm:$0xff] }
 0x333   : > { %v4403_v34 = vrot.slane %v4401_v27, 4  ;;  %v4890_v30 = vrot.slane %v4181_v52, 5  ;;  %v5760_v41 = vmax.bf16 %v5728_v19, %v11817_v50  ;;  %v4409_v63 = vrot.slane %v4407_v32, 5 }
 0x334   : > { %v4893_v21 = vrot.slane %v4182_v7, 5  ;;  %v5164_v54 = vrot.slane %v4388_v42, 5  ;;  %v4395_v2 = vrot.slane %v4394_v1, 4  ;;  %v5165_v25 = vrot.slane %v4391_v45, 6 }
 0x335   : > { %v4404_v26 = vor.u32 %v4403_v34, %v4399_v9  ;;  %v4891_v14 = vsel %vm8089_vm14, %v7315_v59, %v4890_v30  ;;  %v4892_v13 = vrot.slane %v4890_v30, 4  ;;  %v7449_v31 = vcombine.low %v5759_v58, %v5760_v41  ;;  %v11857_v58 = vld [vmem:[#allocation2 + $0x68] sm:$0x3] }
 0x336   : > { %v5168_v5 = vrot.slane %v4401_v27, 5  ;;  %v5169_v61 = vrot.slane %v4397_v29, 6  ;;  %v4400_v60 = vsel %vm7960_vm11, %v4395_v2, %v4399_v9  ;;  %v5173_v49 = vshrl.u32 %v4182_v7, 16 }
 0x337   : > { %v4405_v20 = vrot.slane %v4404_v26, 4  ;;  %v4894_v6 = vsel %vm8089_vm14, %v4892_v13, %v4893_v21  ;;  %7660 = vmatprep.mubr.msk.bf16.mxu1 %vm5838_vm7, %v7449_v31  ;;  %v4753_v56 = vmax.bf16 %v4400_v60, %v11797_v0  ;;  %v5166_v12 = vor.u32 %v5165_v25, %v5164_v54 }
 0x338   : > { %v5170_v8 = vor.u32 %v5169_v61, %v5168_v5  ;;  %v5176_v53 = vrot.slane %v4407_v32, 6  ;;  %v5175_v3 = vrot.slane %v5173_v49, 5  ;;  %v7335_v40 = vrot.slane %v11797_v0, 10  ;;  %v13498_v32 = vld [vmem:[#allocation63_spill] sm:$0xff] }
 0x339   : > { %v4410_v4 = vsel %vm7960_vm11, %v4405_v20, %v4409_v63  ;;  %v5490_v39 = vrot.slane %v4181_v52, 6  ;;  %v5033_v33 = vmax.bf16 %v4891_v14, %v4753_v56  ;;  %v5167_v18 = vrot.slane %v5166_v12, 4 }
 0x33a   : > { %v4754_v57 = vmax.bf16 %v4410_v4, %v4181_v52  ;;  %v5172_v62 = vrot.slane %v5170_v8, 4  ;;  %v5177_v22 = vor.u32 %v5176_v53, %v5175_v3  ;;  %v5493_v48 = vrot.slane %v4182_v7, 6  ;;  %v11843_v52 = vld [vmem:[#allocation2 + $0x60] sm:$0xf] }
 0x33b   : > { %v5491_v23 = vsel %vm8286_vm8, %v7335_v40, %v5490_v39  ;;  %v5492_v42 = vrot.slane %v5490_v39, 4  ;;  %v5171_v11 = vsel %vm8198_vm3, %v5167_v18, %v5170_v8  ;;  %v5665_v45 = vmax.bf16 %v11707_v55, %v11699_v17 }
 0x33c   : > { %v5034_v51 = vmax.bf16 %v4894_v6, %v4754_v57  ;;  %v5666_v0 = vmax.bf16 %v11709_v35, %v11701_v36  ;;  %v5178_v24 = vsel %vm8198_vm3, %v5172_v62, %v5177_v22  ;;  %v5413_v29 = vmax.bf16 %v5171_v11, %v5033_v33  ;;  %v13497_v36 = vld [vmem:[#allocation9_spill] sm:$0xff] }
 0x33d   : > { %v5494_v7 = vsel %vm8286_vm8, %v5492_v42, %v5493_v48  ;;  %v7418_v27 = vcombine.low %v13496_v44, %v13495_v43  ;;  %v5697_v17 = vmax.bf16 %v5665_v45, %v11772_v16  ;;  %v7419_v59 = vcombine.low %v13498_v32, %v13497_v36 }
 0x33e   : > { %v5414_v19 = vmax.bf16 %v5178_v24, %v5034_v51  ;;  %v5698_v9 = vmax.bf16 %v5666_v0, %v11775_v38  ;;  %v11859_v1 = vmax.bf16 %v5491_v23, %v5413_v29  ;;  %v4412_v34 = vshrl.u32 %v11843_v52, 16 }
 0x33f   : > { %7630 = vmatprep.mubr.msk.bf16.mxu0 %vm5838_vm7, %v7418_v27  ;;  %v4415_v30 = vshll.u32 %v11843_v52, 16  ;;  %v4421_v41 = vshll.u32 %v11845_v47, 16  ;;  %v5729_v21 = vmax.bf16 %v5697_v17, %v11814_v37  ;;  %v4425_v2 = vshrl.u32 %v11845_v47, 16  ;;  %v11892_v27 = vld [vmem:[#allocation2 + $0x6c] sm:$0xf] }
 0x340   : > { %v11865_v63 = vmax.bf16 %v5494_v7, %v5414_v19  ;;  %v5730_v54 = vmax.bf16 %v5698_v9, %v11817_v50  ;;  %7631 = vmatmul.mubr.msk.bf16.gmra.mxu0 %vm5838_vm7, %v7419_v59  ;;  %v4414_v26 = vrot.slane %v4412_v34, 4  ;;  %v4431_v31 = vshll.u32 %v11857_v58, 16 }
 0x341   : > { %v4417_v14 = vrot.slane %v4415_v30, 5  ;;  %v4423_v13 = vrot.slane %v4421_v41, 5  ;;  %v5761_v25 = vmax.bf16 %v5729_v21, %v11859_v1  ;;  %v4427_v61 = vrot.slane %v4425_v2, 4 }
 0x342   : > { %v5762_v5 = vmax.bf16 %v5730_v54, %v11865_v63  ;;  %v7316_v60 = vrot.slane %v11843_v52, 9  ;;  %v4433_v6 = vrot.slane %v4431_v31, 5  ;;  %v4897_v49 = vrot.slane %v11845_v47, 5 }
 0x343   : > { %v4418_v20 = vor.u32 %v4417_v14, %v4414_v26  ;;  %v4900_v56 = vrot.slane %v11857_v58, 5  ;;  %v4428_v8 = vor.u32 %v4427_v61, %v4423_v13  ;;  %v5179_v53 = vrot.slane %v4412_v34, 5 }
 0x344   : > { %v7450_v12 = vcombine.low %v5761_v25, %v5762_v5  ;;  %v5180_v4 = vrot.slane %v4415_v30, 6  ;;  %v4898_v40 = vsel %vm8089_vm14, %v7316_v60, %v4897_v49  ;;  %v4899_v39 = vrot.slane %v4897_v49, 4 }
 0x345   : > { %v4419_v3 = vrot.slane %v4418_v20, 4  ;;  %v5183_v57 = vrot.slane %v4425_v2, 5  ;;  %v4429_v33 = vrot.slane %v4428_v8, 4  ;;  %v5184_v62 = vrot.slane %v4421_v41, 6  ;;  %v4188_v2 = vld [vmem:[#allocation2 + $0x74] sm:$0x3] }
 0x346   : > { %7661 = vmatmul.mubr.msk.bf16.gmra.mxu1 %vm5838_vm7, %v7450_v12  ;;  %v5181_v18 = vor.u32 %v5180_v4, %v5179_v53  ;;  %v5188_v22 = vshrl.u32 %v11857_v58, 16  ;;  %v4901_v42 = vsel %vm8089_vm14, %v4899_v39, %v4900_v56  ;;  %v5191_v48 = vrot.slane %v4431_v31, 6 }
 0x347   : > { %v4424_v23 = vsel %vm7960_vm11, %v4419_v3, %v4423_v13  ;;  %v7336_v51 = vrot.slane %v11843_v52, 10  ;;  %v4434_v11 = vsel %vm7960_vm11, %v4429_v33, %v4433_v6  ;;  %v5185_v24 = vor.u32 %v5184_v62, %v5183_v57 }
 0x348   : > { %v4755_v45 = vmax.bf16 %v4424_v23, %v11843_v52  ;;  %v5182_v0 = vrot.slane %v5181_v18, 4  ;;  %v4756_v29 = vmax.bf16 %v4434_v11, %v11845_v47  ;;  %v5190_v7 = vrot.slane %v5188_v22, 5  ;;  %v4187_v52 = vld [vmem:[#allocation2 + $0x70] sm:$0xf] }
 0x349   : > { %v5497_v43 = vrot.slane %v11845_v47, 6  ;;  %v5500_v44 = vrot.slane %v11857_v58, 6  ;;  %v5187_v9 = vrot.slane %v5185_v24, 4  ;;  %v5667_v36 = vmax.bf16 %v11772_v16, %v11707_v55 }
 0x34a   : > { %v5035_v19 = vmax.bf16 %v4898_v40, %v4755_v45  ;;  %v5186_v17 = vsel %vm8198_vm3, %v5182_v0, %v5185_v24  ;;  %v5036_v32 = vmax.bf16 %v4901_v42, %v4756_v29  ;;  %v5192_v59 = vor.u32 %v5191_v48, %v5190_v7 }
 0x34b   : > { %v5498_v34 = vsel %vm8286_vm8, %v7336_v51, %v5497_v43  ;;  %v5499_v30 = vrot.slane %v5497_v43, 4  ;;  %v5668_v58 = vmax.bf16 %v11775_v38, %v11709_v35  ;;  %v5699_v41 = vmax.bf16 %v5667_v36, %v11814_v37 }
 0x34c   : > { %v5415_v47 = vmax.bf16 %v5186_v17, %v5035_v19  ;;  %v4436_v21 = vshrl.u32 %v11892_v27, 16  ;;  %v5193_v54 = vsel %vm8198_vm3, %v5187_v9, %v5192_v59  ;;  %v4439_v26 = vshll.u32 %v11892_v27, 16 }
 0x34d   : > { %v5501_v55 = vsel %vm8286_vm8, %v5499_v30, %v5500_v44  ;;  %v4445_v14 = vshll.u32 %v4187_v52, 16  ;;  %v5416_v13 = vmax.bf16 %v5193_v54, %v5036_v32  ;;  %v5700_v25 = vmax.bf16 %v5668_v58, %v11817_v50 }
 0x34e   : > { %v11909_v31 = vmax.bf16 %v5498_v34, %v5415_v47  ;;  %v5731_v35 = vmax.bf16 %v5699_v41, %v11859_v1  ;;  %v4438_v5 = vrot.slane %v4436_v21, 4  ;;  %v4441_v61 = vrot.slane %v4439_v26, 5 }
 0x34f   : > { %v4447_v60 = vrot.slane %v4445_v14, 5  ;;  %v4449_v20 = vshrl.u32 %v4187_v52, 16  ;;  %v11913_v6 = vmax.bf16 %v5501_v55, %v5416_v13  ;;  %v5732_v49 = vmax.bf16 %v5700_v25, %v11865_v63 }
 0x350   : > { %v5763_v56 = vmax.bf16 %v5731_v35, %v11909_v31  ;;  %v4455_v12 = vshll.u32 %v4188_v2, 16  ;;  %v4442_v8 = vor.u32 %v4441_v61, %v4438_v5  ;;  %v7317_v4 = vrot.slane %v11892_v27, 9  ;;  %v13500_v5 = vld [vmem:[#allocation3_spill] sm:$0xff] }
 0x351   : > { %v4451_v53 = vrot.slane %v4449_v20, 4  ;;  %v4904_v3 = vrot.slane %v4187_v52, 5  ;;  %v5764_v40 = vmax.bf16 %v5732_v49, %v11913_v6  ;;  %v4907_v57 = vrot.slane %v4188_v2, 5 }
 0x352   : > { %v4457_v39 = vrot.slane %v4455_v12, 5  ;;  %v5194_v33 = vrot.slane %v4436_v21, 5  ;;  %v4443_v18 = vrot.slane %v4442_v8, 4  ;;  %v5195_v48 = vrot.slane %v4439_v26, 6 }
 0x353   : > { %v4452_v62 = vor.u32 %v4451_v53, %v4447_v60  ;;  %v4905_v22 = vsel %vm8089_vm14, %v7317_v4, %v4904_v3  ;;  %v4906_v23 = vrot.slane %v4904_v3, 4  ;;  %v7451_v42 = vcombine.low %v5763_v56, %v5764_v40  ;;  %v13502_v56 = vld [vmem:[#allocation19_spill] sm:$0xff]  ;;  %v13503_v53 = vld [vmem:[#allocation73_spill] sm:$0xff] }
 0x354   : > { %v5198_v51 = vrot.slane %v4449_v20, 5  ;;  %v5199_v11 = vrot.slane %v4445_v14, 6  ;;  %v4448_v45 = vsel %vm7960_vm11, %v4443_v18, %v4447_v60  ;;  %v5203_v29 = vshrl.u32 %v4188_v2, 16  ;;  %v11946_v60 = vld [vmem:[#allocation2 + $0x80] sm:$0x3]  ;;  %v13505_v3 = vld [vmem:[#allocation7_spill] sm:$0xff] }
 0x355   : > { %v4453_v0 = vrot.slane %v4452_v62, 4  ;;  %v4908_v24 = vsel %vm8089_vm14, %v4906_v23, %v4907_v57  ;;  %7664 = vmatprep.mubr.msk.bf16.mxu1 %vm5838_vm7, %v7451_v42  ;;  %v4757_v7 = vmax.bf16 %v4448_v45, %v11892_v27  ;;  %v5196_v43 = vor.u32 %v5195_v48, %v5194_v33 }
 0x356   : > { %v5200_v44 = vor.u32 %v5199_v11, %v5198_v51  ;;  %v5206_v19 = vrot.slane %v4455_v12, 6  ;;  %v5205_v9 = vrot.slane %v5203_v29, 5  ;;  %v7337_v36 = vrot.slane %v11892_v27, 10 }
 0x357   : > { %v4458_v17 = vsel %vm7960_vm11, %v4453_v0, %v4457_v39  ;;  %v5504_v32 = vrot.slane %v4187_v52, 6  ;;  %v5037_v34 = vmax.bf16 %v4905_v22, %v4757_v7  ;;  %v5197_v30 = vrot.slane %v5196_v43, 4 }
 0x358   : > { %v4758_v59 = vmax.bf16 %v4458_v17, %v4187_v52  ;;  %v5202_v47 = vrot.slane %v5200_v44, 4  ;;  %v5207_v58 = vor.u32 %v5206_v19, %v5205_v9  ;;  %v5507_v54 = vrot.slane %v4188_v2, 6  ;;  %v11938_v52 = vld [vmem:[#allocation2 + $0x78] sm:$0xf]  ;;  %v13499_v2 = vld [vmem:[#allocation18_spill] sm:$0xff] }
 0x359   : > { %v5505_v41 = vsel %vm8286_vm8, %v7337_v36, %v5504_v32  ;;  %v5506_v21 = vrot.slane %v5504_v32, 4  ;;  %v5201_v26 = vsel %vm8198_vm3, %v5197_v30, %v5200_v44  ;;  %v5669_v14 = vmax.bf16 %v11814_v37, %v11772_v16 }
 0x35a   : > { %v5038_v55 = vmax.bf16 %v4908_v24, %v4758_v59  ;;  %v5670_v27 = vmax.bf16 %v11817_v50, %v11775_v38  ;;  %v5208_v13 = vsel %vm8198_vm3, %v5202_v47, %v5207_v58  ;;  %v5417_v25 = vmax.bf16 %v5201_v26, %v5037_v34  ;;  %v13501_v38 = vld [vmem:[#allocation71_spill] sm:$0xff] }
 0x35b   : > { %v5508_v35 = vsel %vm8286_vm8, %v5506_v21, %v5507_v54  ;;  %v7420_v61 = vcombine.low %v13500_v5, %v13499_v2  ;;  %v5701_v16 = vmax.bf16 %v5669_v14, %v11859_v1  ;;  %v7421_v12 = vcombine.low %v13502_v56, %v13501_v38  ;;  %v13508_v54 = vld [vmem:[#allocation33_spill] sm:$0xff] }
 0x35c   : > { %v5418_v20 = vmax.bf16 %v5208_v13, %v5038_v55  ;;  %v5702_v49 = vmax.bf16 %v5670_v27, %v11865_v63  ;;  %v11952_v8 = vmax.bf16 %v5505_v41, %v5417_v25  ;;  %v13504_v4 = vrot.slane %v13503_v53, 7  ;;  %v13507_v41 = vld [vmem:[#allocation31_spill] sm:$0xff] }
 0x35d   : > { %7634 = vmatprep.mubr.msk.bf16.mxu0 %vm5838_vm7, %v7420_v61  ;;  %v4460_v57 = vshrl.u32 %v11938_v52, 16  ;;  %v4463_v33 = vshll.u32 %v11938_v52, 16  ;;  %v5733_v62 = vmax.bf16 %v5701_v16, %v11909_v31  ;;  %v4479_v23 = vshll.u32 %v11946_v60, 16 }
 0x35e   : > { %v4026_v39 = vsel %vm7892_vm10, %v13505_v3, %v13504_v4  ;;  %v11962_v18 = vmax.bf16 %v5508_v35, %v5418_v20  ;;  %v5734_v22 = vmax.bf16 %v5702_v49, %v11913_v6  ;;  %7635 = vmatmul.mubr.msk.bf16.gmra.mxu0 %vm5838_vm7, %v7421_v12  ;;  %v7318_v51 = vrot.slane %v11938_v52, 9 }
 0x35f   : > { %4136 = vst.msk [vmem:[#allocation2 + $0x7c] sm:$0xf] %vm173_vm1, %v4026_v39  ;;  %v4462_v42 = vrot.slane %v4460_v57, 4  ;;  %v4465_v48 = vrot.slane %v4463_v33, 5  ;;  %v4914_v11 = vrot.slane %v11946_v60, 5  ;;  %v5765_v45 = vmax.bf16 %v5733_v62, %v11952_v8 }
 0x360   : > { %v5766_v0 = vmax.bf16 %v5734_v22, %v11962_v18  ;;  %v11973_v24 = vrot.slane %v4479_v23, 5  ;;  %v5209_v29 = vrot.slane %v4460_v57, 5  ;;  %v5210_v43 = vrot.slane %v4463_v33, 6 }
 0x361   : > { %v4466_v7 = vor.u32 %v4465_v48, %v4462_v42  ;;  %v5218_v44 = vshrl.u32 %v11946_v60, 16  ;;  %v11976_v19 = vrot.slane %v4479_v23, 6  ;;  %v7338_v9 = vrot.slane %v11938_v52, 10 }
 0x362   : > { %v7452_v17 = vcombine.low %v5765_v45, %v5766_v0  ;;  %v5514_v36 = vrot.slane %v11946_v60, 6  ;;  %v5671_v32 = vmax.bf16 %v11859_v1, %v11814_v37  ;;  %v5211_v34 = vor.u32 %v5210_v43, %v5209_v29 }
 0x363   : > { %v4467_v59 = vrot.slane %v4466_v7, 4  ;;  %v5220_v30 = vrot.slane %v5218_v44, 5  ;;  %v5672_v47 = vmax.bf16 %v11865_v63, %v11817_v50  ;;  %v4028_v21 = vrot.slane %v13507_v41, 7 }
 0x364   : > { %7665 = vmatmul.mubr.msk.bf16.gmra.mxu1 %vm5838_vm7, %v7452_v17  ;;  %v11986_v58 = vmax.bf16 %v5671_v32, %v11909_v31  ;;  %v4030_v55 = vrot.slane %v13508_v54, 7  ;;  %v5673_v26 = vmax.bf16 %v11909_v31, %v11859_v1  ;;  %v5212_v37 = vrot.slane %v5211_v34, 4 }
 0x365   : > { %v5222_v27 = vor.u32 %v11976_v19, %v5220_v30  ;;  %v11994_v13 = vmax.bf16 %v5672_v47, %v11913_v6  ;;  %v5674_v50 = vmax.bf16 %v11913_v6, %v11865_v63  ;;  %4138 = vst.msk [vmem:[#allocation2 + $0x84] sm:$0xe] %vm426_vm6, %v4028_v21  ;;  %v4029_v60 = vrot.slane %v4028_v21, 4  ;;  %v13510_v19 = vld [vmem:[#allocation39_spill] sm:$0xff] }
 0x366   : > { %v4190_v14 = vld [vmem:[#allocation2 + $0x7c] sm:$0xf]  ;;  %v5735_v61 = vmax.bf16 %v11986_v58, %v11952_v8  ;;  %v4032_v20 = vrot.slane %v4030_v55, 4  ;;  %v12019_v48 = vmax.bf16 %v5673_v26, %v11952_v8  ;;  %v7423_v29 = vcombine.low %v13507_v41, %v13508_v54 }
 0x367   : > { %v4469_v25 = vshll.u32 %v4190_v14, 16  ;;  %v4473_v35 = vshrl.u32 %v4190_v14, 16  ;;  %v4911_v2 = vrot.slane %v4190_v14, 5  ;;  %v5511_v5 = vrot.slane %v4190_v14, 6 }
 0x368   : > { %v5736_v1 = vmax.bf16 %v11994_v13, %v11962_v18  ;;  %4140 = vst.msk [vmem:[#allocation2 + $0x8c] sm:$0x1] %vm188_vm2, %v4032_v20  ;;  %v4031_v62 = vsel %vm7892_vm10, %v4029_v60, %v4030_v55  ;;  %v12022_v45 = vmax.bf16 %v5674_v50, %v11962_v18  ;;  %v4033_v17 = vrot.slane %v13510_v19, 7 }
 0x369   : > { %v4471_v16 = vrot.slane %v4469_v25, 5  ;;  %v4475_v49 = vrot.slane %v4473_v35, 4  ;;  %v4912_v38 = vsel %vm8089_vm14, %v7318_v51, %v4911_v2  ;;  %v4913_v63 = vrot.slane %v4911_v2, 4  ;;  %4139 = vst.msk [vmem:[#allocation2 + $0x88] sm:$0xf] %vm173_vm1, %v4031_v62 }
 0x36a   : > { %v5213_v56 = vrot.slane %v4473_v35, 5  ;;  %v5214_v12 = vrot.slane %v4469_v25, 6  ;;  %v5512_v4 = vsel %vm8286_vm8, %v7338_v9, %v5511_v5  ;;  %v5513_v3 = vrot.slane %v5511_v5, 4  ;;  %4141 = vst.msk [vmem:[#allocation2 + $0x90] sm:$0xe] %vm426_vm6, %v4033_v17 }
 0x36b   : > { %v4472_v39 = vsel %vm7960_vm11, %v4467_v59, %v4471_v16  ;;  %v4476_v57 = vor.u32 %v4475_v49, %v4471_v16  ;;  %v4915_v33 = vsel %vm8089_vm14, %v4913_v63, %v4914_v11  ;;  %v13509_v11 = vld [vmem:[#allocation8_spill] sm:$0xff] }
 0x36c   : > { %v4759_v22 = vmax.bf16 %v4472_v39, %v11938_v52  ;;  %v5215_v23 = vor.u32 %v5214_v12, %v5213_v56  ;;  %v5515_v42 = vsel %vm8286_vm8, %v5513_v3, %v5514_v36  ;;  %v7422_v0 = vcombine.low %v13509_v11, %v13503_v53  ;;  %v4192_v44 = vld [vmem:[#allocation2 + $0x84] sm:$0xf] }
 0x36d   : > { %v4477_v51 = vrot.slane %v4476_v57, 4  ;;  %v4484_v36 = vshrl.u32 %v4192_v44, 16  ;;  %v4487_v32 = vshll.u32 %v4192_v44, 16  ;;  %v7319_v59 = vrot.slane %v4192_v44, 9 }
 0x36e   : > { %v5039_v52 = vmax.bf16 %v4912_v38, %v4759_v22  ;;  %v5216_v7 = vsel %vm8198_vm3, %v5212_v37, %v5215_v23  ;;  %v5217_v43 = vrot.slane %v5215_v23, 4  ;;  %7638 = vmatprep.mubr.msk.bf16.mxu0 %vm5838_vm7, %v7422_v0  ;;  %v7339_v47 = vrot.slane %v4192_v44, 10 }
 0x36f   : > { %v4482_v9 = vsel %vm7960_vm11, %v4477_v51, %v11973_v24  ;;  %7639 = vmatmul.mubr.msk.bf16.gmra.mxu0 %vm5838_vm7, %v7423_v29  ;;  %v4194_v58 = vld [vmem:[#allocation2 + $0x8c] sm:$0x3]  ;;  %v4486_v41 = vrot.slane %v4484_v36, 4  ;;  %v4489_v24 = vrot.slane %v4487_v32, 5  ;;  %v5224_v21 = vrot.slane %v4484_v36, 5 }
 0x370   : > { %v4760_v53 = vmax.bf16 %v4482_v9, %v4190_v14  ;;  %v5223_v34 = vsel %vm8198_vm3, %v5217_v43, %v5222_v27  ;;  %v5419_v30 = vmax.bf16 %v5216_v7, %v5039_v52  ;;  %v5225_v54 = vrot.slane %v4487_v32, 6  ;;  %v4193_v50 = vld [vmem:[#allocation2 + $0x88] sm:$0xf] }
 0x371   : > { %v4503_v14 = vshll.u32 %v4194_v58, 16  ;;  %v4921_v37 = vrot.slane %v4194_v58, 5  ;;  %v4490_v27 = vor.u32 %v4489_v24, %v4486_v41  ;;  %v5233_v35 = vshrl.u32 %v4194_v58, 16 }
 0x372   : > { %v5040_v55 = vmax.bf16 %v4915_v33, %v4760_v53  ;;  %v12041_v26 = vmax.bf16 %v5512_v4, %v5419_v30  ;;  %v5226_v25 = vor.u32 %v5225_v54, %v5224_v21  ;;  %v5521_v2 = vrot.slane %v4194_v58, 6 }
 0x373   : > { %v4493_v20 = vshll.u32 %v4193_v50, 16  ;;  %v4497_v16 = vshrl.u32 %v4193_v50, 16  ;;  %v4491_v49 = vrot.slane %v4490_v27, 4  ;;  %v4505_v38 = vrot.slane %v4503_v14, 5  ;;  %v12081_v27 = vpop.f32.mrf.mxu0 }
 0x374   : > { %v5420_v5 = vmax.bf16 %v5223_v34, %v5040_v55  ;;  %v5767_v60 = vmax.bf16 %v5735_v61, %v12041_v26  ;;  %v4918_v63 = vrot.slane %v4193_v50, 5  ;;  %v5227_v56 = vrot.slane %v5226_v25, 4 }
 0x375   : > { %v4495_v4 = vrot.slane %v4493_v20, 5  ;;  %v4499_v3 = vrot.slane %v4497_v16, 4  ;;  %v5228_v39 = vrot.slane %v4497_v16, 5  ;;  %v5229_v62 = vrot.slane %v4493_v20, 6  ;;  %v12088_v16 = vld [vmem:[#allocation2 + $0x9c] sm:$0xf] }
 0x376   : > { %v12044_v12 = vmax.bf16 %v5515_v42, %v5420_v5  ;;  %v4919_v57 = vsel %vm8089_vm14, %v7319_v59, %v4918_v63  ;;  %v4920_v33 = vrot.slane %v4918_v63, 4  ;;  %v5235_v22 = vrot.slane %v5233_v35, 5 }
 0x377   : > { %v4496_v23 = vsel %vm7960_vm11, %v4491_v49, %v4495_v4  ;;  %v4500_v51 = vor.u32 %v4499_v3, %v4495_v4  ;;  %v5236_v42 = vrot.slane %v4503_v14, 6  ;;  %v5230_v29 = vor.u32 %v5229_v62, %v5228_v39  ;;  %v12099_v39 = vld [vmem:[#allocation2 + $0xa4] sm:$0x3] }
 0x378   : > { %v5768_v61 = vmax.bf16 %v5736_v1, %v12044_v12  ;;  %v4761_v11 = vmax.bf16 %v4496_v23, %v4192_v44  ;;  %v4922_v0 = vsel %vm8089_vm14, %v4920_v33, %v4921_v37  ;;  %v5518_v52 = vrot.slane %v4193_v50, 6  ;;  %v12062_v44 = vld [vmem:[#allocation2 + $0x90] sm:$0xf]  ;;  %v13514_v23 = vld [vmem:[#allocation45_spill] sm:$0xff] }
 0x379   : > { %v4501_v43 = vrot.slane %v4500_v51, 4  ;;  %v5237_v9 = vor.u32 %v5236_v42, %v5235_v22  ;;  %v5737_v36 = vmax.bf16 %v12019_v48, %v12041_v26  ;;  %v5231_v13 = vsel %vm8198_vm3, %v5227_v56, %v5230_v29  ;;  %v13512_v22 = vld [vmem:[#allocation34_spill] sm:$0xff] }
 0x37a   : > { %v7453_v7 = vcombine.low %v5767_v60, %v5768_v61  ;;  %v5041_v32 = vmax.bf16 %v4919_v57, %v4761_v11  ;;  %v5232_v1 = vrot.slane %v5230_v29, 4  ;;  %v5519_v59 = vsel %vm8286_vm8, %v7339_v47, %v5518_v52  ;;  %v13511_v47 = vld [vmem:[#allocation38_spill] sm:$0xff] }
 0x37b   : > { %v4506_v53 = vsel %vm7960_vm11, %v4501_v43, %v4505_v38  ;;  %v5520_v34 = vrot.slane %v5518_v52, 4  ;;  %v5738_v30 = vmax.bf16 %v12022_v45, %v12044_v12  ;;  %v4034_v48 = vrot.slane %v4033_v17, 4  ;;  %v12079_v45 = vpop.f32.mrf.mxu1  ;;  %v12092_v38 = vpop.f32.mrf.mxu0 }
 0x37c   : > { %7668 = vmatprep.mubr.msk.bf16.mxu1 %vm5838_vm7, %v7453_v7  ;;  %v4762_v58 = vmax.bf16 %v4506_v53, %v4193_v50  ;;  %v5238_v41 = vsel %vm8198_vm3, %v5232_v1, %v5237_v9  ;;  %v5421_v24 = vmax.bf16 %v5231_v13, %v5041_v32  ;;  %v4035_v21 = vrot.slane %v13511_v47, 7 }
 0x37d   : > { %v5522_v54 = vsel %vm8286_vm8, %v5520_v34, %v5521_v2  ;;  %v4508_v55 = vshrl.u32 %v12062_v44, 16  ;;  %v4511_v14 = vshll.u32 %v12062_v44, 16  ;;  %v7320_v37 = vrot.slane %v12062_v44, 9  ;;  %v12090_v49 = vpop.f32.mrf.mxu1  ;;  %v12110_v11 = vpop.f32.mrf.mxu0 }
 0x37e   : > { %v5042_v17 = vmax.bf16 %v4922_v0, %v4762_v58  ;;  %v12083_v50 = vmax.bf16 %v5519_v59, %v5421_v24  ;;  %v4036_v25 = vsel %vm7892_vm10, %v4034_v48, %v4035_v21  ;;  %v4037_v35 = vrot.slane %v4035_v21, 4 }
 0x37f   : > { %4142 = vst.msk [vmem:[#allocation2 + $0x94] sm:$0xf] %vm173_vm1, %v4036_v25  ;;  %v4510_v2 = vrot.slane %v4508_v55, 4  ;;  %v4513_v5 = vrot.slane %v4511_v14, 5  ;;  %v5239_v60 = vrot.slane %v4508_v55, 5  ;;  %v5240_v20 = vrot.slane %v4511_v14, 6  ;;  %v12108_v42 = vpop.f32.mrf.mxu1 }
 0x380   : > { %v5422_v63 = vmax.bf16 %v5238_v41, %v5042_v17  ;;  %v5769_v56 = vmax.bf16 %v5737_v36, %v12083_v50  ;;  %4143 = vst.msk [vmem:[#allocation2 + $0x98] sm:$0x1] %vm188_vm2, %v4037_v35  ;;  %v7340_v4 = vrot.slane %v12062_v44, 10  ;;  %v5675_v3 = vmax.bf16 %v11952_v8, %v11909_v31  ;;  %v12128_v36 = vpop.f32.mrf.mxu0 }
 0x381   : > { %v4514_v57 = vor.u32 %v4513_v5, %v4510_v2  ;;  %v5241_v33 = vor.u32 %v5240_v20, %v5239_v60  ;;  %v5676_v62 = vmax.bf16 %v11962_v18, %v11913_v6  ;;  %v13513_v61 = vrot.slane %v13512_v22, 7  ;;  %v12126_v9 = vpop.f32.mrf.mxu1 }
 0x382   : > { %v12112_v0 = vmax.bf16 %v5522_v54, %v5422_v63  ;;  %v12115_v31 = vmax.bf16 %v5675_v3, %v12041_v26  ;;  %v4532_v29 = vshrl.u32 %v12088_v16, 16  ;;  %v4535_v6 = vshll.u32 %v12088_v16, 16  ;;  %v12143_v24 = vpop.f32.mrf.mxu0 }
 0x383   : > { %v4041_v51 = vsel %vm7892_vm10, %v13514_v23, %v13513_v61  ;;  %v4515_v52 = vrot.slane %v4514_v57, 4  ;;  %v12120_v7 = vrot.slane %v5241_v33, 4  ;;  %v12123_v40 = vmax.bf16 %v5676_v62, %v12044_v12  ;;  %v12141_v41 = vpop.f32.mrf.mxu1 }
 0x384   : > { %4145 = vst.msk [vmem:[#allocation2 + $0xa0] sm:$0xf] %vm173_vm1, %v4041_v51  ;;  %v13071_v43 = vshll.u32 %v12099_v39, 16  ;;  %v5770_v32 = vmax.bf16 %v5738_v30, %v12112_v0  ;;  %v4534_v1 = vrot.slane %v4532_v29, 4  ;;  %v4537_v59 = vrot.slane %v4535_v6, 5  ;;  %v12145_v60 = vpop.f32.mrf.mxu0 }
 0x385   : > { %v7321_v48 = vrot.slane %v12088_v16, 9  ;;  %v5254_v55 = vrot.slane %v4532_v29, 5  ;;  %v5255_v14 = vrot.slane %v4535_v6, 6  ;;  %v12152_v23 = vpop.f32.mrf.mxu1  ;;  %vm7131_vm1 = vcmask 64512  }
 0x386   : > { %v12137_v34 = vrot.slane %v13071_v43, 5  ;;  %v7454_v30 = vcombine.low %v5769_v56, %v5770_v32  ;;  %v4196_v21 = vld [vmem:[#allocation2 + $0x94] sm:$0xf]  ;;  %v4538_v54 = vor.u32 %v4537_v59, %v4534_v1  ;;  %v12154_v51 = vpop.f32.mrf.mxu0 }
 0x387   : > { %v4197_v17 = vld [vmem:[#allocation2 + $0x98] sm:$0x3]  ;;  %v4517_v25 = vshll.u32 %v4196_v21, 16  ;;  %v4521_v35 = vshrl.u32 %v4196_v21, 16  ;;  %v4925_v2 = vrot.slane %v4196_v21, 5  ;;  %v5525_v5 = vrot.slane %v4196_v21, 6 }
 0x388   : > { %7669 = vmatmul.mubr.msk.bf16.gmra.mxu1 %vm5838_vm7, %v7454_v30  ;;  %v4527_v20 = vshll.u32 %v4197_v17, 16  ;;  %v4928_v63 = vrot.slane %v4197_v17, 5  ;;  %v5248_v3 = vshrl.u32 %v4197_v17, 16  ;;  %v5528_v57 = vrot.slane %v4197_v17, 6  ;;  %13515 = vst [vmem:[#allocation15_spill] sm:$0xff] %v12154_v51 }
 0x389   : > { %v4519_v33 = vrot.slane %v4517_v25, 5  ;;  %v4523_v62 = vrot.slane %v4521_v35, 4  ;;  %v4926_v56 = vsel %vm8089_vm14, %v7320_v37, %v4925_v2  ;;  %v4927_v61 = vrot.slane %v4925_v2, 4  ;;  %v12162_v37 = vpop.f32.mrf.mxu0 }
 0x38a   : > { %v4529_v29 = vrot.slane %v4527_v20, 5  ;;  %v5243_v6 = vrot.slane %v4521_v35, 5  ;;  %v5244_v32 = vrot.slane %v4517_v25, 6  ;;  %v5250_v1 = vrot.slane %v5248_v3, 5 }
 0x38b   : > { %v12156_v59 = vld [vmem:[#allocation2 + $0xa0] sm:$0xf]  ;;  %v4520_v30 = vsel %vm7960_vm11, %v4515_v52, %v4519_v33  ;;  %v4524_v17 = vor.u32 %v4523_v62, %v4519_v33  ;;  %v4929_v53 = vsel %vm8089_vm14, %v4927_v61, %v4928_v63  ;;  %v5251_v43 = vrot.slane %v4527_v20, 6  ;;  %v12170_v33 = vpop.f32.mrf.mxu1  ;;  %v12172_v63 = vpop.f32.mrf.mxu0 }
 0x38c   : > { %v4763_v2 = vmax.bf16 %v4520_v30, %v12062_v44  ;;  %v5245_v13 = vor.u32 %v5244_v32, %v5243_v6  ;;  %v5526_v25 = vsel %vm8286_vm8, %v7340_v4, %v5525_v5  ;;  %v5527_v35 = vrot.slane %v5525_v5, 4 }
 0x38d   : > { %v4525_v3 = vrot.slane %v4524_v17, 4  ;;  %v5252_v58 = vor.u32 %v5251_v43, %v5250_v1  ;;  %v4539_v51 = vrot.slane %v4538_v54, 4  ;;  %v4541_v52 = vshll.u32 %v12156_v59, 16  ;;  %v12185_v30 = vpop.f32.mrf.mxu0  ;;  %v12191_v17 = vpop.f32.mrf.mxu1 }
 0x38e   : > { %v5043_v20 = vmax.bf16 %v4926_v56, %v4763_v2  ;;  %v5246_v62 = vsel %vm8198_vm3, %v12120_v7, %v5245_v13  ;;  %v5247_v61 = vrot.slane %v5245_v13, 4  ;;  %v5529_v44 = vsel %vm8286_vm8, %v5527_v35, %v5528_v57 }
 0x38f   : > { %v4530_v4 = vsel %vm7960_vm11, %v4525_v3, %v4529_v29  ;;  %v4543_v43 = vrot.slane %v4541_v52, 5  ;;  %v4545_v54 = vshrl.u32 %v12156_v59, 16  ;;  %v4932_v5 = vrot.slane %v12156_v59, 5 }
 0x390   : > { %v4764_v6 = vmax.bf16 %v4530_v4, %v4196_v21  ;;  %v5253_v56 = vsel %vm8198_vm3, %v5247_v61, %v5252_v58  ;;  %v5423_v32 = vmax.bf16 %v5246_v62, %v5043_v20  ;;  %v5256_v1 = vor.u32 %v5255_v14, %v5254_v55  ;;  %v12205_v4 = vpop.f32.mrf.mxu0 }
 0x391   : > { %v4544_v7 = vsel %vm7960_vm11, %v4539_v51, %v4543_v43  ;;  %v4547_v13 = vrot.slane %v4545_v54, 4  ;;  %v4933_v57 = vsel %vm8089_vm14, %v7321_v48, %v4932_v5  ;;  %v4934_v29 = vrot.slane %v4932_v5, 4 }
 0x392   : > { %v5044_v2 = vmax.bf16 %v4929_v53, %v4764_v6  ;;  %v12193_v35 = vmax.bf16 %v5526_v25, %v5423_v32  ;;  %v4765_v21 = vmax.bf16 %v4544_v7, %v12088_v16  ;;  %v5257_v58 = vrot.slane %v5256_v1, 4 }
 0x393   : > { %v4548_v3 = vor.u32 %v4547_v13, %v4543_v43  ;;  %v13516_v55 = vrot.slane %v12099_v39, 5  ;;  %v5258_v51 = vrot.slane %v4545_v54, 5  ;;  %v5259_v20 = vrot.slane %v4541_v52, 6  ;;  %v12210_v54 = vpop.f32.mrf.mxu1 }
 0x394   : > { %v5424_v62 = vmax.bf16 %v5253_v56, %v5044_v2  ;;  %v13517_v48 = vmax.bf16 %v12115_v31, %v12083_v50  ;;  %v5045_v53 = vmax.bf16 %v4933_v57, %v4765_v21  ;;  %v5263_v25 = vshrl.u32 %v12099_v39, 16 }
 0x395   : > { %v4936_v14 = vsel %vm8089_vm14, %v4934_v29, %v13516_v55  ;;  %v4549_v5 = vrot.slane %v4548_v3, 4  ;;  %v5260_v43 = vor.u32 %v5259_v20, %v5258_v51  ;;  %v13518_v6 = vshll.u32 %v12099_v39, 16  ;;  %v12228_v55 = vpop.f32.mrf.mxu0  ;;  %v12235_v20 = vld [vmem:[#allocation2 + $0xa8] sm:$0xf] }
 0x396   : > { %v5771_v61 = vmax.bf16 %v13517_v48, %v12193_v35  ;;  %v7341_v1 = vrot.slane %v12088_v16, 10  ;;  %v12212_v52 = vmax.bf16 %v5529_v44, %v5424_v62  ;;  %v5265_v56 = vrot.slane %v5263_v25, 5  ;;  %13520 = vst [vmem:[#allocation5_spill] sm:$0xff] %v12228_v55  ;;  %v12237_v62 = vpop.f32.mrf.mxu1  ;;  %v12243_v25 = vld [vmem:[#allocation2 + $0xac] sm:$0xf] }
 0x397   : > { %v5266_v32 = vrot.slane %v13518_v6, 6  ;;  %v5532_v31 = vrot.slane %v12156_v59, 6  ;;  %v5535_v7 = vrot.slane %v12099_v39, 6  ;;  %v4554_v13 = vsel %vm7960_vm11, %v4549_v5, %v12137_v34 }
 0x398   : > { %v5261_v57 = vsel %vm8198_vm3, %v5257_v58, %v5260_v43  ;;  %v5262_v29 = vrot.slane %v5260_v43, 4  ;;  %v5677_v16 = vmax.bf16 %v12041_v26, %v11952_v8  ;;  %v13519_v44 = vmax.bf16 %v12123_v40, %v12112_v0 }
 0x399   : > { %v4766_v21 = vmax.bf16 %v4554_v13, %v12156_v59  ;;  %v5267_v3 = vor.u32 %v5266_v32, %v5265_v56  ;;  %v5425_v39 = vmax.bf16 %v5261_v57, %v5045_v53  ;;  %v5533_v34 = vsel %vm8286_vm8, %v7341_v1, %v5532_v31  ;;  %v12251_v32 = vld [vmem:[#allocation2 + $0xb0] sm:$0x3] }
 0x39a   : > { %v5772_v2 = vmax.bf16 %v13519_v44, %v12212_v52  ;;  %v5534_v51 = vrot.slane %v5532_v31, 4  ;;  %v5678_v58 = vmax.bf16 %v12044_v12, %v11962_v18  ;;  %v5709_v8 = vmax.bf16 %v5677_v16, %v12083_v50 }
 0x39b   : > { %v5046_v48 = vmax.bf16 %v4936_v14, %v4766_v21  ;;  %v5268_v59 = vsel %vm8198_vm3, %v5262_v29, %v5267_v3  ;;  %v12241_v53 = vmax.bf16 %v5533_v34, %v5425_v39  ;;  %v7424_v6 = vcombine.low %v13510_v19, %v13511_v47  ;;  %v12265_v29 = vpop.f32.mrf.mxu1 }
 0x39c   : > { %v7455_v40 = vcombine.low %v5771_v61, %v5772_v2  ;;  %v5536_v5 = vsel %vm8286_vm8, %v5534_v51, %v5535_v7  ;;  %v5710_v18 = vmax.bf16 %v5678_v58, %v12112_v0  ;;  %v5741_v43 = vmax.bf16 %v5709_v8, %v12193_v35  ;;  %v13521_v61 = vld [vmem:[#allocation36_spill] sm:$0xff]  ;;  %v12258_v7 = vpop.f32.mrf.mxu0 }
 0x39d   : > { %v5426_v14 = vmax.bf16 %v5268_v59, %v5046_v48  ;;  %v7425_v1 = vcombine.low %v13521_v61, %v13512_v22  ;;  %v4556_v56 = vshrl.u32 %v12235_v20, 16  ;;  %v4559_v31 = vshll.u32 %v12235_v20, 16  ;;  %13522 = vst [vmem:[#allocation16_spill] sm:$0xff] %v12258_v7  ;;  %7642 = vmatprep.mubr.msk.bf16.mxu0 %vm5838_vm7, %v7424_v6  ;;  %v12279_v6 = vpop.f32.mrf.mxu1 }
 0x39e   : > { %7672 = vmatprep.mubr.msk.bf16.mxu1 %vm5838_vm7, %v7455_v40  ;;  %v5742_v13 = vmax.bf16 %v5710_v18, %v12212_v52  ;;  %v5773_v57 = vmax.bf16 %v5741_v43, %v12241_v53  ;;  %v4565_v19 = vshll.u32 %v12243_v25, 16  ;;  %v4569_v47 = vshrl.u32 %v12243_v25, 16  ;;  %v12275_v48 = vpop.f32.mrf.mxu0  ;;  %13524 = vst [vmem:[#allocation17_spill] sm:$0xff] %v12279_v6 }
 0x39f   : > { %v12267_v16 = vmax.bf16 %v5536_v5, %v5426_v14  ;;  %7643 = vmatmul.mubr.msk.bf16.gmra.mxu0 %vm5838_vm7, %v7425_v1  ;;  %v4558_v22 = vrot.slane %v4556_v56, 4  ;;  %v4561_v44 = vrot.slane %v4559_v31, 5  ;;  %v4575_v2 = vshll.u32 %v12251_v32, 16  ;;  %13523 = vst [vmem:[#allocation74_spill] sm:$0xff] %v12275_v48 }
 0x3a0   : > { %v4567_v21 = vrot.slane %v4565_v19, 5  ;;  %v4571_v3 = vrot.slane %v4569_v47, 4  ;;  %v7322_v39 = vrot.slane %v12235_v20, 9  ;;  %v4939_v34 = vrot.slane %v12243_v25, 5 }
 0x3a1   : > { %v5774_v51 = vmax.bf16 %v5742_v13, %v12267_v16  ;;  %v4562_v58 = vor.u32 %v4561_v44, %v4558_v22  ;;  %v4577_v8 = vrot.slane %v4575_v2, 5  ;;  %v4942_v40 = vrot.slane %v12251_v32, 5 }
 0x3a2   : > { %v4572_v59 = vor.u32 %v4571_v3, %v4567_v21  ;;  %v4940_v5 = vsel %vm8089_vm14, %v7322_v39, %v4939_v34  ;;  %v4941_v18 = vrot.slane %v4939_v34, 4  ;;  %v5269_v43 = vrot.slane %v4556_v56, 5 }
 0x3a3   : > { %v7456_v14 = vcombine.low %v5773_v57, %v5774_v51  ;;  %v4563_v61 = vrot.slane %v4562_v58, 4  ;;  %v5270_v1 = vrot.slane %v4559_v31, 6  ;;  %v5273_v7 = vrot.slane %v4569_v47, 5  ;;  %v12288_v57 = vpop.f32.mrf.mxu0  ;;  %v12293_v58 = vpop.f32.mrf.mxu1 }
 0x3a4   : > { %v4573_v55 = vrot.slane %v4572_v59, 4  ;;  %v4943_v13 = vsel %vm8089_vm14, %v4941_v18, %v4942_v40  ;;  %v5274_v22 = vrot.slane %v4565_v19, 6  ;;  %v5278_v44 = vshrl.u32 %v12251_v32, 16  ;;  %13525 = vst [vmem:[#allocation75_spill] sm:$0xff] %v12288_v57  ;;  %13526 = vst [vmem:[#allocation66_spill] sm:$0xff] %v12293_v58 }
 0x3a5   : > { %7673 = vmatmul.mubr.msk.bf16.gmra.mxu1 %vm5838_vm7, %v7456_v14  ;;  %v4568_v3 = vsel %vm7960_vm11, %v4563_v61, %v4567_v21  ;;  %v5271_v39 = vor.u32 %v5270_v1, %v5269_v43  ;;  %v5281_v56 = vrot.slane %v4575_v2, 6  ;;  %v7342_v34 = vrot.slane %v12235_v20, 10 }
 0x3a6   : > { %v4578_v31 = vsel %vm7960_vm11, %v4573_v55, %v4577_v8  ;;  %v4767_v47 = vmax.bf16 %v4568_v3, %v12235_v20  ;;  %v5275_v51 = vor.u32 %v5274_v22, %v5273_v7  ;;  %v5280_v19 = vrot.slane %v5278_v44, 5  ;;  %v12300_v55 = vld [vmem:[#allocation2 + $0xb4] sm:$0xf]  ;;  %v12306_v22 = vld [vmem:[#allocation2 + $0xb8] sm:$0xf]  ;;  %v12315_v44 = vpop.f32.mrf.mxu1 }
 0x3a7   : > { %v4768_v40 = vmax.bf16 %v4578_v31, %v12243_v25  ;;  %v5272_v59 = vrot.slane %v5271_v39, 4  ;;  %v5539_v21 = vrot.slane %v12243_v25, 6  ;;  %v5542_v2 = vrot.slane %v12251_v32, 6  ;;  %v12308_v25 = vpop.f32.mrf.mxu0  ;;  %13528 = vst [vmem:[#allocation68_spill] sm:$0xff] %v12315_v44 }
 0x3a8   : > { %v5047_v18 = vmax.bf16 %v4940_v5, %v4767_v47  ;;  %v5277_v43 = vrot.slane %v5275_v51, 4  ;;  %v5282_v14 = vor.u32 %v5281_v56, %v5280_v19  ;;  %v5679_v61 = vmax.bf16 %v12083_v50, %v12041_v26  ;;  %13527 = vst [vmem:[#allocation13_spill] sm:$0xff] %v12308_v25  ;;  %v12319_v56 = vld [vmem:[#allocation2 + $0xbc] sm:$0x3] }
 0x3a9   : > { %v5048_v20 = vmax.bf16 %v4943_v13, %v4768_v40  ;;  %v5276_v7 = vsel %vm8198_vm3, %v5272_v59, %v5275_v51  ;;  %v5540_v8 = vsel %vm8286_vm8, %v7342_v34, %v5539_v21  ;;  %v5541_v1 = vrot.slane %v5539_v21, 4 }
 0x3aa   : > { %v5283_v32 = vsel %vm8198_vm3, %v5277_v43, %v5282_v14  ;;  %v5427_v5 = vmax.bf16 %v5276_v7, %v5047_v18  ;;  %v5680_v26 = vmax.bf16 %v12112_v0, %v12044_v12  ;;  %v5711_v13 = vmax.bf16 %v5679_v61, %v12193_v35  ;;  %v12331_v18 = vpop.f32.mrf.mxu0  ;;  %v12336_v7 = vpop.f32.mrf.mxu1 }
 0x3ab   : > { %v5428_v3 = vmax.bf16 %v5283_v32, %v5048_v20  ;;  %v5543_v39 = vsel %vm8286_vm8, %v5541_v1, %v5542_v2  ;;  %v4580_v34 = vshrl.u32 %v12300_v55, 16  ;;  %v4583_v31 = vshll.u32 %v12300_v55, 16  ;;  %13529 = vst [vmem:[#allocation14_spill] sm:$0xff] %v12331_v18  ;;  %13530 = vst [vmem:[#allocation70_spill] sm:$0xff] %v12336_v7 }
 0x3ac   : > { %v12323_v47 = vmax.bf16 %v5540_v8, %v5427_v5  ;;  %v5712_v51 = vmax.bf16 %v5680_v26, %v12212_v52  ;;  %v5743_v12 = vmax.bf16 %v5711_v13, %v12241_v53  ;;  %v4589_v19 = vshll.u32 %v12306_v22, 16  ;;  %v12344_v57 = vpop.f32.mrf.mxu0  ;;  %v12346_v48 = vpop.f32.mrf.mxu1 }
 0x3ad   : > { %v12328_v40 = vmax.bf16 %v5543_v39, %v5428_v3  ;;  %v4582_v59 = vrot.slane %v4580_v34, 4  ;;  %v4585_v21 = vrot.slane %v4583_v31, 5  ;;  %v4593_v2 = vshrl.u32 %v12306_v22, 16  ;;  %13531 = vst [vmem:[#allocation44_spill] sm:$0xff] %v12344_v57  ;;  %13532 = vst [vmem:[#allocation47_spill] sm:$0xff] %v12346_v48 }
 0x3ae   : > { %v5744_v43 = vmax.bf16 %v5712_v51, %v12267_v16  ;;  %v5775_v14 = vmax.bf16 %v5743_v12, %v12323_v47  ;;  %v4591_v61 = vrot.slane %v4589_v19, 5  ;;  %v4599_v20 = vshll.u32 %v12319_v56, 16 }
 0x3af   : > { %v4586_v8 = vor.u32 %v4585_v21, %v4582_v59  ;;  %v4595_v1 = vrot.slane %v4593_v2, 4  ;;  %v7323_v32 = vrot.slane %v12300_v55, 9  ;;  %v4946_v5 = vrot.slane %v12306_v22, 5 }
 0x3b0   : > { %v5776_v26 = vmax.bf16 %v5744_v43, %v12328_v40  ;;  %v4601_v13 = vrot.slane %v4599_v20, 5  ;;  %v4949_v3 = vrot.slane %v12319_v56, 5  ;;  %v5284_v39 = vrot.slane %v4580_v34, 5 }
 0x3b1   : > { %v4587_v51 = vrot.slane %v4586_v8, 4  ;;  %v4596_v18 = vor.u32 %v4595_v1, %v4591_v61  ;;  %v4947_v12 = vsel %vm8089_vm14, %v7323_v32, %v4946_v5  ;;  %v4948_v25 = vrot.slane %v4946_v5, 4 }
 0x3b2   : > { %v7457_v59 = vcombine.low %v5775_v14, %v5776_v26  ;;  %v5285_v21 = vrot.slane %v4583_v31, 6  ;;  %v5288_v7 = vrot.slane %v4593_v2, 5  ;;  %v5289_v44 = vrot.slane %v4589_v19, 6 }
 0x3b3   : > { %v4592_v43 = vsel %vm7960_vm11, %v4587_v51, %v4591_v61  ;;  %v4597_v58 = vrot.slane %v4596_v18, 4  ;;  %v4950_v34 = vsel %vm8089_vm14, %v4948_v25, %v4949_v3  ;;  %v5293_v8 = vshrl.u32 %v12319_v56, 16  ;;  %v12359_v61 = vpop.f32.mrf.mxu0 }
 0x3b4   : > { %7676 = vmatprep.mubr.msk.bf16.mxu1 %vm5838_vm7, %v7457_v59  ;;  %v4769_v1 = vmax.bf16 %v4592_v43, %v12300_v55  ;;  %v5286_v32 = vor.u32 %v5285_v21, %v5284_v39  ;;  %v5290_v14 = vor.u32 %v5289_v44, %v5288_v7  ;;  %v5296_v31 = vrot.slane %v4599_v20, 6  ;;  %13533 = vst [vmem:[#allocation48_spill] sm:$0xff] %v12359_v61  ;;  %v12362_v59 = vpop.f32.mrf.mxu1  ;;  %v12375_v21 = vld [vmem:[#allocation2 + $0xc4] sm:$0xf] }
 0x3b5   : > { %v4602_v19 = vsel %vm7960_vm11, %v4597_v58, %v4601_v13  ;;  %v5295_v2 = vrot.slane %v5293_v8, 5  ;;  %v7343_v5 = vrot.slane %v12300_v55, 10  ;;  %v5546_v18 = vrot.slane %v12306_v22, 6  ;;  %13534 = vst [vmem:[#allocation46_spill] sm:$0xff] %v12362_v59 }
 0x3b6   : > { %v4770_v25 = vmax.bf16 %v4602_v19, %v12306_v22  ;;  %v5049_v26 = vmax.bf16 %v4947_v12, %v4769_v1  ;;  %v5287_v3 = vrot.slane %v5286_v32, 4  ;;  %v5292_v51 = vrot.slane %v5290_v14, 4  ;;  %v12373_v12 = vld [vmem:[#allocation2 + $0xc0] sm:$0xf]  ;;  %v13538_v19 = vld [vmem:[#allocation32_spill] sm:$0xff] }
 0x3b7   : > { %v5297_v39 = vor.u32 %v5296_v31, %v5295_v2  ;;  %v5547_v44 = vsel %vm8286_vm8, %v7343_v5, %v5546_v18  ;;  %v5548_v20 = vrot.slane %v5546_v18, 4  ;;  %v5549_v58 = vrot.slane %v12319_v56, 6  ;;  %v13536_v1 = vld [vmem:[#allocation37_spill] sm:$0xff]  ;;  %v13539_v2 = vld [vmem:[#allocation30_spill] sm:$0xff] }
 0x3b8   : > { %v5050_v7 = vmax.bf16 %v4950_v34, %v4770_v25  ;;  %v5291_v55 = vsel %vm8198_vm3, %v5287_v3, %v5290_v14  ;;  %v5681_v13 = vmax.bf16 %v12193_v35, %v12083_v50  ;;  %v5682_v22 = vmax.bf16 %v12212_v52, %v12112_v0  ;;  %v13535_v34 = vld [vmem:[#allocation35_spill] sm:$0xff]  ;;  %v12383_v14 = vpop.f32.mrf.mxu0  ;;  %v12389_v18 = vld [vmem:[#allocation2 + $0xc8] sm:$0x3]  ;;  %v12391_v25 = vpop.f32.mrf.mxu1 }
 0x3b9   : > { %v5298_v43 = vsel %vm8198_vm3, %v5292_v51, %v5297_v39  ;;  %v5429_v8 = vmax.bf16 %v5291_v55, %v5049_v26  ;;  %v5550_v56 = vsel %vm8286_vm8, %v5548_v20, %v5549_v58  ;;  %v7426_v32 = vcombine.low %v13536_v1, %v13535_v34  ;;  %13537 = vst [vmem:[#allocation41_spill] sm:$0xff] %v12383_v14 }
 0x3ba   : > { %v5430_v50 = vmax.bf16 %v5298_v43, %v5050_v7  ;;  %v5713_v31 = vmax.bf16 %v5681_v13, %v12241_v53  ;;  %v5714_v0 = vmax.bf16 %v5682_v22, %v12267_v16  ;;  %v7427_v5 = vcombine.low %v13539_v2, %v13538_v19  ;;  %13540 = vst [vmem:[#allocation40_spill] sm:$0xff] %v12391_v25 }
 0x3bb   : > { %v12393_v26 = vmax.bf16 %v5547_v44, %v5429_v8  ;;  %7646 = vmatprep.mubr.msk.bf16.mxu0 %vm5838_vm7, %v7426_v32  ;;  %v4604_v3 = vshrl.u32 %v12373_v12, 16  ;;  %v4607_v51 = vshll.u32 %v12373_v12, 16  ;;  %v4613_v39 = vshll.u32 %v12375_v21, 16  ;;  %v12406_v8 = vpop.f32.mrf.mxu0 }
 0x3bc   : > { %v12399_v20 = vmax.bf16 %v5550_v56, %v5430_v50  ;;  %v5745_v58 = vmax.bf16 %v5713_v31, %v12323_v47  ;;  %v5746_v7 = vmax.bf16 %v5714_v0, %v12328_v40  ;;  %7647 = vmatmul.mubr.msk.bf16.gmra.mxu0 %vm5838_vm7, %v7427_v5  ;;  %v4617_v55 = vshrl.u32 %v12375_v21, 16  ;;  %13541 = vst [vmem:[#allocation49_spill] sm:$0xff] %v12406_v8  ;;  %v12411_v50 = vpop.f32.mrf.mxu1 }
 0x3bd   : > { %v4606_v44 = vrot.slane %v4604_v3, 4  ;;  %v4609_v13 = vrot.slane %v4607_v51, 5  ;;  %v4615_v22 = vrot.slane %v4613_v39, 5  ;;  %v4623_v43 = vshll.u32 %v12389_v18, 16  ;;  %13542 = vst [vmem:[#allocation12_spill] sm:$0xff] %v12411_v50  ;;  %v12417_v59 = vpop.f32.mrf.mxu0 }
 0x3be   : > { %v5777_v34 = vmax.bf16 %v5745_v58, %v12393_v26  ;;  %v5778_v56 = vmax.bf16 %v5746_v7, %v12399_v20  ;;  %v4619_v1 = vrot.slane %v4617_v55, 4  ;;  %v7324_v32 = vrot.slane %v12373_v12, 9  ;;  %13543 = vst [vmem:[#allocation50_spill] sm:$0xff] %v12417_v59  ;;  %v12421_v6 = vpop.f32.mrf.mxu1 }
 0x3bf   : > { %v4610_v31 = vor.u32 %v4609_v13, %v4606_v44  ;;  %v4625_v0 = vrot.slane %v4623_v43, 5  ;;  %v4953_v19 = vrot.slane %v12375_v21, 5  ;;  %v4956_v2 = vrot.slane %v12389_v18, 5  ;;  %13544 = vst [vmem:[#allocation51_spill] sm:$0xff] %v12421_v6 }
 0x3c0   : > { %v7458_v5 = vcombine.low %v5777_v34, %v5778_v56  ;;  %v4620_v14 = vor.u32 %v4619_v1, %v4615_v22  ;;  %v5299_v61 = vrot.slane %v4604_v3, 5  ;;  %v5300_v25 = vrot.slane %v4607_v51, 6 }
 0x3c1   : > { %v4611_v8 = vrot.slane %v4610_v31, 4  ;;  %v4954_v58 = vsel %vm8089_vm14, %v7324_v32, %v4953_v19  ;;  %v4955_v7 = vrot.slane %v4953_v19, 4  ;;  %v5303_v57 = vrot.slane %v4617_v55, 5  ;;  %v12436_v31 = vpop.f32.mrf.mxu0 }
 0x3c2   : > { %7677 = vmatmul.mubr.msk.bf16.gmra.mxu1 %vm5838_vm7, %v7458_v5  ;;  %v4621_v44 = vrot.slane %v4620_v14, 4  ;;  %v5301_v13 = vor.u32 %v5300_v25, %v5299_v61  ;;  %v5304_v50 = vrot.slane %v4613_v39, 6  ;;  %v5308_v48 = vshrl.u32 %v12389_v18, 16  ;;  %13545 = vst [vmem:[#allocation52_spill] sm:$0xff] %v12436_v31 }
 0x3c3   : > { %v4616_v3 = vsel %vm7960_vm11, %v4611_v8, %v4615_v22  ;;  %v4957_v51 = vsel %vm8089_vm14, %v4955_v7, %v4956_v2  ;;  %v5311_v34 = vrot.slane %v4623_v43, 6  ;;  %v7344_v55 = vrot.slane %v12373_v12, 10  ;;  %v12434_v8 = vld [vmem:[#allocation2 + $0xcc] sm:$0xf] }
 0x3c4   : > { %v4626_v56 = vsel %vm7960_vm11, %v4621_v44, %v4625_v0  ;;  %v4771_v14 = vmax.bf16 %v4616_v3, %v12373_v12  ;;  %v5302_v61 = vrot.slane %v5301_v13, 4  ;;  %v5305_v25 = vor.u32 %v5304_v50, %v5303_v57  ;;  %v12442_v57 = vld [vmem:[#allocation2 + $0xd0] sm:$0xf]  ;;  %v12444_v50 = vpop.f32.mrf.mxu1  ;;  %v12456_v3 = vld [vmem:[#allocation2 + $0xd4] sm:$0x3] }
 0x3c5   : > { %v4772_v39 = vmax.bf16 %v4626_v56, %v12375_v21  ;;  %v5310_v1 = vrot.slane %v5308_v48, 5  ;;  %v5553_v32 = vrot.slane %v12375_v21, 6  ;;  %v5556_v22 = vrot.slane %v12389_v18, 6  ;;  %13546 = vst [vmem:[#allocation53_spill] sm:$0xff] %v12444_v50 }
 0x3c6   : > { %v5051_v43 = vmax.bf16 %v4954_v58, %v4771_v14  ;;  %v5306_v19 = vsel %vm8198_vm3, %v5302_v61, %v5305_v25  ;;  %v5307_v0 = vrot.slane %v5305_v25, 4  ;;  %v5683_v12 = vmax.bf16 %v12241_v53, %v12193_v35  ;;  %v12466_v25 = vpop.f32.mrf.mxu1 }
 0x3c7   : > { %v5052_v48 = vmax.bf16 %v4957_v51, %v4772_v39  ;;  %v5312_v21 = vor.u32 %v5311_v34, %v5310_v1  ;;  %v5554_v18 = vsel %vm8286_vm8, %v7344_v55, %v5553_v32  ;;  %v5555_v2 = vrot.slane %v5553_v32, 4  ;;  %v12460_v55 = vpop.f32.mrf.mxu0  ;;  %13548 = vst [vmem:[#allocation55_spill] sm:$0xff] %v12466_v25 }
 0x3c8   : > { %v5431_v5 = vmax.bf16 %v5306_v19, %v5051_v43  ;;  %v5684_v58 = vmax.bf16 %v12267_v16, %v12212_v52  ;;  %v5715_v7 = vmax.bf16 %v5683_v12, %v12323_v47  ;;  %v4628_v44 = vshrl.u32 %v12434_v8, 16  ;;  %13547 = vst [vmem:[#allocation54_spill] sm:$0xff] %v12460_v55 }
 0x3c9   : > { %v5313_v35 = vsel %vm8198_vm3, %v5307_v0, %v5312_v21  ;;  %v5557_v13 = vsel %vm8286_vm8, %v5555_v2, %v5556_v22  ;;  %v4631_v51 = vshll.u32 %v12434_v8, 16  ;;  %v4637_v34 = vshll.u32 %v12442_v57, 16 }
 0x3ca   : > { %v5432_v56 = vmax.bf16 %v5313_v35, %v5052_v48  ;;  %v12462_v52 = vmax.bf16 %v5554_v18, %v5431_v5  ;;  %v5716_v14 = vmax.bf16 %v5684_v58, %v12328_v40  ;;  %v5747_v61 = vmax.bf16 %v5715_v7, %v12393_v26  ;;  %v12476_v5 = vpop.f32.mrf.mxu0 }
 0x3cb   : > { %v4630_v39 = vrot.slane %v4628_v44, 4  ;;  %v4633_v1 = vrot.slane %v4631_v51, 5  ;;  %v4639_v32 = vrot.slane %v4637_v34, 5  ;;  %v4641_v22 = vshrl.u32 %v12442_v57, 16  ;;  %13549 = vst [vmem:[#allocation56_spill] sm:$0xff] %v12476_v5 }
 0x3cc   : > { %v12469_v43 = vmax.bf16 %v5557_v13, %v5432_v56  ;;  %v5748_v19 = vmax.bf16 %v5716_v14, %v12399_v20  ;;  %v5779_v0 = vmax.bf16 %v5747_v61, %v12462_v52  ;;  %v4647_v12 = vshll.u32 %v12456_v3, 16  ;;  %v12480_v56 = vpop.f32.mrf.mxu1 }
 0x3cd   : > { %v4634_v48 = vor.u32 %v4633_v1, %v4630_v39  ;;  %v4643_v21 = vrot.slane %v4641_v22, 4  ;;  %v7325_v18 = vrot.slane %v12434_v8, 9  ;;  %v4960_v2 = vrot.slane %v12442_v57, 5  ;;  %13550 = vst [vmem:[#allocation57_spill] sm:$0xff] %v12480_v56  ;;  %v12489_v56 = vpop.f32.mrf.mxu0 }
 0x3ce   : > { %v5780_v58 = vmax.bf16 %v5748_v19, %v12469_v43  ;;  %v4649_v7 = vrot.slane %v4647_v12, 5  ;;  %v4963_v35 = vrot.slane %v12456_v3, 5  ;;  %v5314_v13 = vrot.slane %v4628_v44, 5  ;;  %13551 = vst [vmem:[#allocation58_spill] sm:$0xff] %v12489_v56 }
 0x3cf   : > { %v4635_v14 = vrot.slane %v4634_v48, 4  ;;  %v4644_v61 = vor.u32 %v4643_v21, %v4639_v32  ;;  %v4961_v39 = vsel %vm8089_vm14, %v7325_v18, %v4960_v2  ;;  %v4962_v1 = vrot.slane %v4960_v2, 4 }
 0x3d0   : > { %v7459_v55 = vcombine.low %v5779_v0, %v5780_v58  ;;  %v5315_v31 = vrot.slane %v4631_v51, 6  ;;  %v5318_v25 = vrot.slane %v4641_v22, 5  ;;  %v5319_v59 = vrot.slane %v4637_v34, 6  ;;  %v12493_v22 = vpop.f32.mrf.mxu1 }
 0x3d1   : > { %v4640_v5 = vsel %vm7960_vm11, %v4635_v14, %v4639_v32  ;;  %v4645_v19 = vrot.slane %v4644_v61, 4  ;;  %v4964_v50 = vsel %vm8089_vm14, %v4962_v1, %v4963_v35  ;;  %v5323_v44 = vshrl.u32 %v12456_v3, 16  ;;  %13552 = vst [vmem:[#allocation59_spill] sm:$0xff] %v12493_v22 }
 0x3d2   : > { %7680 = vmatprep.mubr.msk.bf16.mxu1 %vm5838_vm7, %v7459_v55  ;;  %v4773_v48 = vmax.bf16 %v4640_v5, %v12434_v8  ;;  %v5316_v21 = vor.u32 %v5315_v31, %v5314_v13  ;;  %v5320_v0 = vor.u32 %v5319_v59, %v5318_v25  ;;  %v5326_v51 = vrot.slane %v4647_v12, 6  ;;  %v12503_v12 = vpop.f32.mrf.mxu0  ;;  %v12511_v13 = vld [vmem:[#allocation2 + $0xd8] sm:$0xf]  ;;  %v12515_v1 = vpop.f32.mrf.mxu1 }
 0x3d3   : > { %v4650_v34 = vsel %vm7960_vm11, %v4645_v19, %v4649_v7  ;;  %v5325_v32 = vrot.slane %v5323_v44, 5  ;;  %v7345_v18 = vrot.slane %v12434_v8, 10  ;;  %v5560_v2 = vrot.slane %v12442_v57, 6  ;;  %13553 = vst [vmem:[#allocation60_spill] sm:$0xff] %v12503_v12  ;;  %13554 = vst [vmem:[#allocation61_spill] sm:$0xff] %v12515_v1  ;;  %v13555_v44 = vld [vmem:[#allocation29_spill] sm:$0xff] }
 0x3d4   : > { %v4774_v58 = vmax.bf16 %v4650_v34, %v12442_v57  ;;  %v5053_v35 = vmax.bf16 %v4961_v39, %v4773_v48  ;;  %v5317_v14 = vrot.slane %v5316_v21, 4  ;;  %v5322_v55 = vrot.slane %v5320_v0, 4  ;;  %v12513_v39 = vld [vmem:[#allocation2 + $0xdc] sm:$0xf]  ;;  %v13556_v48 = vld [vmem:[#allocation27_spill] sm:$0xff]  ;;  %v13558_v34 = vld [vmem:[#allocation42_spill] sm:$0xff] }
 0x3d5   : > { %v5327_v61 = vor.u32 %v5326_v51, %v5325_v32  ;;  %v5561_v59 = vsel %vm8286_vm8, %v7345_v18, %v5560_v2  ;;  %v5562_v31 = vrot.slane %v5560_v2, 4  ;;  %v5563_v25 = vrot.slane %v12456_v3, 6  ;;  %v13557_v51 = vld [vmem:[#allocation43_spill] sm:$0xff]  ;;  %v12527_v18 = vld [vmem:[#allocation2 + $0xe0] sm:$0x3] }
 0x3d6   : > { %v5054_v5 = vmax.bf16 %v4964_v50, %v4774_v58  ;;  %v5321_v8 = vsel %vm8198_vm3, %v5317_v14, %v5320_v0  ;;  %v5685_v7 = vmax.bf16 %v12323_v47, %v12241_v53  ;;  %v5686_v57 = vmax.bf16 %v12328_v40, %v12267_v16 }
 0x3d7   : > { %v5328_v3 = vsel %vm8198_vm3, %v5322_v55, %v5327_v61  ;;  %v5433_v19 = vmax.bf16 %v5321_v8, %v5053_v35  ;;  %v5564_v50 = vsel %vm8286_vm8, %v5562_v31, %v5563_v25  ;;  %v7428_v21 = vcombine.low %v13556_v48, %v13555_v44  ;;  %v12535_v55 = vpop.f32.mrf.mxu0 }
 0x3d8   : > { %v5434_v53 = vmax.bf16 %v5328_v3, %v5054_v5  ;;  %v5717_v0 = vmax.bf16 %v5685_v7, %v12393_v26  ;;  %v5718_v16 = vmax.bf16 %v5686_v57, %v12399_v20  ;;  %v7429_v32 = vcombine.low %v13558_v34, %v13557_v51  ;;  %13559 = vst [vmem:[#allocation62_spill] sm:$0xff] %v12535_v55  ;;  %v12543_v5 = vpop.f32.mrf.mxu1 }
 0x3d9   : > { %v12529_v2 = vmax.bf16 %v5561_v59, %v5433_v19  ;;  %7650 = vmatprep.mubr.msk.bf16.mxu0 %vm5838_vm7, %v7428_v21  ;;  %v4652_v58 = vshrl.u32 %v12511_v13, 16  ;;  %v4655_v35 = vshll.u32 %v12511_v13, 16  ;;  %v4661_v14 = vshll.u32 %v12513_v39, 16  ;;  %13560 = vst [vmem:[#allocation65_spill] sm:$0xff] %v12543_v5  ;;  %v12551_v51 = vpop.f32.mrf.mxu0 }
 0x3da   : > { %v12537_v61 = vmax.bf16 %v5564_v50, %v5434_v53  ;;  %v5749_v31 = vmax.bf16 %v5717_v0, %v12462_v52  ;;  %v5750_v25 = vmax.bf16 %v5718_v16, %v12469_v43  ;;  %7651 = vmatmul.mubr.msk.bf16.gmra.mxu0 %vm5838_vm7, %v7429_v32  ;;  %v4665_v59 = vshrl.u32 %v12513_v39, 16  ;;  %13561 = vst [vmem:[#allocation67_spill] sm:$0xff] %v12551_v51  ;;  %v12553_v5 = vpop.f32.mrf.mxu1 }
 0x3db   : > { %v4654_v8 = vrot.slane %v4652_v58, 4  ;;  %v4657_v7 = vrot.slane %v4655_v35, 5  ;;  %v4663_v57 = vrot.slane %v4661_v14, 5  ;;  %v4671_v3 = vshll.u32 %v12527_v18, 16 }
 0x3dc   : > { %v5781_v19 = vmax.bf16 %v5749_v31, %v12529_v2  ;;  %v5782_v50 = vmax.bf16 %v5750_v25, %v12537_v61  ;;  %v4667_v44 = vrot.slane %v4665_v59, 4  ;;  %v7326_v48 = vrot.slane %v12511_v13, 9 }
 0x3dd   : > { %v4658_v21 = vor.u32 %v4657_v7, %v4654_v8  ;;  %v4673_v53 = vrot.slane %v4671_v3, 5  ;;  %v4967_v0 = vrot.slane %v12513_v39, 5  ;;  %v4970_v16 = vrot.slane %v12527_v18, 5 }
 0x3de   : > { %v7460_v34 = vcombine.low %v5781_v19, %v5782_v50  ;;  %v4668_v32 = vor.u32 %v4667_v44, %v4663_v57  ;;  %v5329_v55 = vrot.slane %v4652_v58, 5  ;;  %v5330_v12 = vrot.slane %v4655_v35, 6  ;;  %v12564_v44 = vpop.f32.mrf.mxu0 }
 0x3df   : > { %v4659_v31 = vrot.slane %v4658_v21, 4  ;;  %v4968_v25 = vsel %vm8089_vm14, %v7326_v48, %v4967_v0  ;;  %v4969_v56 = vrot.slane %v4967_v0, 4  ;;  %v5333_v1 = vrot.slane %v4665_v59, 5  ;;  %13562 = vst [vmem:[#allocation69_spill] sm:$0xff] %v12564_v44 }
 0x3e0   : > { %7681 = vmatmul.mubr.msk.bf16.gmra.mxu1 %vm5838_vm7, %v7460_v34  ;;  %v4669_v8 = vrot.slane %v4668_v32, 4  ;;  %v5331_v7 = vor.u32 %v5330_v12, %v5329_v55  ;;  %v5334_v22 = vrot.slane %v4661_v14, 6  ;;  %v5338_v6 = vshrl.u32 %v12527_v18, 16  ;;  %v12569_v55 = vpop.f32.mrf.mxu1 }
 0x3e1   : > { %v4664_v19 = vsel %vm7960_vm11, %v4659_v31, %v4663_v57  ;;  %v4971_v58 = vsel %vm8089_vm14, %v4969_v56, %v4970_v16  ;;  %v5341_v35 = vrot.slane %v4671_v3, 6  ;;  %v7346_v50 = vrot.slane %v12511_v13, 10  ;;  %13563 = vst [vmem:[#allocation20_spill] sm:$0xff] %v12569_v55  ;;  %v12574_v3 = vld [vmem:[#allocation2 + $0xe4] sm:$0xf]  ;;  %v12584_v31 = vpop.f32.mrf.mxu0 }
 0x3e2   : > { %v4674_v59 = vsel %vm7960_vm11, %v4669_v8, %v4673_v53  ;;  %v4775_v48 = vmax.bf16 %v4664_v19, %v12511_v13  ;;  %v5332_v12 = vrot.slane %v5331_v7, 4  ;;  %v5335_v14 = vor.u32 %v5334_v22, %v5333_v1  ;;  %v12580_v22 = vld [vmem:[#allocation2 + $0xe8] sm:$0xf]  ;;  %13564 = vst [vmem:[#allocation21_spill] sm:$0xff] %v12584_v31  ;;  %v12590_v19 = vpop.f32.mrf.mxu1 }
 0x3e3   : > { %v4776_v21 = vmax.bf16 %v4674_v59, %v12513_v39  ;;  %v5340_v57 = vrot.slane %v5338_v6, 5  ;;  %v5567_v0 = vrot.slane %v12513_v39, 6  ;;  %v5570_v56 = vrot.slane %v12527_v18, 6  ;;  %13565 = vst [vmem:[#allocation22_spill] sm:$0xff] %v12590_v19 }
 0x3e4   : > { %v5055_v16 = vmax.bf16 %v4968_v25, %v4775_v48  ;;  %v5336_v34 = vsel %vm8198_vm3, %v5332_v12, %v5335_v14  ;;  %v5337_v53 = vrot.slane %v5335_v14, 4  ;;  %v5687_v13 = vmax.bf16 %v12393_v26, %v12323_v47 }
 0x3e5   : > { %v5056_v1 = vmax.bf16 %v4971_v58, %v4776_v21  ;;  %v5342_v32 = vor.u32 %v5341_v35, %v5340_v57  ;;  %v5568_v6 = vsel %vm8286_vm8, %v7346_v50, %v5567_v0  ;;  %v5569_v39 = vrot.slane %v5567_v0, 4  ;;  %v12596_v35 = vld [vmem:[#allocation2 + $0xec] sm:$0x3] }
 0x3e6   : > { %v5435_v18 = vmax.bf16 %v5336_v34, %v5055_v16  ;;  %v5688_v25 = vmax.bf16 %v12399_v20, %v12328_v40  ;;  %v5719_v8 = vmax.bf16 %v5687_v13, %v12462_v52  ;;  %v4676_v7 = vshrl.u32 %v12574_v3, 16  ;;  %v12605_v34 = vpop.f32.mrf.mxu0 }
 0x3e7   : > { %v5343_v47 = vsel %vm8198_vm3, %v5337_v53, %v5342_v32  ;;  %v5571_v58 = vsel %vm8286_vm8, %v5569_v39, %v5570_v56  ;;  %v4679_v50 = vshll.u32 %v12574_v3, 16  ;;  %v4685_v59 = vshll.u32 %v12580_v22, 16  ;;  %13566 = vst [vmem:[#allocation23_spill] sm:$0xff] %v12605_v34  ;;  %v12612_v32 = vpop.f32.mrf.mxu1 }
 0x3e8   : > { %v5436_v48 = vmax.bf16 %v5343_v47, %v5056_v1  ;;  %v12600_v40 = vmax.bf16 %v5568_v6, %v5435_v18  ;;  %v5720_v12 = vmax.bf16 %v5688_v25, %v12469_v43  ;;  %v5751_v14 = vmax.bf16 %v5719_v8, %v12529_v2  ;;  %13567 = vst [vmem:[#allocation24_spill] sm:$0xff] %v12612_v32  ;;  %v7624_v44 = vpop.f32.mrf.mxu0 }
 0x3e9   : > { %v4678_v21 = vrot.slane %v4676_v7, 4  ;;  %v4681_v57 = vrot.slane %v4679_v50, 5  ;;  %v4687_v0 = vrot.slane %v4685_v59, 5  ;;  %v4689_v16 = vshrl.u32 %v12580_v22, 16  ;;  %v12620_v51 = vpop.f32.mrf.mxu1 }
 0x3ea   : > { %v12607_v56 = vmax.bf16 %v5571_v58, %v5436_v48  ;;  %v5752_v53 = vmax.bf16 %v5720_v12, %v12537_v61  ;;  %v5783_v13 = vmax.bf16 %v5751_v14, %v12600_v40  ;;  %v4695_v1 = vshll.u32 %v12596_v35, 16 }
 0x3eb   : > { %v4682_v6 = vor.u32 %v4681_v57, %v4678_v21  ;;  %v4691_v39 = vrot.slane %v4689_v16, 4  ;;  %v7327_v18 = vrot.slane %v12574_v3, 9  ;;  %v4974_v25 = vrot.slane %v12580_v22, 5 }
 0x3ec   : > { %v5784_v8 = vmax.bf16 %v5752_v53, %v12607_v56  ;;  %v4697_v47 = vrot.slane %v4695_v1, 5  ;;  %v4977_v58 = vrot.slane %v12596_v35, 5  ;;  %v5344_v48 = vrot.slane %v4676_v7, 5 }
 0x3ed   : > { %v4683_v34 = vrot.slane %v4682_v6, 4  ;;  %v4692_v12 = vor.u32 %v4691_v39, %v4687_v0  ;;  %v4975_v14 = vsel %vm8089_vm14, %v7327_v18, %v4974_v25  ;;  %v4976_v31 = vrot.slane %v4974_v25, 4 }
 0x3ee   : > { %v7461_v32 = vcombine.low %v5783_v13, %v5784_v8  ;;  %v5345_v21 = vrot.slane %v4679_v50, 6  ;;  %v5348_v57 = vrot.slane %v4689_v16, 5  ;;  %v5349_v19 = vrot.slane %v4685_v59, 6 }
 0x3ef   : > { %v4688_v53 = vsel %vm7960_vm11, %v4683_v34, %v4687_v0  ;;  %v4693_v55 = vrot.slane %v4692_v12, 4  ;;  %v4978_v7 = vsel %vm8089_vm14, %v4976_v31, %v4977_v58  ;;  %v5353_v6 = vshrl.u32 %v12596_v35, 16  ;;  %v6447_v34 = vpop.f32.mrf.mxu0 }
 0x3f0   : > { %7684 = vmatprep.mubr.msk.bf16.mxu1 %vm5838_vm7, %v7461_v32  ;;  %v4777_v39 = vmax.bf16 %v4688_v53, %v12574_v3  ;;  %v5346_v18 = vor.u32 %v5345_v21, %v5344_v48  ;;  %v5350_v13 = vor.u32 %v5349_v19, %v5348_v57  ;;  %v5356_v50 = vrot.slane %v4695_v1, 6  ;;  %v12634_v32 = vpop.f32.mrf.mxu1 }
 0x3f1   : > { %v4698_v59 = vsel %vm7960_vm11, %v4693_v55, %v4697_v47  ;;  %v5355_v16 = vrot.slane %v5353_v6, 5  ;;  %v7347_v25 = vrot.slane %v12574_v3, 10  ;;  %v5574_v0 = vrot.slane %v12580_v22, 6  ;;  %v7625_v53 = vpop.f32.mrf.mxu0 }
 0x3f2   : > { %v4778_v28 = vmax.bf16 %v4698_v59, %v12580_v22  ;;  %v5057_v31 = vmax.bf16 %v4975_v14, %v4777_v39  ;;  %v5347_v8 = vrot.slane %v5346_v18, 4  ;;  %v5352_v58 = vrot.slane %v5350_v13, 4  ;;  %v7658_v48 = vpop.f32.mrf.mxu1 }
 0x3f3   : > { %v5357_v12 = vor.u32 %v5356_v50, %v5355_v16  ;;  %v5575_v19 = vsel %vm8286_vm8, %v7347_v25, %v5574_v0  ;;  %v5576_v1 = vrot.slane %v5574_v0, 4  ;;  %v5577_v10 = vrot.slane %v12596_v35, 6 }
 0x3f4   : > { %v5058_v55 = vmax.bf16 %v4978_v7, %v4778_v28  ;;  %v5351_v3 = vsel %vm8198_vm3, %v5347_v8, %v5350_v13  ;;  %v5689_v47 = vmax.bf16 %v12462_v52, %v12393_v26  ;;  %v5690_v22 = vmax.bf16 %v12469_v43, %v12399_v20  ;;  %v6773_v52 = vpop.f32.mrf.mxu1  ;;  %v6450_v43 = vpop.f32.mrf.mxu0 }
 0x3f5   : > { %v5358_v14 = vsel %vm8198_vm3, %v5352_v58, %v5357_v12  ;;  %v5437_v21 = vmax.bf16 %v5351_v3, %v5057_v31  ;;  %v5578_v57 = vsel %vm8286_vm8, %v5576_v1, %v5577_v10  ;;  %v12665_v31 = vld [vmem:[%s12830_s2] ss:$0 sm:$0xff] }
 0x3f6   : > { %v5438_v35 = vmax.bf16 %v5358_v14, %v5058_v55  ;;  %v5721_v7 = vmax.bf16 %v5689_v47, %v12529_v2  ;;  %v5722_v6 = vmax.bf16 %v5690_v22, %v12537_v61  ;;  %v7659_v59 = vpop.f32.mrf.mxu1  ;;  %v7628_v15 = vpop.f32.mrf.mxu0  ;;  %v6194_v2 = vadd.f32 %v12079_v45, %v12081_v27  ;;  %v13568_v22 = vld [vmem:[#allocation15_spill] sm:$0xff] }
 0x3f7   : > { %v5657_v39 = vmax.bf16 %v5575_v19, %v5437_v21  ;;  %v6186_v61 = vadd.f32 %v12090_v49, %v12092_v38  ;;  %v6205_v14 = vadd.f32 %v12191_v17, %v12162_v37 }
 0x3f8   : > { %v5658_v18 = vmax.bf16 %v5578_v57, %v5438_v35  ;;  %v5753_v26 = vmax.bf16 %v5721_v7, %v12600_v40  ;;  %v5754_v20 = vmax.bf16 %v5722_v6, %v12607_v56  ;;  %v6197_v40 = vadd.f32 %v12108_v42, %v12110_v11  ;;  %v6776_v28 = vpop.f32.mrf.mxu1  ;;  %v6463_v45 = vpop.f32.mrf.mxu0 }
 0x3f9   : > { %v6189_v56 = vadd.f32 %v12126_v9, %v12128_v36  ;;  %v6576_v16 = vadd.f32 %v7624_v44, %v6194_v2  ;;  %v6574_v25 = vadd.f32 %v6447_v34, %v6186_v61  ;;  %v6210_v42 = vadd.f32 %v12141_v41, %v12143_v24 }
 0x3fa   : > { %v5785_v46 = vmax.bf16 %v5753_v26, %v5657_v39  ;;  %v5786_v13 = vmax.bf16 %v5754_v20, %v5658_v18  ;;  %v6577_v0 = vadd.f32 %v7625_v53, %v6197_v40  ;;  %v6202_v44 = vadd.f32 %v12152_v23, %v12145_v60  ;;  %v7629_v12 = vpop.f32.mrf.mxu0 }
 0x3fb   : > { %v6575_v8 = vadd.f32 %v6450_v43, %v6189_v56  ;;  %v6902_v27 = vadd.f32 %v7658_v48, %v6576_v16  ;;  %v6900_v58 = vadd.f32 %v6773_v52, %v6574_v25  ;;  %v6580_v10 = vadd.f32 %v7628_v15, %v6210_v42 }
 0x3fc   : > { %v7462_v50 = vcombine.low %v5785_v46, %v5786_v13  ;;  %v6903_v49 = vadd.f32 %v7659_v59, %v6577_v0  ;;  %v6213_v41 = vadd.f32 %v12170_v33, %v13568_v22  ;;  %v6578_v24 = vadd.f32 %v6463_v45, %v6202_v44  ;;  %v6466_v60 = vpop.f32.mrf.mxu0 }
 0x3fd   : > { %v6901_v38 = vadd.f32 %v6776_v28, %v6575_v8  ;;  %v6941_v11 = vadd.f32 %v12665_v31, %v6902_v27  ;;  %v6939_v9 = vadd.f32 %v12665_v31, %v6900_v58  ;;  %v6579_v6 = vadd.f32 %v6466_v60, %v6205_v14 }
 0x3fe   : > { %7685 = vmatmul.mubr.msk.bf16.gmra.mxu1 %vm5838_vm7, %v7462_v50  ;;  %v6942_v36 = vadd.f32 %v12665_v31, %v6903_v49  ;;  %v6581_v21 = vadd.f32 %v7629_v12, %v6213_v41  ;;  %v6218_v41 = vadd.f32 %v12237_v62, %v12185_v30 }
 0x3ff   : > { %v6940_v34 = vadd.f32 %v12665_v31, %v6901_v38  ;;  %v6973_v19 = vmul.f32 0.5, %v6941_v11  ;;  %v6971_v1 = vmul.f32 0.5, %v6939_v9 }
 0x400   : > { %v6974_v55 = vmul.f32 0.5, %v6942_v36  ;;  %v7632_v27 = vpop.f32.mrf.mxu0 }
 0x401   : > { %v6972_v3 = vmul.f32 0.5, %v6940_v34  ;;  %7701 = vtanh.f32 %v6973_v19 }
 0x402   : > { %7703 = vtanh.f32 %v6971_v1 }
 0x403   : > { %7705 = vtanh.f32 %v6974_v55  ;;  %v6226_v55 = vadd.f32 %v12210_v54, %v12172_v63 }
 0x404   : > { %7707 = vtanh.f32 %v6972_v3 }
 0x406   : > { %v7662_v47 = vpop.f32.mrf.mxu1 }
 0x407   : > { %v6906_v48 = vadd.f32 %v7662_v47, %v6580_v10 }
 0x408   : > { %v6789_v23 = vpop.f32.mrf.mxu1 }
 0x409   : > { %v6945_v57 = vadd.f32 %v12665_v31, %v6906_v48  ;;  %v6904_v53 = vadd.f32 %v6789_v23, %v6578_v24  ;;  %v6584_v24 = vadd.f32 %v7632_v27, %v6226_v55  ;;  %v6229_v23 = vadd.f32 %v12265_v29, %v12205_v4 }
 0x40a   : > { %v7663_v35 = vpop.f32.mrf.mxu1 }
 0x40b   : > { %v6977_v7 = vmul.f32 0.5, %v6945_v57  ;;  %v6943_v33 = vadd.f32 %v12665_v31, %v6904_v53  ;;  %v6907_v39 = vadd.f32 %v7663_v35, %v6581_v21  ;;  %v13569_v35 = vld [vmem:[#allocation5_spill] sm:$0xff] }
 0x40c   : > { %v6792_v18 = vpop.f32.mrf.mxu1 }
 0x40d   : > { %7709 = vtanh.f32 %v6977_v7  ;;  %v6975_v26 = vmul.f32 0.5, %v6943_v33  ;;  %v6946_v37 = vadd.f32 %v12665_v31, %v6907_v39  ;;  %v6905_v17 = vadd.f32 %v6792_v18, %v6579_v6  ;;  %v13570_v7 = vld [vmem:[#allocation17_spill] sm:$0xff] }
 0x40e   : > { %v7702_v46 = vpop.eup %7701  ;;  %v6221_v6 = vadd.f32 %v13570_v7, %v13569_v35 }
 0x40f   : > { %7711 = vtanh.f32 %v6975_v26  ;;  %v6978_v20 = vmul.f32 0.5, %v6946_v37  ;;  %v6944_v52 = vadd.f32 %v12665_v31, %v6905_v17  ;;  %v7704_v13 = vpop.eup %7703  ;;  %v7037_v50 = vadd.f32 1.0, %v7702_v46 }
 0x410   : > { %v7706_v59 = vpop.eup %7705  ;;  %v7035_v15 = vadd.f32 1.0, %v7704_v13 }
 0x411   : > { %7713 = vtanh.f32 %v6978_v20  ;;  %v6976_v43 = vmul.f32 0.5, %v6944_v52  ;;  %v7708_v2 = vpop.eup %7707  ;;  %v7069_v61 = vmul.f32 0.5, %v7037_v50  ;;  %v7038_v40 = vadd.f32 1.0, %v7706_v59 }
 0x412   : > { %v7067_v56 = vmul.f32 0.5, %v7035_v15  ;;  %v7036_v16 = vadd.f32 1.0, %v7708_v2 }
 0x413   : > { %7715 = vtanh.f32 %v6976_v43  ;;  %v7101_v25 = vmul.f32 %v7069_v61, %v6941_v11  ;;  %v7070_v0 = vmul.f32 0.5, %v7038_v40 }
 0x414   : > { %v7099_v8 = vmul.f32 %v7067_v56, %v6939_v9  ;;  %v7068_v45 = vmul.f32 0.5, %v7036_v16  ;;  %v6479_v9 = vpop.f32.mrf.mxu0 }
 0x415   : > { %7134 = vst.msk [vmem:[%s12687_s4 + $0x10] sm:$0xff] %vm7131_vm1, %v7101_v25  ;;  %v7102_v58 = vmul.f32 %v7070_v0, %v6942_v36  ;;  %v6582_v63 = vadd.f32 %v6479_v9, %v6218_v41 }
 0x416   : > { %7132 = vst.msk [vmem:[%s12687_s4] sm:$0xff] %vm7131_vm1, %v7099_v8  ;;  %v7100_v42 = vmul.f32 %v7068_v45, %v6940_v34  ;;  %v7633_v22 = vpop.f32.mrf.mxu0 }
 0x417   : > { %7135 = vst.msk [vmem:[%s12687_s4 + $0x18] sm:$0xff] %vm7131_vm1, %v7102_v58  ;;  %v6585_v30 = vadd.f32 %v7633_v22, %v6229_v23 }
 0x418   : > { %7133 = vst.msk [vmem:[%s12687_s4 + $0x8] sm:$0xff] %vm7131_vm1, %v7100_v42 }
 0x41a   : > { %v7710_v28 = vpop.eup %7709 }
 0x41b   : > { %v7041_v49 = vadd.f32 1.0, %v7710_v28 }
 0x41c   : > { %v7712_v38 = vpop.eup %7711 }
 0x41d   : > { %v7073_v44 = vmul.f32 0.5, %v7041_v49  ;;  %v7039_v11 = vadd.f32 1.0, %v7712_v38 }
 0x41e   : > { %v7714_v12 = vpop.eup %7713 }
 0x41f   : > { %v7105_v19 = vmul.f32 %v7073_v44, %v6945_v57  ;;  %v7071_v1 = vmul.f32 0.5, %v7039_v11  ;;  %v7042_v10 = vadd.f32 1.0, %v7714_v12  ;;  %v6482_v57 = vpop.f32.mrf.mxu0  ;;  %v13571_v44 = vld [vmem:[#allocation16_spill] sm:$0xff]  ;;  %v13572_v11 = vld [vmem:[#allocation66_spill] sm:$0xff] }
 0x420   : > { %v7716_v36 = vpop.eup %7715  ;;  %v6583_v26 = vadd.f32 %v6482_v57, %v6221_v6  ;;  %v6242_v12 = vadd.f32 %v13572_v11, %v13571_v44 }
 0x421   : > { %7138 = vst.msk [vmem:[%s12687_s4 + $0x30] sm:$0xff] %vm7131_vm1, %v7105_v19  ;;  %v7103_v34 = vmul.f32 %v7071_v1, %v6943_v33  ;;  %v7074_v3 = vmul.f32 0.5, %v7042_v10  ;;  %v7040_v47 = vadd.f32 1.0, %v7716_v36  ;;  %v7636_v28 = vpop.f32.mrf.mxu0  ;;  %v13573_v19 = vld [vmem:[#allocation74_spill] sm:$0xff]  ;;  %v13574_v1 = vld [vmem:[#allocation68_spill] sm:$0xff] }
 0x422   : > { %v6234_v10 = vadd.f32 %v13574_v1, %v13573_v19  ;;  %v6588_v36 = vadd.f32 %v7636_v28, %v6242_v12  ;;  %v13585_v1 = vld [vmem:[#allocation41_spill] sm:$0xff] }
 0x423   : > { %7136 = vst.msk [vmem:[%s12687_s4 + $0x20] sm:$0xff] %vm7131_vm1, %v7103_v34  ;;  %v7106_v48 = vmul.f32 %v7074_v3, %v6946_v37  ;;  %v7072_v14 = vmul.f32 0.5, %v7040_v47  ;;  %v6495_v38 = vpop.f32.mrf.mxu0  ;;  %v13575_v34 = vld [vmem:[#allocation75_spill] sm:$0xff]  ;;  %v13576_v3 = vld [vmem:[#allocation70_spill] sm:$0xff] }
 0x424   : > { %v7666_v60 = vpop.f32.mrf.mxu1  ;;  %v6245_v47 = vadd.f32 %v13576_v3, %v13575_v34  ;;  %v6586_v22 = vadd.f32 %v6495_v38, %v6234_v10  ;;  %v13584_v38 = vld [vmem:[#allocation12_spill] sm:$0xff]  ;;  %v13586_v10 = vld [vmem:[#allocation51_spill] sm:$0xff] }
 0x425   : > { %7139 = vst.msk [vmem:[%s12687_s4 + $0x38] sm:$0xff] %vm7131_vm1, %v7106_v48  ;;  %v7104_v54 = vmul.f32 %v7072_v14, %v6944_v52  ;;  %v6910_v21 = vadd.f32 %v7666_v60, %v6584_v24  ;;  %v7637_v9 = vpop.f32.mrf.mxu0  ;;  %v13577_v14 = vld [vmem:[#allocation13_spill] sm:$0xff]  ;;  %v13578_v60 = vld [vmem:[#allocation47_spill] sm:$0xff] }
 0x426   : > { %v6805_v53 = vpop.f32.mrf.mxu1  ;;  %v6237_v23 = vadd.f32 %v13578_v60, %v13577_v14 }
 0x427   : > { %7137 = vst.msk [vmem:[%s12687_s4 + $0x28] sm:$0xff] %vm7131_vm1, %v7104_v54  ;;  %v6949_v62 = vadd.f32 %v12665_v31, %v6910_v21  ;;  %v6908_v33 = vadd.f32 %v6805_v53, %v6582_v63  ;;  %v6498_v24 = vpop.f32.mrf.mxu0  ;;  %v6589_v63 = vadd.f32 %v7637_v9, %v6245_v47 }
 0x428   : > { %v7667_v39 = vpop.f32.mrf.mxu1  ;;  %v6587_v35 = vadd.f32 %v6498_v24, %v6237_v23 }
 0x429   : > { %v6981_v18 = vmul.f32 0.5, %v6949_v62  ;;  %v6947_v4 = vadd.f32 %v12665_v31, %v6908_v33  ;;  %v6911_v29 = vadd.f32 %v7667_v39, %v6585_v30 }
 0x42a   : > { %v6808_v37 = vpop.f32.mrf.mxu1 }
 0x42b   : > { %7717 = vtanh.f32 %v6981_v18  ;;  %v6979_v17 = vmul.f32 0.5, %v6947_v4  ;;  %v6950_v20 = vadd.f32 %v12665_v31, %v6911_v29  ;;  %v6909_v52 = vadd.f32 %v6808_v37, %v6583_v26 }
 0x42d   : > { %7719 = vtanh.f32 %v6979_v17  ;;  %v6982_v43 = vmul.f32 0.5, %v6950_v20  ;;  %v6948_v46 = vadd.f32 %v12665_v31, %v6909_v52 }
 0x42f   : > { %7721 = vtanh.f32 %v6982_v43  ;;  %v6980_v13 = vmul.f32 0.5, %v6948_v46  ;;  %v7640_v29 = vpop.f32.mrf.mxu0 }
 0x431   : > { %7723 = vtanh.f32 %v6980_v13  ;;  %v6511_v52 = vpop.f32.mrf.mxu0 }
 0x433   : > { %v7641_v28 = vpop.f32.mrf.mxu0 }
 0x438   : > { %v7718_v50 = vpop.eup %7717 }
 0x439   : > { %v7045_v59 = vadd.f32 1.0, %v7718_v50  ;;  %v13579_v50 = vld [vmem:[#allocation14_spill] sm:$0xff] }
 0x43a   : > { %v7720_v15 = vpop.eup %7719 }
 0x43b   : > { %v7077_v2 = vmul.f32 0.5, %v7045_v59  ;;  %v7043_v61 = vadd.f32 1.0, %v7720_v15  ;;  %v13580_v59 = vld [vmem:[#allocation46_spill] sm:$0xff] }
 0x43c   : > { %v7722_v40 = vpop.eup %7721  ;;  %v6258_v15 = vadd.f32 %v13580_v59, %v13579_v50 }
 0x43d   : > { %v7109_v56 = vmul.f32 %v7077_v2, %v6949_v62  ;;  %v7075_v16 = vmul.f32 0.5, %v7043_v61  ;;  %v7046_v25 = vadd.f32 1.0, %v7722_v40 }
 0x43e   : > { %v7724_v0 = vpop.eup %7723 }
 0x43f   : > { %7142 = vst.msk [vmem:[%s12687_s4 + $0x50] sm:$0xff] %vm7131_vm1, %v7109_v56  ;;  %v7107_v8 = vmul.f32 %v7075_v16, %v6947_v4  ;;  %v7078_v45 = vmul.f32 0.5, %v7046_v25  ;;  %v7044_v27 = vadd.f32 1.0, %v7724_v0  ;;  %v13581_v16 = vld [vmem:[#allocation44_spill] sm:$0xff] }
 0x440   : > { %v13582_v25 = vld [vmem:[#allocation40_spill] sm:$0xff] }
 0x441   : > { %7140 = vst.msk [vmem:[%s12687_s4 + $0x40] sm:$0xff] %vm7131_vm1, %v7107_v8  ;;  %v7110_v58 = vmul.f32 %v7078_v45, %v6950_v20  ;;  %v7076_v49 = vmul.f32 0.5, %v7044_v27  ;;  %v6250_v0 = vadd.f32 %v13582_v25, %v13581_v16  ;;  %v6592_v45 = vadd.f32 %v7640_v29, %v6258_v15 }
 0x443   : > { %7143 = vst.msk [vmem:[%s12687_s4 + $0x58] sm:$0xff] %vm7131_vm1, %v7110_v58  ;;  %v7108_v42 = vmul.f32 %v7076_v49, %v6948_v46  ;;  %v13583_v49 = vld [vmem:[#allocation48_spill] sm:$0xff]  ;;  %v6590_v12 = vadd.f32 %v6511_v52, %v6250_v0  ;;  %v13587_v52 = vld [vmem:[#allocation49_spill] sm:$0xff] }
 0x445   : > { %7141 = vst.msk [vmem:[%s12687_s4 + $0x48] sm:$0xff] %vm7131_vm1, %v7108_v42  ;;  %v6261_v42 = vadd.f32 %v13584_v38, %v13583_v49 }
 0x447   : > { %v6593_v47 = vadd.f32 %v7641_v28, %v6261_v42  ;;  %v13591_v28 = vld [vmem:[#allocation52_spill] sm:$0xff] }
 0x448   : > { %v7670_v55 = vpop.f32.mrf.mxu1 }
 0x449   : > { %v6914_v41 = vadd.f32 %v7670_v55, %v6588_v36  ;;  %v6253_v36 = vadd.f32 %v13586_v10, %v13585_v1  ;;  %v6514_v55 = vpop.f32.mrf.mxu0 }
 0x44a   : > { %v6821_v48 = vpop.f32.mrf.mxu1 }
 0x44b   : > { %v6953_v54 = vadd.f32 %v12665_v31, %v6914_v41  ;;  %v6912_v21 = vadd.f32 %v6821_v48, %v6586_v22  ;;  %v6591_v14 = vadd.f32 %v6514_v55, %v6253_v36 }
 0x44c   : > { %v7671_v57 = vpop.f32.mrf.mxu1 }
 0x44d   : > { %v6985_v53 = vmul.f32 0.5, %v6953_v54  ;;  %v6951_v7 = vadd.f32 %v12665_v31, %v6912_v21  ;;  %v6915_v6 = vadd.f32 %v7671_v57, %v6589_v63 }
 0x44e   : > { %v6824_v30 = vpop.f32.mrf.mxu1 }
 0x44f   : > { %7725 = vtanh.f32 %v6985_v53  ;;  %v6983_v62 = vmul.f32 0.5, %v6951_v7  ;;  %v6954_v33 = vadd.f32 %v12665_v31, %v6915_v6  ;;  %v6913_v39 = vadd.f32 %v6824_v30, %v6587_v35 }
 0x451   : > { %7727 = vtanh.f32 %v6983_v62  ;;  %v6986_v18 = vmul.f32 0.5, %v6954_v33  ;;  %v6952_v26 = vadd.f32 %v12665_v31, %v6913_v39 }
 0x453   : > { %7729 = vtanh.f32 %v6986_v18  ;;  %v6984_v4 = vmul.f32 0.5, %v6952_v26 }
 0x455   : > { %7731 = vtanh.f32 %v6984_v4 }
 0x45c   : > { %v7726_v37 = vpop.eup %7725 }
 0x45d   : > { %v7049_v17 = vadd.f32 1.0, %v7726_v37 }
 0x45e   : > { %v7728_v20 = vpop.eup %7727 }
 0x45f   : > { %v7081_v43 = vmul.f32 0.5, %v7049_v17  ;;  %v7047_v46 = vadd.f32 1.0, %v7728_v20  ;;  %v7644_v6 = vpop.f32.mrf.mxu0 }
 0x460   : > { %v7730_v13 = vpop.eup %7729 }
 0x461   : > { %v7113_v2 = vmul.f32 %v7081_v43, %v6953_v54  ;;  %v7079_v61 = vmul.f32 0.5, %v7047_v46  ;;  %v7050_v40 = vadd.f32 1.0, %v7730_v13  ;;  %v13588_v43 = vld [vmem:[#allocation53_spill] sm:$0xff] }
 0x462   : > { %v7732_v56 = vpop.eup %7731  ;;  %v6274_v46 = vadd.f32 %v13588_v43, %v13587_v52  ;;  %v13598_v52 = vld [vmem:[#allocation65_spill] sm:$0xff] }
 0x463   : > { %7146 = vst.msk [vmem:[%s12687_s4 + $0x70] sm:$0xff] %vm7131_vm1, %v7113_v2  ;;  %v7111_v8 = vmul.f32 %v7079_v61, %v6951_v7  ;;  %v7082_v27 = vmul.f32 0.5, %v7050_v40  ;;  %v7048_v58 = vadd.f32 1.0, %v7732_v56  ;;  %v13589_v2 = vld [vmem:[#allocation50_spill] sm:$0xff]  ;;  %v13590_v61 = vld [vmem:[#allocation55_spill] sm:$0xff] }
 0x464   : > { %v6266_v40 = vadd.f32 %v13590_v61, %v13589_v2  ;;  %v6596_v56 = vadd.f32 %v7644_v6, %v6274_v46 }
 0x465   : > { %v7674_v44 = vpop.f32.mrf.mxu1  ;;  %7144 = vst.msk [vmem:[%s12687_s4 + $0x60] sm:$0xff] %vm7131_vm1, %v7111_v8  ;;  %v7114_v11 = vmul.f32 %v7082_v27, %v6954_v33  ;;  %v7080_v9 = vmul.f32 0.5, %v7048_v58  ;;  %v13592_v8 = vld [vmem:[#allocation57_spill] sm:$0xff] }
 0x466   : > { %v6918_v19 = vadd.f32 %v7674_v44, %v6592_v45  ;;  %v6277_v45 = vadd.f32 %v13592_v8, %v13591_v28  ;;  %v13593_v44 = vld [vmem:[#allocation54_spill] sm:$0xff]  ;;  %v13601_v28 = vld [vmem:[#allocation20_spill] sm:$0xff] }
 0x467   : > { %v6837_v34 = vpop.f32.mrf.mxu1  ;;  %7147 = vst.msk [vmem:[%s12687_s4 + $0x78] sm:$0xff] %vm7131_vm1, %v7114_v11  ;;  %v7112_v3 = vmul.f32 %v7080_v9, %v6952_v26  ;;  %v6527_v26 = vpop.f32.mrf.mxu0  ;;  %v13594_v11 = vld [vmem:[#allocation59_spill] sm:$0xff] }
 0x468   : > { %v6957_v22 = vadd.f32 %v12665_v31, %v6918_v19  ;;  %v6916_v41 = vadd.f32 %v6837_v34, %v6590_v12  ;;  %v6594_v27 = vadd.f32 %v6527_v26, %v6266_v40  ;;  %v6269_v12 = vadd.f32 %v13594_v11, %v13593_v44 }
 0x469   : > { %v7675_v24 = vpop.f32.mrf.mxu1  ;;  %7145 = vst.msk [vmem:[%s12687_s4 + $0x68] sm:$0xff] %vm7131_vm1, %v7112_v3  ;;  %v7645_v15 = vpop.f32.mrf.mxu0 }
 0x46a   : > { %v6989_v48 = vmul.f32 0.5, %v6957_v22  ;;  %v6955_v60 = vadd.f32 %v12665_v31, %v6916_v41  ;;  %v6919_v23 = vadd.f32 %v7675_v24, %v6593_v47  ;;  %v6597_v9 = vadd.f32 %v7645_v15, %v6277_v45  ;;  %v13599_v15 = vld [vmem:[#allocation60_spill] sm:$0xff] }
 0x46b   : > { %v6840_v63 = vpop.f32.mrf.mxu1  ;;  %v6530_v38 = vpop.f32.mrf.mxu0  ;;  %v6293_v2 = vadd.f32 %v12553_v5, %v13599_v15 }
 0x46c   : > { %7733 = vtanh.f32 %v6989_v48  ;;  %v6987_v54 = vmul.f32 0.5, %v6955_v60  ;;  %v6958_v21 = vadd.f32 %v12665_v31, %v6919_v23  ;;  %v6917_v57 = vadd.f32 %v6840_v63, %v6591_v14 }
 0x46d   : > { %v6595_v55 = vadd.f32 %v6530_v38, %v6269_v12 }
 0x46e   : > { %7735 = vtanh.f32 %v6987_v54  ;;  %v6990_v53 = vmul.f32 0.5, %v6958_v21  ;;  %v6956_v35 = vadd.f32 %v12665_v31, %v6917_v57 }
 0x470   : > { %7737 = vtanh.f32 %v6990_v53  ;;  %v6988_v7 = vmul.f32 0.5, %v6956_v35 }
 0x472   : > { %7739 = vtanh.f32 %v6988_v7 }
 0x479   : > { %v7734_v30 = vpop.eup %7733 }
 0x47a   : > { %v7053_v62 = vadd.f32 1.0, %v7734_v30 }
 0x47b   : > { %v7736_v33 = vpop.eup %7735 }
 0x47c   : > { %v7085_v39 = vmul.f32 0.5, %v7053_v62  ;;  %v7051_v18 = vadd.f32 1.0, %v7736_v33  ;;  %v7648_v63 = vpop.f32.mrf.mxu0 }
 0x47d   : > { %v7738_v4 = vpop.eup %7737 }
 0x47e   : > { %v7117_v29 = vmul.f32 %v7085_v39, %v6957_v22  ;;  %v7083_v37 = vmul.f32 0.5, %v7051_v18  ;;  %v7054_v17 = vadd.f32 1.0, %v7738_v4  ;;  %v6543_v7 = vpop.f32.mrf.mxu0  ;;  %v13595_v39 = vld [vmem:[#allocation56_spill] sm:$0xff]  ;;  %v13596_v18 = vld [vmem:[#allocation61_spill] sm:$0xff] }
 0x47f   : > { %v7740_v20 = vpop.eup %7739  ;;  %v6290_v26 = vadd.f32 %v13596_v18, %v13595_v39 }
 0x480   : > { %7150 = vst.msk [vmem:[%s12687_s4 + $0x90] sm:$0xff] %vm7131_vm1, %v7117_v29  ;;  %v7115_v13 = vmul.f32 %v7083_v37, %v6955_v60  ;;  %v7086_v50 = vmul.f32 0.5, %v7054_v17  ;;  %v7052_v59 = vadd.f32 1.0, %v7740_v20  ;;  %v7649_v17 = vpop.f32.mrf.mxu0  ;;  %v13597_v20 = vld [vmem:[#allocation58_spill] sm:$0xff] }
 0x481   : > { %v6282_v43 = vadd.f32 %v13598_v52, %v13597_v20  ;;  %v6600_v46 = vadd.f32 %v7648_v63, %v6290_v26  ;;  %v6601_v45 = vadd.f32 %v7649_v17, %v6293_v2 }
 0x482   : > { %7148 = vst.msk [vmem:[%s12687_s4 + $0x80] sm:$0xff] %vm7131_vm1, %v7115_v13  ;;  %v7118_v16 = vmul.f32 %v7086_v50, %v6958_v21  ;;  %v7084_v25 = vmul.f32 0.5, %v7052_v59  ;;  %v7678_v0 = vpop.f32.mrf.mxu1 }
 0x483   : > { %v6922_v58 = vadd.f32 %v7678_v0, %v6596_v56  ;;  %v6598_v61 = vadd.f32 %v6543_v7, %v6282_v43  ;;  %v13600_v0 = vld [vmem:[#allocation62_spill] sm:$0xff] }
 0x484   : > { %7151 = vst.msk [vmem:[%s12687_s4 + $0x98] sm:$0xff] %vm7131_vm1, %v7118_v16  ;;  %v7116_v49 = vmul.f32 %v7084_v25, %v6956_v35  ;;  %v6853_v42 = vpop.f32.mrf.mxu1  ;;  %v6546_v16 = vpop.f32.mrf.mxu0  ;;  %v6285_v8 = vadd.f32 %v13601_v28, %v13600_v0 }
 0x485   : > { %v6961_v19 = vadd.f32 %v12665_v31, %v6922_v58  ;;  %v6920_v1 = vadd.f32 %v6853_v42, %v6594_v27 }
 0x486   : > { %7149 = vst.msk [vmem:[%s12687_s4 + $0x88] sm:$0xff] %vm7131_vm1, %v7116_v49  ;;  %v7679_v10 = vpop.f32.mrf.mxu1  ;;  %v6599_v42 = vadd.f32 %v6546_v16, %v6285_v8 }
 0x487   : > { %v6993_v36 = vmul.f32 0.5, %v6961_v19  ;;  %v6959_v34 = vadd.f32 %v12665_v31, %v6920_v1  ;;  %v6923_v3 = vadd.f32 %v7679_v10, %v6597_v9 }
 0x488   : > { %v6856_v47 = vpop.f32.mrf.mxu1 }
 0x489   : > { %7741 = vtanh.f32 %v6993_v36  ;;  %v6991_v22 = vmul.f32 0.5, %v6959_v34  ;;  %v6962_v41 = vadd.f32 %v12665_v31, %v6923_v3  ;;  %v6921_v24 = vadd.f32 %v6856_v47, %v6595_v55 }
 0x48b   : > { %7743 = vtanh.f32 %v6991_v22  ;;  %v6994_v48 = vmul.f32 0.5, %v6962_v41  ;;  %v6960_v14 = vadd.f32 %v12665_v31, %v6921_v24 }
 0x48d   : > { %7745 = vtanh.f32 %v6994_v48  ;;  %v6992_v60 = vmul.f32 0.5, %v6960_v14 }
 0x48f   : > { %7747 = vtanh.f32 %v6992_v60 }
 0x496   : > { %v7742_v23 = vpop.eup %7741 }
 0x497   : > { %v7057_v54 = vadd.f32 1.0, %v7742_v23 }
 0x498   : > { %v7744_v21 = vpop.eup %7743 }
 0x499   : > { %v7089_v57 = vmul.f32 0.5, %v7057_v54  ;;  %v7055_v53 = vadd.f32 1.0, %v7744_v21  ;;  %v13602_v54 = vld [vmem:[#allocation67_spill] sm:$0xff]  ;;  %v13603_v21 = vld [vmem:[#allocation22_spill] sm:$0xff] }
 0x49a   : > { %v7746_v35 = vpop.eup %7745 }
 0x49b   : > { %v7121_v6 = vmul.f32 %v7089_v57, %v6961_v19  ;;  %v7087_v30 = vmul.f32 0.5, %v7055_v53  ;;  %v7058_v62 = vadd.f32 1.0, %v7746_v35  ;;  %v6306_v57 = vadd.f32 %v13603_v21, %v13602_v54 }
 0x49c   : > { %v7748_v33 = vpop.eup %7747 }
 0x49d   : > { %7154 = vst.msk [vmem:[%s12687_s4 + $0xb0] sm:$0xff] %vm7131_vm1, %v7121_v6  ;;  %v7119_v4 = vmul.f32 %v7087_v30, %v6959_v34  ;;  %v7090_v29 = vmul.f32 0.5, %v7058_v62  ;;  %v7056_v37 = vadd.f32 1.0, %v7748_v33  ;;  %v7652_v34 = vpop.f32.mrf.mxu0  ;;  %v13604_v30 = vld [vmem:[#allocation69_spill] sm:$0xff]  ;;  %v13605_v62 = vld [vmem:[#allocation24_spill] sm:$0xff] }
 0x49e   : > { %v6298_v33 = vadd.f32 %v13605_v62, %v13604_v30  ;;  %v6604_v39 = vadd.f32 %v7652_v34, %v6306_v57 }
 0x49f   : > { %7152 = vst.msk [vmem:[%s12687_s4 + $0xa0] sm:$0xff] %vm7131_vm1, %v7119_v4  ;;  %v7122_v13 = vmul.f32 %v7090_v29, %v6962_v41  ;;  %v7088_v50 = vmul.f32 0.5, %v7056_v37  ;;  %v6559_v48 = vpop.f32.mrf.mxu0  ;;  %v13606_v29 = vld [vmem:[#allocation21_spill] sm:$0xff] }
 0x4a0   : > { %v7682_v59 = vpop.f32.mrf.mxu1  ;;  %v6309_v37 = vadd.f32 %v12620_v51, %v13606_v29  ;;  %v6602_v17 = vadd.f32 %v6559_v48, %v6298_v33 }
 0x4a1   : > { %7155 = vst.msk [vmem:[%s12687_s4 + $0xb8] sm:$0xff] %vm7131_vm1, %v7122_v13  ;;  %v7120_v40 = vmul.f32 %v7088_v50, %v6960_v14  ;;  %v6926_v56 = vadd.f32 %v7682_v59, %v6600_v46  ;;  %v7653_v6 = vpop.f32.mrf.mxu0  ;;  %v13607_v13 = vld [vmem:[#allocation23_spill] sm:$0xff] }
 0x4a2   : > { %v6869_v25 = vpop.f32.mrf.mxu1  ;;  %v6301_v50 = vadd.f32 %v12634_v32, %v13607_v13  ;;  %v6605_v59 = vadd.f32 %v7653_v6, %v6309_v37 }
 0x4a3   : > { %7153 = vst.msk [vmem:[%s12687_s4 + $0xa8] sm:$0xff] %vm7131_vm1, %v7120_v40  ;;  %v6965_v27 = vadd.f32 %v12665_v31, %v6926_v56  ;;  %v6924_v58 = vadd.f32 %v6869_v25, %v6598_v61  ;;  %v6562_v43 = vpop.f32.mrf.mxu0 }
 0x4a4   : > { %v7683_v49 = vpop.f32.mrf.mxu1  ;;  %v6603_v56 = vadd.f32 %v6562_v43, %v6301_v50 }
 0x4a5   : > { %v6997_v38 = vmul.f32 0.5, %v6965_v27  ;;  %v6963_v5 = vadd.f32 %v12665_v31, %v6924_v58  ;;  %v6927_v44 = vadd.f32 %v7683_v49, %v6601_v45 }
 0x4a6   : > { %v6872_v11 = vpop.f32.mrf.mxu1 }
 0x4a7   : > { %7749 = vtanh.f32 %v6997_v38  ;;  %v6995_v12 = vmul.f32 0.5, %v6963_v5  ;;  %v6966_v9 = vadd.f32 %v12665_v31, %v6927_v44  ;;  %v6925_v19 = vadd.f32 %v6872_v11, %v6599_v42 }
 0x4a9   : > { %7751 = vtanh.f32 %v6995_v12  ;;  %v6998_v1 = vmul.f32 0.5, %v6966_v9  ;;  %v6964_v10 = vadd.f32 %v12665_v31, %v6925_v19 }
 0x4ab   : > { %7753 = vtanh.f32 %v6998_v1  ;;  %v6996_v36 = vmul.f32 0.5, %v6964_v10 }
 0x4ad   : > { %7755 = vtanh.f32 %v6996_v36 }
 0x4b4   : > { %v7750_v55 = vpop.eup %7749 }
 0x4b5   : > { %v7061_v3 = vadd.f32 1.0, %v7750_v55 }
 0x4b6   : > { %v7752_v47 = vpop.eup %7751 }
 0x4b7   : > { %v7093_v22 = vmul.f32 0.5, %v7061_v3  ;;  %v7059_v41 = vadd.f32 1.0, %v7752_v47 }
 0x4b8   : > { %v7754_v24 = vpop.eup %7753 }
 0x4b9   : > { %v7125_v14 = vmul.f32 %v7093_v22, %v6965_v27  ;;  %v7091_v60 = vmul.f32 0.5, %v7059_v41  ;;  %v7062_v23 = vadd.f32 1.0, %v7754_v24 }
 0x4ba   : > { %v7756_v63 = vpop.eup %7755 }
 0x4bb   : > { %7158 = vst.msk [vmem:[%s12687_s4 + $0xd0] sm:$0xff] %vm7131_vm1, %v7125_v14  ;;  %v7123_v53 = vmul.f32 %v7091_v60, %v6963_v5  ;;  %v7094_v35 = vmul.f32 0.5, %v7062_v23  ;;  %v7060_v7 = vadd.f32 1.0, %v7756_v63 }
 0x4bd   : > { %7156 = vst.msk [vmem:[%s12687_s4 + $0xc0] sm:$0xff] %vm7131_vm1, %v7123_v53  ;;  %v7126_v18 = vmul.f32 %v7094_v35, %v6966_v9  ;;  %v7092_v26 = vmul.f32 0.5, %v7060_v7 }
 0x4be   : > { %v7686_v4 = vpop.f32.mrf.mxu1 }
 0x4bf   : > { %7159 = vst.msk [vmem:[%s12687_s4 + $0xd8] sm:$0xff] %vm7131_vm1, %v7126_v18  ;;  %v7124_v20 = vmul.f32 %v7092_v26, %v6964_v10  ;;  %v6930_v52 = vadd.f32 %v7686_v4, %v6604_v39 }
 0x4c0   : > { %v6885_v46 = vpop.f32.mrf.mxu1 }
 0x4c1   : > { %7157 = vst.msk [vmem:[%s12687_s4 + $0xc8] sm:$0xff] %vm7131_vm1, %v7124_v20  ;;  %v6969_v15 = vadd.f32 %v12665_v31, %v6930_v52  ;;  %v6928_v2 = vadd.f32 %v6885_v46, %v6602_v17 }
 0x4c2   : > { %v7687_v61 = vpop.f32.mrf.mxu1 }
 0x4c3   : > { %v7001_v40 = vmul.f32 0.5, %v6969_v15  ;;  %v6967_v51 = vadd.f32 %v12665_v31, %v6928_v2  ;;  %v6931_v16 = vadd.f32 %v7687_v61, %v6605_v59 }
 0x4c4   : > { %v6888_v25 = vpop.f32.mrf.mxu1 }
 0x4c5   : > { %7757 = vtanh.f32 %v7001_v40  ;;  %v6999_v0 = vmul.f32 0.5, %v6967_v51  ;;  %v6970_v28 = vadd.f32 %v12665_v31, %v6931_v16  ;;  %v6929_v8 = vadd.f32 %v6888_v25, %v6603_v56 }
 0x4c7   : > { %7759 = vtanh.f32 %v6999_v0  ;;  %v7002_v32 = vmul.f32 0.5, %v6970_v28  ;;  %v6968_v45 = vadd.f32 %v12665_v31, %v6929_v8 }
 0x4c9   : > { %7761 = vtanh.f32 %v7002_v32  ;;  %v7000_v27 = vmul.f32 0.5, %v6968_v45 }
 0x4cb   : > { %7763 = vtanh.f32 %v7000_v27 }
 0x4d2   : > { %v7758_v58 = vpop.eup %7757 }
 0x4d3   : > { %v7065_v49 = vadd.f32 1.0, %v7758_v58 }
 0x4d4   : > { %v7760_v38 = vpop.eup %7759 }
 0x4d5   : > { %v7097_v42 = vmul.f32 0.5, %v7065_v49  ;;  %v7063_v5 = vadd.f32 1.0, %v7760_v38 }
 0x4d6   : > { %v7762_v44 = vpop.eup %7761 }
 0x4d7   : > { %v7129_v11 = vmul.f32 %v7097_v42, %v6969_v15  ;;  %v7095_v12 = vmul.f32 0.5, %v7063_v5  ;;  %v7066_v9 = vadd.f32 1.0, %v7762_v44 }
 0x4d8   : > { %v7764_v19 = vpop.eup %7763 }
 0x4d9   : > { %7162 = vst.msk [vmem:[%s12687_s4 + $0xf0] sm:$0xff] %vm7131_vm1, %v7129_v11  ;;  %v7127_v1 = vmul.f32 %v7095_v12, %v6967_v51  ;;  %v7098_v31 = vmul.f32 0.5, %v7066_v9  ;;  %v7064_v10 = vadd.f32 1.0, %v7764_v19 }
 0x4db   : > { %7160 = vst.msk [vmem:[%s12687_s4 + $0xe0] sm:$0xff] %vm7131_vm1, %v7127_v1  ;;  %v7130_v36 = vmul.f32 %v7098_v31, %v6970_v28  ;;  %v7096_v55 = vmul.f32 0.5, %v7064_v10 }
 0x4dd   : > { %7163 = vst.msk [vmem:[%s12687_s4 + $0xf8] sm:$0xff] %vm7131_vm1, %v7130_v36  ;;  %v7128_v34 = vmul.f32 %v7096_v55, %v6968_v45 }
 0x4df   : > { %7161 = vst.msk [vmem:[%s12687_s4 + $0xe8] sm:$0xff] %vm7131_vm1, %v7128_v34 }
 0x4e0 PF: > { %s13_s12 = sadd.s32 1, %s7774_s12  }
 0x4e1   : > { %p10_p4 = scmp.ge.s32.totalorder %s13_s12, 4  }
 0x4e3   :  { %12 = sbr.rel (!%p10_p4) target bundleno = 1 (0x1), region = 67 }

</bundles_post_ra>
